<compile_context>
chip_gen: v6e
topology: v6e:2x2x1
jax: 0.10.0
libtpu: 0.0.40
codegen_flags: <defaults>
</compile_context>

<pallas_src>
import functools

import jax
import jax.numpy as jnp
from jax import lax
from jax.experimental import pallas as pl
from jax.experimental.pallas import tpu as pltpu

NEG_SLOPE = 0.01              # torch.nn.LeakyReLU default negative_slope
DILATIONS = (1, 2, 4, 8)
PAD = max(DILATIONS)          # shared halo width (8) covers every dilation


def _row_tile(h):
    """Largest row-tile in (8, 4, 2, 1) that divides H."""
    for t in (8, 4, 2):
        if h % t == 0:
            return t
    return 1


def _dilate_block_kernel(x_ref, w_ref, b_ref, out_ref, pad_a, pad_b,
                         *, H, W, C, TH):
    """Fused Dilate_block for one batch element (all four layers + residual).

    x_ref   : (1, H, W, C)            NHWC input block (VMEM, input dtype)
    w_ref   : (4*9, C, C)             per-(layer, tap) (Cin, Cout) bf16 weights
    b_ref   : (4, 1, C)               per-layer bias (f32)
    out_ref : (1, H, W, C)            x + d1 + d2 + d3 + d4
    pad_a/b : (H+2*PAD, W+2*PAD, C)   bf16 zero-haloed ping-pong activations
    """
    Hp, Wp = H + 2 * PAD, W + 2 * PAD
    num_tiles = H // TH

    # ---- zero only the halo strips of both activation buffers -------------
    # The interiors are fully overwritten every grid step; the halos are
    # never written, giving exact "same" zero padding for every dilation.
    for buf in (pad_a, pad_b):
        buf[0:PAD, 0:Wp, :] = jnp.zeros((PAD, Wp, C), jnp.bfloat16)
        buf[PAD + H:Hp, 0:Wp, :] = jnp.zeros((PAD, Wp, C), jnp.bfloat16)
        buf[PAD:PAD + H, 0:PAD, :] = jnp.zeros((H, PAD, C), jnp.bfloat16)
        buf[PAD:PAD + H, PAD + W:Wp, :] = jnp.zeros((H, PAD, C), jnp.bfloat16)

    # Layer-1 input: x (cast to bf16) in the interior of buffer A.
    pad_a[PAD:PAD + H, PAD:PAD + W, :] = x_ref[0].astype(jnp.bfloat16)

    # Ping-pong schedule: layer l reads src, writes dst (last layer's output
    # only feeds the residual sum, so it is not written back).
    src_dst = ((pad_a, pad_b), (pad_b, pad_a), (pad_a, pad_b), (pad_b, None))

    for l, d in enumerate(DILATIONS):
        src, dst = src_dst[l]
        bias = b_ref[l].astype(jnp.float32)                 # (1, C), broadcasts

        def layer_body(t, carry, src=src, dst=dst, l=l, d=d, bias=bias):
            row = t * TH                                     # interior row offset
            # 9-tap accumulation in a local value (vregs / MXU result path):
            # bf16 operands, f32 accumulation.  First tap seeds the acc.
            acc = None
            for ky in range(3):
                r0 = PAD + (ky - 1) * d
                for kx in range(3):
                    c0 = PAD + (kx - 1) * d
                    patch = src[pl.ds(row + r0, TH), c0:c0 + W, :]   # (TH,W,Cin) bf16
                    wk = w_ref[l * 9 + ky * 3 + kx]                  # (Cin,Cout) bf16
                    contrib = lax.dot_general(
                        patch, wk,
                        dimension_numbers=(((2,), (0,)), ((), ())),
                        preferred_element_type=jnp.float32)
                    acc = contrib if acc is None else acc + contrib
            y = acc + bias                                   # f32
            y = jnp.where(y >= 0, y, NEG_SLOPE * y)          # LeakyReLU(0.01)

            # Residual accumulation directly into the VMEM-resident output.
            if l == 0:
                x_tile = x_ref[0, pl.ds(row, TH), :, :].astype(jnp.float32)
                out_ref[0, pl.ds(row, TH), :, :] = (x_tile + y).astype(out_ref.dtype)
            else:
                out_ref[0, pl.ds(row, TH), :, :] += y.astype(out_ref.dtype)

            if dst is not None:                              # next layer's input
                dst[pl.ds(PAD + row, TH), PAD:PAD + W, :] = y.astype(jnp.bfloat16)
            return carry

        lax.fori_loop(0, num_tiles, layer_body, 0)


@jax.jit
def dilate_block(x_nchw, params):
    """Full Dilate_block forward. Input/output in NCHW (PyTorch convention)."""
    N, C, H, W = x_nchw.shape
    x = jnp.transpose(x_nchw, (0, 2, 3, 1))                  # NCHW -> NHWC

    # Pack the four layers' weights once: OIHW -> (layer, kh, kw, Cin, Cout)
    # -> flat (4*9, Cin, Cout) bf16; biases -> (4, 1, C) f32.
    w = jnp.stack([params[f"w{i}"] for i in range(1, 5)], axis=0)
    w = jnp.transpose(w, (0, 3, 4, 2, 1)).reshape(4 * 9, C, C).astype(jnp.bfloat16)
    b = jnp.stack([params[f"b{i}"] for i in range(1, 5)], axis=0)
    b = b.reshape(4, 1, C).astype(jnp.float32)

    Hp, Wp = H + 2 * PAD, W + 2 * PAD
    TH = _row_tile(H)
    kernel = functools.partial(_dilate_block_kernel, H=H, W=W, C=C, TH=TH)

    # VMEM budget from the actual footprint (+25% headroom), clamped.
    itemsize = jnp.dtype(x_nchw.dtype).itemsize
    pad_bytes = 2 * Hp * Wp * C * 2                 # two bf16 ping-pong buffers
    io_bytes = 2 * 2 * H * W * C * itemsize         # in + out, double-buffered
    wb_bytes = 2 * (4 * 9 * C * C * 2 + 4 * C * 4)  # weights + bias (double-buffered)
    vmem_limit = int(min(96 << 20,
                         max(16 << 20,
                             1.25 * (pad_bytes + io_bytes + wb_bytes) + (2 << 20))))

    out_nhwc = pl.pallas_call(
        kernel,
        out_shape=jax.ShapeDtypeStruct((N, H, W, C), x_nchw.dtype),
        grid_spec=pltpu.PrefetchScalarGridSpec(
            num_scalar_prefetch=0,
            grid=(N,),
            in_specs=[
                pl.BlockSpec((1, H, W, C), lambda n: (n, 0, 0, 0)),   # x
                pl.BlockSpec((4 * 9, C, C), lambda n: (0, 0, 0)),     # weights
                pl.BlockSpec((4, 1, C), lambda n: (0, 0, 0)),         # biases
            ],
            out_specs=pl.BlockSpec((1, H, W, C), lambda n: (n, 0, 0, 0)),
            scratch_shapes=[
                pltpu.VMEM((Hp, Wp, C), jnp.bfloat16),   # activation ping
                pltpu.VMEM((Hp, Wp, C), jnp.bfloat16),   # activation pong
            ],
        ),
        compiler_params=pltpu.CompilerParams(
            dimension_semantics=("parallel",),
            vmem_limit_bytes=vmem_limit,
        ),
    )(x, w, b)

    return jnp.transpose(out_nhwc, (0, 3, 1, 2))              # NHWC -> NCHW


def init_params(channel, key):
    """Deterministic synthetic weights in PyTorch OIHW layout; biases zero
    (the PyTorch module zeroes conv biases in __init__)."""
    keys = jax.random.split(key, 4)
    scale = 1.0 / jnp.sqrt(jnp.float32(channel * 9))
    params = {}
    for i, k in enumerate(keys, start=1):
        params[f"w{i}"] = (
            jax.random.normal(k, (channel, channel, 3, 3), jnp.float32) * scale
        )
        params[f"b{i}"] = jnp.zeros((channel,), jnp.float32)
    return params


# ---- pure-JAX references for correctness checks -----------------------------
def _ref_conv_lrelu(x_nchw, w_oihw, bias, d, compute_dtype):
    y = lax.conv_general_dilated(
        x_nchw.astype(compute_dtype), w_oihw.astype(compute_dtype),
        window_strides=(1, 1),
        padding=((d, d), (d, d)),
        rhs_dilation=(d, d),
        dimension_numbers=("NCHW", "OIHW", "NCHW"),
        preferred_element_type=jnp.float32,
    ) + bias[None, :, None, None].astype(jnp.float32)
    return jnp.where(y >= 0, y, NEG_SLOPE * y)


def _ref_dilate_block(x_nchw, params, compute_dtype=jnp.float32):
    d1 = _ref_conv_lrelu(x_nchw, params["w1"], params["b1"], 1, compute_dtype)
    d2 = _ref_conv_lrelu(d1, params["w2"], params["b2"], 2, compute_dtype)
    d3 = _ref_conv_lrelu(d2, params["w3"], params["b3"], 4, compute_dtype)
    d4 = _ref_conv_lrelu(d3, params["w4"], params["b4"], 8, compute_dtype)
    return x_nchw + d1 + d2 + d3 + d4


if __name__ == "__main__":
    key = jax.random.PRNGKey(0)
    kx, kp = jax.random.split(key)

    N, C, H, W = 2, 4, 16, 16   # small NCHW input, matches module semantics
    x = jax.random.normal(kx, (N, C, H, W), jnp.float32)
    params = init_params(C, kp)

    out = jax.block_until_ready(dilate_block(x, params))
    assert out.shape == (N, C, H, W), out.shape

    # Tight check against a reference that uses the same bf16 operands /
    # f32 accumulation as the kernel (verifies indexing, chaining, residual).
    ref_bf16 = jax.block_until_ready(
        _ref_dilate_block(x, params, compute_dtype=jnp.bfloat16))
    err_bf16 = float(jnp.max(jnp.abs(out - ref_bf16)))
    assert err_bf16 < 3e-3, err_bf16

    # Loose sanity check against the full-f32 PyTorch-equivalent reference
    # (bf16 MXU operands loosen the tolerance, as expected).
    ref_f32 = jax.block_until_ready(
        _ref_dilate_block(x, params, compute_dtype=jnp.float32))
    err_f32 = float(jnp.max(jnp.abs(out - ref_f32)))
    assert err_f32 < 2e-1, err_f32

    print("KERNEL_OK")
</pallas_src>

<mosaic_0001>
module attributes {stable_mosaic.version = 11 : i64} {
  func.func @_dilate_block_kernel(%arg0: i32, %arg1: memref<1x16x16x4xf32, #tpu.memory_space<vmem>>, %arg2: memref<36x4x4xbf16, #tpu.memory_space<vmem>>, %arg3: memref<4x1x4xf32, #tpu.memory_space<vmem>>, %arg4: memref<1x16x16x4xf32, #tpu.memory_space<vmem>>, %arg5: memref<32x32x4xbf16, #tpu.memory_space<vmem>>, %arg6: memref<32x32x4xbf16, #tpu.memory_space<vmem>>) attributes {dimension_semantics = [#tpu.dimension_semantics<parallel>], iteration_bounds = array<i64: 2>, scalar_prefetch = 0 : i64, scratch_operands = 2 : i64, tpu.core_type = #tpu.core_type<tc>, window_params = [{transform_indices = @transform_0, window_bounds = array<i64: 1, 16, 16, 4>}, {pipeline_mode = #tpu.pipeline_mode<synchronous>, transform_indices = @transform_1, window_bounds = array<i64: 36, 4, 4>}, {pipeline_mode = #tpu.pipeline_mode<synchronous>, transform_indices = @transform_2, window_bounds = array<i64: 4, 1, 4>}, {transform_indices = @transform_3, window_bounds = array<i64: 1, 16, 16, 4>}]} {
    %cst = arith.constant 0.000000e+00 : bf16
    %0 = vector.broadcast %cst : bf16 to vector<8x32x4xbf16>
    %c0 = arith.constant 0 : index
    %c0_0 = arith.constant 0 : index
    %c0_1 = arith.constant 0 : index
    %1 = vector.load %arg5[%c0, %c0_0, %c0_1] : memref<32x32x4xbf16, #tpu.memory_space<vmem>>, vector<8x32x4xbf16>
    tpu.vector_store %arg5[%c0, %c0_0, %c0_1], %0 {strides = array<i32>} : memref<32x32x4xbf16, #tpu.memory_space<vmem>>, vector<8x32x4xbf16>,
    %cst_2 = arith.constant 0.000000e+00 : bf16
    %2 = vector.broadcast %cst_2 : bf16 to vector<8x32x4xbf16>
    %c24 = arith.constant 24 : index
    %c0_3 = arith.constant 0 : index
    %c0_4 = arith.constant 0 : index
    %3 = vector.load %arg5[%c24, %c0_3, %c0_4] : memref<32x32x4xbf16, #tpu.memory_space<vmem>>, vector<8x32x4xbf16>
    tpu.vector_store %arg5[%c24, %c0_3, %c0_4], %2 {strides = array<i32>} : memref<32x32x4xbf16, #tpu.memory_space<vmem>>, vector<8x32x4xbf16>,
    %cst_5 = arith.constant 0.000000e+00 : bf16
    %4 = vector.broadcast %cst_5 : bf16 to vector<16x8x4xbf16>
    %c8 = arith.constant 8 : index
    %c0_6 = arith.constant 0 : index
    %c0_7 = arith.constant 0 : index
    %5 = vector.load %arg5[%c8, %c0_6, %c0_7] : memref<32x32x4xbf16, #tpu.memory_space<vmem>>, vector<16x8x4xbf16>
    tpu.vector_store %arg5[%c8, %c0_6, %c0_7], %4 {strides = array<i32>} : memref<32x32x4xbf16, #tpu.memory_space<vmem>>, vector<16x8x4xbf16>,
    %cst_8 = arith.constant 0.000000e+00 : bf16
    %6 = vector.broadcast %cst_8 : bf16 to vector<16x8x4xbf16>
    %c8_9 = arith.constant 8 : index
    %c24_10 = arith.constant 24 : index
    %c0_11 = arith.constant 0 : index
    %7 = vector.load %arg5[%c8_9, %c24_10, %c0_11] : memref<32x32x4xbf16, #tpu.memory_space<vmem>>, vector<16x8x4xbf16>
    tpu.vector_store %arg5[%c8_9, %c24_10, %c0_11], %6 {strides = array<i32>} : memref<32x32x4xbf16, #tpu.memory_space<vmem>>, vector<16x8x4xbf16>,
    %cst_12 = arith.constant 0.000000e+00 : bf16
    %8 = vector.broadcast %cst_12 : bf16 to vector<8x32x4xbf16>
    %c0_13 = arith.constant 0 : index
    %c0_14 = arith.constant 0 : index
    %c0_15 = arith.constant 0 : index
    %9 = vector.load %arg6[%c0_13, %c0_14, %c0_15] : memref<32x32x4xbf16, #tpu.memory_space<vmem>>, vector<8x32x4xbf16>
    tpu.vector_store %arg6[%c0_13, %c0_14, %c0_15], %8 {strides = array<i32>} : memref<32x32x4xbf16, #tpu.memory_space<vmem>>, vector<8x32x4xbf16>,
    %cst_16 = arith.constant 0.000000e+00 : bf16
    %10 = vector.broadcast %cst_16 : bf16 to vector<8x32x4xbf16>
    %c24_17 = arith.constant 24 : index
    %c0_18 = arith.constant 0 : index
    %c0_19 = arith.constant 0 : index
    %11 = vector.load %arg6[%c24_17, %c0_18, %c0_19] : memref<32x32x4xbf16, #tpu.memory_space<vmem>>, vector<8x32x4xbf16>
    tpu.vector_store %arg6[%c24_17, %c0_18, %c0_19], %10 {strides = array<i32>} : memref<32x32x4xbf16, #tpu.memory_space<vmem>>, vector<8x32x4xbf16>,
    %cst_20 = arith.constant 0.000000e+00 : bf16
    %12 = vector.broadcast %cst_20 : bf16 to vector<16x8x4xbf16>
    %c8_21 = arith.constant 8 : index
    %c0_22 = arith.constant 0 : index
    %c0_23 = arith.constant 0 : index
    %13 = vector.load %arg6[%c8_21, %c0_22, %c0_23] : memref<32x32x4xbf16, #tpu.memory_space<vmem>>, vector<16x8x4xbf16>
    tpu.vector_store %arg6[%c8_21, %c0_22, %c0_23], %12 {strides = array<i32>} : memref<32x32x4xbf16, #tpu.memory_space<vmem>>, vector<16x8x4xbf16>,
    %cst_24 = arith.constant 0.000000e+00 : bf16
    %14 = vector.broadcast %cst_24 : bf16 to vector<16x8x4xbf16>
    %c8_25 = arith.constant 8 : index
    %c24_26 = arith.constant 24 : index
    %c0_27 = arith.constant 0 : index
    %15 = vector.load %arg6[%c8_25, %c24_26, %c0_27] : memref<32x32x4xbf16, #tpu.memory_space<vmem>>, vector<16x8x4xbf16>
    tpu.vector_store %arg6[%c8_25, %c24_26, %c0_27], %14 {strides = array<i32>} : memref<32x32x4xbf16, #tpu.memory_space<vmem>>, vector<16x8x4xbf16>,
    %c0_28 = arith.constant 0 : index
    %c0_29 = arith.constant 0 : index
    %c0_30 = arith.constant 0 : index
    %c0_31 = arith.constant 0 : index
    %16 = vector.load %arg1[%c0_28, %c0_29, %c0_30, %c0_31] : memref<1x16x16x4xf32, #tpu.memory_space<vmem>>, vector<1x16x16x4xf32>
    %17 = vector.shape_cast %16 : vector<1x16x16x4xf32> to vector<16x16x4xf32>
    %18 = arith.truncf %17 : vector<16x16x4xf32> to vector<16x16x4xbf16>
    %c8_32 = arith.constant 8 : index
    %c8_33 = arith.constant 8 : index
    %c0_34 = arith.constant 0 : index
    %19 = vector.load %arg5[%c8_32, %c8_33, %c0_34] : memref<32x32x4xbf16, #tpu.memory_space<vmem>>, vector<16x16x4xbf16>
    tpu.vector_store %arg5[%c8_32, %c8_33, %c0_34], %18 {strides = array<i32>} : memref<32x32x4xbf16, #tpu.memory_space<vmem>>, vector<16x16x4xbf16>,
    %c0_35 = arith.constant 0 : index
    %c0_36 = arith.constant 0 : index
    %c0_37 = arith.constant 0 : index
    %20 = vector.load %arg3[%c0_35, %c0_36, %c0_37] : memref<4x1x4xf32, #tpu.memory_space<vmem>>, vector<1x1x4xf32>
    %21 = vector.shape_cast %20 : vector<1x1x4xf32> to vector<1x4xf32>
    %c0_i32 = arith.constant 0 : i32
    %c2_i32 = arith.constant 2 : i32
    %22 = arith.addi %c0_i32, %c2_i32 : i32
    %c1_i32 = arith.constant 1 : i32
    scf.for %arg7 = %c0_i32 to %22 step %c1_i32  : i32 {
      %c8_i32 = arith.constant 8 : i32
      %32 = arith.muli %arg7, %c8_i32 : i32
      %c7_i32 = arith.constant 7 : i32
      %33 = arith.addi %32, %c7_i32 : i32
      %34 = arith.index_cast %33 : i32 to index
      %c7 = arith.constant 7 : index
      %c0_57 = arith.constant 0 : index
      %35 = vector.load %arg5[%34, %c7, %c0_57] : memref<32x32x4xbf16, #tpu.memory_space<vmem>>, vector<8x16x4xbf16>
      %c0_58 = arith.constant 0 : index
      %c0_59 = arith.constant 0 : index
      %c0_60 = arith.constant 0 : index
      %36 = vector.load %arg2[%c0_58, %c0_59, %c0_60] : memref<36x4x4xbf16, #tpu.memory_space<vmem>>, vector<1x4x4xbf16>
      %37 = vector.shape_cast %36 : vector<1x4x4xbf16> to vector<4x4xbf16>
      %cst_61 = arith.constant dense<0.000000e+00> : vector<8x16x4xf32>
      %38 = tpu.matmul %35, %37, %cst_61 {dimension_numbers = #tpu.dot_dimension_numbers<[2], [0], [0, 1], [1], [0, 0, 0, 1, 1, 1], [], []>} : vector<8x16x4xbf16>, vector<4x4xbf16>, vector<8x16x4xf32> -> vector<8x16x4xf32>
      %c7_i32_62 = arith.constant 7 : i32
      %39 = arith.addi %32, %c7_i32_62 : i32
      %40 = arith.index_cast %39 : i32 to index
      %c8_63 = arith.constant 8 : index
      %c0_64 = arith.constant 0 : index
      %41 = vector.load %arg5[%40, %c8_63, %c0_64] : memref<32x32x4xbf16, #tpu.memory_space<vmem>>, vector<8x16x4xbf16>
      %c1_65 = arith.constant 1 : index
      %c0_66 = arith.constant 0 : index
      %c0_67 = arith.constant 0 : index
      %42 = vector.load %arg2[%c1_65, %c0_66, %c0_67] : memref<36x4x4xbf16, #tpu.memory_space<vmem>>, vector<1x4x4xbf16>
      %43 = vector.shape_cast %42 : vector<1x4x4xbf16> to vector<4x4xbf16>
      %cst_68 = arith.constant dense<0.000000e+00> : vector<8x16x4xf32>
      %44 = tpu.matmul %41, %43, %cst_68 {dimension_numbers = #tpu.dot_dimension_numbers<[2], [0], [0, 1], [1], [0, 0, 0, 1, 1, 1], [], []>} : vector<8x16x4xbf16>, vector<4x4xbf16>, vector<8x16x4xf32> -> vector<8x16x4xf32>
      %45 = arith.addf %38, %44 : vector<8x16x4xf32>
      %c7_i32_69 = arith.constant 7 : i32
      %46 = arith.addi %32, %c7_i32_69 : i32
      %47 = arith.index_cast %46 : i32 to index
      %c9 = arith.constant 9 : index
      %c0_70 = arith.constant 0 : index
      %48 = vector.load %arg5[%47, %c9, %c0_70] : memref<32x32x4xbf16, #tpu.memory_space<vmem>>, vector<8x16x4xbf16>
      %c2_71 = arith.constant 2 : index
      %c0_72 = arith.constant 0 : index
      %c0_73 = arith.constant 0 : index
      %49 = vector.load %arg2[%c2_71, %c0_72, %c0_73] : memref<36x4x4xbf16, #tpu.memory_space<vmem>>, vector<1x4x4xbf16>
      %50 = vector.shape_cast %49 : vector<1x4x4xbf16> to vector<4x4xbf16>
      %cst_74 = arith.constant dense<0.000000e+00> : vector<8x16x4xf32>
      %51 = tpu.matmul %48, %50, %cst_74 {dimension_numbers = #tpu.dot_dimension_numbers<[2], [0], [0, 1], [1], [0, 0, 0, 1, 1, 1], [], []>} : vector<8x16x4xbf16>, vector<4x4xbf16>, vector<8x16x4xf32> -> vector<8x16x4xf32>
      %52 = arith.addf %45, %51 : vector<8x16x4xf32>
      %c8_i32_75 = arith.constant 8 : i32
      %53 = arith.addi %32, %c8_i32_75 : i32
      %54 = arith.index_cast %53 : i32 to index
      %c7_76 = arith.constant 7 : index
      %c0_77 = arith.constant 0 : index
      %55 = vector.load %arg5[%54, %c7_76, %c0_77] : memref<32x32x4xbf16, #tpu.memory_space<vmem>>, vector<8x16x4xbf16>
      %c3_78 = arith.constant 3 : index
      %c0_79 = arith.constant 0 : index
      %c0_80 = arith.constant 0 : index
      %56 = vector.load %arg2[%c3_78, %c0_79, %c0_80] : memref<36x4x4xbf16, #tpu.memory_space<vmem>>, vector<1x4x4xbf16>
      %57 = vector.shape_cast %56 : vector<1x4x4xbf16> to vector<4x4xbf16>
      %cst_81 = arith.constant dense<0.000000e+00> : vector<8x16x4xf32>
      %58 = tpu.matmul %55, %57, %cst_81 {dimension_numbers = #tpu.dot_dimension_numbers<[2], [0], [0, 1], [1], [0, 0, 0, 1, 1, 1], [], []>} : vector<8x16x4xbf16>, vector<4x4xbf16>, vector<8x16x4xf32> -> vector<8x16x4xf32>
      %59 = arith.addf %52, %58 : vector<8x16x4xf32>
      %c8_i32_82 = arith.constant 8 : i32
      %60 = arith.addi %32, %c8_i32_82 : i32
      %61 = arith.index_cast %60 : i32 to index
      %c8_83 = arith.constant 8 : index
      %c0_84 = arith.constant 0 : index
      %62 = vector.load %arg5[%61, %c8_83, %c0_84] : memref<32x32x4xbf16, #tpu.memory_space<vmem>>, vector<8x16x4xbf16>
      %c4 = arith.constant 4 : index
      %c0_85 = arith.constant 0 : index
      %c0_86 = arith.constant 0 : index
      %63 = vector.load %arg2[%c4, %c0_85, %c0_86] : memref<36x4x4xbf16, #tpu.memory_space<vmem>>, vector<1x4x4xbf16>
      %64 = vector.shape_cast %63 : vector<1x4x4xbf16> to vector<4x4xbf16>
      %cst_87 = arith.constant dense<0.000000e+00> : vector<8x16x4xf32>
      %65 = tpu.matmul %62, %64, %cst_87 {dimension_numbers = #tpu.dot_dimension_numbers<[2], [0], [0, 1], [1], [0, 0, 0, 1, 1, 1], [], []>} : vector<8x16x4xbf16>, vector<4x4xbf16>, vector<8x16x4xf32> -> vector<8x16x4xf32>
      %66 = arith.addf %59, %65 : vector<8x16x4xf32>
      %c8_i32_88 = arith.constant 8 : i32
      %67 = arith.addi %32, %c8_i32_88 : i32
      %68 = arith.index_cast %67 : i32 to index
      %c9_89 = arith.constant 9 : index
      %c0_90 = arith.constant 0 : index
      %69 = vector.load %arg5[%68, %c9_89, %c0_90] : memref<32x32x4xbf16, #tpu.memory_space<vmem>>, vector<8x16x4xbf16>
      %c5 = arith.constant 5 : index
      %c0_91 = arith.constant 0 : index
      %c0_92 = arith.constant 0 : index
      %70 = vector.load %arg2[%c5, %c0_91, %c0_92] : memref<36x4x4xbf16, #tpu.memory_space<vmem>>, vector<1x4x4xbf16>
      %71 = vector.shape_cast %70 : vector<1x4x4xbf16> to vector<4x4xbf16>
      %cst_93 = arith.constant dense<0.000000e+00> : vector<8x16x4xf32>
      %72 = tpu.matmul %69, %71, %cst_93 {dimension_numbers = #tpu.dot_dimension_numbers<[2], [0], [0, 1], [1], [0, 0, 0, 1, 1, 1], [], []>} : vector<8x16x4xbf16>, vector<4x4xbf16>, vector<8x16x4xf32> -> vector<8x16x4xf32>
      %73 = arith.addf %66, %72 : vector<8x16x4xf32>
      %c9_i32 = arith.constant 9 : i32
      %74 = arith.addi %32, %c9_i32 : i32
      %75 = arith.index_cast %74 : i32 to index
      %c7_94 = arith.constant 7 : index
      %c0_95 = arith.constant 0 : index
      %76 = vector.load %arg5[%75, %c7_94, %c0_95] : memref<32x32x4xbf16, #tpu.memory_space<vmem>>, vector<8x16x4xbf16>
      %c6 = arith.constant 6 : index
      %c0_96 = arith.constant 0 : index
      %c0_97 = arith.constant 0 : index
      %77 = vector.load %arg2[%c6, %c0_96, %c0_97] : memref<36x4x4xbf16, #tpu.memory_space<vmem>>, vector<1x4x4xbf16>
      %78 = vector.shape_cast %77 : vector<1x4x4xbf16> to vector<4x4xbf16>
      %cst_98 = arith.constant dense<0.000000e+00> : vector<8x16x4xf32>
      %79 = tpu.matmul %76, %78, %cst_98 {dimension_numbers = #tpu.dot_dimension_numbers<[2], [0], [0, 1], [1], [0, 0, 0, 1, 1, 1], [], []>} : vector<8x16x4xbf16>, vector<4x4xbf16>, vector<8x16x4xf32> -> vector<8x16x4xf32>
      %80 = arith.addf %73, %79 : vector<8x16x4xf32>
      %c9_i32_99 = arith.constant 9 : i32
      %81 = arith.addi %32, %c9_i32_99 : i32
      %82 = arith.index_cast %81 : i32 to index
      %c8_100 = arith.constant 8 : index
      %c0_101 = arith.constant 0 : index
      %83 = vector.load %arg5[%82, %c8_100, %c0_101] : memref<32x32x4xbf16, #tpu.memory_space<vmem>>, vector<8x16x4xbf16>
      %c7_102 = arith.constant 7 : index
      %c0_103 = arith.constant 0 : index
      %c0_104 = arith.constant 0 : index
      %84 = vector.load %arg2[%c7_102, %c0_103, %c0_104] : memref<36x4x4xbf16, #tpu.memory_space<vmem>>, vector<1x4x4xbf16>
      %85 = vector.shape_cast %84 : vector<1x4x4xbf16> to vector<4x4xbf16>
      %cst_105 = arith.constant dense<0.000000e+00> : vector<8x16x4xf32>
      %86 = tpu.matmul %83, %85, %cst_105 {dimension_numbers = #tpu.dot_dimension_numbers<[2], [0], [0, 1], [1], [0, 0, 0, 1, 1, 1], [], []>} : vector<8x16x4xbf16>, vector<4x4xbf16>, vector<8x16x4xf32> -> vector<8x16x4xf32>
      %87 = arith.addf %80, %86 : vector<8x16x4xf32>
      %c9_i32_106 = arith.constant 9 : i32
      %88 = arith.addi %32, %c9_i32_106 : i32
      %89 = arith.index_cast %88 : i32 to index
      %c9_107 = arith.constant 9 : index
      %c0_108 = arith.constant 0 : index
      %90 = vector.load %arg5[%89, %c9_107, %c0_108] : memref<32x32x4xbf16, #tpu.memory_space<vmem>>, vector<8x16x4xbf16>
      %c8_109 = arith.constant 8 : index
      %c0_110 = arith.constant 0 : index
      %c0_111 = arith.constant 0 : index
      %91 = vector.load %arg2[%c8_109, %c0_110, %c0_111] : memref<36x4x4xbf16, #tpu.memory_space<vmem>>, vector<1x4x4xbf16>
      %92 = vector.shape_cast %91 : vector<1x4x4xbf16> to vector<4x4xbf16>
      %cst_112 = arith.constant dense<0.000000e+00> : vector<8x16x4xf32>
      %93 = tpu.matmul %90, %92, %cst_112 {dimension_numbers = #tpu.dot_dimension_numbers<[2], [0], [0, 1], [1], [0, 0, 0, 1, 1, 1], [], []>} : vector<8x16x4xbf16>, vector<4x4xbf16>, vector<8x16x4xf32> -> vector<8x16x4xf32>
      %94 = arith.addf %87, %93 : vector<8x16x4xf32>
      %95 = vector.shape_cast %21 : vector<1x4xf32> to vector<1x1x4xf32>
      %96 = vector.broadcast %95 : vector<1x1x4xf32> to vector<8x16x4xf32>
      %97 = arith.addf %94, %96 : vector<8x16x4xf32>
      %cst_113 = arith.constant 0.000000e+00 : f32
      %98 = vector.broadcast %cst_113 : f32 to vector<8x16x4xf32>
      %99 = arith.cmpf oge, %97, %98 : vector<8x16x4xf32>
      %cst_114 = arith.constant 0.00999999977 : f32
      %100 = vector.broadcast %cst_114 : f32 to vector<8x16x4xf32>
      %101 = arith.mulf %100, %97 : vector<8x16x4xf32>
      %102 = arith.select %99, %97, %101 : vector<8x16x4xi1>, vector<8x16x4xf32>
      %c0_115 = arith.constant 0 : index
      %103 = arith.index_cast %32 : i32 to index
      %c0_116 = arith.constant 0 : index
      %c0_117 = arith.constant 0 : index
      %104 = vector.load %arg1[%c0_115, %103, %c0_116, %c0_117] : memref<1x16x16x4xf32, #tpu.memory_space<vmem>>, vector<1x8x16x4xf32>
      %105 = vector.shape_cast %104 : vector<1x8x16x4xf32> to vector<8x16x4xf32>
      %106 = arith.addf %105, %102 : vector<8x16x4xf32>
      %c0_118 = arith.constant 0 : index
      %107 = arith.index_cast %32 : i32 to index
      %c0_119 = arith.constant 0 : index
      %c0_120 = arith.constant 0 : index
      %108 = vector.load %arg4[%c0_118, %107, %c0_119, %c0_120] : memref<1x16x16x4xf32, #tpu.memory_space<vmem>>, vector<1x8x16x4xf32>
      %109 = vector.shape_cast %108 : vector<1x8x16x4xf32> to vector<8x16x4xf32>
      %110 = vector.shape_cast %106 : vector<8x16x4xf32> to vector<1x8x16x4xf32>
      tpu.vector_store %arg4[%c0_118, %107, %c0_119, %c0_120], %110 {strides = array<i32>} : memref<1x16x16x4xf32, #tpu.memory_space<vmem>>, vector<1x8x16x4xf32>,
      %111 = arith.truncf %102 : vector<8x16x4xf32> to vector<8x16x4xbf16>
      %c8_i32_121 = arith.constant 8 : i32
      %112 = arith.addi %c8_i32_121, %32 : i32
      %113 = arith.index_cast %112 : i32 to index
      %c8_122 = arith.constant 8 : index
      %c0_123 = arith.constant 0 : index
      %114 = vector.load %arg6[%113, %c8_122, %c0_123] : memref<32x32x4xbf16, #tpu.memory_space<vmem>>, vector<8x16x4xbf16>
      tpu.vector_store %arg6[%113, %c8_122, %c0_123], %111 {strides = array<i32>} : memref<32x32x4xbf16, #tpu.memory_space<vmem>>, vector<8x16x4xbf16>,
    }
    %c2_i32_38 = arith.constant 2 : i32
    %c1 = arith.constant 1 : index
    %c0_39 = arith.constant 0 : index
    %c0_40 = arith.constant 0 : index
    %23 = vector.load %arg3[%c1, %c0_39, %c0_40] : memref<4x1x4xf32, #tpu.memory_space<vmem>>, vector<1x1x4xf32>
    %24 = vector.shape_cast %23 : vector<1x1x4xf32> to vector<1x4xf32>
    %c0_i32_41 = arith.constant 0 : i32
    %c2_i32_42 = arith.constant 2 : i32
    %25 = arith.addi %c0_i32_41, %c2_i32_42 : i32
    %c1_i32_43 = arith.constant 1 : i32
    scf.for %arg7 = %c0_i32_41 to %25 step %c1_i32_43  : i32 {
      %c8_i32 = arith.constant 8 : i32
      %32 = arith.muli %arg7, %c8_i32 : i32
      %c6_i32 = arith.constant 6 : i32
      %33 = arith.addi %32, %c6_i32 : i32
      %34 = arith.index_cast %33 : i32 to index
      %c6 = arith.constant 6 : index
      %c0_57 = arith.constant 0 : index
      %35 = vector.load %arg6[%34, %c6, %c0_57] : memref<32x32x4xbf16, #tpu.memory_space<vmem>>, vector<8x16x4xbf16>
      %c9 = arith.constant 9 : index
      %c0_58 = arith.constant 0 : index
      %c0_59 = arith.constant 0 : index
      %36 = vector.load %arg2[%c9, %c0_58, %c0_59] : memref<36x4x4xbf16, #tpu.memory_space<vmem>>, vector<1x4x4xbf16>
      %37 = vector.shape_cast %36 : vector<1x4x4xbf16> to vector<4x4xbf16>
      %cst_60 = arith.constant dense<0.000000e+00> : vector<8x16x4xf32>
      %38 = tpu.matmul %35, %37, %cst_60 {dimension_numbers = #tpu.dot_dimension_numbers<[2], [0], [0, 1], [1], [0, 0, 0, 1, 1, 1], [], []>} : vector<8x16x4xbf16>, vector<4x4xbf16>, vector<8x16x4xf32> -> vector<8x16x4xf32>
      %c6_i32_61 = arith.constant 6 : i32
      %39 = arith.addi %32, %c6_i32_61 : i32
      %40 = arith.index_cast %39 : i32 to index
      %c8_62 = arith.constant 8 : index
      %c0_63 = arith.constant 0 : index
      %41 = vector.load %arg6[%40, %c8_62, %c0_63] : memref<32x32x4xbf16, #tpu.memory_space<vmem>>, vector<8x16x4xbf16>
      %c10 = arith.constant 10 : index
      %c0_64 = arith.constant 0 : index
      %c0_65 = arith.constant 0 : index
      %42 = vector.load %arg2[%c10, %c0_64, %c0_65] : memref<36x4x4xbf16, #tpu.memory_space<vmem>>, vector<1x4x4xbf16>
      %43 = vector.shape_cast %42 : vector<1x4x4xbf16> to vector<4x4xbf16>
      %cst_66 = arith.constant dense<0.000000e+00> : vector<8x16x4xf32>
      %44 = tpu.matmul %41, %43, %cst_66 {dimension_numbers = #tpu.dot_dimension_numbers<[2], [0], [0, 1], [1], [0, 0, 0, 1, 1, 1], [], []>} : vector<8x16x4xbf16>, vector<4x4xbf16>, vector<8x16x4xf32> -> vector<8x16x4xf32>
      %45 = arith.addf %38, %44 : vector<8x16x4xf32>
      %c6_i32_67 = arith.constant 6 : i32
      %46 = arith.addi %32, %c6_i32_67 : i32
      %47 = arith.index_cast %46 : i32 to index
      %c10_68 = arith.constant 10 : index
      %c0_69 = arith.constant 0 : index
      %48 = vector.load %arg6[%47, %c10_68, %c0_69] : memref<32x32x4xbf16, #tpu.memory_space<vmem>>, vector<8x16x4xbf16>
      %c11 = arith.constant 11 : index
      %c0_70 = arith.constant 0 : index
      %c0_71 = arith.constant 0 : index
      %49 = vector.load %arg2[%c11, %c0_70, %c0_71] : memref<36x4x4xbf16, #tpu.memory_space<vmem>>, vector<1x4x4xbf16>
      %50 = vector.shape_cast %49 : vector<1x4x4xbf16> to vector<4x4xbf16>
      %cst_72 = arith.constant dense<0.000000e+00> : vector<8x16x4xf32>
      %51 = tpu.matmul %48, %50, %cst_72 {dimension_numbers = #tpu.dot_dimension_numbers<[2], [0], [0, 1], [1], [0, 0, 0, 1, 1, 1], [], []>} : vector<8x16x4xbf16>, vector<4x4xbf16>, vector<8x16x4xf32> -> vector<8x16x4xf32>
      %52 = arith.addf %45, %51 : vector<8x16x4xf32>
      %c8_i32_73 = arith.constant 8 : i32
      %53 = arith.addi %32, %c8_i32_73 : i32
      %54 = arith.index_cast %53 : i32 to index
      %c6_74 = arith.constant 6 : index
      %c0_75 = arith.constant 0 : index
      %55 = vector.load %arg6[%54, %c6_74, %c0_75] : memref<32x32x4xbf16, #tpu.memory_space<vmem>>, vector<8x16x4xbf16>
      %c12 = arith.constant 12 : index
      %c0_76 = arith.constant 0 : index
      %c0_77 = arith.constant 0 : index
      %56 = vector.load %arg2[%c12, %c0_76, %c0_77] : memref<36x4x4xbf16, #tpu.memory_space<vmem>>, vector<1x4x4xbf16>
      %57 = vector.shape_cast %56 : vector<1x4x4xbf16> to vector<4x4xbf16>
      %cst_78 = arith.constant dense<0.000000e+00> : vector<8x16x4xf32>
      %58 = tpu.matmul %55, %57, %cst_78 {dimension_numbers = #tpu.dot_dimension_numbers<[2], [0], [0, 1], [1], [0, 0, 0, 1, 1, 1], [], []>} : vector<8x16x4xbf16>, vector<4x4xbf16>, vector<8x16x4xf32> -> vector<8x16x4xf32>
      %59 = arith.addf %52, %58 : vector<8x16x4xf32>
      %c8_i32_79 = arith.constant 8 : i32
      %60 = arith.addi %32, %c8_i32_79 : i32
      %61 = arith.index_cast %60 : i32 to index
      %c8_80 = arith.constant 8 : index
      %c0_81 = arith.constant 0 : index
      %62 = vector.load %arg6[%61, %c8_80, %c0_81] : memref<32x32x4xbf16, #tpu.memory_space<vmem>>, vector<8x16x4xbf16>
      %c13 = arith.constant 13 : index
      %c0_82 = arith.constant 0 : index
      %c0_83 = arith.constant 0 : index
      %63 = vector.load %arg2[%c13, %c0_82, %c0_83] : memref<36x4x4xbf16, #tpu.memory_space<vmem>>, vector<1x4x4xbf16>
      %64 = vector.shape_cast %63 : vector<1x4x4xbf16> to vector<4x4xbf16>
      %cst_84 = arith.constant dense<0.000000e+00> : vector<8x16x4xf32>
      %65 = tpu.matmul %62, %64, %cst_84 {dimension_numbers = #tpu.dot_dimension_numbers<[2], [0], [0, 1], [1], [0, 0, 0, 1, 1, 1], [], []>} : vector<8x16x4xbf16>, vector<4x4xbf16>, vector<8x16x4xf32> -> vector<8x16x4xf32>
      %66 = arith.addf %59, %65 : vector<8x16x4xf32>
      %c8_i32_85 = arith.constant 8 : i32
      %67 = arith.addi %32, %c8_i32_85 : i32
      %68 = arith.index_cast %67 : i32 to index
      %c10_86 = arith.constant 10 : index
      %c0_87 = arith.constant 0 : index
      %69 = vector.load %arg6[%68, %c10_86, %c0_87] : memref<32x32x4xbf16, #tpu.memory_space<vmem>>, vector<8x16x4xbf16>
      %c14 = arith.constant 14 : index
      %c0_88 = arith.constant 0 : index
      %c0_89 = arith.constant 0 : index
      %70 = vector.load %arg2[%c14, %c0_88, %c0_89] : memref<36x4x4xbf16, #tpu.memory_space<vmem>>, vector<1x4x4xbf16>
      %71 = vector.shape_cast %70 : vector<1x4x4xbf16> to vector<4x4xbf16>
      %cst_90 = arith.constant dense<0.000000e+00> : vector<8x16x4xf32>
      %72 = tpu.matmul %69, %71, %cst_90 {dimension_numbers = #tpu.dot_dimension_numbers<[2], [0], [0, 1], [1], [0, 0, 0, 1, 1, 1], [], []>} : vector<8x16x4xbf16>, vector<4x4xbf16>, vector<8x16x4xf32> -> vector<8x16x4xf32>
      %73 = arith.addf %66, %72 : vector<8x16x4xf32>
      %c10_i32 = arith.constant 10 : i32
      %74 = arith.addi %32, %c10_i32 : i32
      %75 = arith.index_cast %74 : i32 to index
      %c6_91 = arith.constant 6 : index
      %c0_92 = arith.constant 0 : index
      %76 = vector.load %arg6[%75, %c6_91, %c0_92] : memref<32x32x4xbf16, #tpu.memory_space<vmem>>, vector<8x16x4xbf16>
      %c15 = arith.constant 15 : index
      %c0_93 = arith.constant 0 : index
      %c0_94 = arith.constant 0 : index
      %77 = vector.load %arg2[%c15, %c0_93, %c0_94] : memref<36x4x4xbf16, #tpu.memory_space<vmem>>, vector<1x4x4xbf16>
      %78 = vector.shape_cast %77 : vector<1x4x4xbf16> to vector<4x4xbf16>
      %cst_95 = arith.constant dense<0.000000e+00> : vector<8x16x4xf32>
      %79 = tpu.matmul %76, %78, %cst_95 {dimension_numbers = #tpu.dot_dimension_numbers<[2], [0], [0, 1], [1], [0, 0, 0, 1, 1, 1], [], []>} : vector<8x16x4xbf16>, vector<4x4xbf16>, vector<8x16x4xf32> -> vector<8x16x4xf32>
      %80 = arith.addf %73, %79 : vector<8x16x4xf32>
      %c10_i32_96 = arith.constant 10 : i32
      %81 = arith.addi %32, %c10_i32_96 : i32
      %82 = arith.index_cast %81 : i32 to index
      %c8_97 = arith.constant 8 : index
      %c0_98 = arith.constant 0 : index
      %83 = vector.load %arg6[%82, %c8_97, %c0_98] : memref<32x32x4xbf16, #tpu.memory_space<vmem>>, vector<8x16x4xbf16>
      %c16 = arith.constant 16 : index
      %c0_99 = arith.constant 0 : index
      %c0_100 = arith.constant 0 : index
      %84 = vector.load %arg2[%c16, %c0_99, %c0_100] : memref<36x4x4xbf16, #tpu.memory_space<vmem>>, vector<1x4x4xbf16>
      %85 = vector.shape_cast %84 : vector<1x4x4xbf16> to vector<4x4xbf16>
      %cst_101 = arith.constant dense<0.000000e+00> : vector<8x16x4xf32>
      %86 = tpu.matmul %83, %85, %cst_101 {dimension_numbers = #tpu.dot_dimension_numbers<[2], [0], [0, 1], [1], [0, 0, 0, 1, 1, 1], [], []>} : vector<8x16x4xbf16>, vector<4x4xbf16>, vector<8x16x4xf32> -> vector<8x16x4xf32>
      %87 = arith.addf %80, %86 : vector<8x16x4xf32>
      %c10_i32_102 = arith.constant 10 : i32
      %88 = arith.addi %32, %c10_i32_102 : i32
      %89 = arith.index_cast %88 : i32 to index
      %c10_103 = arith.constant 10 : index
      %c0_104 = arith.constant 0 : index
      %90 = vector.load %arg6[%89, %c10_103, %c0_104] : memref<32x32x4xbf16, #tpu.memory_space<vmem>>, vector<8x16x4xbf16>
      %c17 = arith.constant 17 : index
      %c0_105 = arith.constant 0 : index
      %c0_106 = arith.constant 0 : index
      %91 = vector.load %arg2[%c17, %c0_105, %c0_106] : memref<36x4x4xbf16, #tpu.memory_space<vmem>>, vector<1x4x4xbf16>
      %92 = vector.shape_cast %91 : vector<1x4x4xbf16> to vector<4x4xbf16>
      %cst_107 = arith.constant dense<0.000000e+00> : vector<8x16x4xf32>
      %93 = tpu.matmul %90, %92, %cst_107 {dimension_numbers = #tpu.dot_dimension_numbers<[2], [0], [0, 1], [1], [0, 0, 0, 1, 1, 1], [], []>} : vector<8x16x4xbf16>, vector<4x4xbf16>, vector<8x16x4xf32> -> vector<8x16x4xf32>
      %94 = arith.addf %87, %93 : vector<8x16x4xf32>
      %95 = vector.shape_cast %24 : vector<1x4xf32> to vector<1x1x4xf32>
      %96 = vector.broadcast %95 : vector<1x1x4xf32> to vector<8x16x4xf32>
      %97 = arith.addf %94, %96 : vector<8x16x4xf32>
      %cst_108 = arith.constant 0.000000e+00 : f32
      %98 = vector.broadcast %cst_108 : f32 to vector<8x16x4xf32>
      %99 = arith.cmpf oge, %97, %98 : vector<8x16x4xf32>
      %cst_109 = arith.constant 0.00999999977 : f32
      %100 = vector.broadcast %cst_109 : f32 to vector<8x16x4xf32>
      %101 = arith.mulf %100, %97 : vector<8x16x4xf32>
      %102 = arith.select %99, %97, %101 : vector<8x16x4xi1>, vector<8x16x4xf32>
      %c0_110 = arith.constant 0 : index
      %103 = arith.index_cast %32 : i32 to index
      %c0_111 = arith.constant 0 : index
      %c0_112 = arith.constant 0 : index
      %104 = vector.load %arg4[%c0_110, %103, %c0_111, %c0_112] : memref<1x16x16x4xf32, #tpu.memory_space<vmem>>, vector<1x8x16x4xf32>
      %105 = vector.shape_cast %104 : vector<1x8x16x4xf32> to vector<8x16x4xf32>
      %106 = arith.addf %105, %102 : vector<8x16x4xf32>
      %c0_113 = arith.constant 0 : index
      %107 = arith.index_cast %32 : i32 to index
      %c0_114 = arith.constant 0 : index
      %c0_115 = arith.constant 0 : index
      %108 = vector.load %arg4[%c0_113, %107, %c0_114, %c0_115] : memref<1x16x16x4xf32, #tpu.memory_space<vmem>>, vector<1x8x16x4xf32>
      %109 = vector.shape_cast %108 : vector<1x8x16x4xf32> to vector<8x16x4xf32>
      %110 = vector.shape_cast %106 : vector<8x16x4xf32> to vector<1x8x16x4xf32>
      tpu.vector_store %arg4[%c0_113, %107, %c0_114, %c0_115], %110 {strides = array<i32>} : memref<1x16x16x4xf32, #tpu.memory_space<vmem>>, vector<1x8x16x4xf32>,
      %111 = arith.truncf %102 : vector<8x16x4xf32> to vector<8x16x4xbf16>
      %c8_i32_116 = arith.constant 8 : i32
      %112 = arith.addi %c8_i32_116, %32 : i32
      %113 = arith.index_cast %112 : i32 to index
      %c8_117 = arith.constant 8 : index
      %c0_118 = arith.constant 0 : index
      %114 = vector.load %arg5[%113, %c8_117, %c0_118] : memref<32x32x4xbf16, #tpu.memory_space<vmem>>, vector<8x16x4xbf16>
      tpu.vector_store %arg5[%113, %c8_117, %c0_118], %111 {strides = array<i32>} : memref<32x32x4xbf16, #tpu.memory_space<vmem>>, vector<8x16x4xbf16>,
    }
    %c2_i32_44 = arith.constant 2 : i32
    %c2 = arith.constant 2 : index
    %c0_45 = arith.constant 0 : index
    %c0_46 = arith.constant 0 : index
    %26 = vector.load %arg3[%c2, %c0_45, %c0_46] : memref<4x1x4xf32, #tpu.memory_space<vmem>>, vector<1x1x4xf32>
    %27 = vector.shape_cast %26 : vector<1x1x4xf32> to vector<1x4xf32>
    %c0_i32_47 = arith.constant 0 : i32
    %c2_i32_48 = arith.constant 2 : i32
    %28 = arith.addi %c0_i32_47, %c2_i32_48 : i32
    %c1_i32_49 = arith.constant 1 : i32
    scf.for %arg7 = %c0_i32_47 to %28 step %c1_i32_49  : i32 {
      %c8_i32 = arith.constant 8 : i32
      %32 = arith.muli %arg7, %c8_i32 : i32
      %c4_i32 = arith.constant 4 : i32
      %33 = arith.addi %32, %c4_i32 : i32
      %34 = arith.index_cast %33 : i32 to index
      %c4 = arith.constant 4 : index
      %c0_57 = arith.constant 0 : index
      %35 = vector.load %arg5[%34, %c4, %c0_57] : memref<32x32x4xbf16, #tpu.memory_space<vmem>>, vector<8x16x4xbf16>
      %c18 = arith.constant 18 : index
      %c0_58 = arith.constant 0 : index
      %c0_59 = arith.constant 0 : index
      %36 = vector.load %arg2[%c18, %c0_58, %c0_59] : memref<36x4x4xbf16, #tpu.memory_space<vmem>>, vector<1x4x4xbf16>
      %37 = vector.shape_cast %36 : vector<1x4x4xbf16> to vector<4x4xbf16>
      %cst_60 = arith.constant dense<0.000000e+00> : vector<8x16x4xf32>
      %38 = tpu.matmul %35, %37, %cst_60 {dimension_numbers = #tpu.dot_dimension_numbers<[2], [0], [0, 1], [1], [0, 0, 0, 1, 1, 1], [], []>} : vector<8x16x4xbf16>, vector<4x4xbf16>, vector<8x16x4xf32> -> vector<8x16x4xf32>
      %c4_i32_61 = arith.constant 4 : i32
      %39 = arith.addi %32, %c4_i32_61 : i32
      %40 = arith.index_cast %39 : i32 to index
      %c8_62 = arith.constant 8 : index
      %c0_63 = arith.constant 0 : index
      %41 = vector.load %arg5[%40, %c8_62, %c0_63] : memref<32x32x4xbf16, #tpu.memory_space<vmem>>, vector<8x16x4xbf16>
      %c19 = arith.constant 19 : index
      %c0_64 = arith.constant 0 : index
      %c0_65 = arith.constant 0 : index
      %42 = vector.load %arg2[%c19, %c0_64, %c0_65] : memref<36x4x4xbf16, #tpu.memory_space<vmem>>, vector<1x4x4xbf16>
      %43 = vector.shape_cast %42 : vector<1x4x4xbf16> to vector<4x4xbf16>
      %cst_66 = arith.constant dense<0.000000e+00> : vector<8x16x4xf32>
      %44 = tpu.matmul %41, %43, %cst_66 {dimension_numbers = #tpu.dot_dimension_numbers<[2], [0], [0, 1], [1], [0, 0, 0, 1, 1, 1], [], []>} : vector<8x16x4xbf16>, vector<4x4xbf16>, vector<8x16x4xf32> -> vector<8x16x4xf32>
      %45 = arith.addf %38, %44 : vector<8x16x4xf32>
      %c4_i32_67 = arith.constant 4 : i32
      %46 = arith.addi %32, %c4_i32_67 : i32
      %47 = arith.index_cast %46 : i32 to index
      %c12 = arith.constant 12 : index
      %c0_68 = arith.constant 0 : index
      %48 = vector.load %arg5[%47, %c12, %c0_68] : memref<32x32x4xbf16, #tpu.memory_space<vmem>>, vector<8x16x4xbf16>
      %c20 = arith.constant 20 : index
      %c0_69 = arith.constant 0 : index
      %c0_70 = arith.constant 0 : index
      %49 = vector.load %arg2[%c20, %c0_69, %c0_70] : memref<36x4x4xbf16, #tpu.memory_space<vmem>>, vector<1x4x4xbf16>
      %50 = vector.shape_cast %49 : vector<1x4x4xbf16> to vector<4x4xbf16>
      %cst_71 = arith.constant dense<0.000000e+00> : vector<8x16x4xf32>
      %51 = tpu.matmul %48, %50, %cst_71 {dimension_numbers = #tpu.dot_dimension_numbers<[2], [0], [0, 1], [1], [0, 0, 0, 1, 1, 1], [], []>} : vector<8x16x4xbf16>, vector<4x4xbf16>, vector<8x16x4xf32> -> vector<8x16x4xf32>
      %52 = arith.addf %45, %51 : vector<8x16x4xf32>
      %c8_i32_72 = arith.constant 8 : i32
      %53 = arith.addi %32, %c8_i32_72 : i32
      %54 = arith.index_cast %53 : i32 to index
      %c4_73 = arith.constant 4 : index
      %c0_74 = arith.constant 0 : index
      %55 = vector.load %arg5[%54, %c4_73, %c0_74] : memref<32x32x4xbf16, #tpu.memory_space<vmem>>, vector<8x16x4xbf16>
      %c21 = arith.constant 21 : index
      %c0_75 = arith.constant 0 : index
      %c0_76 = arith.constant 0 : index
      %56 = vector.load %arg2[%c21, %c0_75, %c0_76] : memref<36x4x4xbf16, #tpu.memory_space<vmem>>, vector<1x4x4xbf16>
      %57 = vector.shape_cast %56 : vector<1x4x4xbf16> to vector<4x4xbf16>
      %cst_77 = arith.constant dense<0.000000e+00> : vector<8x16x4xf32>
      %58 = tpu.matmul %55, %57, %cst_77 {dimension_numbers = #tpu.dot_dimension_numbers<[2], [0], [0, 1], [1], [0, 0, 0, 1, 1, 1], [], []>} : vector<8x16x4xbf16>, vector<4x4xbf16>, vector<8x16x4xf32> -> vector<8x16x4xf32>
      %59 = arith.addf %52, %58 : vector<8x16x4xf32>
      %c8_i32_78 = arith.constant 8 : i32
      %60 = arith.addi %32, %c8_i32_78 : i32
      %61 = arith.index_cast %60 : i32 to index
      %c8_79 = arith.constant 8 : index
      %c0_80 = arith.constant 0 : index
      %62 = vector.load %arg5[%61, %c8_79, %c0_80] : memref<32x32x4xbf16, #tpu.memory_space<vmem>>, vector<8x16x4xbf16>
      %c22 = arith.constant 22 : index
      %c0_81 = arith.constant 0 : index
      %c0_82 = arith.constant 0 : index
      %63 = vector.load %arg2[%c22, %c0_81, %c0_82] : memref<36x4x4xbf16, #tpu.memory_space<vmem>>, vector<1x4x4xbf16>
      %64 = vector.shape_cast %63 : vector<1x4x4xbf16> to vector<4x4xbf16>
      %cst_83 = arith.constant dense<0.000000e+00> : vector<8x16x4xf32>
      %65 = tpu.matmul %62, %64, %cst_83 {dimension_numbers = #tpu.dot_dimension_numbers<[2], [0], [0, 1], [1], [0, 0, 0, 1, 1, 1], [], []>} : vector<8x16x4xbf16>, vector<4x4xbf16>, vector<8x16x4xf32> -> vector<8x16x4xf32>
      %66 = arith.addf %59, %65 : vector<8x16x4xf32>
      %c8_i32_84 = arith.constant 8 : i32
      %67 = arith.addi %32, %c8_i32_84 : i32
      %68 = arith.index_cast %67 : i32 to index
      %c12_85 = arith.constant 12 : index
      %c0_86 = arith.constant 0 : index
      %69 = vector.load %arg5[%68, %c12_85, %c0_86] : memref<32x32x4xbf16, #tpu.memory_space<vmem>>, vector<8x16x4xbf16>
      %c23 = arith.constant 23 : index
      %c0_87 = arith.constant 0 : index
      %c0_88 = arith.constant 0 : index
      %70 = vector.load %arg2[%c23, %c0_87, %c0_88] : memref<36x4x4xbf16, #tpu.memory_space<vmem>>, vector<1x4x4xbf16>
      %71 = vector.shape_cast %70 : vector<1x4x4xbf16> to vector<4x4xbf16>
      %cst_89 = arith.constant dense<0.000000e+00> : vector<8x16x4xf32>
      %72 = tpu.matmul %69, %71, %cst_89 {dimension_numbers = #tpu.dot_dimension_numbers<[2], [0], [0, 1], [1], [0, 0, 0, 1, 1, 1], [], []>} : vector<8x16x4xbf16>, vector<4x4xbf16>, vector<8x16x4xf32> -> vector<8x16x4xf32>
      %73 = arith.addf %66, %72 : vector<8x16x4xf32>
      %c12_i32 = arith.constant 12 : i32
      %74 = arith.addi %32, %c12_i32 : i32
      %75 = arith.index_cast %74 : i32 to index
      %c4_90 = arith.constant 4 : index
      %c0_91 = arith.constant 0 : index
      %76 = vector.load %arg5[%75, %c4_90, %c0_91] : memref<32x32x4xbf16, #tpu.memory_space<vmem>>, vector<8x16x4xbf16>
      %c24_92 = arith.constant 24 : index
      %c0_93 = arith.constant 0 : index
      %c0_94 = arith.constant 0 : index
      %77 = vector.load %arg2[%c24_92, %c0_93, %c0_94] : memref<36x4x4xbf16, #tpu.memory_space<vmem>>, vector<1x4x4xbf16>
      %78 = vector.shape_cast %77 : vector<1x4x4xbf16> to vector<4x4xbf16>
      %cst_95 = arith.constant dense<0.000000e+00> : vector<8x16x4xf32>
      %79 = tpu.matmul %76, %78, %cst_95 {dimension_numbers = #tpu.dot_dimension_numbers<[2], [0], [0, 1], [1], [0, 0, 0, 1, 1, 1], [], []>} : vector<8x16x4xbf16>, vector<4x4xbf16>, vector<8x16x4xf32> -> vector<8x16x4xf32>
      %80 = arith.addf %73, %79 : vector<8x16x4xf32>
      %c12_i32_96 = arith.constant 12 : i32
      %81 = arith.addi %32, %c12_i32_96 : i32
      %82 = arith.index_cast %81 : i32 to index
      %c8_97 = arith.constant 8 : index
      %c0_98 = arith.constant 0 : index
      %83 = vector.load %arg5[%82, %c8_97, %c0_98] : memref<32x32x4xbf16, #tpu.memory_space<vmem>>, vector<8x16x4xbf16>
      %c25 = arith.constant 25 : index
      %c0_99 = arith.constant 0 : index
      %c0_100 = arith.constant 0 : index
      %84 = vector.load %arg2[%c25, %c0_99, %c0_100] : memref<36x4x4xbf16, #tpu.memory_space<vmem>>, vector<1x4x4xbf16>
      %85 = vector.shape_cast %84 : vector<1x4x4xbf16> to vector<4x4xbf16>
      %cst_101 = arith.constant dense<0.000000e+00> : vector<8x16x4xf32>
      %86 = tpu.matmul %83, %85, %cst_101 {dimension_numbers = #tpu.dot_dimension_numbers<[2], [0], [0, 1], [1], [0, 0, 0, 1, 1, 1], [], []>} : vector<8x16x4xbf16>, vector<4x4xbf16>, vector<8x16x4xf32> -> vector<8x16x4xf32>
      %87 = arith.addf %80, %86 : vector<8x16x4xf32>
      %c12_i32_102 = arith.constant 12 : i32
      %88 = arith.addi %32, %c12_i32_102 : i32
      %89 = arith.index_cast %88 : i32 to index
      %c12_103 = arith.constant 12 : index
      %c0_104 = arith.constant 0 : index
      %90 = vector.load %arg5[%89, %c12_103, %c0_104] : memref<32x32x4xbf16, #tpu.memory_space<vmem>>, vector<8x16x4xbf16>
      %c26 = arith.constant 26 : index
      %c0_105 = arith.constant 0 : index
      %c0_106 = arith.constant 0 : index
      %91 = vector.load %arg2[%c26, %c0_105, %c0_106] : memref<36x4x4xbf16, #tpu.memory_space<vmem>>, vector<1x4x4xbf16>
      %92 = vector.shape_cast %91 : vector<1x4x4xbf16> to vector<4x4xbf16>
      %cst_107 = arith.constant dense<0.000000e+00> : vector<8x16x4xf32>
      %93 = tpu.matmul %90, %92, %cst_107 {dimension_numbers = #tpu.dot_dimension_numbers<[2], [0], [0, 1], [1], [0, 0, 0, 1, 1, 1], [], []>} : vector<8x16x4xbf16>, vector<4x4xbf16>, vector<8x16x4xf32> -> vector<8x16x4xf32>
      %94 = arith.addf %87, %93 : vector<8x16x4xf32>
      %95 = vector.shape_cast %27 : vector<1x4xf32> to vector<1x1x4xf32>
      %96 = vector.broadcast %95 : vector<1x1x4xf32> to vector<8x16x4xf32>
      %97 = arith.addf %94, %96 : vector<8x16x4xf32>
      %cst_108 = arith.constant 0.000000e+00 : f32
      %98 = vector.broadcast %cst_108 : f32 to vector<8x16x4xf32>
      %99 = arith.cmpf oge, %97, %98 : vector<8x16x4xf32>
      %cst_109 = arith.constant 0.00999999977 : f32
      %100 = vector.broadcast %cst_109 : f32 to vector<8x16x4xf32>
      %101 = arith.mulf %100, %97 : vector<8x16x4xf32>
      %102 = arith.select %99, %97, %101 : vector<8x16x4xi1>, vector<8x16x4xf32>
      %c0_110 = arith.constant 0 : index
      %103 = arith.index_cast %32 : i32 to index
      %c0_111 = arith.constant 0 : index
      %c0_112 = arith.constant 0 : index
      %104 = vector.load %arg4[%c0_110, %103, %c0_111, %c0_112] : memref<1x16x16x4xf32, #tpu.memory_space<vmem>>, vector<1x8x16x4xf32>
      %105 = vector.shape_cast %104 : vector<1x8x16x4xf32> to vector<8x16x4xf32>
      %106 = arith.addf %105, %102 : vector<8x16x4xf32>
      %c0_113 = arith.constant 0 : index
      %107 = arith.index_cast %32 : i32 to index
      %c0_114 = arith.constant 0 : index
      %c0_115 = arith.constant 0 : index
      %108 = vector.load %arg4[%c0_113, %107, %c0_114, %c0_115] : memref<1x16x16x4xf32, #tpu.memory_space<vmem>>, vector<1x8x16x4xf32>
      %109 = vector.shape_cast %108 : vector<1x8x16x4xf32> to vector<8x16x4xf32>
      %110 = vector.shape_cast %106 : vector<8x16x4xf32> to vector<1x8x16x4xf32>
      tpu.vector_store %arg4[%c0_113, %107, %c0_114, %c0_115], %110 {strides = array<i32>} : memref<1x16x16x4xf32, #tpu.memory_space<vmem>>, vector<1x8x16x4xf32>,
      %111 = arith.truncf %102 : vector<8x16x4xf32> to vector<8x16x4xbf16>
      %c8_i32_116 = arith.constant 8 : i32
      %112 = arith.addi %c8_i32_116, %32 : i32
      %113 = arith.index_cast %112 : i32 to index
      %c8_117 = arith.constant 8 : index
      %c0_118 = arith.constant 0 : index
      %114 = vector.load %arg6[%113, %c8_117, %c0_118] : memref<32x32x4xbf16, #tpu.memory_space<vmem>>, vector<8x16x4xbf16>
      tpu.vector_store %arg6[%113, %c8_117, %c0_118], %111 {strides = array<i32>} : memref<32x32x4xbf16, #tpu.memory_space<vmem>>, vector<8x16x4xbf16>,
    }
    %c2_i32_50 = arith.constant 2 : i32
    %c3 = arith.constant 3 : index
    %c0_51 = arith.constant 0 : index
    %c0_52 = arith.constant 0 : index
    %29 = vector.load %arg3[%c3, %c0_51, %c0_52] : memref<4x1x4xf32, #tpu.memory_space<vmem>>, vector<1x1x4xf32>
    %30 = vector.shape_cast %29 : vector<1x1x4xf32> to vector<1x4xf32>
    %c0_i32_53 = arith.constant 0 : i32
    %c2_i32_54 = arith.constant 2 : i32
    %31 = arith.addi %c0_i32_53, %c2_i32_54 : i32
    %c1_i32_55 = arith.constant 1 : i32
    scf.for %arg7 = %c0_i32_53 to %31 step %c1_i32_55  : i32 {
      %c8_i32 = arith.constant 8 : i32
      %32 = arith.muli %arg7, %c8_i32 : i32
      %c0_i32_57 = arith.constant 0 : i32
      %33 = arith.addi %32, %c0_i32_57 : i32
      %34 = arith.index_cast %33 : i32 to index
      %c0_58 = arith.constant 0 : index
      %c0_59 = arith.constant 0 : index
      %35 = vector.load %arg6[%34, %c0_58, %c0_59] : memref<32x32x4xbf16, #tpu.memory_space<vmem>>, vector<8x16x4xbf16>
      %c27 = arith.constant 27 : index
      %c0_60 = arith.constant 0 : index
      %c0_61 = arith.constant 0 : index
      %36 = vector.load %arg2[%c27, %c0_60, %c0_61] : memref<36x4x4xbf16, #tpu.memory_space<vmem>>, vector<1x4x4xbf16>
      %37 = vector.shape_cast %36 : vector<1x4x4xbf16> to vector<4x4xbf16>
      %cst_62 = arith.constant dense<0.000000e+00> : vector<8x16x4xf32>
      %38 = tpu.matmul %35, %37, %cst_62 {dimension_numbers = #tpu.dot_dimension_numbers<[2], [0], [0, 1], [1], [0, 0, 0, 1, 1, 1], [], []>} : vector<8x16x4xbf16>, vector<4x4xbf16>, vector<8x16x4xf32> -> vector<8x16x4xf32>
      %c0_i32_63 = arith.constant 0 : i32
      %39 = arith.addi %32, %c0_i32_63 : i32
      %40 = arith.index_cast %39 : i32 to index
      %c8_64 = arith.constant 8 : index
      %c0_65 = arith.constant 0 : index
      %41 = vector.load %arg6[%40, %c8_64, %c0_65] : memref<32x32x4xbf16, #tpu.memory_space<vmem>>, vector<8x16x4xbf16>
      %c28 = arith.constant 28 : index
      %c0_66 = arith.constant 0 : index
      %c0_67 = arith.constant 0 : index
      %42 = vector.load %arg2[%c28, %c0_66, %c0_67] : memref<36x4x4xbf16, #tpu.memory_space<vmem>>, vector<1x4x4xbf16>
      %43 = vector.shape_cast %42 : vector<1x4x4xbf16> to vector<4x4xbf16>
      %cst_68 = arith.constant dense<0.000000e+00> : vector<8x16x4xf32>
      %44 = tpu.matmul %41, %43, %cst_68 {dimension_numbers = #tpu.dot_dimension_numbers<[2], [0], [0, 1], [1], [0, 0, 0, 1, 1, 1], [], []>} : vector<8x16x4xbf16>, vector<4x4xbf16>, vector<8x16x4xf32> -> vector<8x16x4xf32>
      %45 = arith.addf %38, %44 : vector<8x16x4xf32>
      %c0_i32_69 = arith.constant 0 : i32
      %46 = arith.addi %32, %c0_i32_69 : i32
      %47 = arith.index_cast %46 : i32 to index
      %c16 = arith.constant 16 : index
      %c0_70 = arith.constant 0 : index
      %48 = vector.load %arg6[%47, %c16, %c0_70] : memref<32x32x4xbf16, #tpu.memory_space<vmem>>, vector<8x16x4xbf16>
      %c29 = arith.constant 29 : index
      %c0_71 = arith.constant 0 : index
      %c0_72 = arith.constant 0 : index
      %49 = vector.load %arg2[%c29, %c0_71, %c0_72] : memref<36x4x4xbf16, #tpu.memory_space<vmem>>, vector<1x4x4xbf16>
      %50 = vector.shape_cast %49 : vector<1x4x4xbf16> to vector<4x4xbf16>
      %cst_73 = arith.constant dense<0.000000e+00> : vector<8x16x4xf32>
      %51 = tpu.matmul %48, %50, %cst_73 {dimension_numbers = #tpu.dot_dimension_numbers<[2], [0], [0, 1], [1], [0, 0, 0, 1, 1, 1], [], []>} : vector<8x16x4xbf16>, vector<4x4xbf16>, vector<8x16x4xf32> -> vector<8x16x4xf32>
      %52 = arith.addf %45, %51 : vector<8x16x4xf32>
      %c8_i32_74 = arith.constant 8 : i32
      %53 = arith.addi %32, %c8_i32_74 : i32
      %54 = arith.index_cast %53 : i32 to index
      %c0_75 = arith.constant 0 : index
      %c0_76 = arith.constant 0 : index
      %55 = vector.load %arg6[%54, %c0_75, %c0_76] : memref<32x32x4xbf16, #tpu.memory_space<vmem>>, vector<8x16x4xbf16>
      %c30 = arith.constant 30 : index
      %c0_77 = arith.constant 0 : index
      %c0_78 = arith.constant 0 : index
      %56 = vector.load %arg2[%c30, %c0_77, %c0_78] : memref<36x4x4xbf16, #tpu.memory_space<vmem>>, vector<1x4x4xbf16>
      %57 = vector.shape_cast %56 : vector<1x4x4xbf16> to vector<4x4xbf16>
      %cst_79 = arith.constant dense<0.000000e+00> : vector<8x16x4xf32>
      %58 = tpu.matmul %55, %57, %cst_79 {dimension_numbers = #tpu.dot_dimension_numbers<[2], [0], [0, 1], [1], [0, 0, 0, 1, 1, 1], [], []>} : vector<8x16x4xbf16>, vector<4x4xbf16>, vector<8x16x4xf32> -> vector<8x16x4xf32>
      %59 = arith.addf %52, %58 : vector<8x16x4xf32>
      %c8_i32_80 = arith.constant 8 : i32
      %60 = arith.addi %32, %c8_i32_80 : i32
      %61 = arith.index_cast %60 : i32 to index
      %c8_81 = arith.constant 8 : index
      %c0_82 = arith.constant 0 : index
      %62 = vector.load %arg6[%61, %c8_81, %c0_82] : memref<32x32x4xbf16, #tpu.memory_space<vmem>>, vector<8x16x4xbf16>
      %c31 = arith.constant 31 : index
      %c0_83 = arith.constant 0 : index
      %c0_84 = arith.constant 0 : index
      %63 = vector.load %arg2[%c31, %c0_83, %c0_84] : memref<36x4x4xbf16, #tpu.memory_space<vmem>>, vector<1x4x4xbf16>
      %64 = vector.shape_cast %63 : vector<1x4x4xbf16> to vector<4x4xbf16>
      %cst_85 = arith.constant dense<0.000000e+00> : vector<8x16x4xf32>
      %65 = tpu.matmul %62, %64, %cst_85 {dimension_numbers = #tpu.dot_dimension_numbers<[2], [0], [0, 1], [1], [0, 0, 0, 1, 1, 1], [], []>} : vector<8x16x4xbf16>, vector<4x4xbf16>, vector<8x16x4xf32> -> vector<8x16x4xf32>
      %66 = arith.addf %59, %65 : vector<8x16x4xf32>
      %c8_i32_86 = arith.constant 8 : i32
      %67 = arith.addi %32, %c8_i32_86 : i32
      %68 = arith.index_cast %67 : i32 to index
      %c16_87 = arith.constant 16 : index
      %c0_88 = arith.constant 0 : index
      %69 = vector.load %arg6[%68, %c16_87, %c0_88] : memref<32x32x4xbf16, #tpu.memory_space<vmem>>, vector<8x16x4xbf16>
      %c32 = arith.constant 32 : index
      %c0_89 = arith.constant 0 : index
      %c0_90 = arith.constant 0 : index
      %70 = vector.load %arg2[%c32, %c0_89, %c0_90] : memref<36x4x4xbf16, #tpu.memory_space<vmem>>, vector<1x4x4xbf16>
      %71 = vector.shape_cast %70 : vector<1x4x4xbf16> to vector<4x4xbf16>
      %cst_91 = arith.constant dense<0.000000e+00> : vector<8x16x4xf32>
      %72 = tpu.matmul %69, %71, %cst_91 {dimension_numbers = #tpu.dot_dimension_numbers<[2], [0], [0, 1], [1], [0, 0, 0, 1, 1, 1], [], []>} : vector<8x16x4xbf16>, vector<4x4xbf16>, vector<8x16x4xf32> -> vector<8x16x4xf32>
      %73 = arith.addf %66, %72 : vector<8x16x4xf32>
      %c16_i32 = arith.constant 16 : i32
      %74 = arith.addi %32, %c16_i32 : i32
      %75 = arith.index_cast %74 : i32 to index
      %c0_92 = arith.constant 0 : index
      %c0_93 = arith.constant 0 : index
      %76 = vector.load %arg6[%75, %c0_92, %c0_93] : memref<32x32x4xbf16, #tpu.memory_space<vmem>>, vector<8x16x4xbf16>
      %c33 = arith.constant 33 : index
      %c0_94 = arith.constant 0 : index
      %c0_95 = arith.constant 0 : index
      %77 = vector.load %arg2[%c33, %c0_94, %c0_95] : memref<36x4x4xbf16, #tpu.memory_space<vmem>>, vector<1x4x4xbf16>
      %78 = vector.shape_cast %77 : vector<1x4x4xbf16> to vector<4x4xbf16>
      %cst_96 = arith.constant dense<0.000000e+00> : vector<8x16x4xf32>
      %79 = tpu.matmul %76, %78, %cst_96 {dimension_numbers = #tpu.dot_dimension_numbers<[2], [0], [0, 1], [1], [0, 0, 0, 1, 1, 1], [], []>} : vector<8x16x4xbf16>, vector<4x4xbf16>, vector<8x16x4xf32> -> vector<8x16x4xf32>
      %80 = arith.addf %73, %79 : vector<8x16x4xf32>
      %c16_i32_97 = arith.constant 16 : i32
      %81 = arith.addi %32, %c16_i32_97 : i32
      %82 = arith.index_cast %81 : i32 to index
      %c8_98 = arith.constant 8 : index
      %c0_99 = arith.constant 0 : index
      %83 = vector.load %arg6[%82, %c8_98, %c0_99] : memref<32x32x4xbf16, #tpu.memory_space<vmem>>, vector<8x16x4xbf16>
      %c34 = arith.constant 34 : index
      %c0_100 = arith.constant 0 : index
      %c0_101 = arith.constant 0 : index
      %84 = vector.load %arg2[%c34, %c0_100, %c0_101] : memref<36x4x4xbf16, #tpu.memory_space<vmem>>, vector<1x4x4xbf16>
      %85 = vector.shape_cast %84 : vector<1x4x4xbf16> to vector<4x4xbf16>
      %cst_102 = arith.constant dense<0.000000e+00> : vector<8x16x4xf32>
      %86 = tpu.matmul %83, %85, %cst_102 {dimension_numbers = #tpu.dot_dimension_numbers<[2], [0], [0, 1], [1], [0, 0, 0, 1, 1, 1], [], []>} : vector<8x16x4xbf16>, vector<4x4xbf16>, vector<8x16x4xf32> -> vector<8x16x4xf32>
      %87 = arith.addf %80, %86 : vector<8x16x4xf32>
      %c16_i32_103 = arith.constant 16 : i32
      %88 = arith.addi %32, %c16_i32_103 : i32
      %89 = arith.index_cast %88 : i32 to index
      %c16_104 = arith.constant 16 : index
      %c0_105 = arith.constant 0 : index
      %90 = vector.load %arg6[%89, %c16_104, %c0_105] : memref<32x32x4xbf16, #tpu.memory_space<vmem>>, vector<8x16x4xbf16>
      %c35 = arith.constant 35 : index
      %c0_106 = arith.constant 0 : index
      %c0_107 = arith.constant 0 : index
      %91 = vector.load %arg2[%c35, %c0_106, %c0_107] : memref<36x4x4xbf16, #tpu.memory_space<vmem>>, vector<1x4x4xbf16>
      %92 = vector.shape_cast %91 : vector<1x4x4xbf16> to vector<4x4xbf16>
      %cst_108 = arith.constant dense<0.000000e+00> : vector<8x16x4xf32>
      %93 = tpu.matmul %90, %92, %cst_108 {dimension_numbers = #tpu.dot_dimension_numbers<[2], [0], [0, 1], [1], [0, 0, 0, 1, 1, 1], [], []>} : vector<8x16x4xbf16>, vector<4x4xbf16>, vector<8x16x4xf32> -> vector<8x16x4xf32>
      %94 = arith.addf %87, %93 : vector<8x16x4xf32>
      %95 = vector.shape_cast %30 : vector<1x4xf32> to vector<1x1x4xf32>
      %96 = vector.broadcast %95 : vector<1x1x4xf32> to vector<8x16x4xf32>
      %97 = arith.addf %94, %96 : vector<8x16x4xf32>
      %cst_109 = arith.constant 0.000000e+00 : f32
      %98 = vector.broadcast %cst_109 : f32 to vector<8x16x4xf32>
      %99 = arith.cmpf oge, %97, %98 : vector<8x16x4xf32>
      %cst_110 = arith.constant 0.00999999977 : f32
      %100 = vector.broadcast %cst_110 : f32 to vector<8x16x4xf32>
      %101 = arith.mulf %100, %97 : vector<8x16x4xf32>
      %102 = arith.select %99, %97, %101 : vector<8x16x4xi1>, vector<8x16x4xf32>
      %c0_111 = arith.constant 0 : index
      %103 = arith.index_cast %32 : i32 to index
      %c0_112 = arith.constant 0 : index
      %c0_113 = arith.constant 0 : index
      %104 = vector.load %arg4[%c0_111, %103, %c0_112, %c0_113] : memref<1x16x16x4xf32, #tpu.memory_space<vmem>>, vector<1x8x16x4xf32>
      %105 = vector.shape_cast %104 : vector<1x8x16x4xf32> to vector<8x16x4xf32>
      %106 = arith.addf %105, %102 : vector<8x16x4xf32>
      %c0_114 = arith.constant 0 : index
      %107 = arith.index_cast %32 : i32 to index
      %c0_115 = arith.constant 0 : index
      %c0_116 = arith.constant 0 : index
      %108 = vector.load %arg4[%c0_114, %107, %c0_115, %c0_116] : memref<1x16x16x4xf32, #tpu.memory_space<vmem>>, vector<1x8x16x4xf32>
      %109 = vector.shape_cast %108 : vector<1x8x16x4xf32> to vector<8x16x4xf32>
      %110 = vector.shape_cast %106 : vector<8x16x4xf32> to vector<1x8x16x4xf32>
      tpu.vector_store %arg4[%c0_114, %107, %c0_115, %c0_116], %110 {strides = array<i32>} : memref<1x16x16x4xf32, #tpu.memory_space<vmem>>, vector<1x8x16x4xf32>,
    }
    %c2_i32_56 = arith.constant 2 : i32
    return
  }
  func.func @transform_0(%arg0: i32) -> (i32, i32, i32, i32) {
    %c0_i32 = arith.constant 0 : i32
    %c0_i32_0 = arith.constant 0 : i32
    %c0_i32_1 = arith.constant 0 : i32
    %c0_i32_2 = arith.constant 0 : i32
    return %arg0, %c0_i32, %c0_i32_0, %c0_i32_1 : i32, i32, i32, i32
  }
  func.func @transform_1(%arg0: i32) -> (i32, i32, i32) {
    %c0_i32 = arith.constant 0 : i32
    %c0_i32_0 = arith.constant 0 : i32
    %c0_i32_1 = arith.constant 0 : i32
    %c0_i32_2 = arith.constant 0 : i32
    return %c0_i32, %c0_i32_0, %c0_i32_1 : i32, i32, i32
  }
  func.func @transform_2(%arg0: i32) -> (i32, i32, i32) {
    %c0_i32 = arith.constant 0 : i32
    %c0_i32_0 = arith.constant 0 : i32
    %c0_i32_1 = arith.constant 0 : i32
    %c0_i32_2 = arith.constant 0 : i32
    return %c0_i32, %c0_i32_0, %c0_i32_1 : i32, i32, i32
  }
  func.func @transform_3(%arg0: i32) -> (i32, i32, i32, i32) {
    %c0_i32 = arith.constant 0 : i32
    %c0_i32_0 = arith.constant 0 : i32
    %c0_i32_1 = arith.constant 0 : i32
    %c0_i32_2 = arith.constant 0 : i32
    return %arg0, %c0_i32, %c0_i32_0, %c0_i32_1 : i32, i32, i32, i32
  }
}

</mosaic_0001>

<bundles_post_ra>
// kernel: dilate_block.1
= control target key start
LH: loop header
LB: loop body
LE: loop exit
PB: predicated region body
PF: predicated region fallthrough
CT: control target
= control target key end

     0   :  { %s13146_s12 = smov 0   ;;  %s17013_s0 = inlined_call_operand.vmem [shape: f32[2,16,16,4], index: 0, kind: input, shape index: {}]   ;;  %s17014_s1 = inlined_call_operand.vmem [shape: bf16[36,4,4], index: 1, kind: input, shape index: {}]   ;;  %s17015_s2 = inlined_call_operand.vmem [shape: f32[4,1,4], index: 2, kind: input, shape index: {}]   ;;  %s17016_s3 = inlined_call_operand.vmem [shape: f32[2,16,16,4], index: 3, kind: output, shape index: {}]  }
   0x1 LB: > { %s10287_s13 = sadd.s32 4294967295, %s13107_s12   ;;  %p10291_p0 = scmp.ge.s32.totalorder %s13107_s12, 1  ;;  %s13107_s12 = sphi %s13146_s12, %s13_s12  }
   0x2   : > { %p137_p1 = scmp.lt.s32.totalorder %s13107_s12, 3 }
   0x4   : > { %p138_p2 = pnand %p10291_p0, %p137_p1 }
   0x6   : > { %141 = sbr.rel (%p138_p2) target bundleno = 1629 (0x65d), region = 32 }
   0xb   : > { %vm172_vm0 = vcmask 27648   ;;  %v13157_v0 = vld [vmem:[%s17015_s2] ss:$0 sm:$0xff]  ;;  %p13161_p3 = scmp.lt.s32.totalorder %s10287_s13, 1  ;;  %v13125_v1 = vmov 0   ;;  %s13627_s24 = smov 0  }
   0xc   : > { %17021 = vst [vmem:[#allocation4_spill] sm:$0xff] %v13157_v0  ;;  %173 = vst.msk [vmem:[#allocation2] sm:$0xf] %vm172_vm0, %v13125_v1 }
   0xd   : > { %174 = vst.msk [vmem:[#allocation2 + $0x4] sm:$0xf] %vm172_vm0, %v13125_v1  ;;  %175 = vst.msk [vmem:[#allocation2 + $0x8] sm:$0xf] %vm172_vm0, %v13125_v1  ;;  %s17188_s13 = smov (!%p13161_p3, %s10287_s13), 1 }
   0xe   : > { %176 = vst.msk [vmem:[#allocation2 + $0xc] sm:$0xf] %vm172_vm0, %v13125_v1  ;;  %177 = vst.msk [vmem:[#allocation2 + $0x10] sm:$0xf] %vm172_vm0, %v13125_v1  ;;  %s11778_s17 = sshll.u32 %s17188_s13, 8 }
   0xf   : > { %178 = vst.msk [vmem:[#allocation2 + $0x14] sm:$0xf] %vm172_vm0, %v13125_v1  ;;  %179 = vst.msk [vmem:[#allocation2 + $0x18] sm:$0xf] %vm172_vm0, %v13125_v1  ;;  %s13556_s20 = scalar_lea.vmem %s17013_s0, %s11778_s17  ;;  %s13561_s23 = scalar_lea.vmem %s17016_s3, %s11778_s17 }
  0x10   : > { %180 = vst.msk [vmem:[#allocation2 + $0x1c] sm:$0xf] %vm172_vm0, %v13125_v1  ;;  %181 = vst.msk [vmem:[#allocation2 + $0x20] sm:$0xf] %vm172_vm0, %v13125_v1  ;;  %v369_v2 = vld [vmem:[%s13556_s20] sm:$0xff]  ;;  %v370_v3 = vld [vmem:[%s13556_s20 + $0x8] sm:$0xff] }
  0x11   : > { %182 = vst.msk [vmem:[#allocation2 + $0x24] sm:$0xf] %vm172_vm0, %v13125_v1  ;;  %183 = vst.msk [vmem:[#allocation2 + $0x28] sm:$0xf] %vm172_vm0, %v13125_v1  ;;  %v371_v4 = vld [vmem:[%s13556_s20 + $0x10] sm:$0xff]  ;;  %v11780_v5 = vpack.c.bf16 %v369_v2, %v369_v2  ;;  %v11781_v6 = vpack.c.bf16 %v370_v3, %v370_v3  ;;  %v372_v8 = vld [vmem:[%s13556_s20 + $0x18] sm:$0xff] }
  0x12   : > { %184 = vst.msk [vmem:[#allocation2 + $0x2c] sm:$0xf] %vm172_vm0, %v13125_v1  ;;  %185 = vst.msk [vmem:[#allocation2 + $0x30] sm:$0xf] %vm172_vm0, %v13125_v1  ;;  %v11782_v7 = vpack.c.bf16 %v371_v4, %v371_v4  ;;  %v373_v9 = vld [vmem:[%s13556_s20 + $0x20] sm:$0xff]  ;;  %v374_v10 = vld [vmem:[%s13556_s20 + $0x28] sm:$0xff]  ;;  %v11783_v11 = vpack.c.bf16 %v372_v8, %v372_v8 }
  0x13   : > { %186 = vst.msk [vmem:[#allocation2 + $0x34] sm:$0xf] %vm172_vm0, %v13125_v1  ;;  %187 = vst.msk [vmem:[#allocation2 + $0x38] sm:$0xf] %vm172_vm0, %v13125_v1  ;;  %v11784_v12 = vpack.c.bf16 %v373_v9, %v373_v9  ;;  %v11785_v13 = vpack.c.bf16 %v374_v10, %v374_v10  ;;  %v375_v14 = vld [vmem:[%s13556_s20 + $0x30] sm:$0xff]  ;;  %v376_v15 = vld [vmem:[%s13556_s20 + $0x38] sm:$0xff] }
  0x14   : > { %188 = vst.msk [vmem:[#allocation2 + $0x3c] sm:$0xf] %vm172_vm0, %v13125_v1  ;;  %189 = vst.msk [vmem:[#allocation2 + $0x40] sm:$0xf] %vm172_vm0, %v13125_v1  ;;  %v377_v16 = vld [vmem:[%s13556_s20 + $0x40] sm:$0xff]  ;;  %v11786_v17 = vpack.c.bf16 %v375_v14, %v375_v14  ;;  %v11787_v18 = vpack.c.bf16 %v376_v15, %v376_v15  ;;  %v378_v20 = vld [vmem:[%s13556_s20 + $0x48] sm:$0xff] }
  0x15   : > { %190 = vst.msk [vmem:[#allocation2 + $0x44] sm:$0xf] %vm172_vm0, %v13125_v1  ;;  %191 = vst.msk [vmem:[#allocation2 + $0x48] sm:$0xf] %vm172_vm0, %v13125_v1  ;;  %v11788_v19 = vpack.c.bf16 %v377_v16, %v377_v16  ;;  %v379_v21 = vld [vmem:[%s13556_s20 + $0x50] sm:$0xff]  ;;  %v380_v22 = vld [vmem:[%s13556_s20 + $0x58] sm:$0xff]  ;;  %v11789_v23 = vpack.c.bf16 %v378_v20, %v378_v20 }
  0x16   : > { %192 = vst.msk [vmem:[#allocation2 + $0x4c] sm:$0xf] %vm172_vm0, %v13125_v1  ;;  %193 = vst.msk [vmem:[#allocation2 + $0x50] sm:$0xf] %vm172_vm0, %v13125_v1  ;;  %v11790_v24 = vpack.c.bf16 %v379_v21, %v379_v21  ;;  %v11791_v25 = vpack.c.bf16 %v380_v22, %v380_v22  ;;  %v381_v26 = vld [vmem:[%s13556_s20 + $0x60] sm:$0xff]  ;;  %v382_v27 = vld [vmem:[%s13556_s20 + $0x68] sm:$0xff] }
  0x17   : > { %194 = vst.msk [vmem:[#allocation2 + $0x54] sm:$0xf] %vm172_vm0, %v13125_v1  ;;  %195 = vst.msk [vmem:[#allocation2 + $0x58] sm:$0xf] %vm172_vm0, %v13125_v1  ;;  %v383_v28 = vld [vmem:[%s13556_s20 + $0x70] sm:$0xff]  ;;  %v11792_v29 = vpack.c.bf16 %v381_v26, %v381_v26  ;;  %v11793_v30 = vpack.c.bf16 %v382_v27, %v382_v27  ;;  %v384_v32 = vld [vmem:[%s13556_s20 + $0x78] sm:$0xff] }
  0x18   : > { %196 = vst.msk [vmem:[#allocation2 + $0x5c] sm:$0xf] %vm172_vm0, %v13125_v1  ;;  %197 = vst.msk [vmem:[#allocation2 + $0x60] sm:$0xf] %vm172_vm0, %v13125_v1  ;;  %v11794_v31 = vpack.c.bf16 %v383_v28, %v383_v28  ;;  %v385_v33 = vld [vmem:[%s13556_s20 + $0x80] sm:$0xff]  ;;  %v386_v34 = vld [vmem:[%s13556_s20 + $0x88] sm:$0xff]  ;;  %v11795_v35 = vpack.c.bf16 %v384_v32, %v384_v32 }
  0x19   : > { %198 = vst.msk [vmem:[#allocation2 + $0x64] sm:$0xf] %vm172_vm0, %v13125_v1  ;;  %199 = vst.msk [vmem:[#allocation2 + $0x68] sm:$0xf] %vm172_vm0, %v13125_v1  ;;  %v11796_v36 = vpack.c.bf16 %v385_v33, %v385_v33  ;;  %v11797_v37 = vpack.c.bf16 %v386_v34, %v386_v34  ;;  %v387_v38 = vld [vmem:[%s13556_s20 + $0x90] sm:$0xff]  ;;  %v388_v39 = vld [vmem:[%s13556_s20 + $0x98] sm:$0xff] }
  0x1a   : > { %200 = vst.msk [vmem:[#allocation2 + $0x6c] sm:$0xf] %vm172_vm0, %v13125_v1  ;;  %201 = vst.msk [vmem:[#allocation2 + $0x70] sm:$0xf] %vm172_vm0, %v13125_v1  ;;  %v389_v40 = vld [vmem:[%s13556_s20 + $0xa0] sm:$0xff]  ;;  %v11798_v41 = vpack.c.bf16 %v387_v38, %v387_v38  ;;  %v11799_v42 = vpack.c.bf16 %v388_v39, %v388_v39  ;;  %v390_v44 = vld [vmem:[%s13556_s20 + $0xa8] sm:$0xff] }
  0x1b   : > { %202 = vst.msk [vmem:[#allocation2 + $0x74] sm:$0xf] %vm172_vm0, %v13125_v1  ;;  %203 = vst.msk [vmem:[#allocation2 + $0x78] sm:$0xf] %vm172_vm0, %v13125_v1  ;;  %v11800_v43 = vpack.c.bf16 %v389_v40, %v389_v40  ;;  %v391_v45 = vld [vmem:[%s13556_s20 + $0xb0] sm:$0xff]  ;;  %v392_v46 = vld [vmem:[%s13556_s20 + $0xb8] sm:$0xff]  ;;  %v11801_v47 = vpack.c.bf16 %v390_v44, %v390_v44 }
  0x1c   : > { %204 = vst.msk [vmem:[#allocation2 + $0x7c] sm:$0xf] %vm172_vm0, %v13125_v1  ;;  %206 = vst.msk [vmem:[#allocation2 + $0x180] sm:$0xf] %vm172_vm0, %v13125_v1  ;;  %v11802_v48 = vpack.c.bf16 %v391_v45, %v391_v45  ;;  %v11803_v49 = vpack.c.bf16 %v392_v46, %v392_v46  ;;  %v393_v50 = vld [vmem:[%s13556_s20 + $0xc0] sm:$0xff]  ;;  %v394_v51 = vld [vmem:[%s13556_s20 + $0xc8] sm:$0xff] }
  0x1d   : > { %207 = vst.msk [vmem:[#allocation2 + $0x184] sm:$0xf] %vm172_vm0, %v13125_v1  ;;  %208 = vst.msk [vmem:[#allocation2 + $0x188] sm:$0xf] %vm172_vm0, %v13125_v1  ;;  %v395_v52 = vld [vmem:[%s13556_s20 + $0xd0] sm:$0xff]  ;;  %v11804_v53 = vpack.c.bf16 %v393_v50, %v393_v50  ;;  %v11805_v54 = vpack.c.bf16 %v394_v51, %v394_v51  ;;  %v396_v56 = vld [vmem:[%s13556_s20 + $0xd8] sm:$0xff] }
  0x1e   : > { %209 = vst.msk [vmem:[#allocation2 + $0x18c] sm:$0xf] %vm172_vm0, %v13125_v1  ;;  %210 = vst.msk [vmem:[#allocation2 + $0x190] sm:$0xf] %vm172_vm0, %v13125_v1  ;;  %v11806_v55 = vpack.c.bf16 %v395_v52, %v395_v52  ;;  %v397_v57 = vld [vmem:[%s13556_s20 + $0xe0] sm:$0xff]  ;;  %v398_v58 = vld [vmem:[%s13556_s20 + $0xe8] sm:$0xff]  ;;  %v11807_v59 = vpack.c.bf16 %v396_v56, %v396_v56 }
  0x1f   : > { %211 = vst.msk [vmem:[#allocation2 + $0x194] sm:$0xf] %vm172_vm0, %v13125_v1  ;;  %212 = vst.msk [vmem:[#allocation2 + $0x198] sm:$0xf] %vm172_vm0, %v13125_v1  ;;  %v11808_v60 = vpack.c.bf16 %v397_v57, %v397_v57  ;;  %v11809_v61 = vpack.c.bf16 %v398_v58, %v398_v58  ;;  %v399_v62 = vld [vmem:[%s13556_s20 + $0xf0] sm:$0xff]  ;;  %v400_v63 = vld [vmem:[%s13556_s20 + $0xf8] sm:$0xff] }
  0x20   : > { %213 = vst.msk [vmem:[#allocation2 + $0x19c] sm:$0xf] %vm172_vm0, %v13125_v1  ;;  %214 = vst.msk [vmem:[#allocation2 + $0x1a0] sm:$0xf] %vm172_vm0, %v13125_v1  ;;  %v11811_v2 = vpack.c.bf16 %v400_v63, %v400_v63 }
  0x21   : > { %215 = vst.msk [vmem:[#allocation2 + $0x1a4] sm:$0xf] %vm172_vm0, %v13125_v1  ;;  %216 = vst.msk [vmem:[#allocation2 + $0x1a8] sm:$0xf] %vm172_vm0, %v13125_v1 }
  0x22   : > { %217 = vst.msk [vmem:[#allocation2 + $0x1ac] sm:$0xf] %vm172_vm0, %v13125_v1  ;;  %218 = vst.msk [vmem:[#allocation2 + $0x1b0] sm:$0xf] %vm172_vm0, %v13125_v1 }
  0x23   : > { %219 = vst.msk [vmem:[#allocation2 + $0x1b4] sm:$0xf] %vm172_vm0, %v13125_v1  ;;  %220 = vst.msk [vmem:[#allocation2 + $0x1b8] sm:$0xf] %vm172_vm0, %v13125_v1 }
  0x24   : > { %221 = vst.msk [vmem:[#allocation2 + $0x1bc] sm:$0xf] %vm172_vm0, %v13125_v1  ;;  %222 = vst.msk [vmem:[#allocation2 + $0x1c0] sm:$0xf] %vm172_vm0, %v13125_v1 }
  0x25   : > { %223 = vst.msk [vmem:[#allocation2 + $0x1c4] sm:$0xf] %vm172_vm0, %v13125_v1  ;;  %224 = vst.msk [vmem:[#allocation2 + $0x1c8] sm:$0xf] %vm172_vm0, %v13125_v1 }
  0x26   : > { %225 = vst.msk [vmem:[#allocation2 + $0x1cc] sm:$0xf] %vm172_vm0, %v13125_v1  ;;  %226 = vst.msk [vmem:[#allocation2 + $0x1d0] sm:$0xf] %vm172_vm0, %v13125_v1 }
  0x27   : > { %227 = vst.msk [vmem:[#allocation2 + $0x1d4] sm:$0xf] %vm172_vm0, %v13125_v1  ;;  %228 = vst.msk [vmem:[#allocation2 + $0x1d8] sm:$0xf] %vm172_vm0, %v13125_v1 }
  0x28   : > { %229 = vst.msk [vmem:[#allocation2 + $0x1dc] sm:$0xf] %vm172_vm0, %v13125_v1  ;;  %230 = vst.msk [vmem:[#allocation2 + $0x1e0] sm:$0xf] %vm172_vm0, %v13125_v1 }
  0x29   : > { %231 = vst.msk [vmem:[#allocation2 + $0x1e4] sm:$0xf] %vm172_vm0, %v13125_v1  ;;  %232 = vst.msk [vmem:[#allocation2 + $0x1e8] sm:$0xf] %vm172_vm0, %v13125_v1 }
  0x2a   : > { %233 = vst.msk [vmem:[#allocation2 + $0x1ec] sm:$0xf] %vm172_vm0, %v13125_v1  ;;  %234 = vst.msk [vmem:[#allocation2 + $0x1f0] sm:$0xf] %vm172_vm0, %v13125_v1 }
  0x2b   : > { %235 = vst.msk [vmem:[#allocation2 + $0x1f4] sm:$0xf] %vm172_vm0, %v13125_v1  ;;  %236 = vst.msk [vmem:[#allocation2 + $0x1f8] sm:$0xf] %vm172_vm0, %v13125_v1 }
  0x2c   : > { %237 = vst.msk [vmem:[#allocation2 + $0x1fc] sm:$0xf] %vm172_vm0, %v13125_v1  ;;  %239 = vst.msk [vmem:[#allocation2 + $0x80] sm:$0xf] %vm172_vm0, %v13125_v1 }
  0x2d   : > { %240 = vst.msk [vmem:[#allocation2 + $0x90] sm:$0xf] %vm172_vm0, %v13125_v1  ;;  %241 = vst.msk [vmem:[#allocation2 + $0xa0] sm:$0xf] %vm172_vm0, %v13125_v1 }
  0x2e   : > { %242 = vst.msk [vmem:[#allocation2 + $0xb0] sm:$0xf] %vm172_vm0, %v13125_v1  ;;  %243 = vst.msk [vmem:[#allocation2 + $0xc0] sm:$0xf] %vm172_vm0, %v13125_v1 }
  0x2f   : > { %244 = vst.msk [vmem:[#allocation2 + $0xd0] sm:$0xf] %vm172_vm0, %v13125_v1  ;;  %245 = vst.msk [vmem:[#allocation2 + $0xe0] sm:$0xf] %vm172_vm0, %v13125_v1 }
  0x30   : > { %246 = vst.msk [vmem:[#allocation2 + $0xf0] sm:$0xf] %vm172_vm0, %v13125_v1  ;;  %247 = vst.msk [vmem:[#allocation2 + $0x100] sm:$0xf] %vm172_vm0, %v13125_v1 }
  0x31   : > { %248 = vst.msk [vmem:[#allocation2 + $0x110] sm:$0xf] %vm172_vm0, %v13125_v1  ;;  %249 = vst.msk [vmem:[#allocation2 + $0x120] sm:$0xf] %vm172_vm0, %v13125_v1 }
  0x32   : > { %250 = vst.msk [vmem:[#allocation2 + $0x130] sm:$0xf] %vm172_vm0, %v13125_v1  ;;  %251 = vst.msk [vmem:[#allocation2 + $0x140] sm:$0xf] %vm172_vm0, %v13125_v1 }
  0x33   : > { %252 = vst.msk [vmem:[#allocation2 + $0x150] sm:$0xf] %vm172_vm0, %v13125_v1  ;;  %253 = vst.msk [vmem:[#allocation2 + $0x160] sm:$0xf] %vm172_vm0, %v13125_v1 }
  0x34   : > { %254 = vst.msk [vmem:[#allocation2 + $0x170] sm:$0xf] %vm172_vm0, %v13125_v1  ;;  %255 = vst.msk [vmem:[#allocation2 + $0x8c] sm:$0xf] %vm172_vm0, %v13125_v1 }
  0x35   : > { %256 = vst.msk [vmem:[#allocation2 + $0x9c] sm:$0xf] %vm172_vm0, %v13125_v1  ;;  %257 = vst.msk [vmem:[#allocation2 + $0xac] sm:$0xf] %vm172_vm0, %v13125_v1 }
  0x36   : > { %258 = vst.msk [vmem:[#allocation2 + $0xbc] sm:$0xf] %vm172_vm0, %v13125_v1  ;;  %259 = vst.msk [vmem:[#allocation2 + $0xcc] sm:$0xf] %vm172_vm0, %v13125_v1 }
  0x37   : > { %260 = vst.msk [vmem:[#allocation2 + $0xdc] sm:$0xf] %vm172_vm0, %v13125_v1  ;;  %261 = vst.msk [vmem:[#allocation2 + $0xec] sm:$0xf] %vm172_vm0, %v13125_v1 }
  0x38   : > { %262 = vst.msk [vmem:[#allocation2 + $0xfc] sm:$0xf] %vm172_vm0, %v13125_v1  ;;  %263 = vst.msk [vmem:[#allocation2 + $0x10c] sm:$0xf] %vm172_vm0, %v13125_v1 }
  0x39   : > { %264 = vst.msk [vmem:[#allocation2 + $0x11c] sm:$0xf] %vm172_vm0, %v13125_v1  ;;  %265 = vst.msk [vmem:[#allocation2 + $0x12c] sm:$0xf] %vm172_vm0, %v13125_v1 }
  0x3a   : > { %266 = vst.msk [vmem:[#allocation2 + $0x13c] sm:$0xf] %vm172_vm0, %v13125_v1  ;;  %267 = vst.msk [vmem:[#allocation2 + $0x14c] sm:$0xf] %vm172_vm0, %v13125_v1 }
  0x3b   : > { %268 = vst.msk [vmem:[#allocation2 + $0x15c] sm:$0xf] %vm172_vm0, %v13125_v1  ;;  %269 = vst.msk [vmem:[#allocation2 + $0x16c] sm:$0xf] %vm172_vm0, %v13125_v1 }
  0x3c   : > { %270 = vst.msk [vmem:[#allocation2 + $0x17c] sm:$0xf] %vm172_vm0, %v13125_v1  ;;  %271 = vst.msk [vmem:[#allocation3] sm:$0xf] %vm172_vm0, %v13125_v1 }
  0x3d   : > { %272 = vst.msk [vmem:[#allocation3 + $0x4] sm:$0xf] %vm172_vm0, %v13125_v1  ;;  %273 = vst.msk [vmem:[#allocation3 + $0x8] sm:$0xf] %vm172_vm0, %v13125_v1 }
  0x3e   : > { %274 = vst.msk [vmem:[#allocation3 + $0xc] sm:$0xf] %vm172_vm0, %v13125_v1  ;;  %275 = vst.msk [vmem:[#allocation3 + $0x10] sm:$0xf] %vm172_vm0, %v13125_v1 }
  0x3f   : > { %276 = vst.msk [vmem:[#allocation3 + $0x14] sm:$0xf] %vm172_vm0, %v13125_v1  ;;  %277 = vst.msk [vmem:[#allocation3 + $0x18] sm:$0xf] %vm172_vm0, %v13125_v1 }
  0x40   : > { %278 = vst.msk [vmem:[#allocation3 + $0x1c] sm:$0xf] %vm172_vm0, %v13125_v1  ;;  %279 = vst.msk [vmem:[#allocation3 + $0x20] sm:$0xf] %vm172_vm0, %v13125_v1 }
  0x41   : > { %280 = vst.msk [vmem:[#allocation3 + $0x24] sm:$0xf] %vm172_vm0, %v13125_v1  ;;  %281 = vst.msk [vmem:[#allocation3 + $0x28] sm:$0xf] %vm172_vm0, %v13125_v1 }
  0x42   : > { %282 = vst.msk [vmem:[#allocation3 + $0x2c] sm:$0xf] %vm172_vm0, %v13125_v1  ;;  %283 = vst.msk [vmem:[#allocation3 + $0x30] sm:$0xf] %vm172_vm0, %v13125_v1 }
  0x43   : > { %284 = vst.msk [vmem:[#allocation3 + $0x34] sm:$0xf] %vm172_vm0, %v13125_v1  ;;  %285 = vst.msk [vmem:[#allocation3 + $0x38] sm:$0xf] %vm172_vm0, %v13125_v1 }
  0x44   : > { %286 = vst.msk [vmem:[#allocation3 + $0x3c] sm:$0xf] %vm172_vm0, %v13125_v1  ;;  %287 = vst.msk [vmem:[#allocation3 + $0x40] sm:$0xf] %vm172_vm0, %v13125_v1 }
  0x45   : > { %288 = vst.msk [vmem:[#allocation3 + $0x44] sm:$0xf] %vm172_vm0, %v13125_v1  ;;  %289 = vst.msk [vmem:[#allocation3 + $0x48] sm:$0xf] %vm172_vm0, %v13125_v1 }
  0x46   : > { %290 = vst.msk [vmem:[#allocation3 + $0x4c] sm:$0xf] %vm172_vm0, %v13125_v1  ;;  %291 = vst.msk [vmem:[#allocation3 + $0x50] sm:$0xf] %vm172_vm0, %v13125_v1 }
  0x47   : > { %292 = vst.msk [vmem:[#allocation3 + $0x54] sm:$0xf] %vm172_vm0, %v13125_v1  ;;  %293 = vst.msk [vmem:[#allocation3 + $0x58] sm:$0xf] %vm172_vm0, %v13125_v1 }
  0x48   : > { %294 = vst.msk [vmem:[#allocation3 + $0x5c] sm:$0xf] %vm172_vm0, %v13125_v1  ;;  %295 = vst.msk [vmem:[#allocation3 + $0x60] sm:$0xf] %vm172_vm0, %v13125_v1 }
  0x49   : > { %296 = vst.msk [vmem:[#allocation3 + $0x64] sm:$0xf] %vm172_vm0, %v13125_v1  ;;  %297 = vst.msk [vmem:[#allocation3 + $0x68] sm:$0xf] %vm172_vm0, %v13125_v1 }
  0x4a   : > { %298 = vst.msk [vmem:[#allocation3 + $0x6c] sm:$0xf] %vm172_vm0, %v13125_v1  ;;  %299 = vst.msk [vmem:[#allocation3 + $0x70] sm:$0xf] %vm172_vm0, %v13125_v1 }
  0x4b   : > { %300 = vst.msk [vmem:[#allocation3 + $0x74] sm:$0xf] %vm172_vm0, %v13125_v1  ;;  %301 = vst.msk [vmem:[#allocation3 + $0x78] sm:$0xf] %vm172_vm0, %v13125_v1 }
  0x4c   : > { %302 = vst.msk [vmem:[#allocation3 + $0x7c] sm:$0xf] %vm172_vm0, %v13125_v1  ;;  %304 = vst.msk [vmem:[#allocation3 + $0x180] sm:$0xf] %vm172_vm0, %v13125_v1 }
  0x4d   : > { %305 = vst.msk [vmem:[#allocation3 + $0x184] sm:$0xf] %vm172_vm0, %v13125_v1  ;;  %306 = vst.msk [vmem:[#allocation3 + $0x188] sm:$0xf] %vm172_vm0, %v13125_v1 }
  0x4e   : > { %307 = vst.msk [vmem:[#allocation3 + $0x18c] sm:$0xf] %vm172_vm0, %v13125_v1  ;;  %308 = vst.msk [vmem:[#allocation3 + $0x190] sm:$0xf] %vm172_vm0, %v13125_v1 }
  0x4f   : > { %309 = vst.msk [vmem:[#allocation3 + $0x194] sm:$0xf] %vm172_vm0, %v13125_v1  ;;  %310 = vst.msk [vmem:[#allocation3 + $0x198] sm:$0xf] %vm172_vm0, %v13125_v1 }
  0x50   : > { %311 = vst.msk [vmem:[#allocation3 + $0x19c] sm:$0xf] %vm172_vm0, %v13125_v1  ;;  %312 = vst.msk [vmem:[#allocation3 + $0x1a0] sm:$0xf] %vm172_vm0, %v13125_v1 }
  0x51   : > { %313 = vst.msk [vmem:[#allocation3 + $0x1a4] sm:$0xf] %vm172_vm0, %v13125_v1  ;;  %314 = vst.msk [vmem:[#allocation3 + $0x1a8] sm:$0xf] %vm172_vm0, %v13125_v1 }
  0x52   : > { %315 = vst.msk [vmem:[#allocation3 + $0x1ac] sm:$0xf] %vm172_vm0, %v13125_v1  ;;  %316 = vst.msk [vmem:[#allocation3 + $0x1b0] sm:$0xf] %vm172_vm0, %v13125_v1 }
  0x53   : > { %317 = vst.msk [vmem:[#allocation3 + $0x1b4] sm:$0xf] %vm172_vm0, %v13125_v1  ;;  %318 = vst.msk [vmem:[#allocation3 + $0x1b8] sm:$0xf] %vm172_vm0, %v13125_v1 }
  0x54   : > { %319 = vst.msk [vmem:[#allocation3 + $0x1bc] sm:$0xf] %vm172_vm0, %v13125_v1  ;;  %320 = vst.msk [vmem:[#allocation3 + $0x1c0] sm:$0xf] %vm172_vm0, %v13125_v1 }
  0x55   : > { %321 = vst.msk [vmem:[#allocation3 + $0x1c4] sm:$0xf] %vm172_vm0, %v13125_v1  ;;  %322 = vst.msk [vmem:[#allocation3 + $0x1c8] sm:$0xf] %vm172_vm0, %v13125_v1 }
  0x56   : > { %323 = vst.msk [vmem:[#allocation3 + $0x1cc] sm:$0xf] %vm172_vm0, %v13125_v1  ;;  %324 = vst.msk [vmem:[#allocation3 + $0x1d0] sm:$0xf] %vm172_vm0, %v13125_v1 }
  0x57   : > { %325 = vst.msk [vmem:[#allocation3 + $0x1d4] sm:$0xf] %vm172_vm0, %v13125_v1  ;;  %326 = vst.msk [vmem:[#allocation3 + $0x1d8] sm:$0xf] %vm172_vm0, %v13125_v1 }
  0x58   : > { %327 = vst.msk [vmem:[#allocation3 + $0x1dc] sm:$0xf] %vm172_vm0, %v13125_v1  ;;  %328 = vst.msk [vmem:[#allocation3 + $0x1e0] sm:$0xf] %vm172_vm0, %v13125_v1 }
  0x59   : > { %329 = vst.msk [vmem:[#allocation3 + $0x1e4] sm:$0xf] %vm172_vm0, %v13125_v1  ;;  %330 = vst.msk [vmem:[#allocation3 + $0x1e8] sm:$0xf] %vm172_vm0, %v13125_v1 }
  0x5a   : > { %331 = vst.msk [vmem:[#allocation3 + $0x1ec] sm:$0xf] %vm172_vm0, %v13125_v1  ;;  %332 = vst.msk [vmem:[#allocation3 + $0x1f0] sm:$0xf] %vm172_vm0, %v13125_v1 }
  0x5b   : > { %333 = vst.msk [vmem:[#allocation3 + $0x1f4] sm:$0xf] %vm172_vm0, %v13125_v1  ;;  %334 = vst.msk [vmem:[#allocation3 + $0x1f8] sm:$0xf] %vm172_vm0, %v13125_v1 }
  0x5c   : > { %335 = vst.msk [vmem:[#allocation3 + $0x1fc] sm:$0xf] %vm172_vm0, %v13125_v1  ;;  %337 = vst.msk [vmem:[#allocation3 + $0x80] sm:$0xf] %vm172_vm0, %v13125_v1 }
  0x5d   : > { %338 = vst.msk [vmem:[#allocation3 + $0x90] sm:$0xf] %vm172_vm0, %v13125_v1  ;;  %339 = vst.msk [vmem:[#allocation3 + $0xa0] sm:$0xf] %vm172_vm0, %v13125_v1 }
  0x5e   : > { %340 = vst.msk [vmem:[#allocation3 + $0xb0] sm:$0xf] %vm172_vm0, %v13125_v1  ;;  %341 = vst.msk [vmem:[#allocation3 + $0xc0] sm:$0xf] %vm172_vm0, %v13125_v1 }
  0x5f   : > { %342 = vst.msk [vmem:[#allocation3 + $0xd0] sm:$0xf] %vm172_vm0, %v13125_v1  ;;  %343 = vst.msk [vmem:[#allocation3 + $0xe0] sm:$0xf] %vm172_vm0, %v13125_v1 }
  0x60   : > { %344 = vst.msk [vmem:[#allocation3 + $0xf0] sm:$0xf] %vm172_vm0, %v13125_v1  ;;  %345 = vst.msk [vmem:[#allocation3 + $0x100] sm:$0xf] %vm172_vm0, %v13125_v1 }
  0x61   : > { %346 = vst.msk [vmem:[#allocation3 + $0x110] sm:$0xf] %vm172_vm0, %v13125_v1  ;;  %347 = vst.msk [vmem:[#allocation3 + $0x120] sm:$0xf] %vm172_vm0, %v13125_v1 }
  0x62   : > { %348 = vst.msk [vmem:[#allocation3 + $0x130] sm:$0xf] %vm172_vm0, %v13125_v1  ;;  %349 = vst.msk [vmem:[#allocation3 + $0x140] sm:$0xf] %vm172_vm0, %v13125_v1 }
  0x63   : > { %350 = vst.msk [vmem:[#allocation3 + $0x150] sm:$0xf] %vm172_vm0, %v13125_v1  ;;  %351 = vst.msk [vmem:[#allocation3 + $0x160] sm:$0xf] %vm172_vm0, %v13125_v1 }
  0x64   : > { %352 = vst.msk [vmem:[#allocation3 + $0x170] sm:$0xf] %vm172_vm0, %v13125_v1  ;;  %353 = vst.msk [vmem:[#allocation3 + $0x8c] sm:$0xf] %vm172_vm0, %v13125_v1 }
  0x65   : > { %354 = vst.msk [vmem:[#allocation3 + $0x9c] sm:$0xf] %vm172_vm0, %v13125_v1  ;;  %355 = vst.msk [vmem:[#allocation3 + $0xac] sm:$0xf] %vm172_vm0, %v13125_v1 }
  0x66   : > { %356 = vst.msk [vmem:[#allocation3 + $0xbc] sm:$0xf] %vm172_vm0, %v13125_v1  ;;  %357 = vst.msk [vmem:[#allocation3 + $0xcc] sm:$0xf] %vm172_vm0, %v13125_v1 }
  0x67   : > { %358 = vst.msk [vmem:[#allocation3 + $0xdc] sm:$0xf] %vm172_vm0, %v13125_v1  ;;  %359 = vst.msk [vmem:[#allocation3 + $0xec] sm:$0xf] %vm172_vm0, %v13125_v1 }
  0x68   : > { %360 = vst.msk [vmem:[#allocation3 + $0xfc] sm:$0xf] %vm172_vm0, %v13125_v1  ;;  %361 = vst.msk [vmem:[#allocation3 + $0x10c] sm:$0xf] %vm172_vm0, %v13125_v1 }
  0x69   : > { %362 = vst.msk [vmem:[#allocation3 + $0x11c] sm:$0xf] %vm172_vm0, %v13125_v1  ;;  %363 = vst.msk [vmem:[#allocation3 + $0x12c] sm:$0xf] %vm172_vm0, %v13125_v1 }
  0x6a   : > { %364 = vst.msk [vmem:[#allocation3 + $0x13c] sm:$0xf] %vm172_vm0, %v13125_v1  ;;  %365 = vst.msk [vmem:[#allocation3 + $0x14c] sm:$0xf] %vm172_vm0, %v13125_v1 }
  0x6b   : > { %366 = vst.msk [vmem:[#allocation3 + $0x15c] sm:$0xf] %vm172_vm0, %v13125_v1  ;;  %367 = vst.msk [vmem:[#allocation3 + $0x16c] sm:$0xf] %vm172_vm0, %v13125_v1 }
  0x6c   : > { %368 = vst.msk [vmem:[#allocation3 + $0x17c] sm:$0xf] %vm172_vm0, %v13125_v1  ;;  %529 = vst.msk [vmem:[#allocation2 + $0x84] sm:$0xf] %vm172_vm0, %v11780_v5  ;;  %v11810_v1 = vpack.c.bf16 %v399_v62, %v399_v62 }
  0x6d   : > { %530 = vst.msk [vmem:[#allocation2 + $0x88] sm:$0xf] %vm172_vm0, %v11781_v6  ;;  %531 = vst.msk [vmem:[#allocation2 + $0x94] sm:$0xf] %vm172_vm0, %v11782_v7 }
  0x6e   : > { %532 = vst.msk [vmem:[#allocation2 + $0x98] sm:$0xf] %vm172_vm0, %v11783_v11  ;;  %533 = vst.msk [vmem:[#allocation2 + $0xa4] sm:$0xf] %vm172_vm0, %v11784_v12 }
  0x6f   : > { %534 = vst.msk [vmem:[#allocation2 + $0xa8] sm:$0xf] %vm172_vm0, %v11785_v13  ;;  %535 = vst.msk [vmem:[#allocation2 + $0xb4] sm:$0xf] %vm172_vm0, %v11786_v17 }
  0x70   : > { %536 = vst.msk [vmem:[#allocation2 + $0xb8] sm:$0xf] %vm172_vm0, %v11787_v18  ;;  %537 = vst.msk [vmem:[#allocation2 + $0xc4] sm:$0xf] %vm172_vm0, %v11788_v19 }
  0x71   : > { %538 = vst.msk [vmem:[#allocation2 + $0xc8] sm:$0xf] %vm172_vm0, %v11789_v23  ;;  %539 = vst.msk [vmem:[#allocation2 + $0xd4] sm:$0xf] %vm172_vm0, %v11790_v24 }
  0x72   : > { %540 = vst.msk [vmem:[#allocation2 + $0xd8] sm:$0xf] %vm172_vm0, %v11791_v25  ;;  %541 = vst.msk [vmem:[#allocation2 + $0xe4] sm:$0xf] %vm172_vm0, %v11792_v29 }
  0x73   : > { %542 = vst.msk [vmem:[#allocation2 + $0xe8] sm:$0xf] %vm172_vm0, %v11793_v30  ;;  %543 = vst.msk [vmem:[#allocation2 + $0xf4] sm:$0xf] %vm172_vm0, %v11794_v31 }
  0x74   : > { %544 = vst.msk [vmem:[#allocation2 + $0xf8] sm:$0xf] %vm172_vm0, %v11795_v35  ;;  %545 = vst.msk [vmem:[#allocation2 + $0x104] sm:$0xf] %vm172_vm0, %v11796_v36 }
  0x75   : > { %546 = vst.msk [vmem:[#allocation2 + $0x108] sm:$0xf] %vm172_vm0, %v11797_v37  ;;  %547 = vst.msk [vmem:[#allocation2 + $0x114] sm:$0xf] %vm172_vm0, %v11798_v41 }
  0x76   : > { %548 = vst.msk [vmem:[#allocation2 + $0x118] sm:$0xf] %vm172_vm0, %v11799_v42  ;;  %549 = vst.msk [vmem:[#allocation2 + $0x124] sm:$0xf] %vm172_vm0, %v11800_v43 }
  0x77   : > { %550 = vst.msk [vmem:[#allocation2 + $0x128] sm:$0xf] %vm172_vm0, %v11801_v47  ;;  %551 = vst.msk [vmem:[#allocation2 + $0x134] sm:$0xf] %vm172_vm0, %v11802_v48 }
  0x78   : > { %552 = vst.msk [vmem:[#allocation2 + $0x138] sm:$0xf] %vm172_vm0, %v11803_v49  ;;  %553 = vst.msk [vmem:[#allocation2 + $0x144] sm:$0xf] %vm172_vm0, %v11804_v53 }
  0x79   : > { %554 = vst.msk [vmem:[#allocation2 + $0x148] sm:$0xf] %vm172_vm0, %v11805_v54  ;;  %555 = vst.msk [vmem:[#allocation2 + $0x154] sm:$0xf] %vm172_vm0, %v11806_v55 }
  0x7a   : > { %556 = vst.msk [vmem:[#allocation2 + $0x158] sm:$0xf] %vm172_vm0, %v11807_v59  ;;  %557 = vst.msk [vmem:[#allocation2 + $0x164] sm:$0xf] %vm172_vm0, %v11808_v60 }
  0x7b   : > { %558 = vst.msk [vmem:[#allocation2 + $0x168] sm:$0xf] %vm172_vm0, %v11809_v61  ;;  %559 = vst.msk [vmem:[#allocation2 + $0x174] sm:$0xf] %vm172_vm0, %v11810_v1 }
  0x7c   : > { %560 = vst.msk [vmem:[#allocation2 + $0x178] sm:$0xf] %vm172_vm0, %v11811_v2 }
  0x7d LB: >> { %v10355_v3 = vld [vmem:[%s17014_s1 + $0x2] sm:$0x3]  ;;  %vm665_vm1 = vcmask 1041408   ;;  %v597_v4 = vld [vmem:[%s17014_s1] sm:$0x3]  ;;  %s13645_s4 = sshll.u32 %s13111_s24, 7  ;;  %s13111_s24 = sphi %s13627_s24, %s567_s24  }
  0x7e   : >> { %12861 = vmatprep.subr.msk.bf16.mxu1 %vm665_vm1, %v10355_v3  ;;  %12860 = vmatprep.subr.msk.bf16.mxu0 %vm665_vm1, %v10355_v3  ;;  %v667_v5 = vsel %vm665_vm1, %v10355_v3, 0  ;;  %v10420_v6 = vld [vmem:[%s17014_s1 + $0x4] sm:$0x3]  ;;  %vm640_vm2 = vcmask 31744   ;;  %v13649_v7 = vsel %vm665_vm1, %v597_v4, 0  ;;  %s13654_s5 = scalar_lea.vmem [#allocation2], %s13645_s4  ;;  %s14550_s19 = scalar_lea.vmem %s13556_s20, %s13645_s4 }
  0x7f   : >> { %12853 = vmatpush3.bf16.msra.mxu1 %v667_v5  ;;  %12205 = vmatpush3.bf16.msra.mxu0 %v667_v5  ;;  %v1363_v8 = vsel %vm665_vm1, %v10420_v6, 0  ;;  %vm766_vm3 = vsmask.f32 256  ;;  %vm767_vm4 = vsmask.f32 4368  ;;  %s14568_s21 = scalar_lea.vmem %s13561_s23, %s13645_s4  ;;  %s14578_s22 = scalar_lea.vmem [#allocation3], %s13645_s4 }
  0x80   : >> { %12862 = vmatprep.subr.msk.bf16.mxu1 %vm665_vm1, %v597_v4  ;;  %12863 = vmatprep.subr.msk.bf16.mxu0 %vm665_vm1, %v10420_v6  ;;  %v13696_v43 = vld [vmem:[%s17014_s1 + $0x6] sm:$0x3]  ;;  %vm1119_vm5 = vsmask.f32 3328  ;;  %vm1120_vm6 = vsmask.f32 7440  ;;  %vm13768_vm7 = vmor %vm766_vm3, %vm767_vm4 }
  0x81   : >> { %vm13812_vm8 = vmor %vm1119_vm5, %vm1120_vm6  ;;  %s567_s24 = sadd.s32 1, %s13111_s24  }
  0x82   : >> { %p564_p4 = scmp.ge.s32.totalorder %s567_s24, 2  }
  0x83   : >> { %v10332_v9 = vld [vmem:[%s13654_s5 + $0x74] sm:$0xf]  ;;  %v10333_v10 = vld [vmem:[%s13654_s5 + $0x78] sm:$0xf]  ;;  %v10335_v21 = vld [vmem:[%s13654_s5 + $0x84] sm:$0xf] }
  0x84   : >> { %v10344_v11 = vld [vmem:[%s13654_s5 + $0xb4] sm:$0xf]  ;;  %v10356_v12 = vcombine.low %v10332_v9, %v10333_v10  ;;  %v775_v13 = vshrl.u32 %v10332_v9, 16  ;;  %v778_v14 = vshll.u32 %v10332_v9, 16  ;;  %v784_v15 = vshrl.u32 %v10333_v10, 16  ;;  %s14691_s27 = smov (%p564_p4), 0  }
  0x85   : >> { %v10345_v16 = vld [vmem:[%s13654_s5 + $0xb8] sm:$0xf]  ;;  %v787_v17 = vshll.u32 %v10333_v10, 16  ;;  %v863_v19 = vshrl.u32 %v10344_v11, 16  ;;  %v866_v20 = vshll.u32 %v10344_v11, 16  ;;  %v797_v29 = vshrl.u32 %v10335_v21, 16 }
  0x86   : >> { %v10360_v18 = vcombine.low %v10344_v11, %v10345_v16  ;;  %12206 = vmatprep.mubr.msk.bf16.mxu0 %vm640_vm2, %v10356_v12  ;;  %v13662_v22 = vrot.slane %v775_v13, 7  ;;  %v786_v23 = vrot.slane %v784_v15, 7  ;;  %v872_v24 = vshrl.u32 %v10345_v16, 16  ;;  %v10336_v26 = vld [vmem:[%s13654_s5 + $0x88] sm:$0xf] }
  0x87   : >> { %v875_v25 = vshll.u32 %v10345_v16, 16  ;;  %v13666_v27 = vrot.slane %v863_v19, 7  ;;  %v10357_v28 = vcombine.low %v10335_v21, %v10336_v26  ;;  %v800_v30 = vshll.u32 %v10335_v21, 16  ;;  %v13669_v31 = vld [vmem:[%s13654_s5 + $0xc4] sm:$0xf] }
  0x88   : >> { %12214 = vmatprep.mubr.msk.bf16.mxu1 %vm640_vm2, %v10360_v18  ;;  %v13672_v32 = vor.u32 %v778_v14, %v13662_v22  ;;  %v782_v33 = vrot.slane %v13662_v22, 4  ;;  %v13675_v34 = vor.u32 %v787_v17, %v786_v23  ;;  %v874_v35 = vrot.slane %v872_v24, 7  ;;  %v13678_v36 = vld [vmem:[%s13654_s5 + $0xc8] sm:$0xf]  ;;  %v13681_v37 = vld [vmem:[%s13654_s5 + $0x94] sm:$0xf] }
  0x89   : >> { %v13684_v38 = vor.u32 %v866_v20, %v13666_v27  ;;  %v870_v39 = vrot.slane %v13666_v27, 4  ;;  %12207 = vmatmul.mubr.msk.bf16.vlgmr.msra.gmra.mxu0 %vm640_vm2, %v10357_v28  ;;  %v13688_v40 = vrot.slane %v797_v29, 7  ;;  %v806_v41 = vshrl.u32 %v10336_v26, 16  ;;  %v13691_v42 = vld [vmem:[%s13654_s5 + $0x98] sm:$0xf] }
  0x8a   : >> { %v13698_v44 = vor.u32 %v875_v25, %v874_v35  ;;  %v809_v45 = vshll.u32 %v10336_v26, 16  ;;  %v10361_v46 = vcombine.low %v13669_v31, %v13678_v36  ;;  %v885_v47 = vshrl.u32 %v13669_v31, 16  ;;  %12241 = vmatpush3.bf16.msra.mxu0 %v1363_v8  ;;  %v13704_v48 = vld [vmem:[%s13654_s5 + $0xd4] sm:$0xf]  ;;  %v13707_v49 = vld [vmem:[%s13654_s5 + $0xd8] sm:$0xf] }
  0x8b   : >> { %v13710_v50 = vor.u32 %v800_v30, %v13688_v40  ;;  %v804_v51 = vrot.slane %v13688_v40, 4  ;;  %v808_v52 = vrot.slane %v806_v41, 7  ;;  %v888_v53 = vshll.u32 %v13669_v31, 16  ;;  %v13715_v54 = vld [vmem:[%s13654_s5 + $0xa4] sm:$0xf] }
  0x8c   : >> { %12215 = vmatmul.mubr.msk.bf16.vlgmr.msra.gmra.mxu1 %vm640_vm2, %v10361_v46  ;;  %v13718_v55 = vrot.slane %v885_v47, 7  ;;  %v894_v56 = vshrl.u32 %v13678_v36, 16  ;;  %v897_v57 = vshll.u32 %v13678_v36, 16  ;;  %v10358_v58 = vcombine.low %v13681_v37, %v13691_v42  ;;  %v13725_v59 = vld [vmem:[%s13654_s5 + $0xa8] sm:$0xf] }
  0x8d   : >> { %v811_v60 = vor.u32 %v809_v45, %v808_v52  ;;  %12223 = vmatpush3.bf16.msra.mxu1 %v13649_v7  ;;  %v819_v61 = vshrl.u32 %v13681_v37, 16  ;;  %v822_v62 = vshll.u32 %v13681_v37, 16  ;;  %v828_v63 = vshrl.u32 %v13691_v42, 16  ;;  %v13732_v1 = vld [vmem:[%s13654_s5 + $0xe4] sm:$0xf] }
  0x8e   : >> { %v13734_v2 = vrot.slane %v894_v56, 7  ;;  %12210 = vmatprep.mubr.msk.bf16.mxu0 %vm640_vm2, %v10358_v58  ;;  %v831_v3 = vshll.u32 %v13691_v42, 16  ;;  %v10362_v4 = vcombine.low %v13704_v48, %v13707_v49  ;;  %v907_v5 = vshrl.u32 %v13704_v48, 16  ;;  %v13742_v6 = vld [vmem:[%s13654_s5 + $0xe8] sm:$0xf]  ;;  %12864 = vmatprep.subr.msk.bf16.mxu1 %vm665_vm1, %v13696_v43 }
  0x8f   : >> { %v13746_v7 = vrot.slane %v819_v61, 7  ;;  %v13748_v8 = vrot.slane %v828_v63, 7  ;;  %v910_v9 = vshll.u32 %v13704_v48, 16  ;;  %v916_v10 = vshrl.u32 %v13707_v49, 16  ;;  %v10331_v11 = vld [vmem:[%s13654_s5 + $0x70] sm:$0x8] }
  0x90   : >> { %12218 = vmatprep.mubr.msk.bf16.mxu1 %vm640_vm2, %v10362_v4  ;;  %v13754_v12 = vrot.slane %v907_v5, 7  ;;  %v919_v13 = vshll.u32 %v13707_v49, 16  ;;  %v10359_v14 = vcombine.low %v13715_v54, %v13725_v59  ;;  %v841_v15 = vshrl.u32 %v13715_v54, 16  ;;  %v10396_v16 = vld [vmem:[%s13654_s5 + $0x74] sm:$0xf] }
  0x91   : >> { %v13761_v17 = vrot.slane %v916_v10, 7  ;;  %v844_v18 = vshll.u32 %v13715_v54, 16  ;;  %v850_v19 = vshrl.u32 %v13725_v59, 16  ;;  %v853_v20 = vshll.u32 %v13725_v59, 16  ;;  %v10397_v23 = vld [vmem:[%s13654_s5 + $0x78] sm:$0xf] }
  0x92   : >> { %12211 = vmatmul.mubr.msk.bf16.gmra.mxu0 %vm640_vm2, %v10359_v14  ;;  %v13774_v24 = vrot.slane %v841_v15, 7  ;;  %v10363_v25 = vcombine.low %v13732_v1, %v13742_v6  ;;  %v929_v26 = vshrl.u32 %v13732_v1, 16  ;;  %v932_v28 = vshll.u32 %v13732_v1, 16  ;;  %v10398_v29 = vld [vmem:[%s13654_s5 + $0x7c] sm:$0x1] }
  0x93   : >> { %v13781_v30 = vrot.slane %v850_v19, 7  ;;  %v938_v35 = vshrl.u32 %v13742_v6, 16  ;;  %v770_v45 = vshrl.u32 %v10331_v11, 16  ;;  %v10334_v46 = vld [vmem:[%s13654_s5 + $0x80] sm:$0x8]  ;;  %v790_v52 = vsel %vm13768_vm7, %v782_v33, %v13675_v34 }
  0x94   : >> { %12219 = vmatmul.mubr.msk.bf16.gmra.mxu1 %vm640_vm2, %v10363_v25  ;;  %v13787_v47 = vrot.slane %v929_v26, 7  ;;  %v1123_v56 = vshrl.u32 %v10396_v16, 16  ;;  %v1126_v58 = vshll.u32 %v10396_v16, 16  ;;  %v1132_v4 = vshll.u32 %v10397_v23, 16  ;;  %v10399_v10 = vld [vmem:[%s13654_s5 + $0x84] sm:$0xf] }
  0x95   : >> { %v13794_v61 = vrot.slane %v938_v35, 7  ;;  %v10372_v63 = vrot.slane %v770_v45, 11  ;;  %v1136_v5 = vshrl.u32 %v10397_v23, 16  ;;  %v1142_v15 = vshll.u32 %v10398_v29, 16  ;;  %v10400_v25 = vld [vmem:[%s13654_s5 + $0x88] sm:$0xf] }
  0x96   : >> { %v1125_v11 = vrot.slane %v1123_v56, 4  ;;  %v1128_v14 = vrot.slane %v1126_v58, 5  ;;  %v792_v19 = vshrl.u32 %v10334_v46, 16  ;;  %v1134_v26 = vrot.slane %v1132_v4, 5  ;;  %v10401_v16 = vld [vmem:[%s13654_s5 + $0x8c] sm:$0x1] }
  0x97   : >> { %v781_v22 = vsel %vm13768_vm7, %v10372_v63, %v13672_v32  ;;  %v1138_v33 = vrot.slane %v1136_v5, 4  ;;  %v812_v34 = vsel %vm13768_vm7, %v804_v51, %v811_v60  ;;  %v10488_v23 = vld [vmem:[%s17014_s1 + $0x8] sm:$0x3]  ;;  %v1144_v45 = vrot.slane %v1142_v15, 5  ;;  %v10340_v42 = vld [vmem:[%s13654_s5 + $0xa0] sm:$0x8] }
  0x98   : >> { %v10380_v35 = vcombine.low %v781_v22, %v790_v52  ;;  %v1129_v29 = vor.u32 %v1128_v14, %v1125_v11  ;;  %v10373_v46 = vrot.slane %v792_v19, 11  ;;  %12865 = vmatprep.subr.msk.bf16.mxu0 %vm665_vm1, %v10488_v23  ;;  %v1147_v51 = vshrl.u32 %v10399_v10, 16  ;;  %v10337_v19 = vld [vmem:[%s13654_s5 + $0x90] sm:$0x8]  ;;  %v10407_v54 = vld [vmem:[%s13654_s5 + $0xac] sm:$0x1] }
  0x99   : >> { %v1139_v40 = vor.u32 %v1138_v33, %v1134_v26  ;;  %v1150_v60 = vshll.u32 %v10399_v10, 16  ;;  %v1156_v56 = vshll.u32 %v10400_v25, 16  ;;  %v1160_v63 = vshrl.u32 %v10400_v25, 16  ;;  %v10349_v36 = vld [vmem:[%s13654_s5 + $0xd0] sm:$0x8] }
  0x9a   : >> { %12224 = vmatprep.mubr.msk.bf16.mxu1 %vm640_vm2, %v10380_v35  ;;  %v1130_v52 = vrot.slane %v1129_v29, 4  ;;  %v803_v58 = vsel %vm13768_vm7, %v10373_v46, %v13710_v50  ;;  %v1166_v4 = vshll.u32 %v10401_v16, 16  ;;  %v1149_v14 = vrot.slane %v1147_v51, 4  ;;  %v10402_v35 = vld [vmem:[%s13654_s5 + $0x94] sm:$0xf] }
  0x9b   : >> { %v1140_v5 = vrot.slane %v1139_v40, 4  ;;  %v10381_v11 = vcombine.low %v803_v58, %v812_v34  ;;  %v1152_v15 = vrot.slane %v1150_v60, 5  ;;  %v1158_v22 = vrot.slane %v1156_v56, 5  ;;  %v10403_v16 = vld [vmem:[%s13654_s5 + $0x98] sm:$0xf] }
  0x9c   : >> { %v1135_v10 = vsel %vm13812_vm8, %v1130_v52, %v1134_v26  ;;  %v1162_v33 = vrot.slane %v1160_v63, 4  ;;  %v1168_v41 = vrot.slane %v1166_v4, 5  ;;  %v1733_v25 = vsel %vm665_vm1, %v13696_v43, 0  ;;  %v10404_v58 = vld [vmem:[%s13654_s5 + $0x9c] sm:$0x1] }
  0x9d   : >> { %v1145_v29 = vsel %vm13812_vm8, %v1140_v5, %v1144_v45  ;;  %12225 = vmatmul.mubr.msk.bf16.vlgmr.msra.gmra.mxu1 %vm640_vm2, %v10381_v11  ;;  %v1153_v50 = vor.u32 %v1152_v15, %v1149_v14  ;;  %v1915_v34 = vsel %vm665_vm1, %v10488_v23, 0  ;;  %v814_v26 = vshrl.u32 %v10337_v19, 16  ;;  %v10405_v15 = vld [vmem:[%s13654_s5 + $0xa4] sm:$0xf]  ;;  %v10419_v1 = vld [vmem:[%s13654_s5 + $0xec] sm:$0x1] }
  0x9e   : >> { %v10421_v46 = vcombine.low %v1135_v10, %v1145_v29  ;;  %v1163_v40 = vor.u32 %v1162_v33, %v1158_v22  ;;  %12259 = vmatpush3.bf16.msra.mxu1 %v1733_v25  ;;  %v824_v51 = vor.u32 %v822_v62, %v13746_v7  ;;  %v826_v60 = vrot.slane %v13746_v7, 4 }
  0x9f   : >> { %v1154_v45 = vrot.slane %v1153_v50, 4  ;;  %v833_v56 = vor.u32 %v831_v3, %v13748_v8  ;;  %v1171_v43 = vshrl.u32 %v10402_v35, 16  ;;  %v10374_v52 = vrot.slane %v814_v26, 11 }
  0xa0   : >> { %12242 = vmatprep.mubr.msk.bf16.mxu0 %vm640_vm2, %v10421_v46  ;;  %v1164_v23 = vrot.slane %v1163_v40, 4  ;;  %v1174_v63 = vshll.u32 %v10402_v35, 16  ;;  %v1180_v4 = vshll.u32 %v10403_v16, 16  ;;  %v1184_v5 = vshrl.u32 %v10403_v16, 16  ;;  %v10406_v35 = vld [vmem:[%s13654_s5 + $0xa8] sm:$0xf] }
  0xa1   : >> { %v1159_v37 = vsel %vm13812_vm8, %v1154_v45, %v1158_v22  ;;  %v834_v62 = vsel %vm13768_vm7, %v826_v60, %v833_v56  ;;  %v1173_v7 = vrot.slane %v1171_v43, 4  ;;  %v825_v8 = vsel %vm13768_vm7, %v10374_v52, %v824_v51  ;;  %v10343_v52 = vld [vmem:[%s13654_s5 + $0xb0] sm:$0x8] }
  0xa2   : >> { %v1169_v3 = vsel %vm13812_vm8, %v1164_v23, %v1168_v41  ;;  %v1176_v11 = vrot.slane %v1174_v63, 5  ;;  %v1182_v14 = vrot.slane %v1180_v4, 5  ;;  %v10382_v10 = vcombine.low %v825_v8, %v834_v62 }
  0xa3   : >> { %v10422_v19 = vcombine.low %v1159_v37, %v1169_v3  ;;  %v1186_v33 = vrot.slane %v1184_v5, 4  ;;  %v1190_v22 = vshll.u32 %v10404_v58, 16  ;;  %v836_v50 = vshrl.u32 %v10340_v42, 16  ;;  %v10408_v58 = vld [vmem:[%s13654_s5 + $0xb4] sm:$0xf] }
  0xa4   : >> { %v1177_v29 = vor.u32 %v1176_v11, %v1173_v7  ;;  %v846_v25 = vor.u32 %v844_v18, %v13774_v24  ;;  %v848_v41 = vrot.slane %v13774_v24, 4  ;;  %12228 = vmatprep.mubr.msk.bf16.mxu1 %vm640_vm2, %v10382_v10  ;;  %v855_v40 = vor.u32 %v853_v20, %v13781_v30  ;;  %v10409_v7 = vld [vmem:[%s13654_s5 + $0xb8] sm:$0xf]  ;;  %v13875_v5 = vld [vmem:[%s17014_s1 + $0xa] sm:$0x3] }
  0xa5   : >> { %12243 = vmatmul.mubr.msk.bf16.vlgmr.msra.gmra.mxu0 %vm640_vm2, %v10422_v19  ;;  %v1187_v16 = vor.u32 %v1186_v33, %v1182_v14  ;;  %v1192_v46 = vrot.slane %v1190_v22, 5  ;;  %v1195_v26 = vshrl.u32 %v10405_v15, 16  ;;  %v10375_v45 = vrot.slane %v836_v50, 11  ;;  %12866 = vmatprep.subr.msk.bf16.mxu1 %vm665_vm1, %v13875_v5  ;;  %v13889_v22 = vld [vmem:[%s17014_s1 + $0xc] sm:$0x3] }
  0xa6   : >> { %12277 = vmatpush3.bf16.msra.mxu0 %v1915_v34  ;;  %v1178_v51 = vrot.slane %v1177_v29, 4  ;;  %v1198_v18 = vshll.u32 %v10405_v15, 16  ;;  %v1204_v24 = vshll.u32 %v10406_v35, 16  ;;  %v856_v56 = vsel %vm13768_vm7, %v848_v41, %v855_v40 }
  0xa7   : >> { %v1188_v60 = vrot.slane %v1187_v16, 4  ;;  %v1197_v43 = vrot.slane %v1195_v26, 4  ;;  %v1208_v23 = vshrl.u32 %v10406_v35, 16  ;;  %v847_v20 = vsel %vm13768_vm7, %v10375_v45, %v846_v25  ;;  %12867 = vmatprep.subr.msk.bf16.mxu0 %vm665_vm1, %v13889_v22  ;;  %v10346_v16 = vld [vmem:[%s13654_s5 + $0xc0] sm:$0x8] }
  0xa8   : >> { %v1183_v59 = vsel %vm13812_vm8, %v1178_v51, %v1182_v14  ;;  %v1200_v30 = vrot.slane %v1198_v18, 5  ;;  %v1206_v34 = vrot.slane %v1204_v24, 5  ;;  %v10383_v4 = vcombine.low %v847_v20, %v856_v56  ;;  %v10410_v14 = vld [vmem:[%s13654_s5 + $0xbc] sm:$0x1]  ;;  %v10411_v45 = vld [vmem:[%s13654_s5 + $0xc4] sm:$0xf] }
  0xa9   : >> { %v1193_v63 = vsel %vm13812_vm8, %v1188_v60, %v1192_v46  ;;  %v1210_v37 = vrot.slane %v1208_v23, 4  ;;  %v1214_v62 = vshll.u32 %v10407_v54, 16  ;;  %v858_v8 = vshrl.u32 %v10343_v52, 16  ;;  %v10412_v56 = vld [vmem:[%s13654_s5 + $0xc8] sm:$0xf] }
  0xaa   : >> { %v10423_v42 = vcombine.low %v1183_v59, %v1193_v63  ;;  %v1201_v3 = vor.u32 %v1200_v30, %v1197_v43  ;;  %v878_v11 = vsel %vm13768_vm7, %v870_v39, %v13698_v44  ;;  %12229 = vmatmul.mubr.msk.bf16.gmra.mxu1 %vm640_vm2, %v10383_v4  ;;  %v1219_v10 = vshrl.u32 %v10408_v58, 16  ;;  %v10413_v4 = vld [vmem:[%s13654_s5 + $0xcc] sm:$0x1] }
  0xab   : >> { %v1211_v15 = vor.u32 %v1210_v37, %v1206_v34  ;;  %v1216_v19 = vrot.slane %v1214_v62, 5  ;;  %v1222_v33 = vshll.u32 %v10408_v58, 16  ;;  %v10376_v39 = vrot.slane %v858_v8, 11  ;;  %v10414_v8 = vld [vmem:[%s13654_s5 + $0xd4] sm:$0xf] }
  0xac   : >> { %12246 = vmatprep.mubr.msk.bf16.mxu0 %vm640_vm2, %v10423_v42  ;;  %v1202_v27 = vrot.slane %v1201_v3, 4  ;;  %v1228_v44 = vshll.u32 %v10409_v7, 16  ;;  %v1232_v35 = vshrl.u32 %v10409_v7, 16  ;;  %v1221_v50 = vrot.slane %v1219_v10, 4  ;;  %v10415_v10 = vld [vmem:[%s13654_s5 + $0xd8] sm:$0xf] }
  0xad   : >> { %v1212_v29 = vrot.slane %v1211_v15, 4  ;;  %v1224_v25 = vrot.slane %v1222_v33, 5  ;;  %v1238_v41 = vshll.u32 %v10410_v14, 16  ;;  %v869_v40 = vsel %vm13768_vm7, %v10376_v39, %v13684_v38 }
  0xae   : >> { %v1207_v46 = vsel %vm13812_vm8, %v1202_v27, %v1206_v34  ;;  %v1230_v26 = vrot.slane %v1228_v44, 5  ;;  %v1234_v51 = vrot.slane %v1232_v35, 4  ;;  %v10384_v18 = vcombine.low %v869_v40, %v878_v11 }
  0xaf   : >> { %v1217_v54 = vsel %vm13812_vm8, %v1212_v29, %v1216_v19  ;;  %v1225_v24 = vor.u32 %v1224_v25, %v1221_v50  ;;  %v1240_v60 = vrot.slane %v1238_v41, 5  ;;  %v880_v52 = vshrl.u32 %v10346_v16, 16 }
  0xb0   : >> { %v10424_v43 = vcombine.low %v1207_v46, %v1217_v54  ;;  %v1235_v23 = vor.u32 %v1234_v51, %v1230_v26  ;;  %v890_v59 = vor.u32 %v888_v53, %v13718_v55  ;;  %12232 = vmatprep.mubr.msk.bf16.mxu1 %vm640_vm2, %v10384_v18  ;;  %v892_v20 = vrot.slane %v13718_v55, 4  ;;  %v10416_v46 = vld [vmem:[%s13654_s5 + $0xdc] sm:$0x1] }
  0xb1   : >> { %v1226_v38 = vrot.slane %v1225_v24, 4  ;;  %v899_v30 = vor.u32 %v897_v57, %v13734_v2  ;;  %v1243_v34 = vshrl.u32 %v10411_v45, 16  ;;  %v10377_v63 = vrot.slane %v880_v52, 11 }
  0xb2   : >> { %12247 = vmatmul.mubr.msk.bf16.gmra.mxu0 %vm640_vm2, %v10424_v43  ;;  %v1236_v58 = vrot.slane %v1235_v23, 4  ;;  %v1246_v37 = vshll.u32 %v10411_v45, 16  ;;  %v1252_v31 = vshll.u32 %v10412_v56, 16  ;;  %v1256_v7 = vshrl.u32 %v10412_v56, 16  ;;  %v10352_v45 = vld [vmem:[%s13654_s5 + $0xe0] sm:$0x8] }
  0xb3   : >> { %v1231_v53 = vsel %vm13812_vm8, %v1226_v38, %v1230_v26  ;;  %v900_v55 = vsel %vm13768_vm7, %v892_v20, %v899_v30  ;;  %v1245_v62 = vrot.slane %v1243_v34, 4  ;;  %v891_v2 = vsel %vm13768_vm7, %v10377_v63, %v890_v59  ;;  %v10417_v43 = vld [vmem:[%s13654_s5 + $0xe4] sm:$0xf]  ;;  %v10418_v20 = vld [vmem:[%s13654_s5 + $0xe8] sm:$0xf] }
  0xb4   : >> { %v1241_v57 = vsel %vm13812_vm8, %v1236_v58, %v1240_v60  ;;  %v1248_v42 = vrot.slane %v1246_v37, 5  ;;  %v1254_v3 = vrot.slane %v1252_v31, 5  ;;  %v10385_v14 = vcombine.low %v891_v2, %v900_v55 }
  0xb5   : >> { %v10425_v11 = vcombine.low %v1231_v53, %v1241_v57  ;;  %v1258_v15 = vrot.slane %v1256_v7, 4  ;;  %v1262_v19 = vshll.u32 %v10413_v4, 16  ;;  %v902_v27 = vshrl.u32 %v10349_v36, 16 }
  0xb6   : >> { %v1249_v33 = vor.u32 %v1248_v42, %v1245_v62  ;;  %v912_v39 = vor.u32 %v910_v9, %v13754_v12  ;;  %v914_v44 = vrot.slane %v13754_v12, 4  ;;  %12233 = vmatmul.mubr.msk.bf16.gmra.mxu1 %vm640_vm2, %v10385_v14  ;;  %v921_v50 = vor.u32 %v919_v13, %v13761_v17  ;;  %v10440_v42 = vld [vmem:[%s13654_s5 + $0x84] sm:$0xf] }
  0xb7   : >> { %12250 = vmatprep.mubr.msk.bf16.mxu0 %vm640_vm2, %v10425_v11  ;;  %v1259_v35 = vor.u32 %v1258_v15, %v1254_v3  ;;  %v1264_v29 = vrot.slane %v1262_v19, 5  ;;  %v1267_v25 = vshrl.u32 %v10414_v8, 16  ;;  %v10378_v16 = vrot.slane %v902_v27, 11 }
  0xb8   : >> { %v1250_v41 = vrot.slane %v1249_v33, 4  ;;  %v1270_v48 = vshll.u32 %v10414_v8, 16  ;;  %v1276_v9 = vshll.u32 %v10415_v10, 16  ;;  %v922_v12 = vsel %vm13768_vm7, %v914_v44, %v921_v50 }
  0xb9   : >> { %v1260_v40 = vrot.slane %v1259_v35, 4  ;;  %v1269_v26 = vrot.slane %v1267_v25, 4  ;;  %v1280_v51 = vshrl.u32 %v10415_v10, 16  ;;  %v913_v49 = vsel %vm13768_vm7, %v10378_v16, %v912_v39  ;;  %v10442_v39 = vld [vmem:[%s13654_s5 + $0x90] sm:$0x8] }
  0xba   : >> { %v1255_v54 = vsel %vm13812_vm8, %v1250_v41, %v1254_v3  ;;  %v1272_v13 = vrot.slane %v1270_v48, 5  ;;  %v1278_v17 = vrot.slane %v1276_v9, 5  ;;  %v10386_v24 = vcombine.low %v913_v49, %v922_v12  ;;  %v10441_v3 = vld [vmem:[%s13654_s5 + $0x88] sm:$0xf]  ;;  %v13970_v25 = vld [vmem:[%s13654_s5 + $0x94] sm:$0xf] }
  0xbb   : >> { %v1265_v18 = vsel %vm13812_vm8, %v1260_v40, %v1264_v29  ;;  %v1282_v60 = vrot.slane %v1280_v51, 4  ;;  %v1286_v56 = vshll.u32 %v10416_v46, 16  ;;  %v924_v59 = vshrl.u32 %v10352_v45, 16  ;;  %v13974_v51 = vld [vmem:[%s13654_s5 + $0x98] sm:$0xf] }
  0xbc   : >> { %v10426_v23 = vcombine.low %v1255_v54, %v1265_v18  ;;  %v1273_v52 = vor.u32 %v1272_v13, %v1269_v26  ;;  %v934_v38 = vor.u32 %v932_v28, %v13787_v47  ;;  %12236 = vmatprep.mubr.msk.bf16.mxu1 %vm640_vm2, %v10386_v24  ;;  %v936_v58 = vrot.slane %v13787_v47, 4  ;;  %v10439_v47 = vld [vmem:[%s13654_s5 + $0x80] sm:$0x8] }
  0xbd   : >> { %v1283_v30 = vor.u32 %v1282_v60, %v1278_v17  ;;  %v1288_v34 = vrot.slane %v1286_v56, 5  ;;  %v17027_v63 = vshll.u32 %v13742_v6, 16  ;;  %v10379_v31 = vrot.slane %v924_v59, 11  ;;  %v10445_v56 = vld [vmem:[%s13654_s5 + $0xa0] sm:$0x8] }
  0xbe   : >> { %12251 = vmatmul.mubr.msk.bf16.gmra.mxu0 %vm640_vm2, %v10426_v23  ;;  %v1274_v37 = vrot.slane %v1273_v52, 4  ;;  %v1291_v28 = vshrl.u32 %v10417_v43, 16  ;;  %v1294_v53 = vshll.u32 %v10417_v43, 16  ;;  %v1300_v7 = vshll.u32 %v10418_v20, 16 }
  0xbf   : >> { %v943_v4 = vor.u32 %v17027_v63, %v13794_v61  ;;  %v1284_v55 = vrot.slane %v1283_v30, 4  ;;  %v1304_v36 = vshrl.u32 %v10418_v20, 16  ;;  %v935_v61 = vsel %vm13768_vm7, %v10379_v31, %v934_v38  ;;  %v10446_v38 = vld [vmem:[%s13654_s5 + $0xa4] sm:$0xf]  ;;  %v10447_v63 = vld [vmem:[%s13654_s5 + $0xa8] sm:$0xf] }
  0xc0   : >> { %v1279_v6 = vsel %vm13812_vm8, %v1274_v37, %v1278_v17  ;;  %v1293_v57 = vrot.slane %v1291_v28, 4  ;;  %v1296_v2 = vrot.slane %v1294_v53, 5  ;;  %v1302_v14 = vrot.slane %v1300_v7, 5  ;;  %v10448_v28 = vld [vmem:[%s13654_s5 + $0xb0] sm:$0x8] }
  0xc1   : >> { %v944_v62 = vsel %vm13768_vm7, %v936_v58, %v943_v4  ;;  %v1289_v8 = vsel %vm13812_vm8, %v1284_v55, %v1288_v34  ;;  %v1306_v15 = vrot.slane %v1304_v36, 4  ;;  %v1310_v33 = vshll.u32 %v10419_v1, 16  ;;  %v14001_v36 = vld [vmem:[%s13654_s5 + $0xb4] sm:$0xf] }
  0xc2   : >> { %v10387_v11 = vcombine.low %v935_v61, %v944_v62  ;;  %v10427_v19 = vcombine.low %v1279_v6, %v1289_v8  ;;  %v1297_v10 = vor.u32 %v1296_v2, %v1293_v57  ;;  %v1509_v27 = vshrl.u32 %v10439_v47, 16 }
  0xc3   : >> { %v1307_v44 = vor.u32 %v1306_v15, %v1302_v14  ;;  %v1514_v35 = vshrl.u32 %v10440_v42, 16  ;;  %v1517_v29 = vshll.u32 %v10440_v42, 16  ;;  %v1523_v50 = vshrl.u32 %v10441_v3, 16 }
  0xc4   : >> { %12237 = vmatmul.mubr.msk.bf16.gmra.mxu1 %vm640_vm2, %v10387_v11  ;;  %12254 = vmatprep.mubr.msk.bf16.mxu0 %vm640_vm2, %v10427_v19  ;;  %v1298_v41 = vrot.slane %v1297_v10, 4  ;;  %v1312_v16 = vrot.slane %v1310_v33, 5  ;;  %v10464_v46 = vrot.slane %v1509_v27, 11  ;;  %v1526_v48 = vshll.u32 %v10441_v3, 16  ;;  %v10451_v19 = vld [vmem:[%s13654_s5 + $0xc0] sm:$0x8] }
  0xc5   : >> { %v1308_v9 = vrot.slane %v1307_v44, 4  ;;  %v1516_v40 = vrot.slane %v1514_v35, 7  ;;  %v1525_v12 = vrot.slane %v1523_v50, 7  ;;  %v10489_v26 = vcombine.low %v10440_v42, %v10441_v3  ;;  %v14015_v44 = vld [vmem:[%s13654_s5 + $0xc4] sm:$0xf] }
  0xc6   : >> { %v1303_v45 = vsel %vm13812_vm8, %v1298_v41, %v1302_v14  ;;  %v1531_v54 = vshrl.u32 %v10442_v39, 16  ;;  %v1536_v49 = vshrl.u32 %v13970_v25, 16  ;;  %v1539_v13 = vshll.u32 %v13970_v25, 16  ;;  %v10453_v41 = vld [vmem:[%s13654_s5 + $0xc8] sm:$0xf] }
  0xc7   : >> { %v1313_v17 = vsel %vm13812_vm8, %v1308_v9, %v1312_v16  ;;  %v1519_v18 = vor.u32 %v1517_v29, %v1516_v40  ;;  %v1521_v24 = vrot.slane %v1516_v40, 4  ;;  %v1528_v60 = vor.u32 %v1526_v48, %v1525_v12  ;;  %v14028_v40 = vld [vmem:[%s17014_s1 + $0xe] sm:$0x3]  ;;  %v14033_v12 = vld [vmem:[%s17014_s1 + $0x10] sm:$0x3] }
  0xc8   : >> { %v10428_v43 = vcombine.low %v1303_v45, %v1313_v17  ;;  %v10465_v23 = vrot.slane %v1531_v54, 11  ;;  %v1538_v52 = vrot.slane %v1536_v49, 7  ;;  %v1545_v59 = vshrl.u32 %v13974_v51, 16  ;;  %v10454_v49 = vld [vmem:[%s13654_s5 + $0xd0] sm:$0x8] }
  0xc9   : >> { %v1520_v20 = vsel %vm13768_vm7, %v10464_v46, %v1519_v18  ;;  %v1529_v30 = vsel %vm13768_vm7, %v1521_v24, %v1528_v60  ;;  %v1548_v34 = vshll.u32 %v13974_v51, 16  ;;  %v10490_v58 = vcombine.low %v13970_v25, %v13974_v51 }
  0xca   : >> { %12255 = vmatmul.mubr.msk.bf16.gmra.mxu0 %vm640_vm2, %v10428_v43  ;;  %v10472_v4 = vcombine.low %v1520_v20, %v1529_v30  ;;  %v1541_v37 = vor.u32 %v1539_v13, %v1538_v52  ;;  %v1543_v31 = vrot.slane %v1538_v52, 4  ;;  %v1547_v1 = vrot.slane %v1545_v59, 7  ;;  %v14040_v13 = vld [vmem:[%s13654_s5 + $0xd4] sm:$0xf] }
  0xcb   : >> { %12278 = vmatprep.mubr.msk.bf16.mxu0 %vm640_vm2, %v10489_v26  ;;  %v2297_v53 = vsel %vm665_vm1, %v13875_v5, 0  ;;  %v2667_v55 = vsel %vm665_vm1, %v13889_v22, 0  ;;  %v1553_v62 = vshrl.u32 %v10445_v56, 16  ;;  %v1558_v7 = vshrl.u32 %v10446_v38, 16  ;;  %v14007_v22 = vld [vmem:[%s13654_s5 + $0xb8] sm:$0xf] }
  0xcc   : >> { %12260 = vmatprep.mubr.msk.bf16.mxu1 %vm640_vm2, %v10472_v4  ;;  %v1542_v47 = vsel %vm13768_vm7, %v10465_v23, %v1541_v37  ;;  %v1550_v6 = vor.u32 %v1548_v34, %v1547_v1  ;;  %v1561_v61 = vshll.u32 %v10446_v38, 16  ;;  %v1567_v57 = vshrl.u32 %v10447_v63, 16  ;;  %v14046_v56 = vld [vmem:[%s13654_s5 + $0xd8] sm:$0xf]  ;;  %v14063_v1 = vld [vmem:[%s13654_s5 + $0xe4] sm:$0xf] }
  0xcd   : >> { %v10466_v2 = vrot.slane %v1553_v62, 11  ;;  %v1560_v42 = vrot.slane %v1558_v7, 7  ;;  %v1570_v5 = vshll.u32 %v10447_v63, 16  ;;  %v10491_v3 = vcombine.low %v10446_v38, %v10447_v63 }
  0xce   : >> { %v1551_v8 = vsel %vm13768_vm7, %v1543_v31, %v1550_v6  ;;  %v1569_v11 = vrot.slane %v1567_v57, 7  ;;  %v1575_v14 = vshrl.u32 %v10448_v28, 16  ;;  %v1580_v15 = vshrl.u32 %v14001_v36, 16 }
  0xcf   : >> { %v10473_v10 = vcombine.low %v1542_v47, %v1551_v8  ;;  %v1563_v33 = vor.u32 %v1561_v61, %v1560_v42  ;;  %v1565_v27 = vrot.slane %v1560_v42, 4  ;;  %v1583_v39 = vshll.u32 %v14001_v36, 16 }
  0xd0   : >> { %v1572_v35 = vor.u32 %v1570_v5, %v1569_v11  ;;  %v10467_v29 = vrot.slane %v1575_v14, 11  ;;  %v1582_v50 = vrot.slane %v1580_v15, 7  ;;  %v1589_v25 = vshrl.u32 %v14007_v22, 16  ;;  %v10460_v14 = vld [vmem:[%s13654_s5 + $0xf0] sm:$0x8] }
  0xd1   : >> { %12261 = vmatmul.mubr.msk.bf16.vlgmr.msra.gmra.mxu1 %vm640_vm2, %v10473_v10  ;;  %v1564_v16 = vsel %vm13768_vm7, %v10466_v2, %v1563_v33  ;;  %v1592_v46 = vshll.u32 %v14007_v22, 16  ;;  %v10492_v48 = vcombine.low %v14001_v36, %v14007_v22  ;;  %v1597_v9 = vshrl.u32 %v10451_v19, 16  ;;  %v10459_v2 = vld [vmem:[%s13654_s5 + $0xe8] sm:$0xf] }
  0xd2   : >> { %12279 = vmatmul.mubr.msk.bf16.vlgmr.msra.gmra.mxu0 %vm640_vm2, %v10490_v58  ;;  %12295 = vmatpush3.bf16.msra.mxu1 %v2297_v53  ;;  %v1573_v26 = vsel %vm13768_vm7, %v1565_v27, %v1572_v35  ;;  %v1585_v51 = vor.u32 %v1583_v39, %v1582_v50  ;;  %v1587_v45 = vrot.slane %v1582_v50, 4  ;;  %v1591_v54 = vrot.slane %v1589_v25, 7  ;;  %v10457_v58 = vld [vmem:[%s13654_s5 + $0xe0] sm:$0x8]  ;;  %v14080_v27 = vld [vmem:[%s13654_s5 + $0xf4] sm:$0xf] }
  0xd3   : >> { %12313 = vmatpush3.bf16.msra.mxu0 %v2667_v55  ;;  %v10474_v17 = vcombine.low %v1564_v16, %v1573_v26  ;;  %12282 = vmatprep.mubr.msk.bf16.mxu0 %vm640_vm2, %v10491_v3  ;;  %v10468_v18 = vrot.slane %v1597_v9, 11  ;;  %v1602_v24 = vshrl.u32 %v14015_v44, 16  ;;  %v1605_v60 = vshll.u32 %v14015_v44, 16  ;;  %v14087_v50 = vld [vmem:[%s13654_s5 + $0xf8] sm:$0xf] }
  0xd4   : >> { %v1586_v43 = vsel %vm13768_vm7, %v10467_v29, %v1585_v51  ;;  %v1594_v23 = vor.u32 %v1592_v46, %v1591_v54  ;;  %v1611_v52 = vshrl.u32 %v10453_v41, 16  ;;  %v1614_v59 = vshll.u32 %v10453_v41, 16  ;;  %12868 = vmatprep.subr.msk.bf16.mxu1 %vm665_vm1, %v14028_v40  ;;  %12869 = vmatprep.subr.msk.bf16.mxu0 %vm665_vm1, %v14033_v12  ;;  %v10506_v54 = vld [vmem:[%s13654_s5 + $0x88] sm:$0xf] }
  0xd5   : >> { %12264 = vmatprep.mubr.msk.bf16.mxu1 %vm640_vm2, %v10474_v17  ;;  %v1604_v38 = vrot.slane %v1602_v24, 7  ;;  %v10493_v20 = vcombine.low %v14015_v44, %v10453_v41  ;;  %v1619_v30 = vshrl.u32 %v10454_v49, 16  ;;  %v1624_v34 = vshrl.u32 %v14040_v13, 16 }
  0xd6   : >> { %v1595_v63 = vsel %vm13768_vm7, %v1587_v45, %v1594_v23  ;;  %v1613_v4 = vrot.slane %v1611_v52, 7  ;;  %v1627_v37 = vshll.u32 %v14040_v13, 16  ;;  %v1633_v31 = vshrl.u32 %v14046_v56, 16 }
  0xd7   : >> { %v10475_v28 = vcombine.low %v1586_v43, %v1595_v63  ;;  %v1607_v53 = vor.u32 %v1605_v60, %v1604_v38  ;;  %v1609_v55 = vrot.slane %v1604_v38, 4  ;;  %v10469_v62 = vrot.slane %v1619_v30, 11  ;;  %v10507_v43 = vld [vmem:[%s13654_s5 + $0x8c] sm:$0x1]  ;;  %v10548_v30 = vld [vmem:[%s13654_s5 + $0x90] sm:$0x8] }
  0xd8   : >> { %v1616_v7 = vor.u32 %v1614_v59, %v1613_v4  ;;  %v1626_v36 = vrot.slane %v1624_v34, 7  ;;  %v1635_v47 = vrot.slane %v1633_v31, 7  ;;  %v1636_v6 = vshll.u32 %v14046_v56, 16 }
  0xd9   : >> { %12265 = vmatmul.mubr.msk.bf16.gmra.mxu1 %vm640_vm2, %v10475_v28  ;;  %v1608_v61 = vsel %vm13768_vm7, %v10468_v18, %v1607_v53  ;;  %v10494_v57 = vcombine.low %v14040_v13, %v14046_v56  ;;  %v1641_v42 = vshrl.u32 %v10457_v58, 16  ;;  %v1646_v5 = vshrl.u32 %v14063_v1, 16 }
  0xda   : >> { %12283 = vmatmul.mubr.msk.bf16.gmra.mxu0 %vm640_vm2, %v10492_v48  ;;  %v1617_v3 = vsel %vm13768_vm7, %v1609_v55, %v1616_v7  ;;  %v1629_v22 = vor.u32 %v1627_v37, %v1626_v36  ;;  %v1631_v8 = vrot.slane %v1626_v36, 4  ;;  %v1638_v11 = vor.u32 %v1636_v6, %v1635_v47  ;;  %v10505_v48 = vld [vmem:[%s13654_s5 + $0x84] sm:$0xf]  ;;  %v14108_v37 = vld [vmem:[%s13654_s5 + $0x94] sm:$0xf] }
  0xdb   : >> { %v10476_v15 = vcombine.low %v1608_v61, %v1617_v3  ;;  %12286 = vmatprep.mubr.msk.bf16.mxu0 %vm640_vm2, %v10493_v20  ;;  %v10470_v19 = vrot.slane %v1641_v42, 11  ;;  %v1648_v10 = vrot.slane %v1646_v5, 7  ;;  %v1649_v33 = vshll.u32 %v14063_v1, 16  ;;  %v14114_v36 = vld [vmem:[%s13654_s5 + $0x98] sm:$0xf] }
  0xdc   : >> { %v1630_v39 = vsel %vm13768_vm7, %v10469_v62, %v1629_v22  ;;  %v1639_v44 = vsel %vm13768_vm7, %v1631_v8, %v1638_v11  ;;  %v1655_v35 = vshrl.u32 %v10459_v2, 16  ;;  %v1658_v29 = vshll.u32 %v10459_v2, 16  ;;  %v10508_v42 = vld [vmem:[%s13654_s5 + $0x94] sm:$0xf]  ;;  %v10509_v5 = vld [vmem:[%s13654_s5 + $0x98] sm:$0xf] }
  0xdd   : >> { %12268 = vmatprep.mubr.msk.bf16.mxu1 %vm640_vm2, %v10476_v15  ;;  %v10477_v25 = vcombine.low %v1630_v39, %v1639_v44  ;;  %v1651_v41 = vor.u32 %v1649_v33, %v1648_v10  ;;  %v1653_v16 = vrot.slane %v1648_v10, 4  ;;  %v10495_v46 = vcombine.low %v14063_v1, %v10459_v2 }
  0xde   : >> { %v1657_v9 = vrot.slane %v1655_v35, 7  ;;  %v1663_v26 = vshrl.u32 %v10460_v14, 16  ;;  %v1668_v51 = vshrl.u32 %v14080_v27, 16  ;;  %v1671_v45 = vshll.u32 %v14080_v27, 16 }
  0xdf   : >> { %v1652_v49 = vsel %vm13768_vm7, %v10470_v19, %v1651_v41  ;;  %v1677_v13 = vshrl.u32 %v14087_v50, 16  ;;  %v1680_v17 = vshll.u32 %v14087_v50, 16  ;;  %v10496_v18 = vcombine.low %v14080_v27, %v14087_v50  ;;  %v10510_v27 = vld [vmem:[%s13654_s5 + $0x9c] sm:$0x1] }
  0xe0   : >> { %v1660_v24 = vor.u32 %v1658_v29, %v1657_v9  ;;  %v10471_v60 = vrot.slane %v1663_v26, 11  ;;  %v1670_v56 = vrot.slane %v1668_v51, 7  ;;  %v2057_v23 = vshrl.u32 %v10505_v48, 16 }
  0xe1   : >> { %12269 = vmatmul.mubr.msk.bf16.gmra.mxu1 %vm640_vm2, %v10477_v25  ;;  %v1679_v52 = vrot.slane %v1677_v13, 7  ;;  %v2060_v59 = vshll.u32 %v10505_v48, 16  ;;  %v2066_v38 = vshll.u32 %v10506_v54, 16  ;;  %v2070_v20 = vshrl.u32 %v10506_v54, 16 }
  0xe2   : >> { %12287 = vmatmul.mubr.msk.bf16.gmra.mxu0 %vm640_vm2, %v10494_v57  ;;  %v1661_v34 = vsel %vm13768_vm7, %v1653_v16, %v1660_v24  ;;  %v1673_v58 = vor.u32 %v1671_v45, %v1670_v56  ;;  %v1675_v63 = vrot.slane %v1670_v56, 4  ;;  %v2059_v4 = vrot.slane %v2057_v23, 4  ;;  %v10551_v16 = vld [vmem:[%s13654_s5 + $0xa0] sm:$0x8]  ;;  %v14137_v45 = vld [vmem:[%s13654_s5 + $0xa8] sm:$0xf] }
  0xe3   : >> { %v10478_v31 = vcombine.low %v1652_v49, %v1661_v34  ;;  %12290 = vmatprep.mubr.msk.bf16.mxu0 %vm640_vm2, %v10495_v46  ;;  %v1682_v1 = vor.u32 %v1680_v17, %v1679_v52  ;;  %v2062_v28 = vrot.slane %v2060_v59, 5  ;;  %v2068_v53 = vrot.slane %v2066_v38, 5  ;;  %v14131_v46 = vld [vmem:[%s13654_s5 + $0xa4] sm:$0xf] }
  0xe4   : >> { %v1674_v55 = vsel %vm13768_vm7, %v10471_v60, %v1673_v58  ;;  %v2072_v62 = vrot.slane %v2070_v20, 4  ;;  %v2076_v7 = vshll.u32 %v10507_v43, 16  ;;  %v2443_v47 = vshrl.u32 %v10548_v30, 16  ;;  %v10511_v38 = vld [vmem:[%s13654_s5 + $0xa4] sm:$0xf] }
  0xe5   : >> { %12272 = vmatprep.mubr.msk.bf16.mxu1 %vm640_vm2, %v10478_v31  ;;  %v1683_v6 = vsel %vm13768_vm7, %v1675_v63, %v1682_v1  ;;  %v2063_v61 = vor.u32 %v2062_v28, %v2059_v4  ;;  %v2448_v57 = vshrl.u32 %v14108_v37, 16  ;;  %v2451_v2 = vshll.u32 %v14108_v37, 16  ;;  %v10512_v28 = vld [vmem:[%s13654_s5 + $0xa8] sm:$0xf] }
  0xe6   : >> { %v10479_v3 = vcombine.low %v1674_v55, %v1683_v6  ;;  %v2073_v22 = vor.u32 %v2072_v62, %v2068_v53  ;;  %v2078_v8 = vrot.slane %v2076_v7, 5  ;;  %v10573_v11 = vrot.slane %v2443_v47, 11  ;;  %v10513_v7 = vld [vmem:[%s13654_s5 + $0xac] sm:$0x1] }
  0xe7   : >> { %v2064_v14 = vrot.slane %v2063_v61, 4  ;;  %v2450_v15 = vrot.slane %v2448_v57, 7  ;;  %v2457_v19 = vshrl.u32 %v14114_v36, 16  ;;  %v2460_v10 = vshll.u32 %v14114_v36, 16 }
  0xe8   : >> { %v2074_v33 = vrot.slane %v2073_v22, 4  ;;  %v2081_v39 = vshrl.u32 %v10508_v42, 16  ;;  %v2084_v44 = vshll.u32 %v10508_v42, 16  ;;  %v2090_v35 = vshll.u32 %v10509_v5, 16  ;;  %v10554_v42 = vld [vmem:[%s13654_s5 + $0xb0] sm:$0x8] }
  0xe9   : >> { %12273 = vmatmul.mubr.msk.bf16.gmra.mxu1 %vm640_vm2, %v10479_v3  ;;  %v2069_v29 = vsel %vm13812_vm8, %v2064_v14, %v2068_v53  ;;  %v2453_v50 = vor.u32 %v2451_v2, %v2450_v15  ;;  %v2455_v25 = vrot.slane %v2450_v15, 4  ;;  %v2459_v41 = vrot.slane %v2457_v19, 7  ;;  %v14169_v19 = vld [vmem:[%s13654_s5 + $0xb8] sm:$0xf] }
  0xea   : >> { %12291 = vmatmul.mubr.msk.bf16.gmra.mxu0 %vm640_vm2, %v10496_v18  ;;  %v2079_v48 = vsel %vm13812_vm8, %v2074_v33, %v2078_v8  ;;  %v2083_v9 = vrot.slane %v2081_v39, 4  ;;  %v2086_v26 = vrot.slane %v2084_v44, 5  ;;  %v2092_v51 = vrot.slane %v2090_v35, 5  ;;  %v10514_v44 = vld [vmem:[%s13654_s5 + $0xb4] sm:$0xf] }
  0xeb   : >> { %v10530_v54 = vcombine.low %v2069_v29, %v2079_v48  ;;  %v2454_v49 = vsel %vm13768_vm7, %v10573_v11, %v2453_v50  ;;  %v2462_v13 = vor.u32 %v2460_v10, %v2459_v41  ;;  %v2094_v17 = vshrl.u32 %v10509_v5, 16  ;;  %v14160_v11 = vld [vmem:[%s13654_s5 + $0xb4] sm:$0xf]  ;;  %v10515_v41 = vld [vmem:[%s13654_s5 + $0xb8] sm:$0xf] }
  0xec   : >> { %v2087_v24 = vor.u32 %v2086_v26, %v2083_v9  ;;  %v2100_v60 = vshll.u32 %v10510_v27, 16  ;;  %v2465_v56 = vshrl.u32 %v10551_v16, 16  ;;  %v2470_v18 = vshrl.u32 %v14131_v46, 16 }
  0xed   : >> { %12296 = vmatprep.mubr.msk.bf16.mxu1 %vm640_vm2, %v10530_v54  ;;  %v2463_v43 = vsel %vm13768_vm7, %v2455_v25, %v2462_v13  ;;  %v2096_v23 = vrot.slane %v2094_v17, 4  ;;  %v2473_v52 = vshll.u32 %v14131_v46, 16  ;;  %v2479_v59 = vshrl.u32 %v14137_v45, 16 }
  0xee   : >> { %v10581_v20 = vcombine.low %v2454_v49, %v2463_v43  ;;  %v2088_v30 = vrot.slane %v2087_v24, 4  ;;  %v2102_v34 = vrot.slane %v2100_v60, 5  ;;  %v10574_v58 = vrot.slane %v2465_v56, 11  ;;  %v10516_v60 = vld [vmem:[%s13654_s5 + $0xbc] sm:$0x1] }
  0xef   : >> { %v2097_v63 = vor.u32 %v2096_v23, %v2092_v51  ;;  %v2472_v4 = vrot.slane %v2470_v18, 7  ;;  %v2481_v31 = vrot.slane %v2479_v59, 7  ;;  %v2482_v1 = vshll.u32 %v14137_v45, 16 }
  0xf0   : >> { %12314 = vmatprep.mubr.msk.bf16.mxu0 %vm640_vm2, %v10581_v20  ;;  %v2093_v53 = vsel %vm13812_vm8, %v2088_v30, %v2092_v51  ;;  %v2849_v55 = vsel %vm665_vm1, %v14028_v40, 0  ;;  %v3231_v62 = vsel %vm665_vm1, %v14033_v12, 0  ;;  %v2105_v47 = vshrl.u32 %v10511_v38, 16 }
  0xf1   : >> { %v2098_v6 = vrot.slane %v2097_v63, 4  ;;  %v2475_v61 = vor.u32 %v2473_v52, %v2472_v4  ;;  %v2477_v57 = vrot.slane %v2472_v4, 4  ;;  %v2484_v2 = vor.u32 %v2482_v1, %v2481_v31  ;;  %v14184_v63 = vld [vmem:[%s13654_s5 + $0xc4] sm:$0xf] }
  0xf2   : >> { %v2107_v5 = vrot.slane %v2105_v47, 4  ;;  %v2108_v3 = vshll.u32 %v10511_v38, 16  ;;  %v2114_v22 = vshll.u32 %v10512_v28, 16  ;;  %v2118_v8 = vshrl.u32 %v10512_v28, 16  ;;  %v10557_v38 = vld [vmem:[%s13654_s5 + $0xc0] sm:$0x8] }
  0xf3   : >> { %v2103_v40 = vsel %vm13812_vm8, %v2098_v6, %v2102_v34  ;;  %v2476_v12 = vsel %vm13768_vm7, %v10574_v58, %v2475_v61  ;;  %v2485_v14 = vsel %vm13768_vm7, %v2477_v57, %v2484_v2  ;;  %v2124_v15 = vshll.u32 %v10513_v7, 16  ;;  %v10517_v6 = vld [vmem:[%s13654_s5 + $0xc4] sm:$0xf] }
  0xf4   : >> { %v10531_v10 = vcombine.low %v2093_v53, %v2103_v40  ;;  %v10582_v33 = vcombine.low %v2476_v12, %v2485_v14  ;;  %v2110_v27 = vrot.slane %v2108_v3, 5  ;;  %v2116_v39 = vrot.slane %v2114_v22, 5  ;;  %v14191_v53 = vld [vmem:[%s13654_s5 + $0xc8] sm:$0xf] }
  0xf5   : >> { %v2120_v35 = vrot.slane %v2118_v8, 4  ;;  %v2126_v29 = vrot.slane %v2124_v15, 5  ;;  %v2487_v50 = vshrl.u32 %v10554_v42, 16  ;;  %v2492_v25 = vshrl.u32 %v14160_v11, 16 }
  0xf6   : >> { %12297 = vmatmul.mubr.msk.bf16.vlgmr.msra.gmra.mxu1 %vm640_vm2, %v10531_v10  ;;  %12315 = vmatmul.mubr.msk.bf16.vlgmr.msra.gmra.mxu0 %vm640_vm2, %v10582_v33  ;;  %v2111_v16 = vor.u32 %v2110_v27, %v2107_v5  ;;  %v2495_v48 = vshll.u32 %v14160_v11, 16  ;;  %v2501_v9 = vshrl.u32 %v14169_v19, 16  ;;  %v2504_v26 = vshll.u32 %v14169_v19, 16  ;;  %v10518_v5 = vld [vmem:[%s13654_s5 + $0xc8] sm:$0xf] }
  0xf7   : >> { %12331 = vmatpush3.bf16.msra.mxu1 %v2849_v55  ;;  %12349 = vmatpush3.bf16.msra.mxu0 %v3231_v62  ;;  %v2121_v51 = vor.u32 %v2120_v35, %v2116_v39  ;;  %v10575_v54 = vrot.slane %v2487_v50, 11  ;;  %v2494_v49 = vrot.slane %v2492_v25, 7  ;;  %v2129_v13 = vshrl.u32 %v10514_v44, 16  ;;  %v10519_v10 = vld [vmem:[%s13654_s5 + $0xcc] sm:$0x1] }
  0xf8   : >> { %v2112_v17 = vrot.slane %v2111_v16, 4  ;;  %v2503_v24 = vrot.slane %v2501_v9, 7  ;;  %v2132_v56 = vshll.u32 %v10514_v44, 16  ;;  %v2138_v18 = vshll.u32 %v10515_v41, 16 }
  0xf9   : >> { %v2122_v43 = vrot.slane %v2121_v51, 4  ;;  %v2497_v23 = vor.u32 %v2495_v48, %v2494_v49  ;;  %v2499_v52 = vrot.slane %v2494_v49, 4  ;;  %v2131_v59 = vrot.slane %v2129_v13, 4 }
  0xfa   : >> { %v2117_v20 = vsel %vm13812_vm8, %v2112_v17, %v2116_v39  ;;  %v2506_v30 = vor.u32 %v2504_v26, %v2503_v24  ;;  %v2134_v34 = vrot.slane %v2132_v56, 5  ;;  %v2140_v58 = vrot.slane %v2138_v18, 5  ;;  %v14215_v24 = vld [vmem:[%s13654_s5 + $0xd8] sm:$0xf] }
  0xfb   : >> { %v2127_v4 = vsel %vm13812_vm8, %v2122_v43, %v2126_v29  ;;  %v2498_v31 = vsel %vm13768_vm7, %v10575_v54, %v2497_v23  ;;  %v2142_v1 = vshrl.u32 %v10515_v41, 16  ;;  %v2148_v28 = vshll.u32 %v10516_v60, 16  ;;  %v10560_v29 = vld [vmem:[%s13654_s5 + $0xd0] sm:$0x8]  ;;  %v14208_v54 = vld [vmem:[%s13654_s5 + $0xd4] sm:$0xf] }
  0xfc   : >> { %v10532_v55 = vcombine.low %v2117_v20, %v2127_v4  ;;  %v2507_v62 = vsel %vm13768_vm7, %v2499_v52, %v2506_v30  ;;  %v2135_v7 = vor.u32 %v2134_v34, %v2131_v59  ;;  %v2509_v47 = vshrl.u32 %v10557_v38, 16  ;;  %v10520_v52 = vld [vmem:[%s13654_s5 + $0xd4] sm:$0xf]  ;;  %v10521_v34 = vld [vmem:[%s13654_s5 + $0xd8] sm:$0xf] }
  0xfd   : >> { %v10583_v61 = vcombine.low %v2498_v31, %v2507_v62  ;;  %v2144_v57 = vrot.slane %v2142_v1, 4  ;;  %v2150_v2 = vrot.slane %v2148_v28, 5  ;;  %v2514_v42 = vshrl.u32 %v14184_v63, 16  ;;  %v10522_v62 = vld [vmem:[%s13654_s5 + $0xdc] sm:$0x1] }
  0xfe   : >> { %12300 = vmatprep.mubr.msk.bf16.mxu1 %vm640_vm2, %v10532_v55  ;;  %v2136_v3 = vrot.slane %v2135_v7, 4  ;;  %v10576_v22 = vrot.slane %v2509_v47, 11  ;;  %v2517_v8 = vshll.u32 %v14184_v63, 16  ;;  %v2523_v40 = vshrl.u32 %v14191_v53, 16 }
  0xff   : >> { %12318 = vmatprep.mubr.msk.bf16.mxu0 %vm640_vm2, %v10583_v61  ;;  %v2145_v12 = vor.u32 %v2144_v57, %v2140_v58  ;;  %v2516_v14 = vrot.slane %v2514_v42, 7  ;;  %v2526_v15 = vshll.u32 %v14191_v53, 16  ;;  %v2153_v33 = vshrl.u32 %v10517_v6, 16  ;;  %v10563_v42 = vld [vmem:[%s13654_s5 + $0xe0] sm:$0x8] }
 0x100   : >> { %v2141_v27 = vsel %vm13812_vm8, %v2136_v3, %v2140_v58  ;;  %v2525_v39 = vrot.slane %v2523_v40, 7  ;;  %v2156_v44 = vshll.u32 %v10517_v6, 16  ;;  %v2162_v35 = vshll.u32 %v10518_v5, 16  ;;  %v14232_v40 = vld [vmem:[%s13654_s5 + $0xe4] sm:$0xf] }
 0x101   : >> { %v2146_v50 = vrot.slane %v2145_v12, 4  ;;  %v2519_v25 = vor.u32 %v2517_v8, %v2516_v14  ;;  %v2521_v41 = vrot.slane %v2516_v14, 4  ;;  %v2155_v16 = vrot.slane %v2153_v33, 4 }
 0x102   : >> { %v2528_v48 = vor.u32 %v2526_v15, %v2525_v39  ;;  %v2158_v9 = vrot.slane %v2156_v44, 5  ;;  %v2164_v26 = vrot.slane %v2162_v35, 5  ;;  %v2166_v51 = vshrl.u32 %v10518_v5, 16  ;;  %v14239_v35 = vld [vmem:[%s13654_s5 + $0xe8] sm:$0xf] }
 0x103   : >> { %v2151_v49 = vsel %vm13812_vm8, %v2146_v50, %v2150_v2  ;;  %v2520_v13 = vsel %vm13768_vm7, %v10576_v22, %v2519_v25  ;;  %v2172_v17 = vshll.u32 %v10519_v10, 16  ;;  %v2531_v60 = vshrl.u32 %v10560_v29, 16 }
 0x104   : >> { %v10533_v56 = vcombine.low %v2141_v27, %v2151_v49  ;;  %v2529_v18 = vsel %vm13768_vm7, %v2521_v41, %v2528_v48  ;;  %v2159_v43 = vor.u32 %v2158_v9, %v2155_v16  ;;  %v2168_v23 = vrot.slane %v2166_v51, 4  ;;  %v10523_v16 = vld [vmem:[%s13654_s5 + $0xe4] sm:$0xf] }
 0x105   : >> { %v10584_v59 = vcombine.low %v2520_v13, %v2529_v18  ;;  %v2174_v38 = vrot.slane %v2172_v17, 5  ;;  %v10577_v20 = vrot.slane %v2531_v60, 11  ;;  %v2536_v30 = vshrl.u32 %v14208_v54, 16 }
 0x106   : >> { %12301 = vmatmul.mubr.msk.bf16.gmra.mxu1 %vm640_vm2, %v10533_v56  ;;  %v2160_v58 = vrot.slane %v2159_v43, 4  ;;  %v2169_v4 = vor.u32 %v2168_v23, %v2164_v26  ;;  %v2539_v31 = vshll.u32 %v14208_v54, 16  ;;  %v2545_v1 = vshrl.u32 %v14215_v24, 16  ;;  %v10524_v56 = vld [vmem:[%s13654_s5 + $0xe8] sm:$0xf] }
 0x107   : >> { %12319 = vmatmul.mubr.msk.bf16.gmra.mxu0 %vm640_vm2, %v10584_v59  ;;  %v2538_v28 = vrot.slane %v2536_v30, 7  ;;  %v2548_v55 = vshll.u32 %v14215_v24, 16  ;;  %v2177_v7 = vshrl.u32 %v10520_v52, 16  ;;  %v2180_v47 = vshll.u32 %v10520_v52, 16  ;;  %v10525_v23 = vld [vmem:[%s13654_s5 + $0xec] sm:$0x1] }
 0x108   : >> { %v2165_v6 = vsel %vm13812_vm8, %v2160_v58, %v2164_v26  ;;  %v2170_v61 = vrot.slane %v2169_v4, 4  ;;  %v2547_v57 = vrot.slane %v2545_v1, 7  ;;  %v2186_v2 = vshll.u32 %v10521_v34, 16  ;;  %v10566_v58 = vld [vmem:[%s13654_s5 + $0xf0] sm:$0x8] }
 0x109   : >> { %v2541_v5 = vor.u32 %v2539_v31, %v2538_v28  ;;  %v2543_v3 = vrot.slane %v2538_v28, 4  ;;  %v2179_v22 = vrot.slane %v2177_v7, 4  ;;  %v2182_v8 = vrot.slane %v2180_v47, 5 }
 0x10a   : >> { %v2175_v12 = vsel %vm13812_vm8, %v2170_v61, %v2174_v38  ;;  %v2550_v14 = vor.u32 %v2548_v55, %v2547_v57  ;;  %v2188_v15 = vrot.slane %v2186_v2, 5  ;;  %v2190_v10 = vshrl.u32 %v10521_v34, 16  ;;  %v14256_v55 = vld [vmem:[%s13654_s5 + $0xf4] sm:$0xf] }
 0x10b   : >> { %v10534_v33 = vcombine.low %v2165_v6, %v2175_v12  ;;  %v2542_v27 = vsel %vm13768_vm7, %v10577_v20, %v2541_v5  ;;  %v2183_v39 = vor.u32 %v2182_v8, %v2179_v22  ;;  %v2196_v44 = vshll.u32 %v10522_v62, 16  ;;  %v14263_v5 = vld [vmem:[%s13654_s5 + $0xf8] sm:$0xf] }
 0x10c   : >> { %v2551_v29 = vsel %vm13768_vm7, %v2543_v3, %v2550_v14  ;;  %v2192_v50 = vrot.slane %v2190_v10, 4  ;;  %v2553_v25 = vshrl.u32 %v10563_v42, 16  ;;  %v2558_v41 = vshrl.u32 %v14232_v40, 16  ;;  %v10526_v14 = vld [vmem:[%s13654_s5 + $0xf4] sm:$0xf] }
 0x10d   : >> { %12304 = vmatprep.mubr.msk.bf16.mxu1 %vm640_vm2, %v10534_v33  ;;  %v10585_v48 = vcombine.low %v2542_v27, %v2551_v29  ;;  %v2184_v9 = vrot.slane %v2183_v39, 4  ;;  %v2198_v26 = vrot.slane %v2196_v44, 5  ;;  %v2561_v51 = vshll.u32 %v14232_v40, 16  ;;  %v10527_v39 = vld [vmem:[%s13654_s5 + $0xf8] sm:$0xf] }
 0x10e   : >> { %v2193_v49 = vor.u32 %v2192_v50, %v2188_v15  ;;  %v10578_v13 = vrot.slane %v2553_v25, 11  ;;  %v2560_v17 = vrot.slane %v2558_v41, 7  ;;  %v2567_v60 = vshrl.u32 %v14239_v35, 16  ;;  %v10528_v41 = vld [vmem:[%s13654_s5 + $0xfc] sm:$0x1] }
 0x10f   : >> { %12322 = vmatprep.mubr.msk.bf16.mxu0 %vm640_vm2, %v10585_v48  ;;  %v2189_v18 = vsel %vm13812_vm8, %v2184_v9, %v2188_v15  ;;  %v2570_v43 = vshll.u32 %v14239_v35, 16  ;;  %v2201_v52 = vshrl.u32 %v10523_v16, 16  ;;  %v2204_v59 = vshll.u32 %v10523_v16, 16 }
 0x110   : >> { %v2194_v38 = vrot.slane %v2193_v49, 4  ;;  %v2563_v20 = vor.u32 %v2561_v51, %v2560_v17  ;;  %v2565_v30 = vrot.slane %v2560_v17, 4  ;;  %v2569_v34 = vrot.slane %v2567_v60, 7  ;;  %v10569_v51 = vld [vmem:[%s13654_s5 + $0x100] sm:$0x8] }
 0x111   : >> { %v2203_v4 = vrot.slane %v2201_v52, 4  ;;  %v2206_v31 = vrot.slane %v2204_v59, 5  ;;  %v2210_v1 = vshll.u32 %v10524_v56, 16  ;;  %v2214_v28 = vshrl.u32 %v10524_v56, 16  ;;  %v14280_v56 = vld [vmem:[%s13654_s5 + $0x104] sm:$0xf] }
 0x112   : >> { %v2199_v62 = vsel %vm13812_vm8, %v2194_v38, %v2198_v26  ;;  %v2564_v7 = vsel %vm13768_vm7, %v10578_v13, %v2563_v20  ;;  %v2572_v47 = vor.u32 %v2570_v43, %v2569_v34  ;;  %v2220_v6 = vshll.u32 %v10525_v23, 16  ;;  %v14285_v59 = vld [vmem:[%s13654_s5 + $0x108] sm:$0xf] }
 0x113   : >> { %v10535_v61 = vcombine.low %v2189_v18, %v2199_v62  ;;  %v2207_v57 = vor.u32 %v2206_v31, %v2203_v4  ;;  %v2212_v2 = vrot.slane %v2210_v1, 5  ;;  %v2216_v42 = vrot.slane %v2214_v28, 4 }
 0x114   : >> { %v2573_v3 = vsel %vm13768_vm7, %v2565_v30, %v2572_v47  ;;  %v2222_v22 = vrot.slane %v2220_v6, 5  ;;  %v2575_v8 = vshrl.u32 %v10566_v58, 16  ;;  %v2580_v12 = vshrl.u32 %v14256_v55, 16  ;;  %v10614_v6 = vld [vmem:[%s13654_s5 + $0x94] sm:$0xf] }
 0x115   : >> { %12305 = vmatmul.mubr.msk.bf16.gmra.mxu1 %vm640_vm2, %v10535_v61  ;;  %v10586_v15 = vcombine.low %v2564_v7, %v2573_v3  ;;  %v2208_v10 = vrot.slane %v2207_v57, 4  ;;  %v2217_v33 = vor.u32 %v2216_v42, %v2212_v2  ;;  %v2583_v27 = vshll.u32 %v14256_v55, 16 }
 0x116   : >> { %v10579_v44 = vrot.slane %v2575_v8, 11  ;;  %v2582_v29 = vrot.slane %v2580_v12, 7  ;;  %v2589_v50 = vshrl.u32 %v14263_v5, 16  ;;  %v2592_v25 = vshll.u32 %v14263_v5, 16 }
 0x117   : >> { %12323 = vmatmul.mubr.msk.bf16.gmra.mxu0 %vm640_vm2, %v10586_v15  ;;  %v2213_v16 = vsel %vm13812_vm8, %v2208_v10, %v2212_v2  ;;  %v2218_v48 = vrot.slane %v2217_v33, 4  ;;  %v2225_v9 = vshrl.u32 %v10526_v14, 16  ;;  %v2228_v26 = vshll.u32 %v10526_v14, 16  ;;  %v10615_v14 = vld [vmem:[%s13654_s5 + $0x98] sm:$0xf] }
 0x118   : >> { %v2585_v49 = vor.u32 %v2583_v27, %v2582_v29  ;;  %v2587_v13 = vrot.slane %v2582_v29, 4  ;;  %v2591_v17 = vrot.slane %v2589_v50, 7  ;;  %v2234_v60 = vshll.u32 %v10527_v39, 16  ;;  %v10616_v50 = vld [vmem:[%s13654_s5 + $0x9c] sm:$0x1] }
 0x119   : >> { %v2223_v18 = vsel %vm13812_vm8, %v2218_v48, %v2222_v22  ;;  %v2227_v43 = vrot.slane %v2225_v9, 4  ;;  %v2230_v23 = vrot.slane %v2228_v26, 5  ;;  %v2238_v52 = vshrl.u32 %v10527_v39, 16  ;;  %v10617_v26 = vld [vmem:[%s13654_s5 + $0xa4] sm:$0xf] }
 0x11a   : >> { %v10536_v38 = vcombine.low %v2213_v16, %v2223_v18  ;;  %v2586_v20 = vsel %vm13768_vm7, %v10579_v44, %v2585_v49  ;;  %v2594_v30 = vor.u32 %v2592_v25, %v2591_v17  ;;  %v2236_v34 = vrot.slane %v2234_v60, 5 }
 0x11b   : >> { %v2231_v58 = vor.u32 %v2230_v23, %v2227_v43  ;;  %v2240_v4 = vrot.slane %v2238_v52, 4  ;;  %v2244_v31 = vshll.u32 %v10528_v41, 16  ;;  %v2597_v1 = vshrl.u32 %v10569_v51, 16  ;;  %v10619_v23 = vld [vmem:[%s13654_s5 + $0xac] sm:$0x1] }
 0x11c   : >> { %12308 = vmatprep.mubr.msk.bf16.mxu1 %vm640_vm2, %v10536_v38  ;;  %v2595_v28 = vsel %vm13768_vm7, %v2587_v13, %v2594_v30  ;;  %v2602_v62 = vshrl.u32 %v14280_v56, 16  ;;  %v2605_v7 = vshll.u32 %v14280_v56, 16  ;;  %v2611_v47 = vshrl.u32 %v14285_v59, 16  ;;  %v10618_v13 = vld [vmem:[%s13654_s5 + $0xa8] sm:$0xf] }
 0x11d   : >> { %v10587_v61 = vcombine.low %v2586_v20, %v2595_v28  ;;  %v2232_v57 = vrot.slane %v2231_v58, 4  ;;  %v2241_v2 = vor.u32 %v2240_v4, %v2236_v34  ;;  %v2246_v42 = vrot.slane %v2244_v31, 5  ;;  %v10620_v31 = vld [vmem:[%s13654_s5 + $0xb4] sm:$0xf] }
 0x11e   : >> { %v10580_v3 = vrot.slane %v2597_v1, 11  ;;  %v2604_v22 = vrot.slane %v2602_v62, 7  ;;  %v2613_v8 = vrot.slane %v2611_v47, 7  ;;  %v2614_v12 = vshll.u32 %v14285_v59, 16  ;;  %v10621_v47 = vld [vmem:[%s13654_s5 + $0xb8] sm:$0xf] }
 0x11f   : >> { %12326 = vmatprep.mubr.msk.bf16.mxu0 %vm640_vm2, %v10587_v61  ;;  %v2237_v15 = vsel %vm13812_vm8, %v2232_v57, %v2236_v34  ;;  %v2242_v10 = vrot.slane %v2241_v2, 4  ;;  %v10598_v33 = vcombine.low %v14108_v37, %v14114_v36  ;;  %v2991_v27 = vshrl.u32 %v10614_v6, 16 }
 0x120   : >> { %v2607_v39 = vor.u32 %v2605_v7, %v2604_v22  ;;  %v2609_v44 = vrot.slane %v2604_v22, 4  ;;  %v2616_v29 = vor.u32 %v2614_v12, %v2613_v8  ;;  %v2994_v25 = vshll.u32 %v10614_v6, 16 }
 0x121   : >> { %v2247_v41 = vsel %vm13812_vm8, %v2242_v10, %v2246_v42  ;;  %v2993_v16 = vrot.slane %v2991_v27, 4  ;;  %v3000_v48 = vshll.u32 %v10615_v14, 16  ;;  %v3004_v9 = vshrl.u32 %v10615_v14, 16  ;;  %v10623_v10 = vld [vmem:[%s13654_s5 + $0xc4] sm:$0xf] }
 0x122   : >> { %v10537_v51 = vcombine.low %v2237_v15, %v2247_v41  ;;  %v2608_v49 = vsel %vm13768_vm7, %v10580_v3, %v2607_v39  ;;  %v2617_v37 = vsel %vm13768_vm7, %v2609_v44, %v2616_v29  ;;  %v2996_v36 = vrot.slane %v2994_v25, 5  ;;  %v10622_v3 = vld [vmem:[%s13654_s5 + $0xbc] sm:$0x1]  ;;  %v10624_v25 = vld [vmem:[%s13654_s5 + $0xc8] sm:$0xf] }
 0x123   : >> { %v10588_v17 = vcombine.low %v2608_v49, %v2617_v37  ;;  %v3002_v60 = vrot.slane %v3000_v48, 5  ;;  %v3006_v18 = vrot.slane %v3004_v9, 4  ;;  %v3010_v43 = vshll.u32 %v10616_v50, 16  ;;  %v10625_v9 = vld [vmem:[%s13654_s5 + $0xcc] sm:$0x1] }
 0x124   : >> { %12309 = vmatmul.mubr.msk.bf16.gmra.mxu1 %vm640_vm2, %v10537_v51  ;;  %v2997_v52 = vor.u32 %v2996_v36, %v2993_v16  ;;  %v10599_v38 = vcombine.low %v14131_v46, %v14137_v45  ;;  %v3015_v20 = vshrl.u32 %v10617_v26, 16  ;;  %v3018_v30 = vshll.u32 %v10617_v26, 16 }
 0x125   : >> { %12327 = vmatmul.mubr.msk.bf16.gmra.mxu0 %vm640_vm2, %v10588_v17  ;;  %12332 = vmatprep.mubr.msk.bf16.mxu1 %vm640_vm2, %v10598_v33  ;;  %v3007_v21 = vor.u32 %v3006_v18, %v3002_v60  ;;  %v3012_v34 = vrot.slane %v3010_v43, 5  ;;  %v3024_v58 = vshll.u32 %v10618_v13, 16  ;;  %v3028_v4 = vshrl.u32 %v10618_v13, 16  ;;  %v10626_v13 = vld [vmem:[%s13654_s5 + $0xd4] sm:$0xf] }
 0x126   : >> { %v2998_v1 = vrot.slane %v2997_v52, 4  ;;  %v3017_v28 = vrot.slane %v3015_v20, 4  ;;  %v3020_v62 = vrot.slane %v3018_v30, 5  ;;  %v3034_v7 = vshll.u32 %v10619_v23, 16 }
 0x127   : >> { %v3008_v6 = vrot.slane %v3007_v21, 4  ;;  %v3026_v46 = vrot.slane %v3024_v58, 5  ;;  %v3030_v45 = vrot.slane %v3028_v4, 4  ;;  %v10600_v61 = vcombine.low %v14160_v11, %v14169_v19 }
 0x128   : >> { %v3003_v57 = vsel %vm13812_vm8, %v2998_v1, %v3002_v60  ;;  %v3021_v2 = vor.u32 %v3020_v62, %v3017_v28  ;;  %v3036_v42 = vrot.slane %v3034_v7, 5  ;;  %v3039_v22 = vshrl.u32 %v10620_v31, 16  ;;  %v10628_v28 = vld [vmem:[%s13654_s5 + $0xdc] sm:$0x1] }
 0x129   : >> { %v3013_v8 = vsel %vm13812_vm8, %v3008_v6, %v3012_v34  ;;  %v3031_v12 = vor.u32 %v3030_v45, %v3026_v46  ;;  %v3042_v14 = vshll.u32 %v10620_v31, 16  ;;  %v3048_v15 = vshll.u32 %v10621_v47, 16 }
 0x12a   : >> { %v10639_v33 = vcombine.low %v3003_v57, %v3013_v8  ;;  %v3022_v27 = vrot.slane %v3021_v2, 4  ;;  %v3041_v39 = vrot.slane %v3039_v22, 4  ;;  %v3052_v11 = vshrl.u32 %v10621_v47, 16 }
 0x12b   : >> { %v3032_v19 = vrot.slane %v3031_v12, 4  ;;  %v3044_v44 = vrot.slane %v3042_v14, 5  ;;  %v3050_v29 = vrot.slane %v3048_v15, 5  ;;  %v3058_v50 = vshll.u32 %v10622_v3, 16 }
 0x12c   : >> { %12350 = vmatprep.mubr.msk.bf16.mxu0 %vm640_vm2, %v10639_v33  ;;  %12333 = vmatmul.mubr.msk.bf16.vlgmr.msra.gmra.mxu1 %vm640_vm2, %v10599_v38  ;;  %v3027_v41 = vsel %vm13812_vm8, %v3022_v27, %v3026_v46  ;;  %v3054_v16 = vrot.slane %v3052_v11, 4  ;;  %v10601_v48 = vcombine.low %v14184_v63, %v14191_v53  ;;  %v3063_v26 = vshrl.u32 %v10623_v10, 16  ;;  %v10627_v38 = vld [vmem:[%s13654_s5 + $0xd8] sm:$0xf]  ;;  %v10629_v46 = vld [vmem:[%s13654_s5 + $0xe4] sm:$0xf] }
 0x12d   : >> { %v3037_v51 = vsel %vm13812_vm8, %v3032_v19, %v3036_v42  ;;  %12336 = vmatprep.mubr.msk.bf16.mxu1 %vm640_vm2, %v10600_v61  ;;  %v3045_v49 = vor.u32 %v3044_v44, %v3041_v39  ;;  %v3060_v37 = vrot.slane %v3058_v50, 5  ;;  %v3066_v36 = vshll.u32 %v10623_v10, 16  ;;  %v10631_v27 = vld [vmem:[%s13654_s5 + $0xec] sm:$0x1] }
 0x12e   : >> { %v10640_v17 = vcombine.low %v3027_v41, %v3037_v51  ;;  %v3055_v60 = vor.u32 %v3054_v16, %v3050_v29  ;;  %v3065_v18 = vrot.slane %v3063_v26, 4  ;;  %v3072_v43 = vshll.u32 %v10624_v25, 16 }
 0x12f   : >> { %v3046_v23 = vrot.slane %v3045_v49, 4  ;;  %v3068_v52 = vrot.slane %v3066_v36, 5  ;;  %v3076_v63 = vshrl.u32 %v10624_v25, 16  ;;  %v3082_v53 = vshll.u32 %v10625_v9, 16 }
 0x130   : >> { %12351 = vmatmul.mubr.msk.bf16.vlgmr.msra.gmra.mxu0 %vm640_vm2, %v10640_v17  ;;  %v3056_v20 = vrot.slane %v3055_v60, 4  ;;  %v3074_v30 = vrot.slane %v3072_v43, 5  ;;  %v10602_v21 = vcombine.low %v14208_v54, %v14215_v24  ;;  %v3087_v34 = vshrl.u32 %v10626_v13, 16  ;;  %v10630_v24 = vld [vmem:[%s13654_s5 + $0xe8] sm:$0xf] }
 0x131   : >> { %v3051_v58 = vsel %vm13812_vm8, %v3046_v23, %v3050_v29  ;;  %v3069_v4 = vor.u32 %v3068_v52, %v3065_v18  ;;  %v3078_v31 = vrot.slane %v3076_v63, 4  ;;  %v3084_v1 = vrot.slane %v3082_v53, 5  ;;  %v10632_v29 = vld [vmem:[%s13654_s5 + $0xf4] sm:$0xf]  ;;  %v10635_v63 = vld [vmem:[%s13654_s5 + $0x104] sm:$0xf] }
 0x132   : >> { %v3061_v62 = vsel %vm13812_vm8, %v3056_v20, %v3060_v37  ;;  %v3089_v7 = vrot.slane %v3087_v34, 4  ;;  %v3090_v47 = vshll.u32 %v10626_v13, 16  ;;  %v3096_v6 = vshll.u32 %v10627_v38, 16  ;;  %v10634_v13 = vld [vmem:[%s13654_s5 + $0xfc] sm:$0x1] }
 0x133   : >> { %v10641_v45 = vcombine.low %v3051_v58, %v3061_v62  ;;  %v3070_v61 = vrot.slane %v3069_v4, 4  ;;  %v3079_v57 = vor.u32 %v3078_v31, %v3074_v30  ;;  %v3100_v54 = vshrl.u32 %v10627_v38, 16  ;;  %v10636_v58 = vld [vmem:[%s13654_s5 + $0x108] sm:$0xf] }
 0x134   : >> { %12337 = vmatmul.mubr.msk.bf16.gmra.mxu1 %vm640_vm2, %v10601_v48  ;;  %v3092_v2 = vrot.slane %v3090_v47, 5  ;;  %v3098_v42 = vrot.slane %v3096_v6, 5  ;;  %v3106_v3 = vshll.u32 %v10628_v28, 16  ;;  %v10603_v22 = vcombine.low %v14232_v40, %v14239_v35  ;;  %v10633_v48 = vld [vmem:[%s13654_s5 + $0xf8] sm:$0xf] }
 0x135   : >> { %12354 = vmatprep.mubr.msk.bf16.mxu0 %vm640_vm2, %v10641_v45  ;;  %v3075_v8 = vsel %vm13812_vm8, %v3070_v61, %v3074_v30  ;;  %v3080_v12 = vrot.slane %v3079_v57, 4  ;;  %12340 = vmatprep.mubr.msk.bf16.mxu1 %vm640_vm2, %v10602_v21  ;;  %v3102_v14 = vrot.slane %v3100_v54, 4  ;;  %v3111_v15 = vshrl.u32 %v10629_v46, 16  ;;  %v10637_v28 = vld [vmem:[%s13654_s5 + $0x10c] sm:$0x1] }
 0x136   : >> { %v3093_v10 = vor.u32 %v3092_v2, %v3089_v7  ;;  %v3108_v33 = vrot.slane %v3106_v3, 5  ;;  %v3114_v39 = vshll.u32 %v10629_v46, 16  ;;  %v3120_v11 = vshll.u32 %v10630_v24, 16 }
 0x137   : >> { %v3085_v40 = vsel %vm13812_vm8, %v3080_v12, %v3084_v1  ;;  %v3103_v35 = vor.u32 %v3102_v14, %v3098_v42  ;;  %v3113_v19 = vrot.slane %v3111_v15, 4  ;;  %v3124_v44 = vshrl.u32 %v10630_v24, 16 }
 0x138   : >> { %v10642_v50 = vcombine.low %v3075_v8, %v3085_v40  ;;  %v3094_v25 = vrot.slane %v3093_v10, 4  ;;  %v3116_v41 = vrot.slane %v3114_v39, 5  ;;  %v3122_v16 = vrot.slane %v3120_v11, 5 }
 0x139   : >> { %v3104_v9 = vrot.slane %v3103_v35, 4  ;;  %v3126_v26 = vrot.slane %v3124_v44, 4  ;;  %v3130_v51 = vshll.u32 %v10631_v27, 16  ;;  %v10604_v49 = vcombine.low %v14256_v55, %v14263_v5 }
 0x13a   : >> { %12355 = vmatmul.mubr.msk.bf16.gmra.mxu0 %vm640_vm2, %v10642_v50  ;;  %v3099_v37 = vsel %vm13812_vm8, %v3094_v25, %v3098_v42  ;;  %v3117_v36 = vor.u32 %v3116_v41, %v3113_v19  ;;  %v3135_v17 = vshrl.u32 %v10632_v29, 16  ;;  %v3138_v60 = vshll.u32 %v10632_v29, 16 }
 0x13b   : >> { %v3109_v18 = vsel %vm13812_vm8, %v3104_v9, %v3108_v33  ;;  %v3127_v43 = vor.u32 %v3126_v26, %v3122_v16  ;;  %v3132_v23 = vrot.slane %v3130_v51, 5  ;;  %v3144_v52 = vshll.u32 %v10633_v48, 16 }
 0x13c   : >> { %v10643_v53 = vcombine.low %v3099_v37, %v3109_v18  ;;  %12341 = vmatmul.mubr.msk.bf16.gmra.mxu1 %vm640_vm2, %v10603_v22  ;;  %v3118_v55 = vrot.slane %v3117_v36, 4  ;;  %v3137_v5 = vrot.slane %v3135_v17, 4  ;;  %v3140_v38 = vrot.slane %v3138_v60, 5 }
 0x13d   : >> { %v3128_v20 = vrot.slane %v3127_v43, 4  ;;  %12344 = vmatprep.mubr.msk.bf16.mxu1 %vm640_vm2, %v10604_v49  ;;  %v3146_v30 = vrot.slane %v3144_v52, 5  ;;  %v3148_v21 = vshrl.u32 %v10633_v48, 16  ;;  %v3154_v34 = vshll.u32 %v10634_v13, 16 }
 0x13e   : >> { %12358 = vmatprep.mubr.msk.bf16.mxu0 %vm640_vm2, %v10643_v53  ;;  %v3123_v4 = vsel %vm13812_vm8, %v3118_v55, %v3122_v16  ;;  %v3141_v31 = vor.u32 %v3140_v38, %v3137_v5  ;;  %v10605_v1 = vcombine.low %v14280_v56, %v14285_v59  ;;  %v3159_v62 = vshrl.u32 %v10635_v63, 16 }
 0x13f   : >> { %v3133_v7 = vsel %vm13812_vm8, %v3128_v20, %v3132_v23  ;;  %v3150_v47 = vrot.slane %v3148_v21, 4  ;;  %v3156_v6 = vrot.slane %v3154_v34, 5  ;;  %v3162_v46 = vshll.u32 %v10635_v63, 16 }
 0x140   : >> { %v10644_v45 = vcombine.low %v3123_v4, %v3133_v7  ;;  %v3142_v61 = vrot.slane %v3141_v31, 4  ;;  %v3161_v57 = vrot.slane %v3159_v62, 4  ;;  %v3168_v54 = vshll.u32 %v10636_v58, 16 }
 0x141   : >> { %v3151_v24 = vor.u32 %v3150_v47, %v3146_v30  ;;  %v3164_v2 = vrot.slane %v3162_v46, 5  ;;  %v3172_v42 = vshrl.u32 %v10636_v58, 16  ;;  %v3178_v3 = vshll.u32 %v10637_v28, 16 }
 0x142   : >> { %12359 = vmatmul.mubr.msk.bf16.gmra.mxu0 %vm640_vm2, %v10644_v45  ;;  %v3170_v22 = vrot.slane %v3168_v54, 5  ;;  %v3147_v56 = vsel %vm13812_vm8, %v3142_v61, %v3146_v30 }
 0x143   : >> { %v3152_v59 = vrot.slane %v3151_v24, 4  ;;  %v3165_v8 = vor.u32 %v3164_v2, %v3161_v57  ;;  %v3174_v12 = vrot.slane %v3172_v42, 4  ;;  %v3180_v33 = vrot.slane %v3178_v3, 5 }
 0x144   : >> { %12345 = vmatmul.mubr.msk.bf16.gmra.mxu1 %vm640_vm2, %v10605_v1 }
 0x145   : >> { %v3157_v14 = vsel %vm13812_vm8, %v3152_v59, %v3156_v6  ;;  %v3166_v15 = vrot.slane %v3165_v8, 4  ;;  %v3175_v10 = vor.u32 %v3174_v12, %v3170_v22 }
 0x146   : >> { %v10645_v27 = vcombine.low %v3147_v56, %v3157_v14 }
 0x147   : >> { %v3171_v39 = vsel %vm13812_vm8, %v3166_v15, %v3170_v22  ;;  %v3176_v11 = vrot.slane %v3175_v10, 4 }
 0x148   : >> { %12362 = vmatprep.mubr.msk.bf16.mxu0 %vm640_vm2, %v10645_v27 }
 0x149   : >> { %v3181_v40 = vsel %vm13812_vm8, %v3176_v11, %v3180_v33  ;;  %v12208_v35 = vpop.f32.mrf.mxu0 }
 0x14a   : >> { %v10646_v19 = vcombine.low %v3171_v39, %v3181_v40 }
 0x14b   : >> { %v703_v44 = vpop.f32.mrf.mxu0 }
 0x14c   : >> { %12363 = vmatmul.mubr.msk.bf16.gmra.mxu0 %vm640_vm2, %v10646_v19  ;;  %v12216_v29 = vpop.f32.mrf.mxu1 }
 0x14d   : >> { %v12209_v50 = vpop.f32.mrf.mxu0 }
 0x14e   : >> { %v735_v25 = vpop.f32.mrf.mxu1 }
 0x14f   : >> { %v706_v16 = vpop.f32.mrf.mxu0 }
 0x150   : >> { %v12217_v41 = vpop.f32.mrf.mxu1 }
 0x152   : >> { %v738_v48 = vpop.f32.mrf.mxu1  ;;  %v12212_v26 = vpop.f32.mrf.mxu0 }
 0x154   : >> { %v12220_v9 = vpop.f32.mrf.mxu1  ;;  %v719_v37 = vpop.f32.mrf.mxu0 }
 0x156   : >> { %v751_v51 = vpop.f32.mrf.mxu1  ;;  %v12213_v13 = vpop.f32.mrf.mxu0 }
 0x158   : >> { %v12221_v49 = vpop.f32.mrf.mxu1  ;;  %v722_v43 = vpop.f32.mrf.mxu0 }
 0x15a   : >> { %v754_v36 = vpop.f32.mrf.mxu1 }
 0x15d   : >> { %v12226_v32 = vpop.f32.mrf.mxu1 }
 0x15e   : >> { %v1039_v17 = vadd.f32 %v12226_v32, %v12208_v35 }
 0x15f   : >> { %v1030_v60 = vpop.f32.mrf.mxu1 }
 0x160   : >> { %v1031_v18 = vadd.f32 %v1030_v60, %v703_v44 }
 0x161   : >> { %v12227_v23 = vpop.f32.mrf.mxu1 }
 0x162   : >> { %v1042_v52 = vadd.f32 %v12227_v23, %v12209_v50 }
 0x163   : >> { %v1033_v63 = vpop.f32.mrf.mxu1 }
 0x164   : >> { %v1034_v53 = vadd.f32 %v1033_v63, %v706_v16 }
 0x165   : >> { %v12244_v55 = vpop.f32.mrf.mxu0 }
 0x166   : >> { %v14395_v5 = vadd.f32 %v12244_v55, %v1039_v17 }
 0x167   : >> { %v1399_v38 = vpop.f32.mrf.mxu0 }
 0x168   : >> { %v14397_v20 = vadd.f32 %v1399_v38, %v1031_v18 }
 0x169   : >> { %v12245_v30 = vpop.f32.mrf.mxu0 }
 0x16a   : >> { %v14399_v21 = vadd.f32 %v12245_v30, %v1042_v52  ;;  %v12230_v58 = vpop.f32.mrf.mxu1 }
 0x16b   : >> { %v1402_v34 = vpop.f32.mrf.mxu0  ;;  %v1055_v31 = vadd.f32 %v12230_v58, %v12212_v26 }
 0x16c   : >> { %v14401_v4 = vadd.f32 %v1402_v34, %v1034_v53  ;;  %v1046_v1 = vpop.f32.mrf.mxu1 }
 0x16d   : >> { %v1047_v28 = vadd.f32 %v1046_v1, %v719_v37 }
 0x16e   : >> { %v12231_v62 = vpop.f32.mrf.mxu1 }
 0x16f   : >> { %v1058_v7 = vadd.f32 %v12231_v62, %v12213_v13 }
 0x170   : >> { %v1049_v47 = vpop.f32.mrf.mxu1 }
 0x171   : >> { %v1050_v46 = vadd.f32 %v1049_v47, %v722_v43 }
 0x172   : >> { %v12248_v6 = vpop.f32.mrf.mxu0 }
 0x173   : >> { %v14403_v45 = vadd.f32 %v12248_v6, %v1055_v31 }
 0x174   : >> { %v1415_v61 = vpop.f32.mrf.mxu0 }
 0x175   : >> { %v14405_v57 = vadd.f32 %v1415_v61, %v1047_v28 }
 0x176   : >> { %v12249_v54 = vpop.f32.mrf.mxu0  ;;  %v12234_v2 = vpop.f32.mrf.mxu1 }
 0x177   : >> { %v14407_v24 = vadd.f32 %v12249_v54, %v1058_v7  ;;  %v1071_v3 = vadd.f32 %v12234_v2, %v12216_v29 }
 0x178   : >> { %v1418_v42 = vpop.f32.mrf.mxu0  ;;  %v1062_v56 = vpop.f32.mrf.mxu1 }
 0x179   : >> { %v14409_v22 = vadd.f32 %v1418_v42, %v1050_v46  ;;  %v1063_v59 = vadd.f32 %v1062_v56, %v735_v25 }
 0x17a   : >> { %v12235_v8 = vpop.f32.mrf.mxu1 }
 0x17b   : >> { %v1074_v12 = vadd.f32 %v12235_v8, %v12217_v41 }
 0x17c   : >> { %v1065_v14 = vpop.f32.mrf.mxu1 }
 0x17d   : >> { %v1066_v10 = vadd.f32 %v1065_v14, %v738_v48 }
 0x17e   : >> { %v12252_v15 = vpop.f32.mrf.mxu0 }
 0x17f   : >> { %v14411_v33 = vadd.f32 %v12252_v15, %v1071_v3 }
 0x180   : >> { %v1431_v27 = vpop.f32.mrf.mxu0 }
 0x181   : >> { %v14413_v39 = vadd.f32 %v1431_v27, %v1063_v59 }
 0x182   : >> { %v12253_v11 = vpop.f32.mrf.mxu0 }
 0x183   : >> { %v14415_v40 = vadd.f32 %v12253_v11, %v1074_v12 }
 0x184   : >> { %v12238_v35 = vpop.f32.mrf.mxu1  ;;  %v1434_v19 = vpop.f32.mrf.mxu0 }
 0x185   : >> { %v1087_v44 = vadd.f32 %v12238_v35, %v12220_v9  ;;  %v14417_v29 = vadd.f32 %v1434_v19, %v1066_v10 }
 0x186   : >> { %v1078_v50 = vpop.f32.mrf.mxu1 }
 0x187   : >> { %v1079_v25 = vadd.f32 %v1078_v50, %v751_v51 }
 0x188   : >> { %v12239_v16 = vpop.f32.mrf.mxu1 }
 0x189   : >> { %v1090_v41 = vadd.f32 %v12239_v16, %v12221_v49 }
 0x18a   : >> { %v1081_v26 = vpop.f32.mrf.mxu1  ;;  %v12256_v37 = vpop.f32.mrf.mxu0 }
 0x18b   : >> { %v1082_v48 = vadd.f32 %v1081_v26, %v754_v36  ;;  %v14419_v13 = vadd.f32 %v12256_v37, %v1087_v44 }
 0x18c   : >> { %v1447_v32 = vpop.f32.mrf.mxu0 }
 0x18d   : >> { %v14421_v17 = vadd.f32 %v1447_v32, %v1079_v25 }
 0x18e   : >> { %v12257_v60 = vpop.f32.mrf.mxu0 }
 0x18f   : >> { %v14423_v18 = vadd.f32 %v12257_v60, %v1090_v41 }
 0x190   : >> { %v1450_v43 = vpop.f32.mrf.mxu0 }
 0x191   : >> { %v14425_v23 = vadd.f32 %v1450_v43, %v1082_v48  ;;  %v12262_v9 = vpop.f32.mrf.mxu1 }
 0x192   : >> { %v12280_v52 = vpop.f32.mrf.mxu0 }
 0x193   : >> { %17028 = vst [vmem:[#allocation5_spill] sm:$0xff] %v14425_v23  ;;  %v1769_v63 = vpop.f32.mrf.mxu1 }
 0x194   : >> { %v1951_v51 = vpop.f32.mrf.mxu0 }
 0x195   : >> { %v12263_v53 = vpop.f32.mrf.mxu1 }
 0x196   : >> { %v14427_v49 = vpop.f32.mrf.mxu0 }
 0x197   : >> { %v1772_v55 = vpop.f32.mrf.mxu1 }
 0x198   : >> { %v14429_v36 = vpop.f32.mrf.mxu0 }
 0x199   : >> { %v12266_v38 = vpop.f32.mrf.mxu1 }
 0x19a   : >> { %v14431_v30 = vpop.f32.mrf.mxu0 }
 0x19b   : >> { %v1785_v34 = vpop.f32.mrf.mxu1 }
 0x19c   : >> { %v14433_v58 = vpop.f32.mrf.mxu0 }
 0x19d   : >> { %v12267_v31 = vpop.f32.mrf.mxu1 }
 0x19e   : >> { %v14435_v1 = vpop.f32.mrf.mxu0 }
 0x19f   : >> { %v1788_v28 = vpop.f32.mrf.mxu1 }
 0x1a0   : >> { %v14437_v62 = vpop.f32.mrf.mxu0 }
 0x1a1   : >> { %v12270_v7 = vpop.f32.mrf.mxu1 }
 0x1a2   : >> { %v14439_v47 = vpop.f32.mrf.mxu0 }
 0x1a3   : >> { %v1801_v6 = vpop.f32.mrf.mxu1 }
 0x1a4   : >> { %v14441_v46 = vpop.f32.mrf.mxu0 }
 0x1a5   : >> { %v14443_v61 = vpop.f32.mrf.mxu1 }
 0x1a6   : >> { %v14445_v54 = vpop.f32.mrf.mxu0 }
 0x1a7   : >> { %v14447_v2 = vpop.f32.mrf.mxu1 }
 0x1a8   : >> { %v14449_v42 = vpop.f32.mrf.mxu0 }
 0x1a9   : >> { %v14451_v3 = vpop.f32.mrf.mxu1 }
 0x1aa   : >> { %v14453_v56 = vpop.f32.mrf.mxu0 }
 0x1ab   : >> { %17029 = vst [vmem:[#allocation6_spill] sm:$0xff] %v14453_v56  ;;  %v14455_v59 = vpop.f32.mrf.mxu1 }
 0x1ac   : >> { %v14457_v8 = vpop.f32.mrf.mxu0 }
 0x1ad   : >> { %17030 = vst [vmem:[#allocation7_spill] sm:$0xff] %v14457_v8  ;;  %v14459_v12 = vpop.f32.mrf.mxu1 }
 0x1ae   : >> { %v14461_v14 = vpop.f32.mrf.mxu0 }
 0x1af   : >> { %17031 = vst [vmem:[#allocation8_spill] sm:$0xff] %v14461_v14  ;;  %v14463_v15 = vpop.f32.mrf.mxu1 }
 0x1b0   : >> { %17032 = vst [vmem:[#allocation9_spill] sm:$0xff] %v14463_v15  ;;  %v14465_v10 = vpop.f32.mrf.mxu0 }
 0x1b1   : >> { %17033 = vst [vmem:[#allocation10_spill] sm:$0xff] %v14465_v10 }
 0x1b6   : >> { %v12298_v27 = vpop.f32.mrf.mxu1  ;;  %v12316_v11 = vpop.f32.mrf.mxu0 }
 0x1b8   : >> { %v2333_v35 = vpop.f32.mrf.mxu1  ;;  %v2703_v19 = vpop.f32.mrf.mxu0 }
 0x1ba   : >> { %v12299_v44 = vpop.f32.mrf.mxu1  ;;  %v12317_v50 = vpop.f32.mrf.mxu0 }
 0x1bc   : >> { %v2336_v25 = vpop.f32.mrf.mxu1  ;;  %v14467_v16 = vpop.f32.mrf.mxu0 }
 0x1bd   : >> { %17034 = vst [vmem:[#allocation11_spill] sm:$0xff] %v14467_v16 }
 0x1c6   : >> { %v12302_v41 = vpop.f32.mrf.mxu1 }
 0x1c7   : >> { %v14469_v26 = vpop.f32.mrf.mxu0 }
 0x1c8   : >> { %17035 = vst [vmem:[#allocation12_spill] sm:$0xff] %v14469_v26  ;;  %v2349_v37 = vpop.f32.mrf.mxu1 }
 0x1c9   : >> { %v14471_v48 = vpop.f32.mrf.mxu0 }
 0x1ca   : >> { %17036 = vst [vmem:[#allocation13_spill] sm:$0xff] %v14471_v48  ;;  %v12303_v32 = vpop.f32.mrf.mxu1 }
 0x1cb   : >> { %v14473_v60 = vpop.f32.mrf.mxu0 }
 0x1cc   : >> { %17037 = vst [vmem:[#allocation14_spill] sm:$0xff] %v14473_v60  ;;  %v14475_v43 = vpop.f32.mrf.mxu1  ;;  %v1834_v60 = vadd.f32 %v12262_v9, %v14395_v5  ;;  %v1838_v5 = vadd.f32 %v12266_v38, %v14403_v45  ;;  %v1836_v9 = vadd.f32 %v1785_v34, %v14405_v57  ;;  %v1840_v45 = vadd.f32 %v1801_v6, %v14413_v39 }
 0x1cd   : >> { %17038 = vst [vmem:[#allocation15_spill] sm:$0xff] %v14475_v43  ;;  %v14477_v10 = vpop.f32.mrf.mxu0  ;;  %v1846_v39 = vadd.f32 %v14451_v3, %v14419_v13 }
 0x1ce   : >> { %17039 = vst [vmem:[#allocation16_spill] sm:$0xff] %v14477_v10  ;;  %v1832_v10 = vadd.f32 %v1769_v63, %v14397_v20  ;;  %v1839_v20 = vadd.f32 %v12267_v31, %v14407_v24  ;;  %v2020_v24 = vadd.f32 %v14431_v30, %v1838_v5  ;;  %v2018_v34 = vadd.f32 %v14433_v58, %v1836_v9  ;;  %v17055_v5 = vld [vmem:[#allocation4_spill] sm:$0xff] }
 0x1cf   : >> { %v1843_v31 = vadd.f32 %v14443_v61, %v14415_v40  ;;  %v2022_v61 = vadd.f32 %v14441_v46, %v1840_v45 }
 0x1d0   : >> { %v2402_v3 = vadd.f32 %v12302_v41, %v2020_v24 }
 0x1d5   : >> { %v14479_v0 = vpop.f32.mrf.mxu1 }
 0x1d6   : >> { %17040 = vst [vmem:[#allocation17_spill] sm:$0xff] %v14479_v0  ;;  %v2016_v0 = vadd.f32 %v12280_v52, %v1834_v60 }
 0x1d7   : >> { %v14481_v15 = vpop.f32.mrf.mxu0  ;;  %v14483_v23 = vpop.f32.mrf.mxu1 }
 0x1d8   : >> { %17041 = vst [vmem:[#allocation18_spill] sm:$0xff] %v14481_v15  ;;  %17042 = vst [vmem:[#allocation19_spill] sm:$0xff] %v14483_v23  ;;  %v1835_v15 = vadd.f32 %v12263_v53, %v14399_v21  ;;  %v2398_v56 = vadd.f32 %v12298_v27, %v2016_v0 }
 0x1d9   : >> { %v14485_v14 = vpop.f32.mrf.mxu0  ;;  %v14487_v16 = vpop.f32.mrf.mxu1 }
 0x1da   : >> { %17043 = vst [vmem:[#allocation20_spill] sm:$0xff] %v14485_v14  ;;  %17044 = vst [vmem:[#allocation21_spill] sm:$0xff] %v14487_v16  ;;  %v2014_v16 = vadd.f32 %v1951_v51, %v1832_v10  ;;  %v2017_v21 = vadd.f32 %v14427_v49, %v1835_v15  ;;  %v1837_v51 = vadd.f32 %v1788_v28, %v14409_v22 }
 0x1db   : >> { %v14489_v26 = vpop.f32.mrf.mxu0  ;;  %v14491_v48 = vpop.f32.mrf.mxu1  ;;  %v2768_v57 = vadd.f32 %v12316_v11, %v2398_v56  ;;  %v2021_v49 = vadd.f32 %v14435_v1, %v1839_v20  ;;  %v1841_v28 = vadd.f32 %v14447_v2, %v14417_v29  ;;  %v1844_v1 = vadd.f32 %v14455_v59, %v14421_v17  ;;  %v17047_v59 = vld [vmem:[#allocation6_spill] sm:$0xff] }
 0x1dc   : >> { %17045 = vst [vmem:[#allocation22_spill] sm:$0xff] %v14489_v26  ;;  %17046 = vst [vmem:[#allocation23_spill] sm:$0xff] %v14491_v48  ;;  %v1833_v26 = vadd.f32 %v1772_v55, %v14401_v4  ;;  %v2396_v52 = vadd.f32 %v2333_v35, %v2014_v16  ;;  %v1842_v4 = vadd.f32 %v12270_v7, %v14411_v33  ;;  %v17048_v35 = vld [vmem:[#allocation7_spill] sm:$0xff] }
 0x1dd   : >> { %v14494_v8 = vpop.f32.mrf.mxu0  ;;  %v2399_v38 = vadd.f32 %v12299_v44, %v2017_v21  ;;  %v2019_v30 = vadd.f32 %v14437_v62, %v1837_v51  ;;  %v1847_v56 = vadd.f32 %v14459_v12, %v14423_v18  ;;  %v2025_v2 = vadd.f32 %v14445_v54, %v1843_v31  ;;  %v17049_v18 = vld [vmem:[#allocation11_spill] sm:$0xff]  ;;  %v17056_v21 = vld [vmem:[#allocation12_spill] sm:$0xff]  ;;  %v17057_v51 = vld [vmem:[#allocation13_spill] sm:$0xff] }
 0x1de   : >> { %v2015_v55 = vadd.f32 %v14429_v36, %v1833_v26  ;;  %v2766_v36 = vadd.f32 %v2703_v19, %v2396_v52  ;;  %v2024_v58 = vadd.f32 %v14439_v47, %v1842_v4  ;;  %v2400_v62 = vadd.f32 %v2349_v37, %v2018_v34  ;;  %v17050_v44 = vld [vmem:[#allocation15_spill] sm:$0xff]  ;;  %v17052_v26 = vld [vmem:[#allocation8_spill] sm:$0xff]  ;;  %v17053_v37 = vld [vmem:[#allocation5_spill] sm:$0xff] }
 0x1df   : >> { %v2769_v29 = vadd.f32 %v12317_v50, %v2399_v38  ;;  %v2403_v15 = vadd.f32 %v12303_v32, %v2021_v49  ;;  %v2023_v17 = vadd.f32 %v14449_v42, %v1841_v28  ;;  %v2028_v27 = vadd.f32 %v17047_v59, %v1846_v39  ;;  %v17054_v32 = vld [vmem:[#allocation9_spill] sm:$0xff]  ;;  %v17059_v28 = vld [vmem:[#allocation16_spill] sm:$0xff] }
 0x1e0   : >> { %v2397_v6 = vadd.f32 %v2336_v25, %v2015_v55  ;;  %v14543_v19 = vadd.f32 %v17048_v35, %v1844_v1  ;;  %v2401_v50 = vadd.f32 %v17050_v44, %v2019_v30  ;;  %v17051_v25 = vld [vmem:[#allocation17_spill] sm:$0xff]  ;;  %v14553_v42 = vadd.f32 %v17052_v26, %v1847_v56  ;;  %v17058_v55 = vld [vmem:[#allocation14_spill] sm:$0xff]  ;;  %v17061_v30 = vld [vmem:[#allocation19_spill] sm:$0xff] }
 0x1e1   : >> { %v2406_v54 = vadd.f32 %v17051_v25, %v2024_v58  ;;  %v1845_v60 = vadd.f32 %v17054_v32, %v17053_v37  ;;  %v2772_v52 = vadd.f32 %v17056_v21, %v2402_v3  ;;  %v2770_v4 = vadd.f32 %v17057_v51, %v2400_v62  ;;  %v3420_v49 = vld [vmem:[%s14550_s19 + $0x10] sm:$0xff]  ;;  %v3421_v35 = vld [vmem:[%s14550_s19 + $0x18] sm:$0xff]  ;;  %v3419_v21 = vld [vmem:[%s14550_s19 + $0x8] sm:$0xff] }
 0x1e2   : >> { %v2767_v12 = vadd.f32 %v17049_v18, %v2397_v6  ;;  %v2773_v45 = vadd.f32 %v17058_v55, %v2403_v15  ;;  %v2771_v39 = vadd.f32 %v17059_v28, %v2401_v50  ;;  %v2404_v58 = vadd.f32 %v17061_v30, %v2022_v61  ;;  %v17062_v62 = vld [vmem:[#allocation21_spill] sm:$0xff] }
 0x1e3   : >> { %v2407_v15 = vadd.f32 %v17062_v62, %v2025_v2 }
 0x1e4   : >> { %v14497_v43 = vpop.f32.mrf.mxu1 }
 0x1e5   : >> { %v14500_v23 = vpop.f32.mrf.mxu0 }
 0x1e6   : >> { %v14502_v14 = vpop.f32.mrf.mxu1 }
 0x1e7   : >> { %v14505_v48 = vpop.f32.mrf.mxu0 }
 0x1e8   : >> { %v14510_v63 = vpop.f32.mrf.mxu1 }
 0x1e9   : >> { %v14513_v53 = vpop.f32.mrf.mxu0 }
 0x1ea   : >> { %v14517_v0 = vpop.f32.mrf.mxu1 }
 0x1eb   : >> { %v14526_v22 = vpop.f32.mrf.mxu0 }
 0x1ec   : >> { %v12334_v33 = vpop.f32.mrf.mxu1 }
 0x1ed   : >> { %v2950_v7 = vadd.f32 %v12334_v33, %v2768_v57 }
 0x1ee   : >> { %v2885_v40 = vpop.f32.mrf.mxu1 }
 0x1ef   : >> { %v2948_v13 = vadd.f32 %v2885_v40, %v2766_v36  ;;  %v17060_v36 = vld [vmem:[#allocation18_spill] sm:$0xff] }
 0x1f0   : >> { %v12352_v47 = vpop.f32.mrf.mxu0  ;;  %v12335_v10 = vpop.f32.mrf.mxu1 }
 0x1f1   : >> { %v3332_v11 = vadd.f32 %v12352_v47, %v2950_v7  ;;  %v2951_v46 = vadd.f32 %v12335_v10, %v2769_v29  ;;  %v2776_v7 = vadd.f32 %v17060_v36, %v2406_v54 }
 0x1f2   : >> { %v3267_v16 = vpop.f32.mrf.mxu0  ;;  %v2888_v41 = vpop.f32.mrf.mxu1 }
 0x1f3   : >> { %v3354_v9 = vadd.f32 %v17055_v5, %v3332_v11  ;;  %v3330_v20 = vadd.f32 %v3267_v16, %v2948_v13  ;;  %v2949_v38 = vadd.f32 %v2888_v41, %v2767_v12  ;;  %v3418_v13 = vld [vmem:[%s14550_s19] sm:$0xff]  ;;  %v2410_v41 = vadd.f32 %v14497_v43, %v2028_v27 }
 0x1f4   : >> { %v12353_v57 = vpop.f32.mrf.mxu0  ;;  %v12338_v24 = vpop.f32.mrf.mxu1  ;;  %v17063_v12 = vld [vmem:[#allocation23_spill] sm:$0xff] }
 0x1f5   : >> { %vm3370_vm9 = vcmp.ge.f32.partialorder %v3354_v9, 0.0  ;;  %v3386_v34 = vmul.f32 0.01, %v3354_v9  ;;  %v3352_v31 = vadd.f32 %v17055_v5, %v3330_v20  ;;  %v3333_v33 = vadd.f32 %v12353_v57, %v2951_v46  ;;  %v17065_v57 = vld [vmem:[#allocation20_spill] sm:$0xff] }
 0x1f6   : >> { %v3270_v1 = vpop.f32.mrf.mxu0  ;;  %v2954_v6 = vadd.f32 %v12338_v24, %v2772_v52  ;;  %v2901_v40 = vpop.f32.mrf.mxu1  ;;  %v2405_v44 = vadd.f32 %v17063_v12, %v2023_v17  ;;  %v17066_v24 = vld [vmem:[#allocation22_spill] sm:$0xff] }
 0x1f7   : >> { %v3402_v56 = vsel %vm3370_vm9, %v3354_v9, %v3386_v34  ;;  %vm3368_vm10 = vcmp.ge.f32.partialorder %v3352_v31, 0.0  ;;  %v3384_v29 = vmul.f32 0.01, %v3352_v31  ;;  %v3355_v3 = vadd.f32 %v17055_v5, %v3333_v33 }
 0x1f8   : >> { %v3436_v47 = vadd.f32 %v3420_v49, %v3402_v56  ;;  %v11818_v10 = vpack.c.bf16 %v3402_v56, %v3402_v56  ;;  %v3331_v59 = vadd.f32 %v3270_v1, %v2949_v38  ;;  %v12339_v61 = vpop.f32.mrf.mxu1  ;;  %v2952_v18 = vadd.f32 %v2901_v40, %v2770_v4  ;;  %v17064_v4 = vld [vmem:[#allocation10_spill] sm:$0xff]  ;;  %v3424_v1 = vld [vmem:[%s14550_s19 + $0x30] sm:$0xff] }
 0x1f9   : >> { %v3400_v11 = vsel %vm3368_vm10, %v3352_v31, %v3384_v29  ;;  %vm3371_vm11 = vcmp.ge.f32.partialorder %v3355_v3, 0.0  ;;  %v3387_v46 = vmul.f32 0.01, %v3355_v3  ;;  %v2955_v17 = vadd.f32 %v12339_v61, %v2773_v45 }
 0x1fa   : >> { %3453 = vst.msk [vmem:[%s14568_s21 + $0x10] sm:$0xff] %vm640_vm2, %v3436_v47  ;;  %v3434_v2 = vadd.f32 %v3418_v13, %v3400_v11  ;;  %v11816_v50 = vpack.c.bf16 %v3400_v11, %v3400_v11  ;;  %v3353_v25 = vadd.f32 %v17055_v5, %v3331_v59  ;;  %v12356_v54 = vpop.f32.mrf.mxu0  ;;  %v2904_v16 = vpop.f32.mrf.mxu1  ;;  %v2027_v55 = vadd.f32 %v17064_v4, %v1845_v60  ;;  %v3422_v47 = vld [vmem:[%s14550_s19 + $0x20] sm:$0xff] }
 0x1fb   : >> { %10677 = vst.msk [vmem:[%s14578_s22 + $0x94] sm:$0xf] %vm172_vm0, %v11818_v10  ;;  %v3403_v26 = vsel %vm3371_vm11, %v3355_v3, %v3387_v46  ;;  %v3336_v37 = vadd.f32 %v12356_v54, %v2954_v6  ;;  %v2953_v45 = vadd.f32 %v2904_v16, %v2771_v39  ;;  %v2774_v38 = vadd.f32 %v17065_v57, %v2404_v58  ;;  %v3425_v16 = vld [vmem:[%s14550_s19 + $0x38] sm:$0xff] }
 0x1fc   : >> { %3451 = vst.msk [vmem:[%s14568_s21] sm:$0xff] %vm640_vm2, %v3434_v2  ;;  %v3437_v32 = vadd.f32 %v3421_v35, %v3403_v26  ;;  %v11819_v9 = vpack.c.bf16 %v3403_v26, %v3403_v26  ;;  %vm3369_vm12 = vcmp.ge.f32.partialorder %v3353_v25, 0.0  ;;  %v3385_v20 = vmul.f32 0.01, %v3353_v25  ;;  %v3283_v52 = vpop.f32.mrf.mxu0  ;;  %v12342_v51 = vpop.f32.mrf.mxu1 }
 0x1fd   : >> { %10675 = vst.msk [vmem:[%s14578_s22 + $0x84] sm:$0xf] %vm172_vm0, %v11816_v50  ;;  %v3358_v43 = vadd.f32 %v17055_v5, %v3336_v37  ;;  %v3334_v27 = vadd.f32 %v3283_v52, %v2952_v18  ;;  %v2777_v34 = vadd.f32 %v17066_v24, %v2407_v15  ;;  %v2958_v33 = vadd.f32 %v12342_v51, %v2776_v7 }
 0x1fe   : >> { %3454 = vst.msk [vmem:[%s14568_s21 + $0x18] sm:$0xff] %vm640_vm2, %v3437_v32  ;;  %v3401_v49 = vsel %vm3369_vm12, %v3353_v25, %v3385_v20  ;;  %v12357_v31 = vpop.f32.mrf.mxu0  ;;  %v2917_v28 = vpop.f32.mrf.mxu1  ;;  %v2775_v39 = vadd.f32 %v14494_v8, %v2405_v44  ;;  %v2780_v58 = vadd.f32 %v14500_v23, %v2410_v41  ;;  %v2408_v13 = vadd.f32 %v14502_v14, %v14543_v19 }
 0x1ff   : >> { %10678 = vst.msk [vmem:[%s14578_s22 + $0x98] sm:$0xf] %vm172_vm0, %v11819_v9  ;;  %v3435_v60 = vadd.f32 %v3419_v21, %v3401_v49  ;;  %v11817_v36 = vpack.c.bf16 %v3401_v49, %v3401_v49  ;;  %vm3374_vm13 = vcmp.ge.f32.partialorder %v3358_v43, 0.0  ;;  %v3390_v30 = vmul.f32 0.01, %v3358_v43 }
 0x200   : >> { %v3356_v6 = vadd.f32 %v17055_v5, %v3334_v27  ;;  %v3337_v40 = vadd.f32 %v12357_v31, %v2955_v17  ;;  %v3286_v56 = vpop.f32.mrf.mxu0  ;;  %v12343_v29 = vpop.f32.mrf.mxu1  ;;  %v2956_v8 = vadd.f32 %v2917_v28, %v2774_v38  ;;  %v2411_v46 = vadd.f32 %v14510_v63, %v14553_v42  ;;  %v3423_v63 = vld [vmem:[%s14550_s19 + $0x28] sm:$0xff] }
 0x201   : >> { %3452 = vst.msk [vmem:[%s14568_s21 + $0x8] sm:$0xff] %vm640_vm2, %v3435_v60  ;;  %v3406_v7 = vsel %vm3374_vm13, %v3358_v43, %v3390_v30  ;;  %v3335_v3 = vadd.f32 %v3286_v56, %v2953_v45  ;;  %v2959_v11 = vadd.f32 %v12343_v29, %v2777_v34  ;;  %v2409_v35 = vadd.f32 %v14517_v0, %v2027_v55  ;;  %v3428_v45 = vld [vmem:[%s14550_s19 + $0x50] sm:$0xff] }
 0x202   : >> { %10676 = vst.msk [vmem:[%s14578_s22 + $0x88] sm:$0xf] %vm172_vm0, %v11817_v36  ;;  %v3440_v62 = vadd.f32 %v3424_v1, %v3406_v7  ;;  %v11822_v15 = vpack.c.bf16 %v3406_v7, %v3406_v7  ;;  %vm3372_vm14 = vcmp.ge.f32.partialorder %v3356_v6, 0.0  ;;  %v3388_v23 = vmul.f32 0.01, %v3356_v6  ;;  %v12360_v10 = vpop.f32.mrf.mxu0  ;;  %v2920_v59 = vpop.f32.mrf.mxu1  ;;  %v3429_v1 = vld [vmem:[%s14550_s19 + $0x58] sm:$0xff] }
 0x203   : >> { %v3359_v61 = vadd.f32 %v17055_v5, %v3337_v40  ;;  %v3357_v14 = vadd.f32 %v17055_v5, %v3335_v3  ;;  %v3340_v19 = vadd.f32 %v12360_v10, %v2958_v33  ;;  %v2957_v44 = vadd.f32 %v2920_v59, %v2775_v39  ;;  %v3426_v33 = vld [vmem:[%s14550_s19 + $0x40] sm:$0xff] }
 0x204   : >> { %3457 = vst.msk [vmem:[%s14568_s21 + $0x30] sm:$0xff] %vm640_vm2, %v3440_v62  ;;  %v3404_v18 = vsel %vm3372_vm14, %v3356_v6, %v3388_v23  ;;  %v3299_v12 = vpop.f32.mrf.mxu0  ;;  %v12346_v2 = vpop.f32.mrf.mxu1  ;;  %v2778_v17 = vadd.f32 %v14505_v48, %v2408_v13  ;;  %v2781_v38 = vadd.f32 %v14513_v53, %v2411_v46  ;;  %v2779_v24 = vadd.f32 %v14526_v22, %v2409_v35 }
 0x205   : >> { %10681 = vst.msk [vmem:[%s14578_s22 + $0xb4] sm:$0xf] %vm172_vm0, %v11822_v15  ;;  %v3438_v50 = vadd.f32 %v3422_v47, %v3404_v18  ;;  %v11820_v25 = vpack.c.bf16 %v3404_v18, %v3404_v18  ;;  %vm3375_vm15 = vcmp.ge.f32.partialorder %v3359_v61, 0.0  ;;  %v3391_v54 = vmul.f32 0.01, %v3359_v61  ;;  %v3427_v47 = vld [vmem:[%s14550_s19 + $0x48] sm:$0xff] }
 0x206   : >> { %vm3373_vm3 = vcmp.ge.f32.partialorder %v3357_v14, 0.0  ;;  %v3389_v41 = vmul.f32 0.01, %v3357_v14  ;;  %v3362_v0 = vadd.f32 %v17055_v5, %v3340_v19  ;;  %v3338_v42 = vadd.f32 %v3299_v12, %v2956_v8  ;;  %v12361_v26 = vpop.f32.mrf.mxu0  ;;  %v2933_v37 = vpop.f32.mrf.mxu1  ;;  %v3432_v18 = vld [vmem:[%s14550_s19 + $0x70] sm:$0xff] }
 0x207   : >> { %3455 = vst.msk [vmem:[%s14568_s21 + $0x20] sm:$0xff] %vm640_vm2, %v3438_v50  ;;  %v3407_v32 = vsel %vm3375_vm15, %v3359_v61, %v3391_v54  ;;  %v3341_v9 = vadd.f32 %v12361_v26, %v2959_v11  ;;  %v2962_v20 = vadd.f32 %v12346_v2, %v2780_v58  ;;  %v2960_v22 = vadd.f32 %v2933_v37, %v2778_v17 }
 0x208   : >> { %10679 = vst.msk [vmem:[%s14578_s22 + $0xa4] sm:$0xf] %vm172_vm0, %v11820_v25  ;;  %v3441_v21 = vadd.f32 %v3425_v16, %v3407_v32  ;;  %v11823_v52 = vpack.c.bf16 %v3407_v32, %v3407_v32  ;;  %v3405_v51 = vsel %vm3373_vm3, %v3357_v14, %v3389_v41  ;;  %vm3378_vm4 = vcmp.ge.f32.partialorder %v3362_v0, 0.0  ;;  %v3302_v4 = vpop.f32.mrf.mxu0  ;;  %v12347_v55 = vpop.f32.mrf.mxu1 }
 0x209   : >> { %v3439_v43 = vadd.f32 %v3423_v63, %v3405_v51  ;;  %v11821_v48 = vpack.c.bf16 %v3405_v51, %v3405_v51  ;;  %v3394_v27 = vmul.f32 0.01, %v3362_v0  ;;  %v3360_v57 = vadd.f32 %v17055_v5, %v3338_v42  ;;  %v3430_v63 = vld [vmem:[%s14550_s19 + $0x60] sm:$0xff]  ;;  %v3433_v42 = vld [vmem:[%s14550_s19 + $0x78] sm:$0xff]  ;;  %v3431_v51 = vld [vmem:[%s14550_s19 + $0x68] sm:$0xff] }
 0x20a   : >> { %3458 = vst.msk [vmem:[%s14568_s21 + $0x38] sm:$0xff] %vm640_vm2, %v3441_v21  ;;  %v3363_v34 = vadd.f32 %v17055_v5, %v3341_v9  ;;  %v3339_v49 = vadd.f32 %v3302_v4, %v2957_v44  ;;  %v2936_v28 = vpop.f32.mrf.mxu1  ;;  %v2963_v56 = vadd.f32 %v12347_v55, %v2781_v38 }
 0x20b   : >> { %10682 = vst.msk [vmem:[%s14578_s22 + $0xb8] sm:$0xf] %vm172_vm0, %v11823_v52  ;;  %10680 = vst.msk [vmem:[%s14578_s22 + $0xa8] sm:$0xf] %vm172_vm0, %v11821_v48  ;;  %v3410_v31 = vsel %vm3378_vm4, %v3362_v0, %v3394_v27  ;;  %vm3376_vm5 = vcmp.ge.f32.partialorder %v3360_v57, 0.0  ;;  %v2961_v8 = vadd.f32 %v2936_v28, %v2779_v24 }
 0x20c   : >> { %3456 = vst.msk [vmem:[%s14568_s21 + $0x28] sm:$0xff] %vm640_vm2, %v3439_v43  ;;  %v3392_v53 = vmul.f32 0.01, %v3360_v57  ;;  %v3444_v60 = vadd.f32 %v3428_v45, %v3410_v31  ;;  %v11826_v36 = vpack.c.bf16 %v3410_v31, %v3410_v31  ;;  %vm3379_vm6 = vcmp.ge.f32.partialorder %v3363_v34, 0.0  ;;  %v12364_v39 = vpop.f32.mrf.mxu0  ;;  %v14689_v48 = vld [vmem:[%s17015_s2 + $0x1] ss:$0 sm:$0xff] (%p564_p4) }
 0x20d   : >> { %v3395_v30 = vmul.f32 0.01, %v3363_v34  ;;  %v3361_v6 = vadd.f32 %v17055_v5, %v3339_v49  ;;  %v3344_v40 = vadd.f32 %v12364_v39, %v2962_v20  ;;  %17067 = vst [vmem:[#allocation4_spill] sm:$0xff] (%p564_p4), %v14689_v48 }
 0x20e   : >> { %v3408_v58 = vsel %vm3376_vm5, %v3360_v57, %v3392_v53  ;;  %3461 = vst.msk [vmem:[%s14568_s21 + $0x50] sm:$0xff] %vm640_vm2, %v3444_v60  ;;  %v3315_v3 = vpop.f32.mrf.mxu0 }
 0x20f   : >> { %10685 = vst.msk [vmem:[%s14578_s22 + $0xd4] sm:$0xf] %vm172_vm0, %v11826_v36  ;;  %v3442_v29 = vadd.f32 %v3426_v33, %v3408_v58  ;;  %v11824_v13 = vpack.c.bf16 %v3408_v58, %v3408_v58  ;;  %v3411_v7 = vsel %vm3379_vm6, %v3363_v34, %v3395_v30  ;;  %vm3377_vm7 = vcmp.ge.f32.partialorder %v3361_v6, 0.0 }
 0x210   : >> { %v3445_v62 = vadd.f32 %v3429_v1, %v3411_v7  ;;  %v11827_v15 = vpack.c.bf16 %v3411_v7, %v3411_v7  ;;  %v3393_v23 = vmul.f32 0.01, %v3361_v6  ;;  %v3366_v10 = vadd.f32 %v17055_v5, %v3344_v40  ;;  %v12365_v61 = vpop.f32.mrf.mxu0 }
 0x211   : >> { %3459 = vst.msk [vmem:[%s14568_s21 + $0x40] sm:$0xff] %vm640_vm2, %v3442_v29  ;;  %v3342_v59 = vadd.f32 %v3315_v3, %v2960_v22  ;;  %v3345_v19 = vadd.f32 %v12365_v61, %v2963_v56 }
 0x212   : >> { %10683 = vst.msk [vmem:[%s14578_s22 + $0xc4] sm:$0xf] %vm172_vm0, %v11824_v13  ;;  %10686 = vst.msk [vmem:[%s14578_s22 + $0xd8] sm:$0xf] %vm172_vm0, %v11827_v15  ;;  %v3409_v14 = vsel %vm3377_vm7, %v3361_v6, %v3393_v23  ;;  %vm3382_vm8 = vcmp.ge.f32.partialorder %v3366_v10, 0.0  ;;  %v3318_v12 = vpop.f32.mrf.mxu0 }
 0x213   : >> { %3462 = vst.msk [vmem:[%s14568_s21 + $0x58] sm:$0xff] %vm640_vm2, %v3445_v62  ;;  %v3443_v11 = vadd.f32 %v3427_v47, %v3409_v14  ;;  %v11825_v46 = vpack.c.bf16 %v3409_v14, %v3409_v14  ;;  %v3398_v35 = vmul.f32 0.01, %v3366_v10  ;;  %v3364_v44 = vadd.f32 %v17055_v5, %v3342_v59 }
 0x214   : >> { %v3367_v2 = vadd.f32 %v17055_v5, %v3345_v19  ;;  %v3343_v50 = vadd.f32 %v3318_v12, %v2961_v8 }
 0x215   : >> { %3460 = vst.msk [vmem:[%s14568_s21 + $0x48] sm:$0xff] %vm640_vm2, %v3443_v11  ;;  %v3414_v25 = vsel %vm3382_vm8, %v3366_v10, %v3398_v35  ;;  %vm3380_vm9 = vcmp.ge.f32.partialorder %v3364_v44, 0.0  ;;  %v3396_v41 = vmul.f32 0.01, %v3364_v44 }
 0x216   : >> { %10684 = vst.msk [vmem:[%s14578_s22 + $0xc8] sm:$0xf] %vm172_vm0, %v11825_v46  ;;  %v3448_v54 = vadd.f32 %v3432_v18, %v3414_v25  ;;  %v11830_v16 = vpack.c.bf16 %v3414_v25, %v3414_v25  ;;  %vm3383_vm10 = vcmp.ge.f32.partialorder %v3367_v2, 0.0  ;;  %v3399_v0 = vmul.f32 0.01, %v3367_v2 }
 0x217   : >> { %v3365_v26 = vadd.f32 %v17055_v5, %v3343_v50  ;;  %v3412_v37 = vsel %vm3380_vm9, %v3364_v44, %v3396_v41 }
 0x218   : >> { %3465 = vst.msk [vmem:[%s14568_s21 + $0x70] sm:$0xff] %vm640_vm2, %v3448_v54  ;;  %v3446_v17 = vadd.f32 %v3430_v63, %v3412_v37  ;;  %v11828_v32 = vpack.c.bf16 %v3412_v37, %v3412_v37  ;;  %v3415_v9 = vsel %vm3383_vm10, %v3367_v2, %v3399_v0 }
 0x219   : >> { %10689 = vst.msk [vmem:[%s14578_s22 + $0xf4] sm:$0xf] %vm172_vm0, %v11830_v16  ;;  %vm3381_vm11 = vcmp.ge.f32.partialorder %v3365_v26, 0.0  ;;  %v3449_v20 = vadd.f32 %v3433_v42, %v3415_v9  ;;  %v11831_v21 = vpack.c.bf16 %v3415_v9, %v3415_v9  ;;  %v3397_v52 = vmul.f32 0.01, %v3365_v26 }
 0x21a   : >> { %3463 = vst.msk [vmem:[%s14568_s21 + $0x60] sm:$0xff] %vm640_vm2, %v3446_v17 }
 0x21b   : >> { %10687 = vst.msk [vmem:[%s14578_s22 + $0xe4] sm:$0xf] %vm172_vm0, %v11828_v32  ;;  %10690 = vst.msk [vmem:[%s14578_s22 + $0xf8] sm:$0xf] %vm172_vm0, %v11831_v21  ;;  %v3413_v4 = vsel %vm3381_vm11, %v3365_v26, %v3397_v52  ;;  %566 = sbr.rel (!%p564_p4) target bundleno = 125 (0x7d), region = 152 }
 0x21c   : >> { %3466 = vst.msk [vmem:[%s14568_s21 + $0x78] sm:$0xff] %vm640_vm2, %v3449_v20  ;;  %v3447_v55 = vadd.f32 %v3431_v51, %v3413_v4  ;;  %v11829_v43 = vpack.c.bf16 %v3413_v4, %v3413_v4 }
 0x21e   : >> { %3464 = vst.msk [vmem:[%s14568_s21 + $0x68] sm:$0xff] %vm640_vm2, %v3447_v55 }
 0x21f   : >> { %10688 = vst.msk [vmem:[%s14578_s22 + $0xe8] sm:$0xf] %vm172_vm0, %v11829_v43 }
 0x220 LB: >> { %v10728_v27 = vld [vmem:[%s17014_s1 + $0x14] sm:$0x3]  ;;  %v10719_v5 = vld [vmem:[%s17014_s1 + $0x12] sm:$0x3]  ;;  %v10793_v57 = vld [vmem:[%s17014_s1 + $0x16] sm:$0x3]  ;;  %s13115_s27 = sphi %s14691_s27, %s3556_s27  }
 0x221   : >> { %12871 = vmatprep.subr.msk.bf16.mxu1 %vm665_vm1, %v10728_v27  ;;  %12870 = vmatprep.subr.msk.bf16.mxu0 %vm665_vm1, %v10728_v27  ;;  %v3665_v45 = vsel %vm665_vm1, %v10728_v27, 0  ;;  %s14709_s5 = sshll.u32 %s13115_s27, 7  ;;  %vm3780_vm12 = vcmask 1040384   ;;  %vm3781_vm13 = vcmask 1044484   ;;  %v3888_v53 = vsel %vm665_vm1, %v10719_v5, 0  ;;  %s3556_s27 = sadd.s32 1, %s13115_s27  }
 0x222   : >> { %12855 = vmatpush3.bf16.msra.mxu1 %v3665_v45  ;;  %12367 = vmatpush3.bf16.msra.mxu0 %v3665_v45  ;;  %s14714_s6 = scalar_lea.vmem [#allocation3], %s14709_s5  ;;  %vm4037_vm14 = vcmask 1042432   ;;  %vm4038_vm15 = vcmask 1046532   ;;  %v4145_v36 = vsel %vm665_vm1, %v10793_v57, 0  ;;  %v10877_v58 = vld [vmem:[%s17014_s1 + $0x1a] sm:$0x3]  ;;  %vm14762_vm3 = vmor %vm3780_vm12, %vm3781_vm13  ;;  %s15468_s21 = scalar_lea.vmem %s13561_s23, %s14709_s5 }
 0x223   : >> { %12872 = vmatprep.subr.msk.bf16.mxu1 %vm665_vm1, %v10719_v5  ;;  %12873 = vmatprep.subr.msk.bf16.mxu0 %vm665_vm1, %v10793_v57  ;;  %v10844_v13 = vld [vmem:[%s17014_s1 + $0x18] sm:$0x3]  ;;  %v14785_v54 = vsel %vm665_vm1, %v10877_v58, 0  ;;  %vm14806_vm4 = vmor %vm4037_vm14, %vm4038_vm15  ;;  %s15493_s22 = scalar_lea.vmem [#allocation2], %s14709_s5  ;;  %p3553_p5 = scmp.ge.s32.totalorder %s3556_s27, 2  }
 0x224   : >> { %v14781_v25 = vsel %vm665_vm1, %v10844_v13, 0  ;;  %s15611_s28 = smov (%p3553_p5), 0  }
 0x226   : >> { %v14717_v38 = vld [vmem:[%s14714_s6 + $0x64] sm:$0xf]  ;;  %v10720_v24 = vld [vmem:[%s14714_s6 + $0x68] sm:$0xf]  ;;  %v10699_v28 = vld [vmem:[%s14714_s6 + $0x74] sm:$0xf] }
 0x227   : >> { %v14721_v34 = vld [vmem:[%s14714_s6 + $0xa4] sm:$0xf]  ;;  %v10729_v49 = vcombine.low %v14717_v38, %v10720_v24  ;;  %v10724_v31 = vld [vmem:[%s14714_s6 + $0xa8] sm:$0xf]  ;;  %v3785_v33 = vrot.slane %v14717_v38, 7  ;;  %v3792_v56 = vrot.slane %v10699_v28, 7 }
 0x228   : >> { %v10733_v22 = vcombine.low %v14721_v34, %v10724_v31  ;;  %v10721_v60 = vld [vmem:[%s14714_s6 + $0x78] sm:$0xf]  ;;  %v10698_v30 = vld [vmem:[%s14714_s6 + $0x70] sm:$0x8]  ;;  %v14734_v39 = vld [vmem:[%s14714_s6 + $0xb4] sm:$0xf] }
 0x229   : >> { %12368 = vmatprep.mubr.msk.bf16.mxu0 %vm640_vm2, %v10729_v49  ;;  %v10730_v1 = vcombine.low %v10699_v28, %v10721_v60  ;;  %v3813_v6 = vrot.slane %v14721_v34, 7  ;;  %v10700_v40 = vld [vmem:[%s14714_s6 + $0x78] sm:$0x7]  ;;  %v14749_v3 = vld [vmem:[%s14714_s6 + $0x84] sm:$0xf]  ;;  %v3787_v15 = vrot.slane %v3785_v33, 4 }
 0x22a   : >> { %12376 = vmatprep.mubr.msk.bf16.mxu1 %vm640_vm2, %v10733_v22  ;;  %v10725_v29 = vld [vmem:[%s14714_s6 + $0xb8] sm:$0xf]  ;;  %v10722_v8 = vld [vmem:[%s14714_s6 + $0x88] sm:$0xf]  ;;  %v14753_v62 = vld [vmem:[%s14714_s6 + $0xc4] sm:$0xf] }
 0x22b   : >> { %12369 = vmatmul.mubr.msk.bf16.vlgmr.msra.gmra.mxu0 %vm640_vm2, %v10730_v1  ;;  %v10734_v7 = vcombine.low %v14734_v39, %v10725_v29  ;;  %v10746_v23 = vrot.slane %v10698_v30, 11  ;;  %v10731_v47 = vcombine.low %v14749_v3, %v10722_v8  ;;  %v10726_v10 = vld [vmem:[%s14714_s6 + $0xc8] sm:$0xf]  ;;  %v14758_v59 = vld [vmem:[%s14714_s6 + $0x94] sm:$0xf]  ;;  %v3794_v14 = vrot.slane %v3792_v56, 4 }
 0x22c   : >> { %12403 = vmatpush3.bf16.msra.mxu0 %v4145_v36  ;;  %v3795_v19 = vrot.slane %v10700_v40, 7  ;;  %v3799_v11 = vrot.slane %v14749_v3, 7  ;;  %v10735_v46 = vcombine.low %v14753_v62, %v10726_v10  ;;  %v10723_v35 = vld [vmem:[%s14714_s6 + $0x98] sm:$0xf]  ;;  %v14773_v18 = vld [vmem:[%s14714_s6 + $0xd4] sm:$0xf] }
 0x22d   : >> { %12377 = vmatmul.mubr.msk.bf16.vlgmr.msra.gmra.mxu1 %vm640_vm2, %v10734_v7  ;;  %12875 = vmatprep.subr.msk.bf16.mxu0 %vm665_vm1, %v10877_v58  ;;  %v10727_v12 = vld [vmem:[%s14714_s6 + $0xd8] sm:$0xf]  ;;  %v10695_v44 = vld [vmem:[%s14714_s6 + $0x60] sm:$0x8]  ;;  %v10732_v2 = vcombine.low %v14758_v59, %v10723_v35  ;;  %v10697_v50 = vld [vmem:[%s14714_s6 + $0x68] sm:$0x7]  ;;  %v14793_v41 = vsel %vm14762_vm3, %v10746_v23, %v3792_v56 }
 0x22e   : >> { %12385 = vmatpush3.bf16.msra.mxu1 %v3888_v53  ;;  %12372 = vmatprep.mubr.msk.bf16.mxu0 %vm640_vm2, %v10731_v47  ;;  %v14789_v16 = vrot.slane %v3813_v6, 4  ;;  %v10745_v63 = vrot.slane %v10695_v44, 11  ;;  %v3788_v0 = vrot.slane %v10697_v50, 7  ;;  %v10769_v42 = vld [vmem:[%s14714_s6 + $0x64] sm:$0xe]  ;;  %v14798_v26 = vsel %vm14762_vm3, %v3794_v14, %v3795_v19 }
 0x22f   : >> { %12380 = vmatprep.mubr.msk.bf16.mxu1 %vm640_vm2, %v10735_v46  ;;  %12874 = vmatprep.subr.msk.bf16.mxu1 %vm665_vm1, %v10844_v13  ;;  %v3806_v37 = vrot.slane %v14758_v59, 7  ;;  %v10736_v17 = vcombine.low %v14773_v18, %v10727_v12  ;;  %v10770_v32 = vld [vmem:[%s14714_s6 + $0x68] sm:$0xf]  ;;  %v10771_v9 = vld [vmem:[%s14714_s6 + $0x6c] sm:$0x1]  ;;  %v10794_v21 = vrot.slane %v10769_v42, 9  ;;  %v10754_v58 = vcombine.low %v14793_v41, %v14798_v26 }
 0x230   : >> { %v3801_v52 = vrot.slane %v3799_v11, 4  ;;  %v3786_v51 = vsel %vm14762_vm3, %v10745_v63, %v3785_v33  ;;  %v3789_v4 = vsel %vm14762_vm3, %v3787_v15, %v3788_v0  ;;  %v4042_v55 = vrot.slane %v10770_v32, 5  ;;  %v10772_v43 = vld [vmem:[%s14714_s6 + $0x74] sm:$0xe]  ;;  %v10773_v27 = vld [vmem:[%s14714_s6 + $0x78] sm:$0xf] }
 0x231   : >> { %v10753_v5 = vcombine.low %v3786_v51, %v3789_v4  ;;  %v4045_v45 = vrot.slane %v10771_v9, 5  ;;  %v10774_v57 = vld [vmem:[%s14714_s6 + $0x7c] sm:$0x1]  ;;  %v10795_v38 = vrot.slane %v10772_v43, 9  ;;  %v4049_v24 = vrot.slane %v10773_v27, 5 }
 0x232   : >> { %v4043_v49 = vsel %vm14806_vm4, %v10794_v21, %v4042_v55  ;;  %v4044_v31 = vrot.slane %v4042_v55, 4  ;;  %v4052_v53 = vrot.slane %v10774_v57, 5  ;;  %v10701_v33 = vld [vmem:[%s14714_s6 + $0x80] sm:$0x8]  ;;  %v10703_v22 = vld [vmem:[%s14714_s6 + $0x88] sm:$0x7] }
 0x233   : >> { %12373 = vmatmul.mubr.msk.bf16.gmra.mxu0 %vm640_vm2, %v10732_v2  ;;  %v4050_v28 = vsel %vm14806_vm4, %v10795_v38, %v4049_v24  ;;  %v4051_v60 = vrot.slane %v4049_v24, 4  ;;  %v10747_v36 = vrot.slane %v10701_v33, 11  ;;  %v3802_v30 = vrot.slane %v10703_v22, 7  ;;  %v10775_v1 = vld [vmem:[%s14714_s6 + $0x84] sm:$0xe] }
 0x234   : >> { %v3808_v40 = vrot.slane %v3806_v37, 4  ;;  %v4046_v56 = vsel %vm14806_vm4, %v4044_v31, %v4045_v45  ;;  %v10776_v29 = vld [vmem:[%s14714_s6 + $0x88] sm:$0xf]  ;;  %v10777_v13 = vld [vmem:[%s14714_s6 + $0x8c] sm:$0x1]  ;;  %v10796_v7 = vrot.slane %v10775_v1, 9 }
 0x235   : >> { %12381 = vmatmul.mubr.msk.bf16.gmra.mxu1 %vm640_vm2, %v10736_v17  ;;  %v10802_v3 = vcombine.low %v4043_v49, %v4046_v56  ;;  %v4053_v8 = vsel %vm14806_vm4, %v4051_v60, %v4052_v53  ;;  %v3800_v15 = vsel %vm14762_vm3, %v10747_v36, %v3799_v11  ;;  %v3803_v23 = vsel %vm14762_vm3, %v3801_v52, %v3802_v30  ;;  %v10704_v47 = vld [vmem:[%s14714_s6 + $0x90] sm:$0x8]  ;;  %v10706_v10 = vld [vmem:[%s14714_s6 + $0x98] sm:$0x7]  ;;  %v10778_v14 = vld [vmem:[%s14714_s6 + $0x94] sm:$0xe] }
 0x236   : >> { %12386 = vmatprep.mubr.msk.bf16.mxu1 %vm640_vm2, %v10753_v5  ;;  %v10803_v19 = vcombine.low %v4050_v28, %v4053_v8  ;;  %v10755_v46 = vcombine.low %v3800_v15, %v3803_v23  ;;  %v4056_v35 = vrot.slane %v10776_v29, 5  ;;  %v4059_v12 = vrot.slane %v10777_v13, 5  ;;  %v10779_v44 = vld [vmem:[%s14714_s6 + $0x98] sm:$0xf]  ;;  %v10780_v2 = vld [vmem:[%s14714_s6 + $0x9c] sm:$0x1] }
 0x237   : >> { %12404 = vmatprep.mubr.msk.bf16.mxu0 %vm640_vm2, %v10802_v3  ;;  %v10748_v50 = vrot.slane %v10704_v47, 11  ;;  %v3809_v11 = vrot.slane %v10706_v10, 7  ;;  %v10797_v41 = vrot.slane %v10778_v14, 9  ;;  %v4063_v63 = vrot.slane %v10779_v44, 5  ;;  %v10707_v0 = vld [vmem:[%s14714_s6 + $0xa0] sm:$0x8] }
 0x238   : >> { %v4057_v42 = vsel %vm14806_vm4, %v10796_v7, %v4056_v35  ;;  %v4058_v26 = vrot.slane %v4056_v35, 4  ;;  %v4066_v17 = vrot.slane %v10780_v2, 5  ;;  %v10709_v32 = vld [vmem:[%s14714_s6 + $0xa8] sm:$0x7]  ;;  %v10749_v9 = vrot.slane %v10707_v0, 11 }
 0x239   : >> { %v14854_v21 = vld [vmem:[%s17014_s1 + $0x1c] sm:$0x3]  ;;  %v3820_v52 = vrot.slane %v14734_v39, 7  ;;  %v4065_v51 = vrot.slane %v4063_v63, 4  ;;  %v10781_v4 = vld [vmem:[%s14714_s6 + $0xa4] sm:$0xe]  ;;  %v3807_v27 = vsel %vm14762_vm3, %v10748_v50, %v3806_v37  ;;  %v4064_v5 = vsel %vm14806_vm4, %v10797_v41, %v4063_v63 }
 0x23a   : >> { %v10782_v55 = vld [vmem:[%s14714_s6 + $0xa8] sm:$0xf]  ;;  %v4060_v43 = vsel %vm14806_vm4, %v4058_v26, %v4059_v12  ;;  %v3816_v45 = vrot.slane %v10709_v32, 7  ;;  %v10783_v57 = vld [vmem:[%s14714_s6 + $0xac] sm:$0x1]  ;;  %v10798_v49 = vrot.slane %v10781_v4, 9  ;;  %v3810_v53 = vsel %vm14762_vm3, %v3808_v40, %v3809_v11 }
 0x23b   : >> { %12405 = vmatmul.mubr.msk.bf16.vlgmr.msra.gmra.mxu0 %vm640_vm2, %v10803_v19  ;;  %v10710_v38 = vld [vmem:[%s14714_s6 + $0xb0] sm:$0x8]  ;;  %v10804_v24 = vcombine.low %v4057_v42, %v4060_v43  ;;  %v4070_v31 = vrot.slane %v10782_v55, 5  ;;  %v10712_v59 = vld [vmem:[%s14714_s6 + $0xb8] sm:$0x7]  ;;  %v3814_v33 = vsel %vm14762_vm3, %v10749_v9, %v3813_v6  ;;  %v4073_v28 = vrot.slane %v10783_v57, 5 }
 0x23c   : >> { %12439 = vmatpush3.bf16.msra.mxu0 %v14785_v54  ;;  %v4067_v54 = vsel %vm14806_vm4, %v4065_v51, %v4066_v17  ;;  %v10784_v37 = vld [vmem:[%s14714_s6 + $0xb4] sm:$0xe]  ;;  %v3817_v22 = vsel %vm14762_vm3, %v14789_v16, %v3816_v45  ;;  %v10785_v60 = vld [vmem:[%s14714_s6 + $0xb8] sm:$0xf]  ;;  %v10786_v36 = vld [vmem:[%s14714_s6 + $0xbc] sm:$0x1]  ;;  %v10756_v13 = vcombine.low %v3807_v27, %v3810_v53 }
 0x23d   : >> { %12387 = vmatmul.mubr.msk.bf16.vlgmr.msra.gmra.mxu1 %vm640_vm2, %v10754_v58  ;;  %12408 = vmatprep.mubr.msk.bf16.mxu0 %vm640_vm2, %v10804_v24  ;;  %v10805_v30 = vcombine.low %v4064_v5, %v4067_v54  ;;  %v4071_v34 = vsel %vm14806_vm4, %v10798_v49, %v4070_v31  ;;  %v4072_v1 = vrot.slane %v4070_v31, 4  ;;  %v10713_v6 = vld [vmem:[%s14714_s6 + $0xc0] sm:$0x8]  ;;  %v10715_v58 = vld [vmem:[%s14714_s6 + $0xc8] sm:$0x7]  ;;  %v3822_v16 = vrot.slane %v3820_v52, 4 }
 0x23e   : >> { %12421 = vmatpush3.bf16.msra.mxu1 %v14781_v25  ;;  %12390 = vmatprep.mubr.msk.bf16.mxu1 %vm640_vm2, %v10755_v46  ;;  %v3827_v25 = vrot.slane %v14753_v62, 7  ;;  %v10799_v40 = vrot.slane %v10784_v37, 9  ;;  %v4077_v56 = vrot.slane %v10785_v60, 5  ;;  %v4080_v62 = vrot.slane %v10786_v36, 5  ;;  %v10787_v29 = vld [vmem:[%s14714_s6 + $0xc4] sm:$0xe] }
 0x23f   : >> { %12876 = vmatprep.subr.msk.bf16.mxu1 %vm665_vm1, %v14854_v21  ;;  %v10757_v7 = vcombine.low %v3814_v33, %v3817_v22  ;;  %v4074_v3 = vsel %vm14806_vm4, %v4072_v1, %v4073_v28  ;;  %v10750_v8 = vrot.slane %v10710_v38, 11  ;;  %v10788_v15 = vld [vmem:[%s14714_s6 + $0xc8] sm:$0xf]  ;;  %v10789_v23 = vld [vmem:[%s14714_s6 + $0xcc] sm:$0x1]  ;;  %v3823_v10 = vrot.slane %v10712_v59, 7 }
 0x240   : >> { %v10806_v47 = vcombine.low %v4071_v34, %v4074_v3  ;;  %v4079_v14 = vrot.slane %v4077_v56, 4  ;;  %v10751_v19 = vrot.slane %v10713_v6, 11  ;;  %v3829_v46 = vrot.slane %v3827_v25, 4  ;;  %v10791_v2 = vld [vmem:[%s14714_s6 + $0xd8] sm:$0xf] }
 0x241   : >> { %v3830_v35 = vrot.slane %v10715_v58, 7  ;;  %v10800_v12 = vrot.slane %v10787_v29, 9  ;;  %v4084_v44 = vrot.slane %v10788_v15, 5  ;;  %v4078_v50 = vsel %vm14806_vm4, %v10799_v40, %v4077_v56  ;;  %v10790_v63 = vld [vmem:[%s14714_s6 + $0xd4] sm:$0xe] }
 0x242   : >> { %v4081_v11 = vsel %vm14806_vm4, %v4079_v14, %v4080_v62  ;;  %v4087_v41 = vrot.slane %v10789_v23, 5  ;;  %v3834_v0 = vrot.slane %v14773_v18, 7  ;;  %v10792_v17 = vld [vmem:[%s14714_s6 + $0xdc] sm:$0x1]  ;;  %v10821_v32 = vld [vmem:[%s14714_s6 + $0x84] sm:$0xf]  ;;  %v3821_v9 = vsel %vm14762_vm3, %v10750_v8, %v3820_v52 }
 0x243   : >> { %12409 = vmatmul.mubr.msk.bf16.gmra.mxu0 %vm640_vm2, %v10805_v30  ;;  %v4085_v42 = vsel %vm14806_vm4, %v10800_v12, %v4084_v44  ;;  %v4086_v26 = vrot.slane %v4084_v44, 4  ;;  %v3824_v18 = vsel %vm14762_vm3, %v3822_v16, %v3823_v10  ;;  %v3828_v51 = vsel %vm14762_vm3, %v10751_v19, %v3827_v25  ;;  %v10716_v4 = vld [vmem:[%s14714_s6 + $0xd0] sm:$0x8]  ;;  %v10718_v39 = vld [vmem:[%s14714_s6 + $0xd8] sm:$0x7] }
 0x244   : >> { %12412 = vmatprep.mubr.msk.bf16.mxu0 %vm640_vm2, %v10806_v47  ;;  %v4091_v55 = vrot.slane %v10791_v2, 5  ;;  %v10807_v43 = vcombine.low %v4078_v50, %v4081_v11  ;;  %v3831_v27 = vsel %vm14762_vm3, %v3829_v46, %v3830_v35  ;;  %v10820_v45 = vld [vmem:[%s14714_s6 + $0x80] sm:$0x8]  ;;  %v4316_v57 = vrot.slane %v10821_v32, 7  ;;  %v10822_v49 = vld [vmem:[%s14714_s6 + $0x88] sm:$0x7] }
 0x245   : >> { %12391 = vmatmul.mubr.msk.bf16.gmra.mxu1 %vm640_vm2, %v10756_v13  ;;  %v4088_v5 = vsel %vm14806_vm4, %v4086_v26, %v4087_v41  ;;  %v10801_v52 = vrot.slane %v10790_v63, 9  ;;  %v4094_v54 = vrot.slane %v10792_v17, 5  ;;  %v10758_v31 = vcombine.low %v3821_v9, %v3824_v18  ;;  %v10969_v59 = vld [vmem:[%s17014_s1 + $0x1e] sm:$0x3]  ;;  %v10824_v25 = vld [vmem:[%s14714_s6 + $0x94] sm:$0xf] }
 0x246   : >> { %12394 = vmatprep.mubr.msk.bf16.mxu1 %vm640_vm2, %v10757_v7  ;;  %v10808_v38 = vcombine.low %v4085_v42, %v4088_v5  ;;  %v4093_v24 = vrot.slane %v4091_v55, 4  ;;  %v3836_v37 = vrot.slane %v3834_v0, 4  ;;  %v10759_v53 = vcombine.low %v3828_v51, %v3831_v27  ;;  %12877 = vmatprep.subr.msk.bf16.mxu0 %vm665_vm1, %v10969_v59  ;;  %v10827_v1 = vld [vmem:[%s14714_s6 + $0xa4] sm:$0xf]  ;;  %v10869_v6 = vld [vmem:[%s14714_s6 + $0x88] sm:$0xf] }
 0x247   : >> { %v10752_v33 = vrot.slane %v10716_v4, 11  ;;  %v3837_v22 = vrot.slane %v10718_v39, 7  ;;  %v10845_v28 = vrot.slane %v10820_v45, 11  ;;  %v4318_v60 = vrot.slane %v4316_v57, 4  ;;  %v10823_v13 = vld [vmem:[%s14714_s6 + $0x90] sm:$0x8] }
 0x248   : >> { %v4319_v36 = vrot.slane %v10822_v49, 7  ;;  %v4092_v30 = vsel %vm14806_vm4, %v10801_v52, %v4091_v55  ;;  %v4095_v34 = vsel %vm14806_vm4, %v4093_v24, %v4094_v54  ;;  %v4323_v40 = vrot.slane %v10824_v25, 7  ;;  %v10825_v7 = vld [vmem:[%s14714_s6 + $0x98] sm:$0x7]  ;;  %v10826_v15 = vld [vmem:[%s14714_s6 + $0xa0] sm:$0x8] }
 0x249   : >> { %v3835_v58 = vsel %vm14762_vm3, %v10752_v33, %v3834_v0  ;;  %v3838_v16 = vsel %vm14762_vm3, %v3836_v37, %v3837_v22  ;;  %v10809_v56 = vcombine.low %v4092_v30, %v4095_v34  ;;  %v4317_v62 = vsel %vm14762_vm3, %v10845_v28, %v4316_v57  ;;  %v10828_v23 = vld [vmem:[%s14714_s6 + $0xa8] sm:$0x7]  ;;  %v14964_v2 = vld [vmem:[%s14714_s6 + $0xb4] sm:$0xf]  ;;  %v10870_v50 = vld [vmem:[%s14714_s6 + $0x98] sm:$0xf] }
 0x24a   : >> { %v4320_v29 = vsel %vm14762_vm3, %v4318_v60, %v4319_v36  ;;  %v4330_v3 = vrot.slane %v10827_v1, 7  ;;  %v10878_v8 = vcombine.low %v10821_v32, %v10869_v6  ;;  %v10760_v47 = vcombine.low %v3835_v58, %v3838_v16  ;;  %v14969_v11 = vld [vmem:[%s14714_s6 + $0xc4] sm:$0xf]  ;;  %v10871_v41 = vld [vmem:[%s14714_s6 + $0xa8] sm:$0xf] }
 0x24b   : >> { %12413 = vmatmul.mubr.msk.bf16.gmra.mxu0 %vm640_vm2, %v10807_v43  ;;  %v10853_v10 = vcombine.low %v4317_v62, %v4320_v29  ;;  %v10846_v14 = vrot.slane %v10823_v13, 11  ;;  %v4325_v19 = vrot.slane %v4323_v40, 4  ;;  %v4326_v46 = vrot.slane %v10825_v7, 7  ;;  %v10829_v9 = vld [vmem:[%s14714_s6 + $0xb0] sm:$0x8] }
 0x24c   : >> { %12416 = vmatprep.mubr.msk.bf16.mxu0 %vm640_vm2, %v10808_v38  ;;  %v10847_v35 = vrot.slane %v10826_v15, 11  ;;  %v4332_v12 = vrot.slane %v4330_v3, 4  ;;  %v4333_v44 = vrot.slane %v10828_v23, 7  ;;  %v4337_v42 = vrot.slane %v14964_v2, 7  ;;  %v10831_v18 = vld [vmem:[%s14714_s6 + $0xb8] sm:$0x7] }
 0x24d   : >> { %12395 = vmatmul.mubr.msk.bf16.gmra.mxu1 %vm640_vm2, %v10758_v31  ;;  %v4324_v63 = vsel %vm14762_vm3, %v10846_v14, %v4323_v40  ;;  %v4327_v0 = vsel %vm14762_vm3, %v4325_v19, %v4326_v46  ;;  %v10879_v26 = vcombine.low %v10824_v25, %v10870_v50  ;;  %v4344_v51 = vrot.slane %v14969_v11, 7  ;;  %v10832_v55 = vld [vmem:[%s14714_s6 + $0xc0] sm:$0x8]  ;;  %v10834_v43 = vld [vmem:[%s14714_s6 + $0xc8] sm:$0x7] }
 0x24e   : >> { %12398 = vmatprep.mubr.msk.bf16.mxu1 %vm640_vm2, %v10759_v53  ;;  %v4331_v17 = vsel %vm14762_vm3, %v10847_v35, %v4330_v3  ;;  %v4334_v32 = vsel %vm14762_vm3, %v4332_v12, %v4333_v44  ;;  %v10880_v4 = vcombine.low %v10827_v1, %v10871_v41  ;;  %v10854_v27 = vcombine.low %v4324_v63, %v4327_v0  ;;  %v14990_v52 = vld [vmem:[%s14714_s6 + $0xd4] sm:$0xf]  ;;  %v14998_v37 = vld [vmem:[%s14714_s6 + $0xe4] sm:$0xf]  ;;  %v15003_v53 = vld [vmem:[%s17014_s1 + $0x20] sm:$0x3] }
 0x24f   : >> { %v5145_v5 = vsel %vm665_vm1, %v10969_v59, 0  ;;  %v10855_v39 = vcombine.low %v4331_v17, %v4334_v32  ;;  %v10848_v45 = vrot.slane %v10829_v9, 11  ;;  %v4339_v57 = vrot.slane %v4337_v42, 4  ;;  %v10872_v59 = vld [vmem:[%s14714_s6 + $0xb8] sm:$0xf] }
 0x250   : >> { %v4340_v38 = vrot.slane %v10831_v18, 7  ;;  %v4871_v24 = vsel %vm665_vm1, %v14854_v21, 0  ;;  %v10849_v54 = vrot.slane %v10832_v55, 11  ;;  %v4346_v49 = vrot.slane %v4344_v51, 4  ;;  %v10873_v21 = vld [vmem:[%s14714_s6 + $0xc8] sm:$0xf] }
 0x251   : >> { %v4347_v31 = vrot.slane %v10834_v43, 7  ;;  %v4351_v33 = vrot.slane %v14990_v52, 7  ;;  %v4338_v22 = vsel %vm14762_vm3, %v10848_v45, %v4337_v42  ;;  %v10835_v60 = vld [vmem:[%s14714_s6 + $0xd0] sm:$0x8]  ;;  %v10837_v36 = vld [vmem:[%s14714_s6 + $0xd8] sm:$0x7]  ;;  %v10881_v25 = vcombine.low %v14964_v2, %v10872_v59 }
 0x252   : >> { %v4341_v28 = vsel %vm14762_vm3, %v4339_v57, %v4340_v38  ;;  %v4345_v30 = vsel %vm14762_vm3, %v10849_v54, %v4344_v51  ;;  %v4358_v1 = vrot.slane %v14998_v37, 7  ;;  %v15026_v6 = vld [vmem:[%s17014_s1 + $0x22] sm:$0x3]  ;;  %v10882_v58 = vcombine.low %v14969_v11, %v10873_v21  ;;  %v10840_v40 = vld [vmem:[%s14714_s6 + $0xe8] sm:$0x7] }
 0x253   : >> { %12417 = vmatmul.mubr.msk.bf16.gmra.mxu0 %vm640_vm2, %v10809_v56  ;;  %v4348_v34 = vsel %vm14762_vm3, %v4346_v49, %v4347_v31  ;;  %v10838_v16 = vld [vmem:[%s14714_s6 + $0xe0] sm:$0x8]  ;;  %v10856_v56 = vcombine.low %v4338_v22, %v4341_v28  ;;  %v10850_v62 = vrot.slane %v10835_v60, 11  ;;  %v4353_v29 = vrot.slane %v4351_v33, 4  ;;  %v15034_v7 = vld [vmem:[%s14714_s6 + $0xf4] sm:$0xf] }
 0x254   : >> { %12440 = vmatprep.mubr.msk.bf16.mxu0 %vm640_vm2, %v10878_v8  ;;  %v4354_v13 = vrot.slane %v10837_v36, 7  ;;  %v10857_v3 = vcombine.low %v4345_v30, %v4348_v34  ;;  %v10874_v8 = vld [vmem:[%s14714_s6 + $0xd8] sm:$0xf]  ;;  %v15038_v15 = vld [vmem:[%s14714_s6 + $0xa4] sm:$0xf]  ;;  %v10851_v23 = vrot.slane %v10838_v16, 11 }
 0x255   : >> { %12399 = vmatmul.mubr.msk.bf16.gmra.mxu1 %vm640_vm2, %v10760_v47  ;;  %v4360_v47 = vrot.slane %v4358_v1, 4  ;;  %v10895_v14 = vld [vmem:[%s14714_s6 + $0x88] sm:$0xf]  ;;  %v10841_v46 = vld [vmem:[%s14714_s6 + $0xf0] sm:$0x8]  ;;  %v4365_v35 = vrot.slane %v15034_v7, 7  ;;  %v4352_v12 = vsel %vm14762_vm3, %v10850_v62, %v4351_v33  ;;  %v10883_v42 = vcombine.low %v14990_v52, %v10874_v8 }
 0x256   : >> { %12422 = vmatprep.mubr.msk.bf16.mxu1 %vm640_vm2, %v10853_v10  ;;  %v4361_v10 = vrot.slane %v10840_v40, 7  ;;  %v10875_v19 = vld [vmem:[%s14714_s6 + $0xe8] sm:$0xf]  ;;  %v4355_v44 = vsel %vm14762_vm3, %v4353_v29, %v4354_v13  ;;  %v10843_v2 = vld [vmem:[%s14714_s6 + $0xf8] sm:$0x7]  ;;  %v5042_v11 = vrot.slane %v15038_v15, 7 }
 0x257   : >> { %v10894_v50 = vld [vmem:[%s14714_s6 + $0x84] sm:$0xe]  ;;  %v4768_v41 = vrot.slane %v10895_v14, 5  ;;  %v10945_v63 = vld [vmem:[%s14714_s6 + $0xa0] sm:$0x8]  ;;  %v10884_v32 = vcombine.low %v14998_v37, %v10875_v19  ;;  %v10858_v18 = vcombine.low %v4352_v12, %v4355_v44  ;;  %v10852_v51 = vrot.slane %v10841_v46, 11 }
 0x258   : >> { %v10947_v0 = vld [vmem:[%s14714_s6 + $0xa8] sm:$0x7]  ;;  %v4362_v17 = vsel %vm14762_vm3, %v4360_v47, %v4361_v10  ;;  %v10896_v9 = vld [vmem:[%s14714_s6 + $0x8c] sm:$0x1]  ;;  %v4368_v55 = vrot.slane %v10843_v2, 7 }
 0x259   : >> { %v15065_v43 = vld [vmem:[%s14714_s6 + $0xb4] sm:$0xf]  ;;  %v5045_v45 = vrot.slane %v10947_v0, 7  ;;  %v4770_v38 = vrot.slane %v4768_v41, 4  ;;  %v4771_v52 = vrot.slane %v10896_v9, 5  ;;  %v4366_v59 = vsel %vm14762_vm3, %v10852_v51, %v4365_v35 }
 0x25a   : >> { %v15069_v54 = vld [vmem:[%s14714_s6 + $0xc4] sm:$0xf]  ;;  %v10876_v49 = vld [vmem:[%s14714_s6 + $0xf8] sm:$0xf]  ;;  %v5049_v31 = vrot.slane %v15065_v43, 7 }
 0x25b   : >> { %12441 = vmatmul.mubr.msk.bf16.vlgmr.msra.gmra.mxu0 %vm640_vm2, %v10879_v26  ;;  %v4359_v26 = vsel %vm14762_vm3, %v10851_v23, %v4358_v1  ;;  %v10948_v21 = vld [vmem:[%s14714_s6 + $0xb0] sm:$0x8]  ;;  %v10950_v33 = vld [vmem:[%s14714_s6 + $0xb8] sm:$0x7]  ;;  %v10901_v22 = vld [vmem:[%s14714_s6 + $0xa8] sm:$0xf]  ;;  %v10885_v1 = vcombine.low %v15034_v7, %v10876_v49  ;;  %v4772_v16 = vsel %vm14806_vm4, %v4770_v38, %v4771_v52 }
 0x25c   : >> { %12475 = vmatpush3.bf16.msra.mxu0 %v5145_v5  ;;  %12444 = vmatprep.mubr.msk.bf16.mxu0 %vm640_vm2, %v10880_v4  ;;  %v4367_v4 = vrot.slane %v4365_v35, 4  ;;  %v10970_v5 = vrot.slane %v10945_v63, 11  ;;  %v10859_v57 = vcombine.low %v4359_v26, %v4362_v17  ;;  %v10897_v36 = vld [vmem:[%s14714_s6 + $0x94] sm:$0xe]  ;;  %v5056_v34 = vrot.slane %v15069_v54, 7 }
 0x25d   : >> { %12423 = vmatmul.mubr.msk.bf16.vlgmr.msra.gmra.mxu1 %vm640_vm2, %v10854_v27  ;;  %12879 = vmatprep.subr.msk.bf16.mxu0 %vm665_vm1, %v15026_v6  ;;  %v10919_v27 = vrot.slane %v10894_v50, 9  ;;  %v10900_v40 = vld [vmem:[%s14714_s6 + $0xa4] sm:$0xe]  ;;  %v10953_v62 = vld [vmem:[%s14714_s6 + $0xc8] sm:$0x7]  ;;  %v10971_v29 = vrot.slane %v10948_v21, 11 }
 0x25e   : >> { %12457 = vmatpush3.bf16.msra.mxu1 %v4871_v24  ;;  %12426 = vmatprep.mubr.msk.bf16.mxu1 %vm640_vm2, %v10855_v39  ;;  %v5044_v39 = vrot.slane %v5042_v11, 4  ;;  %v10898_v24 = vld [vmem:[%s14714_s6 + $0x98] sm:$0xf]  ;;  %v4369_v37 = vsel %vm14762_vm3, %v4367_v4, %v4368_v55  ;;  %v5043_v28 = vsel %vm14762_vm3, %v10970_v5, %v5042_v11  ;;  %v5051_v13 = vrot.slane %v5049_v31, 4  ;;  %v10902_v8 = vld [vmem:[%s14714_s6 + $0xac] sm:$0x1] }
 0x25f   : >> { %12878 = vmatprep.subr.msk.bf16.mxu1 %vm665_vm1, %v15003_v53  ;;  %v4775_v30 = vrot.slane %v10898_v24, 5  ;;  %v4782_v23 = vrot.slane %v10901_v22, 5  ;;  %v10860_v47 = vcombine.low %v4366_v59, %v4369_v37  ;;  %v10920_v14 = vrot.slane %v10897_v36, 9  ;;  %v15101_v19 = vld [vmem:[%s14714_s6 + $0xd4] sm:$0xf] }
 0x260   : >> { %v5046_v60 = vsel %vm14762_vm3, %v5044_v39, %v5045_v45  ;;  %v5058_v12 = vrot.slane %v5056_v34, 4  ;;  %v5059_v44 = vrot.slane %v10953_v62, 7  ;;  %v10921_v50 = vrot.slane %v10900_v40, 9  ;;  %v10904_v26 = vld [vmem:[%s14714_s6 + $0xb8] sm:$0xf] }
 0x261   : >> { %v10978_v10 = vcombine.low %v5043_v28, %v5046_v60  ;;  %v4777_v46 = vrot.slane %v4775_v30, 4  ;;  %v4785_v11 = vrot.slane %v10902_v8, 5  ;;  %v5050_v63 = vsel %vm14762_vm3, %v10971_v29, %v5049_v31  ;;  %v10954_v17 = vld [vmem:[%s14714_s6 + $0xd0] sm:$0x8]  ;;  %v10907_v51 = vld [vmem:[%s14714_s6 + $0xc8] sm:$0xf] }
 0x262   : >> { %v4776_v9 = vsel %vm14806_vm4, %v10920_v14, %v4775_v30  ;;  %v10903_v5 = vld [vmem:[%s14714_s6 + $0xb4] sm:$0xe]  ;;  %v4789_v38 = vrot.slane %v10904_v26, 5  ;;  %v10973_v52 = vrot.slane %v10954_v17, 11  ;;  %v10957_v24 = vld [vmem:[%s14714_s6 + $0xe0] sm:$0x8] }
 0x263   : >> { %12445 = vmatmul.mubr.msk.bf16.gmra.mxu0 %vm640_vm2, %v10881_v25  ;;  %v10899_v25 = vld [vmem:[%s14714_s6 + $0x9c] sm:$0x1]  ;;  %v10959_v49 = vld [vmem:[%s14714_s6 + $0xe8] sm:$0x7]  ;;  %v5327_v22 = vsel %vm665_vm1, %v15003_v53, 0  ;;  %v5597_v60 = vsel %vm665_vm1, %v15026_v6, 0 }
 0x264   : >> { %12448 = vmatprep.mubr.msk.bf16.mxu0 %vm640_vm2, %v10882_v58  ;;  %v4769_v58 = vsel %vm14806_vm4, %v10919_v27, %v4768_v41  ;;  %v4778_v7 = vrot.slane %v10899_v25, 5  ;;  %v15104_v41 = vld [vmem:[%s14714_s6 + $0xe4] sm:$0xf]  ;;  %v5060_v27 = vsel %vm14762_vm3, %v5058_v12, %v5059_v44  ;;  %v10905_v59 = vld [vmem:[%s14714_s6 + $0xbc] sm:$0x1]  ;;  %v4791_v62 = vrot.slane %v4789_v38, 4 }
 0x265   : >> { %12427 = vmatmul.mubr.msk.bf16.gmra.mxu1 %vm640_vm2, %v10856_v56  ;;  %v10951_v56 = vld [vmem:[%s14714_s6 + $0xc0] sm:$0x8]  ;;  %v10927_v2 = vcombine.low %v4769_v58, %v4772_v16  ;;  %v5070_v39 = vrot.slane %v15104_v41, 7  ;;  %v10906_v25 = vld [vmem:[%s14714_s6 + $0xc4] sm:$0xe]  ;;  %v5073_v16 = vrot.slane %v10959_v49, 7 }
 0x266   : >> { %12430 = vmatprep.mubr.msk.bf16.mxu1 %vm640_vm2, %v10857_v3  ;;  %v5052_v3 = vrot.slane %v10950_v33, 7  ;;  %v10972_v35 = vrot.slane %v10951_v56, 11  ;;  %v4779_v4 = vsel %vm14806_vm4, %v4777_v46, %v4778_v7  ;;  %v4796_v33 = vrot.slane %v10907_v51, 5  ;;  %v10908_v30 = vld [vmem:[%s14714_s6 + $0xcc] sm:$0x1] }
 0x267   : >> { %v10928_v28 = vcombine.low %v4776_v9, %v4779_v4  ;;  %v5072_v58 = vrot.slane %v5070_v39, 4  ;;  %v15143_v40 = vld [vmem:[%s14714_s6 + $0xf4] sm:$0xf]  ;;  %v4792_v29 = vrot.slane %v10905_v59, 5  ;;  %v15148_v6 = vld [vmem:[%s14714_s6 + $0x104] sm:$0xf] }
 0x268   : >> { %v5053_v0 = vsel %vm14762_vm3, %v5051_v13, %v5052_v3  ;;  %v5057_v55 = vsel %vm14762_vm3, %v10972_v35, %v5056_v34  ;;  %v10922_v34 = vrot.slane %v10903_v5, 9  ;;  %v10923_v3 = vrot.slane %v10906_v25, 9  ;;  %v10913_v7 = vld [vmem:[%s14714_s6 + $0xe8] sm:$0xf]  ;;  %v10962_v12 = vld [vmem:[%s14714_s6 + $0xf8] sm:$0x7] }
 0x269   : >> { %v10979_v45 = vcombine.low %v5050_v63, %v5053_v0  ;;  %v10980_v36 = vcombine.low %v5057_v55, %v5060_v27  ;;  %v4798_v8 = vrot.slane %v4796_v33, 4  ;;  %v5077_v14 = vrot.slane %v15143_v40, 7  ;;  %v10963_v0 = vld [vmem:[%s14714_s6 + $0x100] sm:$0x8]  ;;  %v10911_v9 = vld [vmem:[%s14714_s6 + $0xdc] sm:$0x1] }
 0x26a   : >> { %v5074_v35 = vsel %vm14762_vm3, %v5072_v58, %v5073_v16  ;;  %v5084_v44 = vrot.slane %v15148_v6, 7  ;;  %v4797_v26 = vsel %vm14806_vm4, %v10923_v3, %v4796_v33  ;;  %v4810_v51 = vrot.slane %v10913_v7, 5  ;;  %v10912_v5 = vld [vmem:[%s14714_s6 + $0xe4] sm:$0xe]  ;;  %v10966_v58 = vld [vmem:[%s14714_s6 + $0x110] sm:$0x8] }
 0x26b   : >> { %12449 = vmatmul.mubr.msk.bf16.gmra.mxu0 %vm640_vm2, %v10883_v42  ;;  %v4784_v42 = vrot.slane %v4782_v23, 4  ;;  %v5079_v55 = vrot.slane %v5077_v14, 4  ;;  %v5080_v27 = vrot.slane %v10962_v12, 7  ;;  %v10925_v33 = vrot.slane %v10912_v5, 9  ;;  %v10968_v16 = vld [vmem:[%s14714_s6 + $0x118] sm:$0x7] }
 0x26c   : >> { %12452 = vmatprep.mubr.msk.bf16.mxu0 %vm640_vm2, %v10884_v32  ;;  %v5063_v32 = vrot.slane %v15101_v19, 7  ;;  %v11021_v3 = vld [vmem:[%s14714_s6 + $0xac] sm:$0x1]  ;;  %v5094_v12 = vrot.slane %v10968_v16, 7  ;;  %v11024_v5 = vld [vmem:[%s14714_s6 + $0xbc] sm:$0x1] }
 0x26d   : >> { %12431 = vmatmul.mubr.msk.bf16.gmra.mxu1 %vm640_vm2, %v10858_v18  ;;  %v10956_v18 = vld [vmem:[%s14714_s6 + $0xd8] sm:$0x7]  ;;  %v4786_v31 = vsel %vm14806_vm4, %v4784_v42, %v4785_v11  ;;  %v10965_v42 = vld [vmem:[%s14714_s6 + $0x108] sm:$0x7]  ;;  %v5081_v25 = vsel %vm14762_vm3, %v5079_v55, %v5080_v27  ;;  %v11022_v27 = vld [vmem:[%s14714_s6 + $0xb4] sm:$0xe] }
 0x26e   : >> { %12434 = vmatprep.mubr.msk.bf16.mxu1 %vm640_vm2, %v10859_v57  ;;  %v4783_v57 = vsel %vm14806_vm4, %v10921_v50, %v4782_v23  ;;  %v5065_v37 = vrot.slane %v5063_v32, 4  ;;  %v5066_v21 = vrot.slane %v10956_v18, 7  ;;  %v5064_v53 = vsel %vm14762_vm3, %v10973_v52, %v5063_v32  ;;  %v10909_v32 = vld [vmem:[%s14714_s6 + $0xd4] sm:$0xe] }
 0x26f   : >> { %v10929_v56 = vcombine.low %v4783_v57, %v4786_v31  ;;  %v4799_v23 = vrot.slane %v10908_v30, 5  ;;  %v4793_v50 = vsel %vm14806_vm4, %v4791_v62, %v4792_v29  ;;  %v10976_v57 = vrot.slane %v10963_v0, 11 }
 0x270   : >> { %v5067_v13 = vsel %vm14762_vm3, %v5065_v37, %v5066_v21  ;;  %v5087_v52 = vrot.slane %v10965_v42, 7  ;;  %v10924_v31 = vrot.slane %v10909_v32, 9  ;;  %v4806_v37 = vrot.slane %v10911_v9, 5  ;;  %v11020_v21 = vld [vmem:[%s14714_s6 + $0xa8] sm:$0xf] }
 0x271   : >> { %v10981_v11 = vcombine.low %v5064_v53, %v5067_v13  ;;  %v4800_v17 = vsel %vm14806_vm4, %v4798_v8, %v4799_v23  ;;  %v11019_v13 = vld [vmem:[%s14714_s6 + $0xa4] sm:$0xe]  ;;  %v4811_v23 = vsel %vm14806_vm4, %v10925_v33, %v4810_v51  ;;  %v11026_v32 = vld [vmem:[%s14714_s6 + $0xc8] sm:$0xf] }
 0x272   : >> { %v10931_v49 = vcombine.low %v4797_v26, %v4800_v17 }
 0x273   : >> { %12453 = vmatmul.mubr.msk.bf16.gmra.mxu0 %vm640_vm2, %v10885_v1  ;;  %v10974_v1 = vrot.slane %v10957_v24, 11  ;;  %v15181_v24 = vld [vmem:[%s14714_s6 + $0x114] sm:$0xf] }
 0x274   : >> { %12476 = vmatprep.mubr.msk.bf16.mxu0 %vm640_vm2, %v10978_v10  ;;  %v10960_v10 = vld [vmem:[%s14714_s6 + $0xf0] sm:$0x8]  ;;  %v5091_v30 = vrot.slane %v15181_v24, 7 }
 0x275   : >> { %12435 = vmatmul.mubr.msk.bf16.gmra.mxu1 %vm640_vm2, %v10860_v47  ;;  %v10910_v47 = vld [vmem:[%s14714_s6 + $0xd8] sm:$0xf]  ;;  %v5071_v46 = vsel %vm14762_vm3, %v10974_v1, %v5070_v39  ;;  %v10975_v18 = vrot.slane %v10960_v10, 11  ;;  %v10914_v39 = vld [vmem:[%s14714_s6 + $0xec] sm:$0x1] }
 0x276   : >> { %12458 = vmatprep.mubr.msk.bf16.mxu1 %vm640_vm2, %v10927_v2  ;;  %v4790_v2 = vsel %vm14806_vm4, %v10922_v34, %v4789_v38  ;;  %v4803_v63 = vrot.slane %v10910_v47, 5  ;;  %v10982_v4 = vcombine.low %v5071_v46, %v5074_v35  ;;  %v5086_v38 = vrot.slane %v5084_v44, 4  ;;  %v10915_v10 = vld [vmem:[%s14714_s6 + $0xf4] sm:$0xe] }
 0x277   : >> { %v5085_v34 = vsel %vm14762_vm3, %v10976_v57, %v5084_v44  ;;  %v10977_v46 = vrot.slane %v10966_v58, 11  ;;  %v5093_v35 = vrot.slane %v5091_v30, 4  ;;  %v10926_v42 = vrot.slane %v10915_v10, 9  ;;  %v11025_v57 = vld [vmem:[%s14714_s6 + $0xc4] sm:$0xe] }
 0x278   : >> { %v4805_v59 = vrot.slane %v4803_v63, 4  ;;  %v5088_v1 = vsel %vm14762_vm3, %v5086_v38, %v5087_v52  ;;  %v4804_v62 = vsel %vm14806_vm4, %v10924_v31, %v4803_v63  ;;  %v11023_v63 = vld [vmem:[%s14714_s6 + $0xb8] sm:$0xf]  ;;  %v11027_v38 = vld [vmem:[%s14714_s6 + $0xcc] sm:$0x1] }
 0x279   : >> { %v10984_v7 = vcombine.low %v5085_v34, %v5088_v1  ;;  %v5092_v9 = vsel %vm14762_vm3, %v10977_v46, %v5091_v30  ;;  %v11032_v30 = vld [vmem:[%s14714_s6 + $0xe8] sm:$0xf] }
 0x27a   : >> { %v4807_v29 = vsel %vm14806_vm4, %v4805_v59, %v4806_v37  ;;  %v11045_v59 = vrot.slane %v11022_v27, 9 }
 0x27b   : >> { %12477 = vmatmul.mubr.msk.bf16.vlgmr.msra.gmra.mxu0 %vm640_vm2, %v10979_v45  ;;  %v10930_v45 = vcombine.low %v4790_v2, %v4793_v50  ;;  %v10932_v44 = vcombine.low %v4804_v62, %v4807_v29  ;;  %v11044_v2 = vrot.slane %v11019_v13, 9  ;;  %v11030_v62 = vld [vmem:[%s14714_s6 + $0xdc] sm:$0x1]  ;;  %v5522_v29 = vrot.slane %v11032_v30, 5  ;;  %v11031_v13 = vld [vmem:[%s14714_s6 + $0xe4] sm:$0xe] }
 0x27c   : >> { %12511 = vmatpush3.bf16.msra.mxu0 %v5597_v60  ;;  %12480 = vmatprep.mubr.msk.bf16.mxu0 %vm640_vm2, %v10980_v36  ;;  %v10916_v60 = vld [vmem:[%s14714_s6 + $0xf8] sm:$0xf]  ;;  %v5078_v36 = vsel %vm14762_vm3, %v10975_v18, %v5077_v14  ;;  %v10917_v14 = vld [vmem:[%s14714_s6 + $0xfc] sm:$0x1]  ;;  %v5095_v18 = vsel %vm14762_vm3, %v5093_v35, %v5094_v12  ;;  %v11048_v35 = vrot.slane %v11031_v13, 9 }
 0x27d   : >> { %12459 = vmatmul.mubr.msk.bf16.vlgmr.msra.gmra.mxu1 %vm640_vm2, %v10928_v28  ;;  %v4813_v28 = vrot.slane %v10914_v39, 5  ;;  %v4817_v53 = vrot.slane %v10916_v60, 5  ;;  %v10983_v8 = vcombine.low %v5078_v36, %v5081_v25  ;;  %v4820_v17 = vrot.slane %v10917_v14, 5  ;;  %v11029_v36 = vld [vmem:[%s14714_s6 + $0xd8] sm:$0xf] }
 0x27e   : >> { %12493 = vmatpush3.bf16.msra.mxu1 %v5327_v22  ;;  %12462 = vmatprep.mubr.msk.bf16.mxu1 %vm640_vm2, %v10929_v56  ;;  %v4812_v22 = vrot.slane %v4810_v51, 4  ;;  %v5494_v56 = vrot.slane %v11020_v21, 5  ;;  %v5501_v51 = vrot.slane %v11023_v63, 5  ;;  %v5508_v39 = vrot.slane %v11026_v32, 5 }
 0x27f   : >> { %v4819_v26 = vrot.slane %v4817_v53, 4  ;;  %v10985_v52 = vcombine.low %v5092_v9, %v5095_v18  ;;  %v5504_v21 = vrot.slane %v11024_v5, 5  ;;  %v5511_v60 = vrot.slane %v11027_v38, 5  ;;  %v10997_v9 = vld [vmem:[%s14714_s6 + $0xd8] sm:$0xf] }
 0x280   : >> { %v4814_v47 = vsel %vm14806_vm4, %v4812_v22, %v4813_v28  ;;  %v5496_v50 = vrot.slane %v5494_v56, 4  ;;  %v5503_v37 = vrot.slane %v5501_v51, 4  ;;  %v11046_v22 = vrot.slane %v11025_v57, 9  ;;  %v11037_v18 = vld [vmem:[%s14714_s6 + $0x104] sm:$0xe] }
 0x281   : >> { %v10933_v0 = vcombine.low %v4811_v23, %v4814_v47  ;;  %v4821_v61 = vsel %vm14806_vm4, %v4819_v26, %v4820_v17  ;;  %v5510_v28 = vrot.slane %v5508_v39, 4  ;;  %v5502_v34 = vsel %vm14806_vm4, %v11045_v59, %v5501_v51  ;;  %v10996_v23 = vld [vmem:[%s14714_s6 + $0xc8] sm:$0xf]  ;;  %v11034_v26 = vld [vmem:[%s14714_s6 + $0xf4] sm:$0xe] }
 0x282   : >> { %v5505_v1 = vsel %vm14806_vm4, %v5503_v37, %v5504_v21  ;;  %v5515_v58 = vrot.slane %v11029_v36, 5  ;;  %v5509_v16 = vsel %vm14806_vm4, %v11046_v22, %v5508_v39  ;;  %v5524_v12 = vrot.slane %v5522_v29, 4  ;;  %v11036_v17 = vld [vmem:[%s14714_s6 + $0xfc] sm:$0x1]  ;;  %v11039_v51 = vld [vmem:[%s14714_s6 + $0x10c] sm:$0x1] }
 0x283   : >> { %12481 = vmatmul.mubr.msk.bf16.gmra.mxu0 %vm640_vm2, %v10981_v11  ;;  %v5497_v11 = vrot.slane %v11021_v3, 5  ;;  %v11033_v3 = vld [vmem:[%s14714_s6 + $0xec] sm:$0x1]  ;;  %v11049_v5 = vrot.slane %v11034_v26, 9  ;;  %v11050_v57 = vrot.slane %v11037_v18, 9 }
 0x284   : >> { %12484 = vmatprep.mubr.msk.bf16.mxu0 %vm640_vm2, %v10982_v4  ;;  %v5495_v4 = vsel %vm14806_vm4, %v11044_v2, %v5494_v56  ;;  %v11028_v56 = vld [vmem:[%s14714_s6 + $0xd4] sm:$0xe]  ;;  %v5517_v14 = vrot.slane %v5515_v58, 4  ;;  %v11035_v2 = vld [vmem:[%s14714_s6 + $0xf8] sm:$0xf] }
 0x285   : >> { %12463 = vmatmul.mubr.msk.bf16.gmra.mxu1 %vm640_vm2, %v10930_v45  ;;  %v5498_v55 = vsel %vm14806_vm4, %v5496_v50, %v5497_v11  ;;  %v4818_v45 = vsel %vm14806_vm4, %v10926_v42, %v4817_v53  ;;  %v10995_v53 = vld [vmem:[%s14714_s6 + $0xb8] sm:$0xf]  ;;  %v11047_v10 = vrot.slane %v11028_v56, 9  ;;  %v11005_v50 = vcombine.low %v15069_v54, %v10996_v23  ;;  %v11038_v11 = vld [vmem:[%s14714_s6 + $0x108] sm:$0xf] }
 0x286   : >> { %12466 = vmatprep.mubr.msk.bf16.mxu1 %vm640_vm2, %v10931_v49  ;;  %v10994_v49 = vld [vmem:[%s14714_s6 + $0xa8] sm:$0xf]  ;;  %v11052_v31 = vcombine.low %v5495_v4, %v5498_v55  ;;  %v10934_v33 = vcombine.low %v4818_v45, %v4821_v61  ;;  %v11004_v46 = vcombine.low %v15065_v43, %v10995_v53  ;;  %v5523_v42 = vsel %vm14806_vm4, %v11048_v35, %v5522_v29  ;;  %v11042_v22 = vld [vmem:[%s14714_s6 + $0x11c] sm:$0x1] }
 0x287   : >> { %v11003_v25 = vcombine.low %v15038_v15, %v10994_v49  ;;  %v5512_v15 = vsel %vm14806_vm4, %v5510_v28, %v5511_v60  ;;  %v5516_v63 = vsel %vm14806_vm4, %v11047_v10, %v5515_v58  ;;  %v5536_v32 = vrot.slane %v11038_v11, 5  ;;  %v10998_v55 = vld [vmem:[%s14714_s6 + $0xe8] sm:$0xf]  ;;  %v11041_v49 = vld [vmem:[%s14714_s6 + $0x118] sm:$0xf] }
 0x288   : >> { %v11054_v47 = vcombine.low %v5509_v16, %v5512_v15  ;;  %v5532_v45 = vrot.slane %v11036_v17, 5  ;;  %v11006_v61 = vcombine.low %v15101_v19, %v10997_v9  ;;  %v5543_v21 = vrot.slane %v11041_v49, 5  ;;  %v10999_v28 = vld [vmem:[%s14714_s6 + $0xf8] sm:$0xf]  ;;  %v11000_v36 = vld [vmem:[%s14714_s6 + $0x108] sm:$0xf] }
 0x289   : >> { %v5538_v38 = vrot.slane %v5536_v32, 4  ;;  %v5537_v19 = vsel %vm14806_vm4, %v11050_v57, %v5536_v32  ;;  %v11008_v58 = vcombine.low %v15143_v40, %v10999_v28  ;;  %v11009_v16 = vcombine.low %v15148_v6, %v11000_v36 }
 0x28b   : >> { %12485 = vmatmul.mubr.msk.bf16.gmra.mxu0 %vm640_vm2, %v10983_v8  ;;  %v11053_v8 = vcombine.low %v5502_v34, %v5505_v1  ;;  %v5545_v34 = vrot.slane %v5543_v21, 4  ;;  %v5546_v1 = vrot.slane %v11042_v22, 5 }
 0x28c   : >> { %12488 = vmatprep.mubr.msk.bf16.mxu0 %vm640_vm2, %v10984_v7  ;;  %v5518_v7 = vrot.slane %v11030_v62, 5  ;;  %v11001_v62 = vld [vmem:[%s14714_s6 + $0x118] sm:$0xf] }
 0x28d   : >> { %12467 = vmatmul.mubr.msk.bf16.gmra.mxu1 %vm640_vm2, %v10932_v44  ;;  %v5525_v44 = vrot.slane %v11033_v3, 5  ;;  %v5547_v56 = vsel %vm14806_vm4, %v5545_v34, %v5546_v1  ;;  %v11010_v40 = vcombine.low %v15181_v24, %v11001_v62 }
 0x28e   : >> { %12470 = vmatprep.mubr.msk.bf16.mxu1 %vm640_vm2, %v10933_v0  ;;  %v5519_v43 = vsel %vm14806_vm4, %v5517_v14, %v5518_v7  ;;  %v5529_v0 = vrot.slane %v11035_v2, 5 }
 0x28f   : >> { %v5526_v54 = vsel %vm14806_vm4, %v5524_v12, %v5525_v44  ;;  %v11055_v4 = vcombine.low %v5516_v63, %v5519_v43 }
 0x290   : >> { %v11056_v27 = vcombine.low %v5523_v42, %v5526_v54  ;;  %v5531_v39 = vrot.slane %v5529_v0, 4  ;;  %v5530_v59 = vsel %vm14806_vm4, %v11049_v5, %v5529_v0 }
 0x292   : >> { %v5533_v37 = vsel %vm14806_vm4, %v5531_v39, %v5532_v45 }
 0x293   : >> { %12489 = vmatmul.mubr.msk.bf16.gmra.mxu0 %vm640_vm2, %v10985_v52  ;;  %v5539_v52 = vrot.slane %v11039_v51, 5  ;;  %v11057_v60 = vcombine.low %v5530_v59, %v5533_v37 }
 0x294   : >> { %12512 = vmatprep.mubr.msk.bf16.mxu0 %vm640_vm2, %v11052_v31  ;;  %v11007_v31 = vcombine.low %v15104_v41, %v10998_v55  ;;  %v11040_v41 = vld [vmem:[%s14714_s6 + $0x114] sm:$0xe] }
 0x295   : >> { %12471 = vmatmul.mubr.msk.bf16.gmra.mxu1 %vm640_vm2, %v10934_v33  ;;  %v5540_v33 = vsel %vm14806_vm4, %v5538_v38, %v5539_v52  ;;  %v11051_v30 = vrot.slane %v11040_v41, 9 }
 0x296   : >> { %12494 = vmatprep.mubr.msk.bf16.mxu1 %vm640_vm2, %v11003_v25  ;;  %v11058_v25 = vcombine.low %v5537_v19, %v5540_v33 }
 0x297   : >> { %v5544_v15 = vsel %vm14806_vm4, %v11051_v30, %v5543_v21 }
 0x298   : >> { %v11059_v29 = vcombine.low %v5544_v15, %v5547_v56 }
 0x29b   : >> { %12513 = vmatmul.mubr.msk.bf16.vlgmr.msra.gmra.mxu0 %vm640_vm2, %v11053_v8 }
 0x29c   : >> { %12516 = vmatprep.mubr.msk.bf16.mxu0 %vm640_vm2, %v11054_v47 }
 0x29d   : >> { %12495 = vmatmul.mubr.msk.bf16.vlgmr.msra.gmra.mxu1 %vm640_vm2, %v11004_v46 }
 0x29e   : >> { %12498 = vmatprep.mubr.msk.bf16.mxu1 %vm640_vm2, %v11005_v50 }
 0x2a3   : >> { %12517 = vmatmul.mubr.msk.bf16.gmra.mxu0 %vm640_vm2, %v11055_v4 }
 0x2a4   : >> { %12520 = vmatprep.mubr.msk.bf16.mxu0 %vm640_vm2, %v11056_v27 }
 0x2a5   : >> { %12499 = vmatmul.mubr.msk.bf16.gmra.mxu1 %vm640_vm2, %v11006_v61 }
 0x2a6   : >> { %12502 = vmatprep.mubr.msk.bf16.mxu1 %vm640_vm2, %v11007_v31 }
 0x2ab   : >> { %12521 = vmatmul.mubr.msk.bf16.gmra.mxu0 %vm640_vm2, %v11057_v60 }
 0x2ac   : >> { %12524 = vmatprep.mubr.msk.bf16.mxu0 %vm640_vm2, %v11058_v25 }
 0x2ad   : >> { %12503 = vmatmul.mubr.msk.bf16.gmra.mxu1 %vm640_vm2, %v11008_v58 }
 0x2ae   : >> { %12506 = vmatprep.mubr.msk.bf16.mxu1 %vm640_vm2, %v11009_v16 }
 0x2b3   : >> { %12525 = vmatmul.mubr.msk.bf16.gmra.mxu0 %vm640_vm2, %v11059_v29 }
 0x2b5   : >> { %12507 = vmatmul.mubr.msk.bf16.gmra.mxu1 %vm640_vm2, %v11010_v40 }
 0x2eb   : >> { %v12370_v6 = vpop.f32.mrf.mxu0 }
 0x2ed   : >> { %v12378_v53 = vpop.f32.mrf.mxu1  ;;  %v3701_v13 = vpop.f32.mrf.mxu0 }
 0x2ef   : >> { %v3733_v3 = vpop.f32.mrf.mxu1  ;;  %v12371_v8 = vpop.f32.mrf.mxu0 }
 0x2f1   : >> { %v12379_v23 = vpop.f32.mrf.mxu1  ;;  %v3704_v20 = vpop.f32.mrf.mxu0 }
 0x2f3   : >> { %v3736_v47 = vpop.f32.mrf.mxu1  ;;  %v12374_v10 = vpop.f32.mrf.mxu0 }
 0x2f5   : >> { %v12382_v14 = vpop.f32.mrf.mxu1  ;;  %v3717_v7 = vpop.f32.mrf.mxu0 }
 0x2f7   : >> { %v3749_v46 = vpop.f32.mrf.mxu1  ;;  %v12375_v35 = vpop.f32.mrf.mxu0 }
 0x2f9   : >> { %v12383_v12 = vpop.f32.mrf.mxu1  ;;  %v3720_v44 = vpop.f32.mrf.mxu0 }
 0x2fb   : >> { %v15311_v24 = vpop.f32.mrf.mxu1  ;;  %v12406_v2 = vpop.f32.mrf.mxu0 }
 0x2fd   : >> { %v12388_v50 = vpop.f32.mrf.mxu1  ;;  %v4181_v11 = vpop.f32.mrf.mxu0 }
 0x2fe   : >> { %v3933_v63 = vadd.f32 %v12388_v50, %v12370_v6 }
 0x2ff   : >> { %v3924_v43 = vpop.f32.mrf.mxu1  ;;  %v12407_v0 = vpop.f32.mrf.mxu0 }
 0x300   : >> { %v15313_v42 = vadd.f32 %v12406_v2, %v3933_v63  ;;  %v3925_v54 = vadd.f32 %v3924_v43, %v3701_v13 }
 0x301   : >> { %v12389_v26 = vpop.f32.mrf.mxu1  ;;  %v4184_v17 = vpop.f32.mrf.mxu0 }
 0x302   : >> { %v15315_v32 = vadd.f32 %v4181_v11, %v3925_v54  ;;  %v3936_v9 = vadd.f32 %v12389_v26, %v12371_v8 }
 0x303   : >> { %v3927_v18 = vpop.f32.mrf.mxu1  ;;  %v12410_v51 = vpop.f32.mrf.mxu0 }
 0x304   : >> { %v15317_v4 = vadd.f32 %v12407_v0, %v3936_v9  ;;  %v3928_v55 = vadd.f32 %v3927_v18, %v3704_v20 }
 0x305   : >> { %v12392_v27 = vpop.f32.mrf.mxu1  ;;  %v4197_v5 = vpop.f32.mrf.mxu0 }
 0x306   : >> { %v15319_v39 = vadd.f32 %v4184_v17, %v3928_v55  ;;  %v3949_v45 = vadd.f32 %v12392_v27, %v12374_v10 }
 0x307   : >> { %v3940_v61 = vpop.f32.mrf.mxu1  ;;  %v12411_v57 = vpop.f32.mrf.mxu0 }
 0x308   : >> { %v15321_v38 = vadd.f32 %v12410_v51, %v3949_v45  ;;  %v3941_v52 = vadd.f32 %v3940_v61, %v3717_v7 }
 0x309   : >> { %v12393_v49 = vpop.f32.mrf.mxu1  ;;  %v4200_v31 = vpop.f32.mrf.mxu0 }
 0x30a   : >> { %v15323_v59 = vadd.f32 %v4197_v5, %v3941_v52  ;;  %v3952_v37 = vadd.f32 %v12393_v49, %v12375_v35 }
 0x30b   : >> { %v3943_v21 = vpop.f32.mrf.mxu1  ;;  %v12414_v19 = vpop.f32.mrf.mxu0 }
 0x30c   : >> { %v15325_v33 = vadd.f32 %v12411_v57, %v3952_v37  ;;  %v3944_v41 = vadd.f32 %v3943_v21, %v3720_v44 }
 0x30d   : >> { %v12396_v22 = vpop.f32.mrf.mxu1  ;;  %v4213_v28 = vpop.f32.mrf.mxu0 }
 0x30e   : >> { %v15327_v60 = vadd.f32 %v4200_v31, %v3944_v41  ;;  %v3965_v36 = vadd.f32 %v12396_v22, %v12378_v53 }
 0x30f   : >> { %v3956_v25 = vpop.f32.mrf.mxu1  ;;  %v12415_v30 = vpop.f32.mrf.mxu0 }
 0x310   : >> { %v15329_v34 = vadd.f32 %v12414_v19, %v3965_v36  ;;  %v3957_v1 = vadd.f32 %v3956_v25, %v3733_v3 }
 0x311   : >> { %v12397_v58 = vpop.f32.mrf.mxu1  ;;  %v4216_v16 = vpop.f32.mrf.mxu0 }
 0x312   : >> { %v15331_v15 = vadd.f32 %v4213_v28, %v3957_v1  ;;  %v3968_v56 = vadd.f32 %v12397_v58, %v12379_v23 }
 0x313   : >> { %v3959_v62 = vpop.f32.mrf.mxu1  ;;  %v12418_v29 = vpop.f32.mrf.mxu0 }
 0x314   : >> { %v15333_v40 = vadd.f32 %v12415_v30, %v3968_v56  ;;  %v3960_v6 = vadd.f32 %v3959_v62, %v3736_v47 }
 0x315   : >> { %v12400_v13 = vpop.f32.mrf.mxu1  ;;  %v4229_v8 = vpop.f32.mrf.mxu0 }
 0x316   : >> { %v15335_v20 = vadd.f32 %v4216_v16, %v3960_v6  ;;  %v3981_v53 = vadd.f32 %v12400_v13, %v12382_v14 }
 0x317   : >> { %v3972_v10 = vpop.f32.mrf.mxu1  ;;  %v12419_v7 = vpop.f32.mrf.mxu0 }
 0x318   : >> { %v15337_v35 = vadd.f32 %v12418_v29, %v3981_v53  ;;  %v3973_v3 = vadd.f32 %v3972_v10, %v3749_v46 }
 0x319   : >> { %v12401_v44 = vpop.f32.mrf.mxu1  ;;  %v4232_v2 = vpop.f32.mrf.mxu0 }
 0x31a   : >> { %v15339_v50 = vadd.f32 %v4229_v8, %v3973_v3  ;;  %v3984_v23 = vadd.f32 %v12401_v44, %v12383_v12 }
 0x31b   : >> { %v3975_v11 = vpop.f32.mrf.mxu1  ;;  %v15341_v63 = vpop.f32.mrf.mxu0 }
 0x31c   : >> { %v15343_v43 = vadd.f32 %v12419_v7, %v3984_v23  ;;  %v3976_v47 = vadd.f32 %v3975_v11, %v15311_v24 }
 0x31d   : >> { %v12424_v0 = vpop.f32.mrf.mxu1  ;;  %v15346_v54 = vpop.f32.mrf.mxu0 }
 0x31e   : >> { %v15348_v14 = vadd.f32 %v4232_v2, %v3976_v47 }
 0x31f   : >> { %v4455_v26 = vpop.f32.mrf.mxu1  ;;  %v15350_v17 = vpop.f32.mrf.mxu0 }
 0x320   : >> { %17072 = vst [vmem:[#allocation24_spill] sm:$0xff] %v15348_v14 }
 0x321   : >> { %v12425_v46 = vpop.f32.mrf.mxu1  ;;  %v15352_v9 = vpop.f32.mrf.mxu0 }
 0x322   : >> { %v4521_v14 = vadd.f32 %v12425_v46, %v15317_v4 }
 0x323   : >> { %v4458_v18 = vpop.f32.mrf.mxu1  ;;  %v15354_v12 = vpop.f32.mrf.mxu0 }
 0x325   : >> { %v12428_v51 = vpop.f32.mrf.mxu1  ;;  %v15356_v55 = vpop.f32.mrf.mxu0 }
 0x327   : >> { %v4471_v27 = vpop.f32.mrf.mxu1  ;;  %v15358_v5 = vpop.f32.mrf.mxu0 }
 0x329   : >> { %v12429_v24 = vpop.f32.mrf.mxu1  ;;  %v15360_v45 = vpop.f32.mrf.mxu0 }
 0x32b   : >> { %v4474_v61 = vpop.f32.mrf.mxu1  ;;  %v15362_v57 = vpop.f32.mrf.mxu0 }
 0x32d   : >> { %v12432_v52 = vpop.f32.mrf.mxu1  ;;  %v15364_v49 = vpop.f32.mrf.mxu0 }
 0x32f   : >> { %v4487_v31 = vpop.f32.mrf.mxu1  ;;  %v15366_v37 = vpop.f32.mrf.mxu0 }
 0x330   : >> { %v4526_v4 = vadd.f32 %v4487_v31, %v15331_v15 }
 0x331   : >> { %v12433_v21 = vpop.f32.mrf.mxu1  ;;  %v15368_v19 = vpop.f32.mrf.mxu0 }
 0x333   : >> { %v4490_v41 = vpop.f32.mrf.mxu1  ;;  %v15370_v22 = vpop.f32.mrf.mxu0 }
 0x335   : >> { %v12436_v28 = vpop.f32.mrf.mxu1  ;;  %v15372_v36 = vpop.f32.mrf.mxu0 }
 0x336   : >> { %17073 = vst [vmem:[#allocation25_spill] sm:$0xff] %v15372_v36 }
 0x337   : >> { %v4503_v25 = vpop.f32.mrf.mxu1  ;;  %v15374_v30 = vpop.f32.mrf.mxu0 }
 0x338   : >> { %17074 = vst [vmem:[#allocation26_spill] sm:$0xff] %v15374_v30 }
 0x339   : >> { %v15376_v1 = vpop.f32.mrf.mxu1  ;;  %v15378_v58 = vpop.f32.mrf.mxu0 }
 0x33a   : >> { %17075 = vst [vmem:[#allocation27_spill] sm:$0xff] %v15376_v1  ;;  %17076 = vst [vmem:[#allocation28_spill] sm:$0xff] %v15378_v58 }
 0x33b   : >> { %v15380_v16 = vpop.f32.mrf.mxu1  ;;  %v15382_v56 = vpop.f32.mrf.mxu0 }
 0x33c   : >> { %17077 = vst [vmem:[#allocation29_spill] sm:$0xff] %v15380_v16  ;;  %17078 = vst [vmem:[#allocation30_spill] sm:$0xff] %v15382_v56  ;;  %v4522_v56 = vadd.f32 %v4471_v27, %v15323_v59 }
 0x33d   : >> { %v12460_v62 = vpop.f32.mrf.mxu1  ;;  %v15384_v29 = vpop.f32.mrf.mxu0 }
 0x33e   : >> { %17079 = vst [vmem:[#allocation31_spill] sm:$0xff] %v15384_v29  ;;  %v4704_v15 = vadd.f32 %v15356_v55, %v4522_v56 }
 0x33f   : >> { %v4907_v6 = vpop.f32.mrf.mxu1  ;;  %v15386_v13 = vpop.f32.mrf.mxu0 }
 0x340   : >> { %17080 = vst [vmem:[#allocation32_spill] sm:$0xff] %v15386_v13 }
 0x341   : >> { %v12461_v8 = vpop.f32.mrf.mxu1  ;;  %v15388_v53 = vpop.f32.mrf.mxu0 }
 0x342   : >> { %17081 = vst [vmem:[#allocation33_spill] sm:$0xff] %v15388_v53 }
 0x343   : >> { %v4910_v10 = vpop.f32.mrf.mxu1  ;;  %v15390_v7 = vpop.f32.mrf.mxu0 }
 0x344   : >> { %17082 = vst [vmem:[#allocation34_spill] sm:$0xff] %v15390_v7 }
 0x345   : >> { %v12464_v3 = vpop.f32.mrf.mxu1  ;;  %v15392_v44 = vpop.f32.mrf.mxu0 }
 0x346   : >> { %17083 = vst [vmem:[#allocation35_spill] sm:$0xff] %v15392_v44  ;;  %v4520_v44 = vadd.f32 %v12424_v0, %v15313_v42  ;;  %v4525_v0 = vadd.f32 %v12429_v24, %v15325_v33  ;;  %v4703_v33 = vadd.f32 %v15350_v17, %v4521_v14  ;;  %v4708_v14 = vadd.f32 %v15364_v49, %v4526_v4 }
 0x347   : >> { %v4923_v2 = vpop.f32.mrf.mxu1  ;;  %v15394_v23 = vpop.f32.mrf.mxu0 }
 0x348   : >> { %17084 = vst [vmem:[#allocation36_spill] sm:$0xff] %v15394_v23  ;;  %v4702_v42 = vadd.f32 %v15341_v63, %v4520_v44  ;;  %v4532_v63 = vadd.f32 %v12436_v28, %v15337_v35 }
 0x349   : >> { %v12465_v11 = vpop.f32.mrf.mxu1  ;;  %v15396_v47 = vpop.f32.mrf.mxu0 }
 0x34a   : >> { %17085 = vst [vmem:[#allocation37_spill] sm:$0xff] %v15396_v47  ;;  %v4518_v47 = vadd.f32 %v4455_v26, %v15315_v32  ;;  %v4528_v32 = vadd.f32 %v12432_v52, %v15329_v34 }
 0x34b   : >> { %v4926_v48 = vpop.f32.mrf.mxu1  ;;  %v15398_v58 = vpop.f32.mrf.mxu0 }
 0x34c   : >> { %17086 = vst [vmem:[#allocation38_spill] sm:$0xff] %v15398_v58  ;;  %v4519_v58 = vadd.f32 %v4458_v18, %v15319_v39  ;;  %v4529_v39 = vadd.f32 %v12433_v21, %v15333_v40  ;;  %v4700_v46 = vadd.f32 %v15346_v54, %v4518_v47  ;;  %v4972_v18 = vadd.f32 %v12460_v62, %v4702_v42  ;;  %v17092_v21 = vld [vmem:[#allocation24_spill] sm:$0xff]  ;;  %v17095_v62 = vld [vmem:[#allocation31_spill] sm:$0xff] }
 0x34d   : >> { %v12468_v30 = vpop.f32.mrf.mxu1  ;;  %v15400_v13 = vpop.f32.mrf.mxu0  ;;  %v4530_v54 = vadd.f32 %v4503_v25, %v15339_v50  ;;  %v4710_v24 = vadd.f32 %v15362_v57, %v4528_v32  ;;  %v4973_v50 = vadd.f32 %v12461_v8, %v4703_v33  ;;  %v4974_v25 = vadd.f32 %v4923_v2, %v4704_v15  ;;  %v17101_v33 = vld [vmem:[#allocation35_spill] sm:$0xff] }
 0x34e   : >> { %17087 = vst [vmem:[#allocation39_spill] sm:$0xff] %v15400_v13  ;;  %v4524_v13 = vadd.f32 %v12428_v51, %v15321_v38  ;;  %v4527_v38 = vadd.f32 %v4490_v41, %v15335_v20  ;;  %v4707_v51 = vadd.f32 %v15358_v5, %v4525_v0  ;;  %v4970_v35 = vadd.f32 %v4907_v6, %v4700_v46  ;;  %v17090_v5 = vld [vmem:[#allocation27_spill] sm:$0xff]  ;;  %v17093_v41 = vld [vmem:[#allocation29_spill] sm:$0xff]  ;;  %v17096_v0 = vld [vmem:[#allocation26_spill] sm:$0xff] }
 0x34f   : >> { %v4939_v29 = vpop.f32.mrf.mxu1  ;;  %v15402_v53 = vpop.f32.mrf.mxu0  ;;  %v4711_v17 = vadd.f32 %v15366_v37, %v4529_v39  ;;  %v4533_v52 = vadd.f32 %v17090_v5, %v15343_v43  ;;  %v4531_v57 = vadd.f32 %v17093_v41, %v17092_v21  ;;  %v4980_v44 = vadd.f32 %v12468_v30, %v4710_v24  ;;  %v17098_v39 = vld [vmem:[#allocation28_spill] sm:$0xff]  ;;  %v17099_v46 = vld [vmem:[#allocation33_spill] sm:$0xff] }
 0x350   : >> { %17088 = vst [vmem:[#allocation40_spill] sm:$0xff] %v15402_v53  ;;  %v4706_v34 = vadd.f32 %v15354_v12, %v4524_v13  ;;  %v5244_v6 = vadd.f32 %v17095_v62, %v4970_v35  ;;  %v4977_v13 = vadd.f32 %v12465_v11, %v4707_v51  ;;  %v5786_v21 = vld [vmem:[%s15468_s21 + $0x10] sm:$0xff] }
 0x351   : >> { %v12469_v36 = vpop.f32.mrf.mxu1  ;;  %v15404_v7 = vpop.f32.mrf.mxu0 }
 0x352   : >> { %v4976_v49 = vadd.f32 %v12464_v3, %v4706_v34  ;;  %v4981_v8 = vadd.f32 %v12469_v36, %v4711_v17  ;;  %v17097_v3 = vld [vmem:[#allocation32_spill] sm:$0xff]  ;;  %v17103_v34 = vld [vmem:[#allocation4_spill] sm:$0xff] }
 0x353   : >> { %v15407_v16 = vpop.f32.mrf.mxu1  ;;  %v15409_v23 = vpop.f32.mrf.mxu0  ;;  %v5247_v2 = vadd.f32 %v17097_v3, %v4973_v50  ;;  %v17105_v24 = vld [vmem:[#allocation38_spill] sm:$0xff] }
 0x354   : >> { %17089 = vst [vmem:[#allocation41_spill] sm:$0xff] %v15409_v23  ;;  %v4523_v23 = vadd.f32 %v4474_v61, %v15327_v60  ;;  %v4701_v60 = vadd.f32 %v15352_v9, %v4519_v58  ;;  %v4709_v9 = vadd.f32 %v15368_v19, %v4527_v38  ;;  %v4714_v61 = vadd.f32 %v15370_v22, %v4532_v63  ;;  %v17094_v19 = vld [vmem:[#allocation25_spill] sm:$0xff]  ;;  %v17100_v63 = vld [vmem:[#allocation34_spill] sm:$0xff] }
 0x355   : >> { %v15416_v53 = vpop.f32.mrf.mxu1  ;;  %v15418_v1 = vpop.f32.mrf.mxu0  ;;  %v4712_v56 = vadd.f32 %v17094_v19, %v4530_v54  ;;  %v15461_v38 = vadd.f32 %v17098_v39, %v4531_v57  ;;  %v17104_v54 = vld [vmem:[#allocation37_spill] sm:$0xff]  ;;  %v17106_v17 = vld [vmem:[#allocation39_spill] sm:$0xff] }
 0x356   : >> { %v4705_v27 = vadd.f32 %v15360_v45, %v4523_v23  ;;  %v17091_v45 = vld [vmem:[#allocation30_spill] sm:$0xff]  ;;  %v4971_v28 = vadd.f32 %v4910_v10, %v4701_v60  ;;  %v4978_v23 = vadd.f32 %v4939_v29, %v4708_v14  ;;  %v4715_v10 = vadd.f32 %v17096_v0, %v4533_v52  ;;  %v17102_v29 = vld [vmem:[#allocation36_spill] sm:$0xff] }
 0x357   : >> { %v15427_v26 = vpop.f32.mrf.mxu1  ;;  %v15429_v59 = vpop.f32.mrf.mxu0  ;;  %v5246_v31 = vadd.f32 %v17091_v45, %v4972_v18  ;;  %v5250_v18 = vadd.f32 %v17100_v63, %v4976_v49  ;;  %v5251_v60 = vadd.f32 %v17102_v29, %v4977_v13  ;;  %v15474_v14 = vadd.f32 %v17105_v24, %v4980_v44  ;;  %v17107_v5 = vld [vmem:[#allocation40_spill] sm:$0xff]  ;;  %v5784_v13 = vld [vmem:[%s15468_s21] sm:$0xff] }
 0x358   : >> { %v4975_v43 = vadd.f32 %v4926_v48, %v4705_v27  ;;  %v5245_v11 = vadd.f32 %v17099_v46, %v4971_v28  ;;  %v5248_v48 = vadd.f32 %v17101_v33, %v4974_v25  ;;  %v15480_v52 = vadd.f32 %v17107_v5, %v4981_v8 }
 0x359   : >> { %v15437_v40 = vpop.f32.mrf.mxu1  ;;  %v15439_v20 = vpop.f32.mrf.mxu0  ;;  %v4979_v28 = vadd.f32 %v15407_v16, %v4709_v9  ;;  %v4984_v49 = vadd.f32 %v15416_v53, %v4714_v61  ;;  %v4982_v25 = vadd.f32 %v15427_v26, %v4712_v56  ;;  %v5787_v56 = vld [vmem:[%s15468_s21 + $0x18] sm:$0xff] }
 0x35a   : >> { %v5249_v35 = vadd.f32 %v17104_v54, %v4975_v43 }
 0x35b   : >> { %v15448_v12 = vpop.f32.mrf.mxu1  ;;  %v12514_v55 = vpop.f32.mrf.mxu0  ;;  %v15509_v54 = vadd.f32 %v15418_v1, %v4982_v25 }
 0x35d   : >> { %v12496_v37 = vpop.f32.mrf.mxu1  ;;  %v5633_v58 = vpop.f32.mrf.mxu0 }
 0x35e   : >> { %v5428_v22 = vadd.f32 %v12496_v37, %v5246_v31 }
 0x35f   : >> { %v5363_v47 = vpop.f32.mrf.mxu1  ;;  %v12515_v42 = vpop.f32.mrf.mxu0 }
 0x360   : >> { %v5698_v32 = vadd.f32 %v12514_v55, %v5428_v22  ;;  %v5426_v4 = vadd.f32 %v5363_v47, %v5244_v6  ;;  %v15477_v55 = vadd.f32 %v17106_v17, %v4978_v23 }
 0x361   : >> { %v12497_v36 = vpop.f32.mrf.mxu1  ;;  %v5636_v30 = vpop.f32.mrf.mxu0 }
 0x362   : >> { %v5720_v15 = vadd.f32 %v17103_v34, %v5698_v32  ;;  %v5696_v51 = vadd.f32 %v5633_v58, %v5426_v4  ;;  %v5429_v27 = vadd.f32 %v12497_v36, %v5247_v2  ;;  %v4985_v4 = vadd.f32 %v15437_v40, %v4715_v10 }
 0x363   : >> { %v5366_v45 = vpop.f32.mrf.mxu1  ;;  %v12518_v31 = vpop.f32.mrf.mxu0 }
 0x364   : >> { %vm5736_vm5 = vcmp.ge.f32.partialorder %v5720_v15, 0.0  ;;  %v5752_v50 = vmul.f32 0.01, %v5720_v15  ;;  %v5718_v41 = vadd.f32 %v17103_v34, %v5696_v51  ;;  %v5699_v57 = vadd.f32 %v12515_v42, %v5429_v27  ;;  %v17108_v51 = vld [vmem:[#allocation41_spill] sm:$0xff] }
 0x365   : >> { %v5427_v37 = vadd.f32 %v5366_v45, %v5245_v11  ;;  %v12500_v58 = vpop.f32.mrf.mxu1  ;;  %v5649_v19 = vpop.f32.mrf.mxu0  ;;  %v5258_v27 = vadd.f32 %v17108_v51, %v4984_v49  ;;  %v15519_v49 = vadd.f32 %v15429_v59, %v4985_v4 }
 0x366   : >> { %v5768_v62 = vsel %vm5736_vm5, %v5720_v15, %v5752_v50  ;;  %vm5734_vm6 = vcmp.ge.f32.partialorder %v5718_v41, 0.0  ;;  %v5750_v6 = vmul.f32 0.01, %v5718_v41  ;;  %v5721_v22 = vadd.f32 %v17103_v34, %v5699_v57  ;;  %v5790_v50 = vld [vmem:[%s15468_s21 + $0x30] sm:$0xff] }
 0x367   : >> { %v5802_v43 = vadd.f32 %v5786_v21, %v5768_v62  ;;  %v11839_v44 = vpack.c.bf16 %v5768_v62, %v5768_v62  ;;  %v5697_v23 = vadd.f32 %v5636_v30, %v5427_v37  ;;  %v5432_v16 = vadd.f32 %v12500_v58, %v5250_v18  ;;  %v5379_v9 = vpop.f32.mrf.mxu1  ;;  %v12519_v53 = vpop.f32.mrf.mxu0  ;;  %v5788_v21 = vld [vmem:[%s15468_s21 + $0x20] sm:$0xff] }
 0x368   : >> { %v5766_v61 = vsel %vm5734_vm6, %v5718_v41, %v5750_v6  ;;  %vm5737_vm7 = vcmp.ge.f32.partialorder %v5721_v22, 0.0  ;;  %v5753_v26 = vmul.f32 0.01, %v5721_v22  ;;  %v5430_v8 = vadd.f32 %v5379_v9, %v5248_v48  ;;  %v5785_v48 = vld [vmem:[%s15468_s21 + $0x8] sm:$0xff] }
 0x369   : >> { %5818 = vst.msk [vmem:[%s15468_s21 + $0x10] sm:$0xff] %vm640_vm2, %v5802_v43  ;;  %v5800_v47 = vadd.f32 %v5784_v13, %v5766_v61  ;;  %v11837_v42 = vpack.c.bf16 %v5766_v61, %v5766_v61  ;;  %v5719_v0 = vadd.f32 %v17103_v34, %v5697_v23  ;;  %v5702_v3 = vadd.f32 %v12518_v31, %v5432_v16  ;;  %v12501_v2 = vpop.f32.mrf.mxu1  ;;  %v5652_v32 = vpop.f32.mrf.mxu0  ;;  %v5791_v23 = vld [vmem:[%s15468_s21 + $0x38] sm:$0xff] }
 0x36a   : >> { %11090 = vst.msk [vmem:[%s15493_s22 + $0x94] sm:$0xf] %vm172_vm0, %v11839_v44  ;;  %v5769_v39 = vsel %vm5737_vm7, %v5721_v22, %v5753_v26  ;;  %v5700_v46 = vadd.f32 %v5649_v19, %v5430_v8  ;;  %v5433_v11 = vadd.f32 %v12501_v2, %v5251_v60  ;;  %v5253_v15 = vadd.f32 %v15404_v7, %v4979_v28 }
 0x36b   : >> { %5816 = vst.msk [vmem:[%s15468_s21] sm:$0xff] %vm640_vm2, %v5800_v47  ;;  %v5803_v63 = vadd.f32 %v5787_v56, %v5769_v39  ;;  %v11840_v18 = vpack.c.bf16 %v5769_v39, %v5769_v39  ;;  %vm5735_vm8 = vcmp.ge.f32.partialorder %v5719_v0, 0.0  ;;  %v5751_v33 = vmul.f32 0.01, %v5719_v0  ;;  %v5382_v36 = vpop.f32.mrf.mxu1  ;;  %v12522_v30 = vpop.f32.mrf.mxu0 }
 0x36c   : >> { %11088 = vst.msk [vmem:[%s15493_s22 + $0x84] sm:$0xf] %vm172_vm0, %v11837_v42  ;;  %v5724_v29 = vadd.f32 %v17103_v34, %v5702_v3  ;;  %v5722_v40 = vadd.f32 %v17103_v34, %v5700_v46  ;;  %v5703_v10 = vadd.f32 %v12519_v53, %v5433_v11  ;;  %v5431_v60 = vadd.f32 %v5382_v36, %v5249_v35 }
 0x36d   : >> { %5819 = vst.msk [vmem:[%s15468_s21 + $0x18] sm:$0xff] %vm640_vm2, %v5803_v63  ;;  %v5767_v24 = vsel %vm5735_vm8, %v5719_v0, %v5751_v33  ;;  %v12504_v17 = vpop.f32.mrf.mxu1  ;;  %v5665_v5 = vpop.f32.mrf.mxu0 }
 0x36e   : >> { %11091 = vst.msk [vmem:[%s15493_s22 + $0x98] sm:$0xf] %vm172_vm0, %v11840_v18  ;;  %v5801_v45 = vadd.f32 %v5785_v48, %v5767_v24  ;;  %v11838_v31 = vpack.c.bf16 %v5767_v24, %v5767_v24  ;;  %vm5740_vm9 = vcmp.ge.f32.partialorder %v5724_v29, 0.0  ;;  %v5756_v35 = vmul.f32 0.01, %v5724_v29  ;;  %v5794_v18 = vld [vmem:[%s15468_s21 + $0x50] sm:$0xff] }
 0x36f   : >> { %vm5738_vm10 = vcmp.ge.f32.partialorder %v5722_v40, 0.0  ;;  %v5754_v7 = vmul.f32 0.01, %v5722_v40  ;;  %v5725_v1 = vadd.f32 %v17103_v34, %v5703_v10  ;;  %v5701_v41 = vadd.f32 %v5652_v32, %v5431_v60  ;;  %v5395_v57 = vpop.f32.mrf.mxu1  ;;  %v12523_v28 = vpop.f32.mrf.mxu0 }
 0x370   : >> { %5817 = vst.msk [vmem:[%s15468_s21 + $0x8] sm:$0xff] %vm640_vm2, %v5801_v45  ;;  %v5772_v25 = vsel %vm5740_vm9, %v5724_v29, %v5756_v35  ;;  %v5436_v37 = vadd.f32 %v12504_v17, %v15474_v14  ;;  %v5434_v58 = vadd.f32 %v5395_v57, %v15477_v55  ;;  %v4983_v14 = vadd.f32 %v15448_v12, %v15461_v38  ;;  %v5789_v38 = vld [vmem:[%s15468_s21 + $0x28] sm:$0xff]  ;;  %v5795_v35 = vld [vmem:[%s15468_s21 + $0x58] sm:$0xff] }
 0x371   : >> { %11089 = vst.msk [vmem:[%s15493_s22 + $0x88] sm:$0xf] %vm172_vm0, %v11838_v31  ;;  %v5806_v19 = vadd.f32 %v5790_v50, %v5772_v25  ;;  %v11843_v62 = vpack.c.bf16 %v5772_v25, %v5772_v25  ;;  %v5770_v6 = vsel %vm5738_vm10, %v5722_v40, %v5754_v7  ;;  %vm5741_vm11 = vcmp.ge.f32.partialorder %v5725_v1, 0.0  ;;  %v12505_v13 = vpop.f32.mrf.mxu1  ;;  %v5668_v59 = vpop.f32.mrf.mxu0 }
 0x372   : >> { %v5804_v22 = vadd.f32 %v5788_v21, %v5770_v6  ;;  %v11841_v43 = vpack.c.bf16 %v5770_v6, %v5770_v6  ;;  %v5757_v44 = vmul.f32 0.01, %v5725_v1  ;;  %v5723_v16 = vadd.f32 %v17103_v34, %v5701_v41  ;;  %v5793_v21 = vld [vmem:[%s15468_s21 + $0x48] sm:$0xff] }
 0x373   : >> { %5822 = vst.msk [vmem:[%s15468_s21 + $0x30] sm:$0xff] %vm640_vm2, %v5806_v19  ;;  %v5706_v55 = vadd.f32 %v12522_v30, %v5436_v37  ;;  %v5704_v9 = vadd.f32 %v5665_v5, %v5434_v58  ;;  %v5437_v53 = vadd.f32 %v12505_v13, %v15480_v52  ;;  %v5398_v61 = vpop.f32.mrf.mxu1  ;;  %v12526_v26 = vpop.f32.mrf.mxu0  ;;  %v5792_v30 = vld [vmem:[%s15468_s21 + $0x40] sm:$0xff]  ;;  %v5257_v10 = vadd.f32 %v15439_v20, %v4983_v14 }
 0x374   : >> { %11094 = vst.msk [vmem:[%s15493_s22 + $0xb4] sm:$0xf] %vm172_vm0, %v11843_v62  ;;  %11092 = vst.msk [vmem:[%s15493_s22 + $0xa4] sm:$0xf] %vm172_vm0, %v11841_v43  ;;  %v5773_v56 = vsel %vm5741_vm11, %v5725_v1, %v5757_v44  ;;  %vm5739_vm12 = vcmp.ge.f32.partialorder %v5723_v16, 0.0  ;;  %v5435_v8 = vadd.f32 %v5398_v61, %v5253_v15  ;;  %v5796_v14 = vld [vmem:[%s15468_s21 + $0x60] sm:$0xff] }
 0x375   : >> { %5820 = vst.msk [vmem:[%s15468_s21 + $0x20] sm:$0xff] %vm640_vm2, %v5804_v22  ;;  %v5755_v12 = vmul.f32 0.01, %v5723_v16  ;;  %v5807_v47 = vadd.f32 %v5791_v23, %v5773_v56  ;;  %v11844_v42 = vpack.c.bf16 %v5773_v56, %v5773_v56  ;;  %v5728_v0 = vadd.f32 %v17103_v34, %v5706_v55  ;;  %v12508_v3 = vpop.f32.mrf.mxu1  ;;  %v5681_v48 = vpop.f32.mrf.mxu0 }
 0x376   : >> { %v5726_v52 = vadd.f32 %v17103_v34, %v5704_v9  ;;  %v5707_v32 = vadd.f32 %v12523_v28, %v5437_v53  ;;  %v5705_v4 = vadd.f32 %v5668_v59, %v5435_v8  ;;  %v5440_v39 = vadd.f32 %v12508_v3, %v5258_v27  ;;  %v5799_v8 = vld [vmem:[%s15468_s21 + $0x78] sm:$0xff] }
 0x377   : >> { %v5771_v2 = vsel %vm5739_vm12, %v5723_v16, %v5755_v12  ;;  %5823 = vst.msk [vmem:[%s15468_s21 + $0x38] sm:$0xff] %vm640_vm2, %v5807_v47  ;;  %vm5744_vm13 = vcmp.ge.f32.partialorder %v5728_v0, 0.0  ;;  %v5760_v63 = vmul.f32 0.01, %v5728_v0  ;;  %v5411_v33 = vpop.f32.mrf.mxu1  ;;  %v12527_v50 = vpop.f32.mrf.mxu0 }
 0x378   : >> { %11095 = vst.msk [vmem:[%s15493_s22 + $0xb8] sm:$0xf] %vm172_vm0, %v11844_v42  ;;  %v5805_v46 = vadd.f32 %v5789_v38, %v5771_v2  ;;  %v11842_v11 = vpack.c.bf16 %v5771_v2, %v5771_v2  ;;  %vm5742_vm14 = vcmp.ge.f32.partialorder %v5726_v52, 0.0  ;;  %v5758_v36 = vmul.f32 0.01, %v5726_v52  ;;  %v5797_v42 = vld [vmem:[%s15468_s21 + $0x68] sm:$0xff] }
 0x379   : >> { %v5729_v29 = vadd.f32 %v17103_v34, %v5707_v32  ;;  %v5727_v40 = vadd.f32 %v17103_v34, %v5705_v4  ;;  %v5776_v60 = vsel %vm5744_vm13, %v5728_v0, %v5760_v63  ;;  %v5710_v15 = vadd.f32 %v12526_v26, %v5440_v39  ;;  %v12509_v27 = vpop.f32.mrf.mxu1  ;;  %v5684_v22 = vpop.f32.mrf.mxu0  ;;  %v15609_v39 = vld [vmem:[%s17015_s2 + $0x2] ss:$0 sm:$0xff] (%p3553_p5) }
 0x37a   : >> { %5821 = vst.msk [vmem:[%s15468_s21 + $0x28] sm:$0xff] %vm640_vm2, %v5805_v46  ;;  %v5438_v51 = vadd.f32 %v5411_v33, %v15509_v54  ;;  %v5810_v24 = vadd.f32 %v5794_v18, %v5776_v60  ;;  %v11847_v17 = vpack.c.bf16 %v5776_v60, %v5776_v60  ;;  %v5774_v5 = vsel %vm5742_vm14, %v5726_v52, %v5758_v36 }
 0x37b   : >> { %11093 = vst.msk [vmem:[%s15493_s22 + $0xa8] sm:$0xf] %vm172_vm0, %v11842_v11  ;;  %vm5745_vm15 = vcmp.ge.f32.partialorder %v5729_v29, 0.0  ;;  %v5808_v45 = vadd.f32 %v5792_v30, %v5774_v5  ;;  %v11845_v20 = vpack.c.bf16 %v5774_v5, %v5774_v5  ;;  %v5761_v31 = vmul.f32 0.01, %v5729_v29  ;;  %v5414_v7 = vpop.f32.mrf.mxu1  ;;  %17109 = vst [vmem:[#allocation4_spill] sm:$0xff] (%p3553_p5), %v15609_v39 }
 0x37c   : >> { %vm5743_vm3 = vcmp.ge.f32.partialorder %v5727_v40, 0.0  ;;  %5826 = vst.msk [vmem:[%s15468_s21 + $0x50] sm:$0xff] %vm640_vm2, %v5810_v24  ;;  %v5759_v54 = vmul.f32 0.01, %v5727_v40  ;;  %v5732_v1 = vadd.f32 %v17103_v34, %v5710_v15  ;;  %v5708_v41 = vadd.f32 %v5681_v48, %v5438_v51 }
 0x37d   : >> { %11098 = vst.msk [vmem:[%s15493_s22 + $0xd4] sm:$0xf] %vm172_vm0, %v11847_v17  ;;  %v5441_v57 = vadd.f32 %v12509_v27, %v15519_v49  ;;  %11096 = vst.msk [vmem:[%s15493_s22 + $0xc4] sm:$0xf] %vm172_vm0, %v11845_v20  ;;  %v5777_v28 = vsel %vm5745_vm15, %v5729_v29, %v5761_v31  ;;  %v5439_v25 = vadd.f32 %v5414_v7, %v5257_v10  ;;  %v5798_v49 = vld [vmem:[%s15468_s21 + $0x70] sm:$0xff] }
 0x37e   : >> { %5824 = vst.msk [vmem:[%s15468_s21 + $0x40] sm:$0xff] %vm640_vm2, %v5808_v45  ;;  %v5811_v37 = vadd.f32 %v5795_v35, %v5777_v28  ;;  %v11848_v58 = vpack.c.bf16 %v5777_v28, %v5777_v28  ;;  %v5775_v19 = vsel %vm5743_vm3, %v5727_v40, %v5759_v54  ;;  %vm5748_vm4 = vcmp.ge.f32.partialorder %v5732_v1, 0.0 }
 0x37f   : >> { %v5809_v62 = vadd.f32 %v5793_v21, %v5775_v19  ;;  %v11846_v6 = vpack.c.bf16 %v5775_v19, %v5775_v19  ;;  %v5764_v13 = vmul.f32 0.01, %v5732_v1  ;;  %v5730_v59 = vadd.f32 %v17103_v34, %v5708_v41 }
 0x380   : >> { %5827 = vst.msk [vmem:[%s15468_s21 + $0x58] sm:$0xff] %vm640_vm2, %v5811_v37  ;;  %v5711_v43 = vadd.f32 %v12527_v50, %v5441_v57  ;;  %v5709_v44 = vadd.f32 %v5684_v22, %v5439_v25 }
 0x381   : >> { %11099 = vst.msk [vmem:[%s15493_s22 + $0xd8] sm:$0xf] %vm172_vm0, %v11848_v58  ;;  %11097 = vst.msk [vmem:[%s15493_s22 + $0xc8] sm:$0xf] %vm172_vm0, %v11846_v6  ;;  %v5780_v23 = vsel %vm5748_vm4, %v5732_v1, %v5764_v13  ;;  %vm5746_vm5 = vcmp.ge.f32.partialorder %v5730_v59, 0.0 }
 0x382   : >> { %5825 = vst.msk [vmem:[%s15468_s21 + $0x48] sm:$0xff] %vm640_vm2, %v5809_v62  ;;  %v5762_v16 = vmul.f32 0.01, %v5730_v59  ;;  %v5814_v55 = vadd.f32 %v5798_v49, %v5780_v23  ;;  %v11851_v9 = vpack.c.bf16 %v5780_v23, %v5780_v23  ;;  %v5733_v53 = vadd.f32 %v17103_v34, %v5711_v43 }
 0x383   : >> { %v5731_v61 = vadd.f32 %v17103_v34, %v5709_v44 }
 0x384   : >> { %v5778_v26 = vsel %vm5746_vm5, %v5730_v59, %v5762_v16  ;;  %5830 = vst.msk [vmem:[%s15468_s21 + $0x70] sm:$0xff] %vm640_vm2, %v5814_v55  ;;  %vm5749_vm6 = vcmp.ge.f32.partialorder %v5733_v53, 0.0  ;;  %v5765_v38 = vmul.f32 0.01, %v5733_v53 }
 0x385   : >> { %11102 = vst.msk [vmem:[%s15493_s22 + $0xf4] sm:$0xf] %vm172_vm0, %v11851_v9  ;;  %v5812_v56 = vadd.f32 %v5796_v14, %v5778_v26  ;;  %v11849_v12 = vpack.c.bf16 %v5778_v26, %v5778_v26  ;;  %vm5747_vm7 = vcmp.ge.f32.partialorder %v5731_v61, 0.0  ;;  %v5763_v47 = vmul.f32 0.01, %v5731_v61 }
 0x386   : >> { %v5781_v0 = vsel %vm5749_vm6, %v5733_v53, %v5765_v38 }
 0x387   : >> { %5828 = vst.msk [vmem:[%s15468_s21 + $0x60] sm:$0xff] %vm640_vm2, %v5812_v56  ;;  %v5815_v52 = vadd.f32 %v5799_v8, %v5781_v0  ;;  %v11852_v3 = vpack.c.bf16 %v5781_v0, %v5781_v0  ;;  %v5779_v2 = vsel %vm5747_vm7, %v5731_v61, %v5763_v47  ;;  %3555 = sbr.rel (!%p3553_p5) target bundleno = 544 (0x220), region = 163 }
 0x388   : >> { %11100 = vst.msk [vmem:[%s15493_s22 + $0xe4] sm:$0xf] %vm172_vm0, %v11849_v12  ;;  %v5813_v32 = vadd.f32 %v5797_v42, %v5779_v2  ;;  %v11850_v4 = vpack.c.bf16 %v5779_v2, %v5779_v2 }
 0x389   : >> { %5831 = vst.msk [vmem:[%s15468_s21 + $0x78] sm:$0xff] %vm640_vm2, %v5815_v52 }
 0x38a   : >> { %11103 = vst.msk [vmem:[%s15493_s22 + $0xf8] sm:$0xf] %vm172_vm0, %v11852_v3  ;;  %11101 = vst.msk [vmem:[%s15493_s22 + $0xe8] sm:$0xf] %vm172_vm0, %v11850_v4 }
 0x38b   : >> { %5829 = vst.msk [vmem:[%s15468_s21 + $0x68] sm:$0xff] %vm640_vm2, %v5813_v32 }
 0x38c LB: >> { %v11141_v46 = vld [vmem:[%s17014_s1 + $0x26] sm:$0x3]  ;;  %v11132_v34 = vld [vmem:[%s17014_s1 + $0x24] sm:$0x3]  ;;  %v11206_v63 = vld [vmem:[%s17014_s1 + $0x28] sm:$0x3]  ;;  %s13119_s28 = sphi %s15611_s28, %s5921_s28  }
 0x38d   : >> { %12881 = vmatprep.subr.msk.bf16.mxu1 %vm665_vm1, %v11141_v46  ;;  %12880 = vmatprep.subr.msk.bf16.mxu0 %vm665_vm1, %v11141_v46  ;;  %v6030_v11 = vsel %vm665_vm1, %v11141_v46, 0  ;;  %s15629_s5 = sshll.u32 %s13119_s28, 7  ;;  %v6253_v29 = vsel %vm665_vm1, %v11132_v34, 0  ;;  %vm6146_vm8 = vcmask 1045508   ;;  %v6507_v51 = vsel %vm665_vm1, %v11206_v63, 0  ;;  %s5921_s28 = sadd.s32 1, %s13119_s28  }
 0x38e   : >> { %12857 = vmatpush3.bf16.msra.mxu1 %v6030_v11  ;;  %12529 = vmatpush3.bf16.msra.mxu0 %v6030_v11  ;;  %s15634_s6 = scalar_lea.vmem [#allocation2], %s15629_s5  ;;  %v11290_v5 = vld [vmem:[%s17014_s1 + $0x2c] sm:$0x3]  ;;  %v11257_v50 = vld [vmem:[%s17014_s1 + $0x2a] sm:$0x3]  ;;  %vm15682_vm9 = vmor %vm665_vm1, %vm6146_vm8  ;;  %s16386_s21 = scalar_lea.vmem %s13561_s23, %s15629_s5 }
 0x38f   : >> { %12882 = vmatprep.subr.msk.bf16.mxu1 %vm665_vm1, %v11132_v34  ;;  %12883 = vmatprep.subr.msk.bf16.mxu0 %vm665_vm1, %v11206_v63  ;;  %v15701_v16 = vsel %vm665_vm1, %v11257_v50, 0  ;;  %v15705_v14 = vsel %vm665_vm1, %v11290_v5, 0  ;;  %s16411_s22 = scalar_lea.vmem [#allocation3], %s15629_s5  ;;  %p5918_p6 = scmp.ge.s32.totalorder %s5921_s28, 2  }
 0x390   : > { %s16529_s29 = smov (%p5918_p6), 0  }
 0x391   : >> { %v15637_v18 = vld [vmem:[%s15634_s6 + $0x44] sm:$0xf]  ;;  %v11133_v33 = vld [vmem:[%s15634_s6 + $0x48] sm:$0xf]  ;;  %v11112_v60 = vld [vmem:[%s15634_s6 + $0x54] sm:$0xf] }
 0x392   : >> { %v15641_v48 = vld [vmem:[%s15634_s6 + $0x84] sm:$0xf]  ;;  %v11142_v36 = vcombine.low %v15637_v18, %v11133_v33  ;;  %v11137_v30 = vld [vmem:[%s15634_s6 + $0x88] sm:$0xf]  ;;  %v6150_v40 = vrot.slane %v15637_v18, 6  ;;  %v6157_v31 = vrot.slane %v11112_v60, 6 }
 0x393   : >> { %v11146_v10 = vcombine.low %v15641_v48, %v11137_v30  ;;  %v11134_v15 = vld [vmem:[%s15634_s6 + $0x58] sm:$0xf]  ;;  %v11111_v27 = vld [vmem:[%s15634_s6 + $0x50] sm:$0xc]  ;;  %v15654_v17 = vld [vmem:[%s15634_s6 + $0x94] sm:$0xf] }
 0x394   : >> { %12530 = vmatprep.mubr.msk.bf16.mxu0 %vm640_vm2, %v11142_v36  ;;  %v11143_v24 = vcombine.low %v11112_v60, %v11134_v15  ;;  %v6178_v45 = vrot.slane %v15641_v48, 6  ;;  %v11113_v20 = vld [vmem:[%s15634_s6 + $0x58] sm:$0x3]  ;;  %v15669_v54 = vld [vmem:[%s15634_s6 + $0x64] sm:$0xf]  ;;  %v6152_v41 = vrot.slane %v6150_v40, 4 }
 0x395   : >> { %12538 = vmatprep.mubr.msk.bf16.mxu1 %vm640_vm2, %v11146_v10  ;;  %v11138_v35 = vld [vmem:[%s15634_s6 + $0x98] sm:$0xf]  ;;  %v11135_v21 = vld [vmem:[%s15634_s6 + $0x68] sm:$0xf]  ;;  %v15673_v1 = vld [vmem:[%s15634_s6 + $0xa4] sm:$0xf] }
 0x396   : >> { %12531 = vmatmul.mubr.msk.bf16.vlgmr.msra.gmra.mxu0 %vm640_vm2, %v11143_v24  ;;  %v11147_v7 = vcombine.low %v15654_v17, %v11138_v35  ;;  %v11159_v57 = vrot.slane %v11111_v27, 10  ;;  %v11144_v28 = vcombine.low %v15669_v54, %v11135_v21  ;;  %v11139_v25 = vld [vmem:[%s15634_s6 + $0xa8] sm:$0xf]  ;;  %v15678_v37 = vld [vmem:[%s15634_s6 + $0x74] sm:$0xf]  ;;  %v6159_v19 = vrot.slane %v6157_v31, 4 }
 0x397   : >> { %12565 = vmatpush3.bf16.msra.mxu0 %v6507_v51  ;;  %v6160_v62 = vrot.slane %v11113_v20, 6  ;;  %v6164_v6 = vrot.slane %v15669_v54, 6  ;;  %v11148_v13 = vcombine.low %v15673_v1, %v11139_v25  ;;  %v11136_v49 = vld [vmem:[%s15634_s6 + $0x78] sm:$0xf]  ;;  %v15693_v59 = vld [vmem:[%s15634_s6 + $0xb4] sm:$0xf] }
 0x398   : >> { %12539 = vmatmul.mubr.msk.bf16.vlgmr.msra.gmra.mxu1 %vm640_vm2, %v11147_v7  ;;  %12885 = vmatprep.subr.msk.bf16.mxu0 %vm665_vm1, %v11290_v5  ;;  %v11140_v22 = vld [vmem:[%s15634_s6 + $0xb8] sm:$0xf]  ;;  %v11108_v43 = vld [vmem:[%s15634_s6 + $0x40] sm:$0xc]  ;;  %v11145_v44 = vcombine.low %v15678_v37, %v11136_v49  ;;  %v11110_v23 = vld [vmem:[%s15634_s6 + $0x48] sm:$0x3]  ;;  %v15713_v9 = vsel %vm15682_vm9, %v11159_v57, %v6157_v31 }
 0x399   : >> { %12547 = vmatpush3.bf16.msra.mxu1 %v6253_v29  ;;  %12534 = vmatprep.mubr.msk.bf16.mxu0 %vm640_vm2, %v11144_v28  ;;  %v15709_v55 = vrot.slane %v6178_v45, 4  ;;  %v11158_v53 = vrot.slane %v11108_v43, 10  ;;  %v6153_v61 = vrot.slane %v11110_v23, 6  ;;  %v11182_v26 = vld [vmem:[%s15634_s6 + $0x44] sm:$0xc]  ;;  %v15718_v56 = vsel %vm15682_vm9, %v6159_v19, %v6160_v62 }
 0x39a   : >> { %12542 = vmatprep.mubr.msk.bf16.mxu1 %vm640_vm2, %v11148_v13  ;;  %12884 = vmatprep.subr.msk.bf16.mxu1 %vm665_vm1, %v11257_v50  ;;  %v6171_v12 = vrot.slane %v15678_v37, 6  ;;  %v11149_v38 = vcombine.low %v15693_v59, %v11140_v22  ;;  %v11183_v8 = vld [vmem:[%s15634_s6 + $0x48] sm:$0xf]  ;;  %v11184_v47 = vld [vmem:[%s15634_s6 + $0x4c] sm:$0x3]  ;;  %v11207_v42 = vrot.slane %v11182_v26, 10  ;;  %v11167_v24 = vcombine.low %v15713_v9, %v15718_v56 }
 0x39b   : >> { %v6166_v0 = vrot.slane %v6164_v6, 4  ;;  %v6151_v52 = vsel %vm15682_vm9, %v11158_v53, %v6150_v40  ;;  %v6154_v3 = vsel %vm15682_vm9, %v6152_v41, %v6153_v61  ;;  %v6404_v2 = vrot.slane %v11183_v8, 6  ;;  %v11185_v32 = vld [vmem:[%s15634_s6 + $0x54] sm:$0xc]  ;;  %v11186_v4 = vld [vmem:[%s15634_s6 + $0x58] sm:$0xf] }
 0x39c   : >> { %v11166_v46 = vcombine.low %v6151_v52, %v6154_v3  ;;  %v6407_v34 = vrot.slane %v11184_v47, 6  ;;  %v11187_v11 = vld [vmem:[%s15634_s6 + $0x5c] sm:$0x3]  ;;  %v11208_v63 = vrot.slane %v11185_v32, 10  ;;  %v6411_v18 = vrot.slane %v11186_v4, 6 }
 0x39d   : >> { %v6405_v33 = vsel %vm15682_vm9, %v11207_v42, %v6404_v2  ;;  %v6406_v36 = vrot.slane %v6404_v2, 4  ;;  %v6414_v30 = vrot.slane %v11187_v11, 6  ;;  %v11114_v29 = vld [vmem:[%s15634_s6 + $0x60] sm:$0xc]  ;;  %v11116_v40 = vld [vmem:[%s15634_s6 + $0x68] sm:$0x3] }
 0x39e   : >> { %12535 = vmatmul.mubr.msk.bf16.gmra.mxu0 %vm640_vm2, %v11145_v44  ;;  %v6412_v10 = vsel %vm15682_vm9, %v11208_v63, %v6411_v18  ;;  %v6413_v60 = vrot.slane %v6411_v18, 4  ;;  %v11160_v15 = vrot.slane %v11114_v29, 10  ;;  %v6167_v51 = vrot.slane %v11116_v40, 6  ;;  %v11188_v27 = vld [vmem:[%s15634_s6 + $0x64] sm:$0xc] }
 0x39f   : >> { %v6173_v5 = vrot.slane %v6171_v12, 4  ;;  %v6408_v20 = vsel %vm15682_vm9, %v6406_v36, %v6407_v34  ;;  %v11189_v31 = vld [vmem:[%s15634_s6 + $0x68] sm:$0xf]  ;;  %v11190_v35 = vld [vmem:[%s15634_s6 + $0x6c] sm:$0x3]  ;;  %v11209_v50 = vrot.slane %v11188_v27, 10 }
 0x3a0   : >> { %12543 = vmatmul.mubr.msk.bf16.gmra.mxu1 %vm640_vm2, %v11149_v38  ;;  %v11215_v7 = vcombine.low %v6405_v33, %v6408_v20  ;;  %v6415_v54 = vsel %vm15682_vm9, %v6413_v60, %v6414_v30  ;;  %v6165_v21 = vsel %vm15682_vm9, %v11160_v15, %v6164_v6  ;;  %v6168_v41 = vsel %vm15682_vm9, %v6166_v0, %v6167_v51  ;;  %v11117_v57 = vld [vmem:[%s15634_s6 + $0x70] sm:$0xc]  ;;  %v11119_v28 = vld [vmem:[%s15634_s6 + $0x78] sm:$0x3]  ;;  %v11191_v25 = vld [vmem:[%s15634_s6 + $0x74] sm:$0xc] }
 0x3a1   : >> { %12548 = vmatprep.mubr.msk.bf16.mxu1 %vm640_vm2, %v11166_v46  ;;  %v11216_v19 = vcombine.low %v6412_v10, %v6415_v54  ;;  %v11168_v62 = vcombine.low %v6165_v21, %v6168_v41  ;;  %v6418_v13 = vrot.slane %v11189_v31, 6  ;;  %v6421_v49 = vrot.slane %v11190_v35, 6  ;;  %v11192_v22 = vld [vmem:[%s15634_s6 + $0x78] sm:$0xf]  ;;  %v11193_v43 = vld [vmem:[%s15634_s6 + $0x7c] sm:$0x3] }
 0x3a2   : >> { %v15763_v44 = vld [vmem:[%s17014_s1 + $0x30] sm:$0x3]  ;;  %12566 = vmatprep.mubr.msk.bf16.mxu0 %vm640_vm2, %v11215_v7  ;;  %v11161_v6 = vrot.slane %v11117_v57, 10  ;;  %v6174_v23 = vrot.slane %v11119_v28, 6  ;;  %v11210_v9 = vrot.slane %v11191_v25, 10  ;;  %v6425_v53 = vrot.slane %v11192_v22, 6 }
 0x3a3   : >> { %v11120_v61 = vld [vmem:[%s15634_s6 + $0x80] sm:$0xc]  ;;  %v6419_v26 = vsel %vm15682_vm9, %v11209_v50, %v6418_v13  ;;  %v6420_v56 = vrot.slane %v6418_v13, 4  ;;  %v6428_v38 = vrot.slane %v11193_v43, 6  ;;  %v11122_v8 = vld [vmem:[%s15634_s6 + $0x88] sm:$0x3] }
 0x3a4   : >> { %v11162_v47 = vrot.slane %v11120_v61, 10  ;;  %v15773_v42 = vld [vmem:[%s17014_s1 + $0x2e] sm:$0x3]  ;;  %v6185_v0 = vrot.slane %v15654_v17, 6  ;;  %v6427_v52 = vrot.slane %v6425_v53, 4  ;;  %v6172_v4 = vsel %vm15682_vm9, %v11161_v6, %v6171_v12 }
 0x3a5   : >> { %v11194_v3 = vld [vmem:[%s15634_s6 + $0x84] sm:$0xc]  ;;  %v11195_v2 = vld [vmem:[%s15634_s6 + $0x88] sm:$0xf]  ;;  %v6422_v32 = vsel %vm15682_vm9, %v6420_v56, %v6421_v49  ;;  %v6426_v46 = vsel %vm15682_vm9, %v11210_v9, %v6425_v53  ;;  %v6181_v34 = vrot.slane %v11122_v8, 6  ;;  %v6175_v12 = vsel %vm15682_vm9, %v6173_v5, %v6174_v23 }
 0x3a6   : >> { %12567 = vmatmul.mubr.msk.bf16.vlgmr.msra.gmra.mxu0 %vm640_vm2, %v11216_v19  ;;  %v11196_v11 = vld [vmem:[%s15634_s6 + $0x8c] sm:$0x3]  ;;  %v11123_v63 = vld [vmem:[%s15634_s6 + $0x90] sm:$0xc]  ;;  %v11217_v18 = vcombine.low %v6419_v26, %v6422_v32  ;;  %v11211_v33 = vrot.slane %v11194_v3, 10  ;;  %v6432_v36 = vrot.slane %v11195_v2, 6  ;;  %v6179_v29 = vsel %vm15682_vm9, %v11162_v47, %v6178_v45 }
 0x3a7   : >> { %12601 = vmatpush3.bf16.msra.mxu0 %v15705_v14  ;;  %v6429_v14 = vsel %vm15682_vm9, %v6427_v52, %v6428_v38  ;;  %v11125_v37 = vld [vmem:[%s15634_s6 + $0x98] sm:$0x3]  ;;  %v11197_v30 = vld [vmem:[%s15634_s6 + $0x94] sm:$0xc]  ;;  %v6182_v40 = vsel %vm15682_vm9, %v15709_v55, %v6181_v34  ;;  %v6435_v10 = vrot.slane %v11196_v11, 6  ;;  %v6187_v55 = vrot.slane %v6185_v0, 4 }
 0x3a8   : >> { %12549 = vmatmul.mubr.msk.bf16.vlgmr.msra.gmra.mxu1 %vm640_vm2, %v11167_v24  ;;  %12887 = vmatprep.subr.msk.bf16.mxu0 %vm665_vm1, %v15763_v44  ;;  %v11198_v60 = vld [vmem:[%s15634_s6 + $0x98] sm:$0xf]  ;;  %v11199_v15 = vld [vmem:[%s15634_s6 + $0x9c] sm:$0x3]  ;;  %v11218_v51 = vcombine.low %v6426_v46, %v6429_v14  ;;  %v6433_v48 = vsel %vm15682_vm9, %v11211_v33, %v6432_v36  ;;  %v6434_v27 = vrot.slane %v6432_v36, 4  ;;  %v11212_v5 = vrot.slane %v11197_v30, 10 }
 0x3a9   : >> { %12583 = vmatpush3.bf16.msra.mxu1 %v15701_v16  ;;  %12552 = vmatprep.mubr.msk.bf16.mxu1 %vm640_vm2, %v11168_v62  ;;  %v6192_v16 = vrot.slane %v15673_v1, 6  ;;  %v11126_v45 = vld [vmem:[%s15634_s6 + $0xa0] sm:$0xc]  ;;  %v11128_v24 = vld [vmem:[%s15634_s6 + $0xa8] sm:$0x3]  ;;  %v6439_v20 = vrot.slane %v11198_v60, 6  ;;  %v11169_v35 = vcombine.low %v6172_v4, %v6175_v12  ;;  %v11170_v50 = vcombine.low %v6179_v29, %v6182_v40 }
 0x3aa   : >> { %12570 = vmatprep.mubr.msk.bf16.mxu0 %vm640_vm2, %v11217_v18  ;;  %12886 = vmatprep.subr.msk.bf16.mxu1 %vm665_vm1, %v15773_v42  ;;  %v6442_v1 = vrot.slane %v11199_v15, 6  ;;  %v11200_v31 = vld [vmem:[%s15634_s6 + $0xa4] sm:$0xc]  ;;  %v6436_v7 = vsel %vm15682_vm9, %v6434_v27, %v6435_v10  ;;  %v11163_v54 = vrot.slane %v11123_v63, 10  ;;  %v11201_v21 = vld [vmem:[%s15634_s6 + $0xa8] sm:$0xf] }
 0x3ab   : >> { %v11202_v41 = vld [vmem:[%s15634_s6 + $0xac] sm:$0x3]  ;;  %v11219_v57 = vcombine.low %v6433_v48, %v6436_v7  ;;  %v6188_v28 = vrot.slane %v11125_v37, 6  ;;  %v6441_v25 = vrot.slane %v6439_v20, 4  ;;  %v11164_v19 = vrot.slane %v11126_v45, 10 }
 0x3ac   : >> { %v6194_v62 = vrot.slane %v6192_v16, 4  ;;  %v6195_v13 = vrot.slane %v11128_v24, 6  ;;  %v11213_v49 = vrot.slane %v11200_v31, 10  ;;  %v6446_v22 = vrot.slane %v11201_v21, 6  ;;  %v11204_v43 = vld [vmem:[%s15634_s6 + $0xb8] sm:$0xf] }
 0x3ad   : >> { %v6440_v6 = vsel %vm15682_vm9, %v11212_v5, %v6439_v20  ;;  %v6443_v23 = vsel %vm15682_vm9, %v6441_v25, %v6442_v1  ;;  %v6449_v9 = vrot.slane %v11202_v41, 6  ;;  %v11203_v53 = vld [vmem:[%s15634_s6 + $0xb4] sm:$0xc]  ;;  %v6199_v61 = vrot.slane %v15693_v59, 6  ;;  %v11205_v38 = vld [vmem:[%s15634_s6 + $0xbc] sm:$0x3] }
 0x3ae   : >> { %12571 = vmatmul.mubr.msk.bf16.gmra.mxu0 %vm640_vm2, %v11218_v51  ;;  %v6447_v26 = vsel %vm15682_vm9, %v11213_v49, %v6446_v22  ;;  %v6448_v56 = vrot.slane %v6446_v22, 4  ;;  %v11234_v8 = vld [vmem:[%s15634_s6 + $0x84] sm:$0xf]  ;;  %v6186_v47 = vsel %vm15682_vm9, %v11163_v54, %v6185_v0  ;;  %v6189_v59 = vsel %vm15682_vm9, %v6187_v55, %v6188_v28  ;;  %v11129_v3 = vld [vmem:[%s15634_s6 + $0xb0] sm:$0xc] }
 0x3af   : >> { %12574 = vmatprep.mubr.msk.bf16.mxu0 %vm640_vm2, %v11219_v57  ;;  %v6193_v52 = vsel %vm15682_vm9, %v11164_v19, %v6192_v16  ;;  %v6453_v2 = vrot.slane %v11204_v43, 6  ;;  %v11220_v32 = vcombine.low %v6440_v6, %v6443_v23  ;;  %v6196_v4 = vsel %vm15682_vm9, %v6194_v62, %v6195_v13  ;;  %v11131_v17 = vld [vmem:[%s15634_s6 + $0xb8] sm:$0x3]  ;;  %v11233_v34 = vld [vmem:[%s15634_s6 + $0x80] sm:$0xc] }
 0x3b0   : >> { %12553 = vmatmul.mubr.msk.bf16.gmra.mxu1 %vm640_vm2, %v11169_v35  ;;  %v6450_v46 = vsel %vm15682_vm9, %v6448_v56, %v6449_v9  ;;  %v6678_v11 = vrot.slane %v11234_v8, 6  ;;  %v11214_v63 = vrot.slane %v11203_v53, 10  ;;  %v6456_v14 = vrot.slane %v11205_v38, 6  ;;  %v11235_v33 = vld [vmem:[%s15634_s6 + $0x88] sm:$0x3] }
 0x3b1   : >> { %12556 = vmatprep.mubr.msk.bf16.mxu1 %vm640_vm2, %v11170_v50  ;;  %v11221_v0 = vcombine.low %v6447_v26, %v6450_v46  ;;  %v6455_v18 = vrot.slane %v6453_v2, 4  ;;  %v11171_v36 = vcombine.low %v6186_v47, %v6189_v59  ;;  %v6201_v37 = vrot.slane %v6199_v61, 4  ;;  %v11237_v15 = vld [vmem:[%s15634_s6 + $0x94] sm:$0xf]  ;;  %v11240_v48 = vld [vmem:[%s15634_s6 + $0xa4] sm:$0xf] }
 0x3b2   : >> { %v11172_v30 = vcombine.low %v6193_v52, %v6196_v4  ;;  %v11165_v12 = vrot.slane %v11129_v3, 10  ;;  %v6202_v29 = vrot.slane %v11131_v17, 6  ;;  %v11258_v40 = vrot.slane %v11233_v34, 10  ;;  %v11282_v27 = vld [vmem:[%s15634_s6 + $0x88] sm:$0xf] }
 0x3b3   : >> { %v6680_v10 = vrot.slane %v6678_v11, 4  ;;  %v6681_v60 = vrot.slane %v11235_v33, 6  ;;  %v6454_v16 = vsel %vm15682_vm9, %v11214_v63, %v6453_v2  ;;  %v6457_v51 = vsel %vm15682_vm9, %v6455_v18, %v6456_v14  ;;  %v11236_v31 = vld [vmem:[%s15634_s6 + $0x90] sm:$0xc]  ;;  %v11238_v35 = vld [vmem:[%s15634_s6 + $0x98] sm:$0x3] }
 0x3b4   : >> { %v6200_v45 = vsel %vm15682_vm9, %v11165_v12, %v6199_v61  ;;  %v6203_v24 = vsel %vm15682_vm9, %v6201_v37, %v6202_v29  ;;  %v6685_v55 = vrot.slane %v11237_v15, 6  ;;  %v11222_v5 = vcombine.low %v6454_v16, %v6457_v51  ;;  %v11239_v54 = vld [vmem:[%s15634_s6 + $0xa0] sm:$0xc]  ;;  %v11241_v21 = vld [vmem:[%s15634_s6 + $0xa8] sm:$0x3] }
 0x3b5   : >> { %v6679_v20 = vsel %vm15682_vm9, %v11258_v40, %v6678_v11  ;;  %v6682_v1 = vsel %vm15682_vm9, %v6680_v10, %v6681_v60  ;;  %v6692_v50 = vrot.slane %v11240_v48, 6  ;;  %v11291_v7 = vcombine.low %v11234_v8, %v11282_v27  ;;  %v15881_v22 = vld [vmem:[%s15634_s6 + $0xb4] sm:$0xf]  ;;  %v11283_v43 = vld [vmem:[%s15634_s6 + $0x98] sm:$0xf] }
 0x3b6   : >> { %12575 = vmatmul.mubr.msk.bf16.gmra.mxu0 %vm640_vm2, %v11220_v32  ;;  %v11173_v41 = vcombine.low %v6200_v45, %v6203_v24  ;;  %v11266_v57 = vcombine.low %v6679_v20, %v6682_v1  ;;  %v11259_v28 = vrot.slane %v11236_v31, 10  ;;  %v6687_v25 = vrot.slane %v6685_v55, 4  ;;  %v15886_v6 = vld [vmem:[%s15634_s6 + $0xc4] sm:$0xf]  ;;  %v11284_v23 = vld [vmem:[%s15634_s6 + $0xa8] sm:$0xf] }
 0x3b7   : >> { %12578 = vmatprep.mubr.msk.bf16.mxu0 %vm640_vm2, %v11221_v0  ;;  %v6688_v19 = vrot.slane %v11238_v35, 6  ;;  %v11260_v62 = vrot.slane %v11239_v54, 10  ;;  %v6694_v13 = vrot.slane %v6692_v50, 4  ;;  %v6695_v49 = vrot.slane %v11241_v21, 6  ;;  %v11242_v8 = vld [vmem:[%s15634_s6 + $0xb0] sm:$0xc] }
 0x3b8   : >> { %12557 = vmatmul.mubr.msk.bf16.gmra.mxu1 %vm640_vm2, %v11171_v36  ;;  %v6686_v9 = vsel %vm15682_vm9, %v11259_v28, %v6685_v55  ;;  %v6699_v61 = vrot.slane %v15881_v22, 6  ;;  %v11292_v26 = vcombine.low %v11237_v15, %v11283_v43  ;;  %v11244_v47 = vld [vmem:[%s15634_s6 + $0xb8] sm:$0x3]  ;;  %v6706_v59 = vrot.slane %v15886_v6, 6  ;;  %v11245_v3 = vld [vmem:[%s15634_s6 + $0xc0] sm:$0xc] }
 0x3b9   : >> { %12560 = vmatprep.mubr.msk.bf16.mxu1 %vm640_vm2, %v11172_v30  ;;  %v6689_v53 = vsel %vm15682_vm9, %v6687_v25, %v6688_v19  ;;  %v6693_v56 = vsel %vm15682_vm9, %v11260_v62, %v6692_v50  ;;  %v6696_v38 = vsel %vm15682_vm9, %v6694_v13, %v6695_v49  ;;  %v11293_v52 = vcombine.low %v11240_v48, %v11284_v23  ;;  %v11247_v2 = vld [vmem:[%s15634_s6 + $0xc8] sm:$0x3]  ;;  %v15908_v0 = vld [vmem:[%s15634_s6 + $0xd4] sm:$0xf]  ;;  %v15916_v36 = vld [vmem:[%s15634_s6 + $0xe4] sm:$0xf] }
 0x3ba   : >> { %v11267_v32 = vcombine.low %v6686_v9, %v6689_v53  ;;  %v7507_v4 = vsel %vm665_vm1, %v15763_v44, 0  ;;  %v11268_v46 = vcombine.low %v6693_v56, %v6696_v38  ;;  %v11261_v17 = vrot.slane %v11242_v8, 10  ;;  %v11285_v44 = vld [vmem:[%s15634_s6 + $0xb8] sm:$0xf]  ;;  %v15921_v37 = vld [vmem:[%s17014_s1 + $0x32] sm:$0x3] }
 0x3bb   : >> { %v6701_v34 = vrot.slane %v6699_v61, 4  ;;  %v6702_v11 = vrot.slane %v11244_v47, 6  ;;  %v7233_v63 = vsel %vm665_vm1, %v15773_v42, 0  ;;  %v11262_v18 = vrot.slane %v11245_v3, 10  ;;  %v11286_v42 = vld [vmem:[%s15634_s6 + $0xc8] sm:$0xf] }
 0x3bc   : >> { %v6708_v14 = vrot.slane %v6706_v59, 4  ;;  %v6709_v33 = vrot.slane %v11247_v2, 6  ;;  %v6713_v30 = vrot.slane %v15908_v0, 6  ;;  %v6700_v12 = vsel %vm15682_vm9, %v11261_v17, %v6699_v61  ;;  %v11248_v40 = vld [vmem:[%s15634_s6 + $0xd0] sm:$0xc] }
 0x3bd   : >> { %v6703_v29 = vsel %vm15682_vm9, %v6701_v34, %v6702_v11  ;;  %v11250_v10 = vld [vmem:[%s15634_s6 + $0xd8] sm:$0x3]  ;;  %v15936_v60 = vld [vmem:[%s17014_s1 + $0x34] sm:$0x3]  ;;  %v11294_v15 = vcombine.low %v15881_v22, %v11285_v44  ;;  %v6707_v16 = vsel %vm15682_vm9, %v11262_v18, %v6706_v59  ;;  %v6720_v48 = vrot.slane %v15916_v36, 6 }
 0x3be   : >> { %12579 = vmatmul.mubr.msk.bf16.gmra.mxu0 %vm640_vm2, %v11222_v5  ;;  %v6710_v51 = vsel %vm15682_vm9, %v6708_v14, %v6709_v33  ;;  %v11295_v27 = vcombine.low %v15886_v6, %v11286_v42  ;;  %v11251_v45 = vld [vmem:[%s15634_s6 + $0xe0] sm:$0xc]  ;;  %v11253_v24 = vld [vmem:[%s15634_s6 + $0xe8] sm:$0x3]  ;;  %v11269_v55 = vcombine.low %v6700_v12, %v6703_v29  ;;  %v11263_v5 = vrot.slane %v11248_v40, 10 }
 0x3bf   : >> { %12602 = vmatprep.mubr.msk.bf16.mxu0 %vm640_vm2, %v11291_v7  ;;  %v6715_v20 = vrot.slane %v6713_v30, 4  ;;  %v6716_v1 = vrot.slane %v11250_v10, 6  ;;  %v15952_v31 = vld [vmem:[%s15634_s6 + $0xf4] sm:$0xf]  ;;  %v11270_v35 = vcombine.low %v6707_v16, %v6710_v51  ;;  %v11287_v50 = vld [vmem:[%s15634_s6 + $0xd8] sm:$0xf] }
 0x3c0   : >> { %12561 = vmatmul.mubr.msk.bf16.gmra.mxu1 %vm640_vm2, %v11173_v41  ;;  %v15956_v7 = vld [vmem:[%s15634_s6 + $0xc4] sm:$0xf]  ;;  %v11264_v54 = vrot.slane %v11251_v45, 10  ;;  %v6722_v21 = vrot.slane %v6720_v48, 4  ;;  %v6723_v41 = vrot.slane %v11253_v24, 6  ;;  %v6727_v19 = vrot.slane %v15952_v31, 6 }
 0x3c1   : >> { %12584 = vmatprep.mubr.msk.bf16.mxu1 %vm640_vm2, %v11266_v57  ;;  %v11308_v57 = vld [vmem:[%s15634_s6 + $0x88] sm:$0xf]  ;;  %v11254_v25 = vld [vmem:[%s15634_s6 + $0xf0] sm:$0xc]  ;;  %v6714_v62 = vsel %vm15682_vm9, %v11263_v5, %v6713_v30  ;;  %v6717_v13 = vsel %vm15682_vm9, %v6715_v20, %v6716_v1  ;;  %v11256_v49 = vld [vmem:[%s15634_s6 + $0xf8] sm:$0x3]  ;;  %v11296_v53 = vcombine.low %v15908_v0, %v11287_v50 }
 0x3c2   : >> { %v11288_v28 = vld [vmem:[%s15634_s6 + $0xe8] sm:$0xf]  ;;  %v11307_v22 = vld [vmem:[%s15634_s6 + $0x84] sm:$0xc]  ;;  %v7404_v43 = vrot.slane %v15956_v7, 6  ;;  %v7130_v6 = vrot.slane %v11308_v57, 6  ;;  %v6721_v61 = vsel %vm15682_vm9, %v11264_v54, %v6720_v48  ;;  %v11271_v8 = vcombine.low %v6714_v62, %v6717_v13 }
 0x3c3   : >> { %v11358_v23 = vld [vmem:[%s15634_s6 + $0xc0] sm:$0xc]  ;;  %v11360_v9 = vld [vmem:[%s15634_s6 + $0xc8] sm:$0x3]  ;;  %v11297_v56 = vcombine.low %v15916_v36, %v11288_v28  ;;  %v11309_v38 = vld [vmem:[%s15634_s6 + $0x8c] sm:$0x3] }
 0x3c4   : >> { %v11265_v47 = vrot.slane %v11254_v25, 10  ;;  %v6729_v59 = vrot.slane %v6727_v19, 4  ;;  %v15983_v3 = vld [vmem:[%s15634_s6 + $0xd4] sm:$0xf]  ;;  %v11332_v2 = vrot.slane %v11307_v22, 10  ;;  %v7132_v34 = vrot.slane %v7130_v6, 4 }
 0x3c5   : >> { %v7133_v11 = vrot.slane %v11309_v38, 6  ;;  %v11311_v0 = vld [vmem:[%s15634_s6 + $0x98] sm:$0xf]  ;;  %v7411_v14 = vrot.slane %v15983_v3, 6  ;;  %v11361_v36 = vld [vmem:[%s15634_s6 + $0xd0] sm:$0xc] }
 0x3c6   : >> { %12603 = vmatmul.mubr.msk.bf16.vlgmr.msra.gmra.mxu0 %vm640_vm2, %v11292_v26  ;;  %v6724_v26 = vsel %vm15682_vm9, %v6722_v21, %v6723_v41  ;;  %v11289_v18 = vld [vmem:[%s15634_s6 + $0xf8] sm:$0xf]  ;;  %v6728_v33 = vsel %vm15682_vm9, %v11265_v47, %v6727_v19  ;;  %v11314_v30 = vld [vmem:[%s15634_s6 + $0xa8] sm:$0xf]  ;;  %v11310_v40 = vld [vmem:[%s15634_s6 + $0x94] sm:$0xc]  ;;  %v7131_v48 = vsel %vm15682_vm9, %v11332_v2, %v7130_v6 }
 0x3c7   : >> { %12637 = vmatpush3.bf16.msra.mxu0 %v7507_v4  ;;  %12606 = vmatprep.mubr.msk.bf16.mxu0 %vm640_vm2, %v11293_v52  ;;  %v6730_v52 = vrot.slane %v11256_v49, 6  ;;  %v7406_v4 = vrot.slane %v7404_v43, 4  ;;  %v11272_v17 = vcombine.low %v6721_v61, %v6724_v26  ;;  %v11363_v42 = vld [vmem:[%s15634_s6 + $0xd8] sm:$0x3]  ;;  %v11312_v10 = vld [vmem:[%s15634_s6 + $0x9c] sm:$0x3]  ;;  %v11298_v51 = vcombine.low %v15952_v31, %v11289_v18 }
 0x3c8   : >> { %12585 = vmatmul.mubr.msk.bf16.vlgmr.msra.gmra.mxu1 %vm640_vm2, %v11267_v32  ;;  %12889 = vmatprep.subr.msk.bf16.mxu0 %vm665_vm1, %v15936_v60  ;;  %v11383_v32 = vrot.slane %v11358_v23, 10  ;;  %v11313_v45 = vld [vmem:[%s15634_s6 + $0xa4] sm:$0xc]  ;;  %v11364_v24 = vld [vmem:[%s15634_s6 + $0xe0] sm:$0xc]  ;;  %v11384_v5 = vrot.slane %v11361_v36, 10 }
 0x3c9   : >> { %12619 = vmatpush3.bf16.msra.mxu1 %v7233_v63  ;;  %12588 = vmatprep.mubr.msk.bf16.mxu1 %vm640_vm2, %v11268_v46  ;;  %v7407_v46 = vrot.slane %v11360_v9, 6  ;;  %v15987_v63 = vld [vmem:[%s15634_s6 + $0xe4] sm:$0xf]  ;;  %v6731_v44 = vsel %vm15682_vm9, %v6729_v59, %v6730_v52  ;;  %v7413_v20 = vrot.slane %v7411_v14, 4  ;;  %v7414_v1 = vrot.slane %v11363_v42, 6 }
 0x3ca   : >> { %12888 = vmatprep.subr.msk.bf16.mxu1 %vm665_vm1, %v15921_v37  ;;  %v7405_v12 = vsel %vm15682_vm9, %v11383_v32, %v7404_v43  ;;  %v7418_v16 = vrot.slane %v15987_v63, 6  ;;  %v7144_v50 = vrot.slane %v11314_v30, 6  ;;  %v11273_v54 = vcombine.low %v6728_v33, %v6731_v44  ;;  %v16019_v57 = vld [vmem:[%s15634_s6 + $0xf4] sm:$0xf]  ;;  %v16022_v43 = vld [vmem:[%s15634_s6 + $0x104] sm:$0xf] }
 0x3cb   : >> { %v7408_v29 = vsel %vm15682_vm9, %v7406_v4, %v7407_v46  ;;  %v11333_v41 = vrot.slane %v11310_v40, 10  ;;  %v7140_v31 = vrot.slane %v11312_v10, 6  ;;  %v11385_v25 = vrot.slane %v11364_v24, 10  ;;  %v11367_v61 = vld [vmem:[%s15634_s6 + $0xf0] sm:$0xc] }
 0x3cc   : >> { %v11391_v21 = vcombine.low %v7405_v12, %v7408_v29  ;;  %v7420_v19 = vrot.slane %v7418_v16, 4  ;;  %v11334_v49 = vrot.slane %v11313_v45, 10  ;;  %v7412_v6 = vsel %vm15682_vm9, %v11384_v5, %v7411_v14  ;;  %v11369_v38 = vld [vmem:[%s15634_s6 + $0xf8] sm:$0x3]  ;;  %v11316_v2 = vld [vmem:[%s15634_s6 + $0xb4] sm:$0xc] }
 0x3cd   : >> { %v7415_v23 = vsel %vm15682_vm9, %v7413_v20, %v7414_v1  ;;  %v7146_v9 = vrot.slane %v7144_v50, 4  ;;  %v7425_v26 = vrot.slane %v16019_v57, 6  ;;  %v7419_v59 = vsel %vm15682_vm9, %v11385_v25, %v7418_v16  ;;  %v11318_v14 = vld [vmem:[%s15634_s6 + $0xbc] sm:$0x3]  ;;  %v11319_v40 = vld [vmem:[%s15634_s6 + $0xc4] sm:$0xc] }
 0x3ce   : >> { %12607 = vmatmul.mubr.msk.bf16.gmra.mxu0 %vm640_vm2, %v11294_v15  ;;  %v7137_v15 = vrot.slane %v11311_v0, 6  ;;  %v7432_v32 = vrot.slane %v16022_v43, 6  ;;  %v11392_v4 = vcombine.low %v7412_v6, %v7415_v23  ;;  %v7145_v46 = vsel %vm15682_vm9, %v11334_v49, %v7144_v50  ;;  %v11372_v0 = vld [vmem:[%s15634_s6 + $0x108] sm:$0x3]  ;;  %v11321_v10 = vld [vmem:[%s15634_s6 + $0xcc] sm:$0x3] }
 0x3cf   : >> { %12610 = vmatprep.mubr.msk.bf16.mxu0 %vm640_vm2, %v11295_v27  ;;  %v7134_v27 = vsel %vm15682_vm9, %v7132_v34, %v7133_v11  ;;  %v11386_v34 = vrot.slane %v11367_v61, 10  ;;  %v11370_v11 = vld [vmem:[%s15634_s6 + $0x100] sm:$0xc]  ;;  %v7427_v33 = vrot.slane %v7425_v26, 4  ;;  %v7428_v44 = vrot.slane %v11369_v38, 6 }
 0x3d0   : >> { %12589 = vmatmul.mubr.msk.bf16.gmra.mxu1 %vm640_vm2, %v11269_v55  ;;  %v11366_v55 = vld [vmem:[%s15634_s6 + $0xe8] sm:$0x3]  ;;  %v7139_v28 = vrot.slane %v7137_v15, 4  ;;  %v11340_v13 = vcombine.low %v7131_v48, %v7134_v27  ;;  %v7689_v42 = vsel %vm665_vm1, %v15921_v37, 0  ;;  %v7959_v12 = vsel %vm665_vm1, %v15936_v60, 0 }
 0x3d1   : >> { %12592 = vmatprep.mubr.msk.bf16.mxu1 %vm640_vm2, %v11270_v35  ;;  %v11315_v35 = vld [vmem:[%s15634_s6 + $0xac] sm:$0x3]  ;;  %v7421_v62 = vrot.slane %v11366_v55, 6  ;;  %v11387_v16 = vrot.slane %v11370_v11, 10  ;;  %v7435_v48 = vrot.slane %v11372_v0, 6  ;;  %v7154_v55 = vrot.slane %v11318_v14, 6 }
 0x3d2   : >> { %v7147_v22 = vrot.slane %v11315_v35, 6  ;;  %v7141_v47 = vsel %vm15682_vm9, %v7139_v28, %v7140_v31  ;;  %v16061_v27 = vld [vmem:[%s15634_s6 + $0x114] sm:$0xf]  ;;  %v7426_v37 = vsel %vm15682_vm9, %v11386_v34, %v7425_v26  ;;  %v16066_v60 = vld [vmem:[%s15634_s6 + $0x124] sm:$0xf]  ;;  %v7429_v5 = vsel %vm15682_vm9, %v7427_v33, %v7428_v44 }
 0x3d3   : >> { %v7422_v52 = vsel %vm15682_vm9, %v7420_v19, %v7421_v62  ;;  %v11336_v20 = vrot.slane %v11319_v40, 10  ;;  %v7161_v35 = vrot.slane %v11321_v10, 6  ;;  %v11323_v50 = vld [vmem:[%s15634_s6 + $0xd8] sm:$0xf]  ;;  %v7433_v31 = vsel %vm15682_vm9, %v11387_v16, %v7432_v32  ;;  %v11376_v6 = vld [vmem:[%s15634_s6 + $0x120] sm:$0xc] }
 0x3d4   : >> { %v7148_v18 = vsel %vm15682_vm9, %v7146_v9, %v7147_v22  ;;  %v11393_v29 = vcombine.low %v7419_v59, %v7422_v52  ;;  %v11375_v25 = vld [vmem:[%s15634_s6 + $0x118] sm:$0x3]  ;;  %v7446_v19 = vrot.slane %v16066_v60, 6  ;;  %v11394_v49 = vcombine.low %v7426_v37, %v7429_v5  ;;  %v11378_v23 = vld [vmem:[%s15634_s6 + $0x128] sm:$0x3] }
 0x3d5   : >> { %v11342_v45 = vcombine.low %v7145_v46, %v7148_v18  ;;  %v7165_v22 = vrot.slane %v11323_v50, 6  ;;  %v11322_v61 = vld [vmem:[%s15634_s6 + $0xd4] sm:$0xc]  ;;  %v11324_v26 = vld [vmem:[%s15634_s6 + $0xdc] sm:$0x3]  ;;  %v7442_v59 = vrot.slane %v11375_v25, 6 }
 0x3d6   : >> { %12611 = vmatmul.mubr.msk.bf16.gmra.mxu0 %vm640_vm2, %v11296_v53  ;;  %v11317_v53 = vld [vmem:[%s15634_s6 + $0xb8] sm:$0xf]  ;;  %v11325_v52 = vld [vmem:[%s15634_s6 + $0xe4] sm:$0xc]  ;;  %v7448_v46 = vrot.slane %v7446_v19, 4  ;;  %v11337_v0 = vrot.slane %v11322_v61, 10 }
 0x3d7   : >> { %12614 = vmatprep.mubr.msk.bf16.mxu0 %vm640_vm2, %v11297_v56  ;;  %v7138_v56 = vsel %vm15682_vm9, %v11333_v41, %v7137_v15  ;;  %v11335_v15 = vrot.slane %v11316_v2, 10  ;;  %v11326_v41 = vld [vmem:[%s15634_s6 + $0xe8] sm:$0xf]  ;;  %v11327_v2 = vld [vmem:[%s15634_s6 + $0xec] sm:$0x3]  ;;  %v7167_v18 = vrot.slane %v7165_v22, 4 }
 0x3d8   : >> { %12593 = vmatmul.mubr.msk.bf16.gmra.mxu1 %vm640_vm2, %v11271_v8  ;;  %v11320_v8 = vld [vmem:[%s15634_s6 + $0xc8] sm:$0xf]  ;;  %v11341_v30 = vcombine.low %v7138_v56, %v7141_v47  ;;  %v7172_v38 = vrot.slane %v11326_v41, 6  ;;  %v16099_v34 = vld [vmem:[%s15634_s6 + $0x134] sm:$0xf]  ;;  %v7168_v14 = vrot.slane %v11324_v26, 6 }
 0x3d9   : >> { %12596 = vmatprep.mubr.msk.bf16.mxu1 %vm640_vm2, %v11272_v17  ;;  %v7151_v17 = vrot.slane %v11317_v53, 6  ;;  %v7158_v36 = vrot.slane %v11320_v8, 6  ;;  %v11433_v33 = vld [vmem:[%s15634_s6 + $0xc8] sm:$0xf]  ;;  %v11338_v44 = vrot.slane %v11325_v52, 10  ;;  %v7453_v40 = vrot.slane %v16099_v34, 6 }
 0x3da   : >> { %v11379_v16 = vld [vmem:[%s15634_s6 + $0x130] sm:$0xc]  ;;  %v11432_v37 = vld [vmem:[%s15634_s6 + $0xc4] sm:$0xc]  ;;  %v11434_v5 = vld [vmem:[%s15634_s6 + $0xcc] sm:$0x3] }
 0x3db   : >> { %v7153_v24 = vrot.slane %v7151_v17, 4  ;;  %v7160_v1 = vrot.slane %v7158_v36, 4  ;;  %v7152_v62 = vsel %vm15682_vm9, %v11335_v15, %v7151_v17  ;;  %v7159_v9 = vsel %vm15682_vm9, %v11336_v20, %v7158_v36  ;;  %v11328_v50 = vld [vmem:[%s15634_s6 + $0xf4] sm:$0xc] }
 0x3dc   : >> { %v7449_v17 = vrot.slane %v11378_v23, 6  ;;  %v7174_v36 = vrot.slane %v7172_v38, 4  ;;  %v11390_v41 = vrot.slane %v11379_v16, 10 }
 0x3dd   : >> { %v7162_v53 = vsel %vm15682_vm9, %v7160_v1, %v7161_v35  ;;  %v7173_v1 = vsel %vm15682_vm9, %v11338_v44, %v7172_v38 }
 0x3de   : >> { %12615 = vmatmul.mubr.msk.bf16.gmra.mxu0 %vm640_vm2, %v11298_v51  ;;  %v7434_v51 = vrot.slane %v7432_v32, 4  ;;  %v11344_v11 = vcombine.low %v7159_v9, %v7162_v53  ;;  %v7450_v15 = vsel %vm15682_vm9, %v7448_v46, %v7449_v17  ;;  %v11439_v53 = vld [vmem:[%s15634_s6 + $0xe8] sm:$0xf]  ;;  %v7454_v61 = vsel %vm15682_vm9, %v11390_v41, %v7453_v40  ;;  %v11440_v46 = vld [vmem:[%s15634_s6 + $0xec] sm:$0x3] }
 0x3df   : >> { %12638 = vmatprep.mubr.msk.bf16.mxu0 %vm640_vm2, %v11391_v21  ;;  %v7439_v21 = vrot.slane %v16061_v27, 6  ;;  %v7870_v52 = vrot.slane %v11439_v53, 6 }
 0x3e0   : >> { %12597 = vmatmul.mubr.msk.bf16.gmra.mxu1 %vm640_vm2, %v11273_v54  ;;  %v11373_v54 = vld [vmem:[%s15634_s6 + $0x110] sm:$0xc]  ;;  %v7436_v28 = vsel %vm15682_vm9, %v7434_v51, %v7435_v48  ;;  %v11381_v51 = vld [vmem:[%s15634_s6 + $0x138] sm:$0x3]  ;;  %v7856_v48 = vrot.slane %v11433_v33, 6 }
 0x3e1   : >> { %12620 = vmatprep.mubr.msk.bf16.mxu1 %vm640_vm2, %v11340_v13  ;;  %v7155_v13 = vsel %vm15682_vm9, %v7153_v24, %v7154_v55  ;;  %v11388_v56 = vrot.slane %v11373_v54, 10  ;;  %v11395_v8 = vcombine.low %v7433_v31, %v7436_v28  ;;  %v7441_v47 = vrot.slane %v7439_v21, 4  ;;  %v11330_v54 = vld [vmem:[%s15634_s6 + $0xfc] sm:$0x3] }
 0x3e2   : >> { %v11343_v32 = vcombine.low %v7152_v62, %v7155_v13  ;;  %v7169_v24 = vsel %vm15682_vm9, %v7167_v18, %v7168_v14  ;;  %v7455_v31 = vrot.slane %v7453_v40, 4  ;;  %v7456_v28 = vrot.slane %v11381_v51, 6  ;;  %v11445_v40 = vld [vmem:[%s15634_s6 + $0x108] sm:$0xf] }
 0x3e3   : >> { %v7858_v62 = vrot.slane %v7856_v48, 4  ;;  %v7859_v13 = vrot.slane %v11434_v5, 6  ;;  %v7182_v9 = vrot.slane %v11330_v54, 6  ;;  %v11446_v5 = vld [vmem:[%s15634_s6 + $0x10c] sm:$0x3] }
 0x3e4   : >> { %v7457_v26 = vsel %vm15682_vm9, %v7455_v31, %v7456_v28 }
 0x3e5   : >> { %v11398_v17 = vcombine.low %v7454_v61, %v7457_v26  ;;  %v11410_v61 = vld [vmem:[%s15634_s6 + $0xf8] sm:$0xf]  ;;  %v11450_v26 = vld [vmem:[%s15634_s6 + $0x124] sm:$0xc] }
 0x3e6   : >> { %12639 = vmatmul.mubr.msk.bf16.vlgmr.msra.gmra.mxu0 %vm640_vm2, %v11392_v4  ;;  %v11389_v4 = vrot.slane %v11376_v6, 10  ;;  %v11339_v6 = vrot.slane %v11328_v50, 10 }
 0x3e7   : >> { %12673 = vmatpush3.bf16.msra.mxu0 %v7959_v12  ;;  %12642 = vmatprep.mubr.msk.bf16.mxu0 %vm640_vm2, %v11393_v29  ;;  %v7440_v12 = vsel %vm15682_vm9, %v11388_v56, %v7439_v21  ;;  %v7443_v29 = vsel %vm15682_vm9, %v7441_v47, %v7442_v59  ;;  %v11435_v47 = vld [vmem:[%s15634_s6 + $0xd4] sm:$0xc]  ;;  %v11437_v59 = vld [vmem:[%s15634_s6 + $0xdc] sm:$0x3] }
 0x3e8   : >> { %12621 = vmatmul.mubr.msk.bf16.vlgmr.msra.gmra.mxu1 %vm640_vm2, %v11341_v30  ;;  %v11329_v30 = vld [vmem:[%s15634_s6 + $0xf8] sm:$0xf]  ;;  %v7447_v10 = vsel %vm15682_vm9, %v11389_v4, %v7446_v19  ;;  %v11396_v20 = vcombine.low %v7440_v12, %v7443_v29  ;;  %v11457_v19 = vrot.slane %v11432_v37, 10  ;;  %v11438_v4 = vld [vmem:[%s15634_s6 + $0xe4] sm:$0xc]  ;;  %v11458_v18 = vrot.slane %v11435_v47, 10 }
 0x3e9   : >> { %12655 = vmatpush3.bf16.msra.mxu1 %v7689_v42  ;;  %12624 = vmatprep.mubr.msk.bf16.mxu1 %vm640_vm2, %v11342_v45  ;;  %v7175_v42 = vrot.slane %v11327_v2, 6  ;;  %v7166_v45 = vsel %vm15682_vm9, %v11337_v0, %v7165_v22  ;;  %v7179_v55 = vrot.slane %v11329_v30, 6  ;;  %v11397_v21 = vcombine.low %v7447_v10, %v7450_v15  ;;  %v11442_v12 = vld [vmem:[%s15634_s6 + $0xf8] sm:$0xf]  ;;  %v11444_v37 = vld [vmem:[%s15634_s6 + $0x104] sm:$0xc] }
 0x3ea   : >> { %v11345_v25 = vcombine.low %v7166_v45, %v7169_v24  ;;  %v7857_v38 = vsel %vm15682_vm9, %v11457_v19, %v7856_v48  ;;  %v7866_v33 = vrot.slane %v11437_v59, 6  ;;  %v7873_v30 = vrot.slane %v11440_v46, 6  ;;  %v11441_v48 = vld [vmem:[%s15634_s6 + $0xf4] sm:$0xc]  ;;  %v11443_v45 = vld [vmem:[%s15634_s6 + $0xfc] sm:$0x3] }
 0x3eb   : >> { %v7176_v35 = vsel %vm15682_vm9, %v7174_v36, %v7175_v42  ;;  %v7181_v23 = vrot.slane %v7179_v55, 4  ;;  %v7180_v2 = vsel %vm15682_vm9, %v11339_v6, %v7179_v55  ;;  %v11459_v36 = vrot.slane %v11438_v4, 10  ;;  %v11408_v55 = vld [vmem:[%s15634_s6 + $0xd8] sm:$0xf] }
 0x3ec   : >> { %v11346_v22 = vcombine.low %v7173_v1, %v7176_v35  ;;  %v7872_v42 = vrot.slane %v7870_v52, 4  ;;  %v7877_v16 = vrot.slane %v11442_v12, 6  ;;  %v7884_v24 = vrot.slane %v11445_v40, 6  ;;  %v11409_v1 = vld [vmem:[%s15634_s6 + $0xe8] sm:$0xf] }
 0x3ed   : >> { %v7871_v51 = vsel %vm15682_vm9, %v11459_v36, %v7870_v52  ;;  %v11460_v50 = vrot.slane %v11441_v48, 10  ;;  %v11417_v41 = vcombine.low %v15983_v3, %v11408_v55  ;;  %v11461_v31 = vrot.slane %v11444_v37, 10  ;;  %v11448_v19 = vld [vmem:[%s15634_s6 + $0x118] sm:$0xf]  ;;  %v11455_v36 = vld [vmem:[%s15634_s6 + $0x13c] sm:$0x3] }
 0x3ee   : >> { %12643 = vmatmul.mubr.msk.bf16.gmra.mxu0 %vm640_vm2, %v11394_v49  ;;  %v11436_v49 = vld [vmem:[%s15634_s6 + $0xd8] sm:$0xf]  ;;  %v7879_v54 = vrot.slane %v7877_v16, 4  ;;  %v7886_v28 = vrot.slane %v7884_v24, 4  ;;  %v11463_v4 = vrot.slane %v11450_v26, 10 }
 0x3ef   : >> { %12646 = vmatprep.mubr.msk.bf16.mxu0 %vm640_vm2, %v11395_v8  ;;  %v7863_v56 = vrot.slane %v11436_v49, 6  ;;  %v7860_v8 = vsel %vm15682_vm9, %v7858_v62, %v7859_v13  ;;  %v11418_v62 = vcombine.low %v15987_v63, %v11409_v1  ;;  %v11451_v13 = vld [vmem:[%s15634_s6 + $0x128] sm:$0xf]  ;;  %v7878_v49 = vsel %vm15682_vm9, %v11460_v50, %v7877_v16 }
 0x3f0   : >> { %12625 = vmatmul.mubr.msk.bf16.gmra.mxu1 %vm640_vm2, %v11343_v32  ;;  %v7183_v32 = vsel %vm15682_vm9, %v7181_v23, %v7182_v9  ;;  %v11465_v0 = vcombine.low %v7857_v38, %v7860_v8  ;;  %v7885_v6 = vsel %vm15682_vm9, %v11461_v31, %v7884_v24  ;;  %v11447_v23 = vld [vmem:[%s15634_s6 + $0x114] sm:$0xc]  ;;  %v11449_v9 = vld [vmem:[%s15634_s6 + $0x11c] sm:$0x3]  ;;  %v7898_v53 = vrot.slane %v11451_v13, 6 }
 0x3f1   : >> { %12628 = vmatprep.mubr.msk.bf16.mxu1 %vm640_vm2, %v11344_v11  ;;  %v11407_v11 = vld [vmem:[%s15634_s6 + $0xc8] sm:$0xf]  ;;  %v7865_v14 = vrot.slane %v7863_v56, 4  ;;  %v11347_v44 = vcombine.low %v7180_v2, %v7183_v32  ;;  %v7864_v10 = vsel %vm15682_vm9, %v11458_v18, %v7863_v56  ;;  %v11452_v56 = vld [vmem:[%s15634_s6 + $0x12c] sm:$0x3]  ;;  %v11462_v59 = vrot.slane %v11447_v23, 10 }
 0x3f2   : >> { %v11416_v29 = vcombine.low %v15956_v7, %v11407_v11  ;;  %v7874_v7 = vsel %vm15682_vm9, %v7872_v42, %v7873_v30  ;;  %v11411_v8 = vld [vmem:[%s15634_s6 + $0x108] sm:$0xf]  ;;  %v7894_v2 = vrot.slane %v11449_v9, 6  ;;  %v11419_v32 = vcombine.low %v16019_v57, %v11410_v61  ;;  %v11454_v11 = vld [vmem:[%s15634_s6 + $0x138] sm:$0xf] }
 0x3f3   : >> { %v7867_v15 = vsel %vm15682_vm9, %v7865_v14, %v7866_v33  ;;  %v11467_v35 = vcombine.low %v7871_v51, %v7874_v7  ;;  %v7900_v46 = vrot.slane %v7898_v53, 4  ;;  %v7905_v33 = vrot.slane %v11454_v11, 6  ;;  %v11412_v42 = vld [vmem:[%s15634_s6 + $0x118] sm:$0xf]  ;;  %v11413_v12 = vld [vmem:[%s15634_s6 + $0x128] sm:$0xf] }
 0x3f4   : >> { %v7899_v57 = vsel %vm15682_vm9, %v11463_v4, %v7898_v53  ;;  %v11421_v16 = vcombine.low %v16061_v27, %v11412_v42  ;;  %v11422_v51 = vcombine.low %v16066_v60, %v11413_v12 }
 0x3f6   : >> { %12647 = vmatmul.mubr.msk.bf16.gmra.mxu0 %vm640_vm2, %v11396_v20  ;;  %v11466_v20 = vcombine.low %v7864_v10, %v7867_v15  ;;  %v7907_v10 = vrot.slane %v7905_v33, 4  ;;  %v7908_v15 = vrot.slane %v11455_v36, 6 }
 0x3f7   : >> { %12650 = vmatprep.mubr.msk.bf16.mxu0 %vm640_vm2, %v11397_v21  ;;  %v7880_v21 = vrot.slane %v11443_v45, 6  ;;  %v11414_v45 = vld [vmem:[%s15634_s6 + $0x138] sm:$0xf] }
 0x3f8   : >> { %12629 = vmatmul.mubr.msk.bf16.gmra.mxu1 %vm640_vm2, %v11345_v25  ;;  %v7887_v25 = vrot.slane %v11446_v5, 6  ;;  %v7909_v48 = vsel %vm15682_vm9, %v7907_v10, %v7908_v15  ;;  %v11423_v27 = vcombine.low %v16099_v34, %v11414_v45 }
 0x3f9   : >> { %12632 = vmatprep.mubr.msk.bf16.mxu1 %vm640_vm2, %v11346_v22  ;;  %v7881_v3 = vsel %vm15682_vm9, %v7879_v54, %v7880_v21  ;;  %v7891_v22 = vrot.slane %v11448_v19, 6 }
 0x3fa   : >> { %v7888_v63 = vsel %vm15682_vm9, %v7886_v28, %v7887_v25  ;;  %v11468_v38 = vcombine.low %v7878_v49, %v7881_v3 }
 0x3fb   : >> { %v11469_v47 = vcombine.low %v7885_v6, %v7888_v63  ;;  %v7893_v52 = vrot.slane %v7891_v22, 4  ;;  %v7892_v18 = vsel %vm15682_vm9, %v11462_v59, %v7891_v22 }
 0x3fd   : >> { %v7895_v14 = vsel %vm15682_vm9, %v7893_v52, %v7894_v2 }
 0x3fe   : >> { %12651 = vmatmul.mubr.msk.bf16.gmra.mxu0 %vm640_vm2, %v11398_v17  ;;  %v7901_v17 = vrot.slane %v11452_v56, 6  ;;  %v11470_v30 = vcombine.low %v7892_v18, %v7895_v14 }
 0x3ff   : >> { %12674 = vmatprep.mubr.msk.bf16.mxu0 %vm640_vm2, %v11465_v0  ;;  %v11420_v0 = vcombine.low %v16022_v43, %v11411_v8  ;;  %v11453_v43 = vld [vmem:[%s15634_s6 + $0x134] sm:$0xc] }
 0x400   : >> { %12633 = vmatmul.mubr.msk.bf16.gmra.mxu1 %vm640_vm2, %v11347_v44  ;;  %v7902_v44 = vsel %vm15682_vm9, %v7900_v46, %v7901_v17  ;;  %v11464_v40 = vrot.slane %v11453_v43, 10 }
 0x401   : >> { %12656 = vmatprep.mubr.msk.bf16.mxu1 %vm640_vm2, %v11416_v29  ;;  %v11471_v29 = vcombine.low %v7899_v57, %v7902_v44 }
 0x402   : >> { %v7906_v7 = vsel %vm15682_vm9, %v11464_v40, %v7905_v33 }
 0x403   : >> { %v11472_v24 = vcombine.low %v7906_v7, %v7909_v48 }
 0x406   : >> { %12675 = vmatmul.mubr.msk.bf16.vlgmr.msra.gmra.mxu0 %vm640_vm2, %v11466_v20 }
 0x407   : >> { %12678 = vmatprep.mubr.msk.bf16.mxu0 %vm640_vm2, %v11467_v35 }
 0x408   : >> { %12657 = vmatmul.mubr.msk.bf16.vlgmr.msra.gmra.mxu1 %vm640_vm2, %v11417_v41 }
 0x409   : >> { %12660 = vmatprep.mubr.msk.bf16.mxu1 %vm640_vm2, %v11418_v62 }
 0x40e   : >> { %12679 = vmatmul.mubr.msk.bf16.gmra.mxu0 %vm640_vm2, %v11468_v38 }
 0x40f   : >> { %12682 = vmatprep.mubr.msk.bf16.mxu0 %vm640_vm2, %v11469_v47 }
 0x410   : >> { %12661 = vmatmul.mubr.msk.bf16.gmra.mxu1 %vm640_vm2, %v11419_v32 }
 0x411   : >> { %12664 = vmatprep.mubr.msk.bf16.mxu1 %vm640_vm2, %v11420_v0 }
 0x416   : >> { %12683 = vmatmul.mubr.msk.bf16.gmra.mxu0 %vm640_vm2, %v11470_v30 }
 0x417   : >> { %12686 = vmatprep.mubr.msk.bf16.mxu0 %vm640_vm2, %v11471_v29 }
 0x418   : >> { %12665 = vmatmul.mubr.msk.bf16.gmra.mxu1 %vm640_vm2, %v11421_v16 }
 0x419   : >> { %12668 = vmatprep.mubr.msk.bf16.mxu1 %vm640_vm2, %v11422_v51 }
 0x41e   : >> { %12687 = vmatmul.mubr.msk.bf16.gmra.mxu0 %vm640_vm2, %v11472_v24 }
 0x420   : >> { %12669 = vmatmul.mubr.msk.bf16.gmra.mxu1 %vm640_vm2, %v11423_v27 }
 0x456   : >> { %v12532_v60 = vpop.f32.mrf.mxu0 }
 0x458   : >> { %v12540_v55 = vpop.f32.mrf.mxu1  ;;  %v6066_v37 = vpop.f32.mrf.mxu0 }
 0x45a   : >> { %v6098_v5 = vpop.f32.mrf.mxu1  ;;  %v12533_v20 = vpop.f32.mrf.mxu0 }
 0x45c   : >> { %v12541_v1 = vpop.f32.mrf.mxu1  ;;  %v6069_v58 = vpop.f32.mrf.mxu0 }
 0x45e   : >> { %v6101_v35 = vpop.f32.mrf.mxu1  ;;  %v12536_v50 = vpop.f32.mrf.mxu0 }
 0x460   : >> { %v12544_v54 = vpop.f32.mrf.mxu1  ;;  %v6082_v21 = vpop.f32.mrf.mxu0 }
 0x462   : >> { %v6114_v41 = vpop.f32.mrf.mxu1  ;;  %v12537_v31 = vpop.f32.mrf.mxu0 }
 0x464   : >> { %v12545_v28 = vpop.f32.mrf.mxu1  ;;  %v6085_v25 = vpop.f32.mrf.mxu0 }
 0x466   : >> { %v16229_v34 = vpop.f32.mrf.mxu1  ;;  %v12568_v19 = vpop.f32.mrf.mxu0 }
 0x468   : >> { %v12550_v62 = vpop.f32.mrf.mxu1  ;;  %v6543_v13 = vpop.f32.mrf.mxu0 }
 0x469   : >> { %v6298_v49 = vadd.f32 %v12550_v62, %v12532_v60 }
 0x46a   : >> { %v6289_v3 = vpop.f32.mrf.mxu1  ;;  %v12569_v22 = vpop.f32.mrf.mxu0 }
 0x46b   : >> { %v16231_v6 = vadd.f32 %v12568_v19, %v6298_v49  ;;  %v6290_v63 = vadd.f32 %v6289_v3, %v6066_v37 }
 0x46c   : >> { %v12551_v23 = vpop.f32.mrf.mxu1  ;;  %v6546_v9 = vpop.f32.mrf.mxu0 }
 0x46d   : >> { %v16233_v53 = vadd.f32 %v6543_v13, %v6290_v63  ;;  %v6301_v61 = vadd.f32 %v12551_v23, %v12533_v20 }
 0x46e   : >> { %v6292_v26 = vpop.f32.mrf.mxu1  ;;  %v12572_v56 = vpop.f32.mrf.mxu0 }
 0x46f   : >> { %v16235_v38 = vadd.f32 %v12569_v22, %v6301_v61  ;;  %v6293_v8 = vadd.f32 %v6292_v26, %v6069_v58 }
 0x470   : >> { %v12554_v47 = vpop.f32.mrf.mxu1  ;;  %v6559_v59 = vpop.f32.mrf.mxu0 }
 0x471   : >> { %v16237_v52 = vadd.f32 %v6546_v9, %v6293_v8  ;;  %v6314_v2 = vadd.f32 %v12554_v47, %v12536_v50 }
 0x472   : >> { %v6305_v32 = vpop.f32.mrf.mxu1  ;;  %v12573_v4 = vpop.f32.mrf.mxu0 }
 0x473   : >> { %v16239_v46 = vadd.f32 %v12572_v56, %v6314_v2  ;;  %v6306_v17 = vadd.f32 %v6305_v32, %v6082_v21 }
 0x474   : >> { %v12555_v11 = vpop.f32.mrf.mxu1  ;;  %v6562_v0 = vpop.f32.mrf.mxu0 }
 0x475   : >> { %v16241_v18 = vadd.f32 %v6559_v59, %v6306_v17  ;;  %v6317_v14 = vadd.f32 %v12555_v11, %v12537_v31 }
 0x476   : >> { %v6308_v33 = vpop.f32.mrf.mxu1  ;;  %v12576_v57 = vpop.f32.mrf.mxu0 }
 0x477   : >> { %v16243_v44 = vadd.f32 %v12573_v4, %v6317_v14  ;;  %v6309_v43 = vadd.f32 %v6308_v33, %v6085_v25 }
 0x478   : >> { %v12558_v36 = vpop.f32.mrf.mxu1  ;;  %v6575_v42 = vpop.f32.mrf.mxu0 }
 0x479   : >> { %v16245_v30 = vadd.f32 %v6562_v0, %v6309_v43  ;;  %v6330_v12 = vadd.f32 %v12558_v36, %v12540_v55 }
 0x47a   : >> { %v6321_v29 = vpop.f32.mrf.mxu1  ;;  %v12577_v40 = vpop.f32.mrf.mxu0 }
 0x47b   : >> { %v16247_v10 = vadd.f32 %v12576_v57, %v6330_v12  ;;  %v6322_v15 = vadd.f32 %v6321_v29, %v6098_v5 }
 0x47c   : >> { %v12559_v16 = vpop.f32.mrf.mxu1  ;;  %v6578_v51 = vpop.f32.mrf.mxu0 }
 0x47d   : >> { %v16249_v7 = vadd.f32 %v6575_v42, %v6322_v15  ;;  %v6333_v48 = vadd.f32 %v12559_v16, %v12541_v1 }
 0x47e   : >> { %v6324_v45 = vpop.f32.mrf.mxu1  ;;  %v12580_v24 = vpop.f32.mrf.mxu0 }
 0x47f   : >> { %v16251_v27 = vadd.f32 %v12577_v40, %v6333_v48  ;;  %v6325_v60 = vadd.f32 %v6324_v45, %v6101_v35 }
 0x480   : >> { %v12562_v37 = vpop.f32.mrf.mxu1  ;;  %v6591_v20 = vpop.f32.mrf.mxu0 }
 0x481   : >> { %v16253_v58 = vadd.f32 %v6578_v51, %v6325_v60  ;;  %v6346_v55 = vadd.f32 %v12562_v37, %v12544_v54 }
 0x482   : >> { %v6337_v50 = vpop.f32.mrf.mxu1  ;;  %v12581_v21 = vpop.f32.mrf.mxu0 }
 0x483   : >> { %v16255_v31 = vadd.f32 %v12580_v24, %v6346_v55  ;;  %v6338_v5 = vadd.f32 %v6337_v50, %v6114_v41 }
 0x484   : >> { %v12563_v25 = vpop.f32.mrf.mxu1  ;;  %v6594_v19 = vpop.f32.mrf.mxu0 }
 0x485   : >> { %v16257_v62 = vadd.f32 %v6591_v20, %v6338_v5  ;;  %v6349_v1 = vadd.f32 %v12563_v25, %v12545_v28 }
 0x486   : >> { %v6340_v13 = vpop.f32.mrf.mxu1  ;;  %v16259_v49 = vpop.f32.mrf.mxu0 }
 0x487   : >> { %v16261_v3 = vadd.f32 %v12581_v21, %v6349_v1  ;;  %v6341_v35 = vadd.f32 %v6340_v13, %v16229_v34 }
 0x488   : >> { %v12586_v22 = vpop.f32.mrf.mxu1  ;;  %v16264_v63 = vpop.f32.mrf.mxu0 }
 0x489   : >> { %v16266_v54 = vadd.f32 %v6594_v19, %v6341_v35 }
 0x48a   : >> { %v6817_v23 = vpop.f32.mrf.mxu1  ;;  %v16268_v9 = vpop.f32.mrf.mxu0 }
 0x48b   : >> { %17112 = vst [vmem:[#allocation42_spill] sm:$0xff] %v16266_v54 }
 0x48c   : >> { %v12587_v41 = vpop.f32.mrf.mxu1  ;;  %v16270_v61 = vpop.f32.mrf.mxu0 }
 0x48d   : >> { %v6883_v54 = vadd.f32 %v12587_v41, %v16235_v38 }
 0x48e   : >> { %v6820_v26 = vpop.f32.mrf.mxu1  ;;  %v16272_v28 = vpop.f32.mrf.mxu0 }
 0x490   : >> { %v12590_v56 = vpop.f32.mrf.mxu1  ;;  %v16274_v8 = vpop.f32.mrf.mxu0 }
 0x492   : >> { %v6833_v47 = vpop.f32.mrf.mxu1  ;;  %v16276_v59 = vpop.f32.mrf.mxu0 }
 0x494   : >> { %v12591_v34 = vpop.f32.mrf.mxu1  ;;  %v16278_v2 = vpop.f32.mrf.mxu0 }
 0x496   : >> { %v6836_v32 = vpop.f32.mrf.mxu1  ;;  %v16280_v4 = vpop.f32.mrf.mxu0 }
 0x498   : >> { %v12594_v17 = vpop.f32.mrf.mxu1  ;;  %v16282_v11 = vpop.f32.mrf.mxu0 }
 0x49a   : >> { %v6849_v0 = vpop.f32.mrf.mxu1  ;;  %v16284_v14 = vpop.f32.mrf.mxu0 }
 0x49b   : >> { %v6888_v38 = vadd.f32 %v6849_v0, %v16249_v7 }
 0x49c   : >> { %v12595_v33 = vpop.f32.mrf.mxu1  ;;  %v16286_v57 = vpop.f32.mrf.mxu0 }
 0x49e   : >> { %v6852_v43 = vpop.f32.mrf.mxu1  ;;  %v16288_v36 = vpop.f32.mrf.mxu0 }
 0x4a0   : >> { %v12598_v42 = vpop.f32.mrf.mxu1  ;;  %v16290_v12 = vpop.f32.mrf.mxu0 }
 0x4a1   : >> { %17113 = vst [vmem:[#allocation43_spill] sm:$0xff] %v16290_v12 }
 0x4a2   : >> { %v6865_v29 = vpop.f32.mrf.mxu1  ;;  %v16292_v40 = vpop.f32.mrf.mxu0 }
 0x4a3   : >> { %17114 = vst [vmem:[#allocation44_spill] sm:$0xff] %v16292_v40 }
 0x4a4   : >> { %v16294_v15 = vpop.f32.mrf.mxu1  ;;  %v16296_v16 = vpop.f32.mrf.mxu0 }
 0x4a5   : >> { %17115 = vst [vmem:[#allocation45_spill] sm:$0xff] %v16294_v15  ;;  %17116 = vst [vmem:[#allocation46_spill] sm:$0xff] %v16296_v16 }
 0x4a6   : >> { %v16298_v51 = vpop.f32.mrf.mxu1  ;;  %v16300_v48 = vpop.f32.mrf.mxu0 }
 0x4a7   : >> { %17117 = vst [vmem:[#allocation47_spill] sm:$0xff] %v16298_v51  ;;  %17118 = vst [vmem:[#allocation48_spill] sm:$0xff] %v16300_v48  ;;  %v6884_v48 = vadd.f32 %v6833_v47, %v16241_v18 }
 0x4a8   : >> { %v12622_v45 = vpop.f32.mrf.mxu1  ;;  %v16302_v24 = vpop.f32.mrf.mxu0 }
 0x4a9   : >> { %17119 = vst [vmem:[#allocation49_spill] sm:$0xff] %v16302_v24  ;;  %v7066_v7 = vadd.f32 %v16274_v8, %v6884_v48 }
 0x4aa   : >> { %v7269_v60 = vpop.f32.mrf.mxu1  ;;  %v16304_v37 = vpop.f32.mrf.mxu0 }
 0x4ab   : >> { %17120 = vst [vmem:[#allocation50_spill] sm:$0xff] %v16304_v37 }
 0x4ac   : >> { %v12623_v20 = vpop.f32.mrf.mxu1  ;;  %v16306_v55 = vpop.f32.mrf.mxu0 }
 0x4ad   : >> { %17121 = vst [vmem:[#allocation51_spill] sm:$0xff] %v16306_v55 }
 0x4ae   : >> { %v7272_v50 = vpop.f32.mrf.mxu1  ;;  %v16308_v21 = vpop.f32.mrf.mxu0 }
 0x4af   : >> { %17122 = vst [vmem:[#allocation52_spill] sm:$0xff] %v16308_v21 }
 0x4b0   : >> { %v12626_v5 = vpop.f32.mrf.mxu1  ;;  %v16310_v25 = vpop.f32.mrf.mxu0 }
 0x4b1   : >> { %17123 = vst [vmem:[#allocation53_spill] sm:$0xff] %v16310_v25  ;;  %v6882_v25 = vadd.f32 %v12586_v22, %v16231_v6  ;;  %v6887_v22 = vadd.f32 %v12591_v34, %v16243_v44  ;;  %v7065_v44 = vadd.f32 %v16268_v9, %v6883_v54  ;;  %v7070_v54 = vadd.f32 %v16282_v11, %v6888_v38 }
 0x4b2   : >> { %v7285_v19 = vpop.f32.mrf.mxu1  ;;  %v16312_v1 = vpop.f32.mrf.mxu0 }
 0x4b3   : >> { %17124 = vst [vmem:[#allocation54_spill] sm:$0xff] %v16312_v1  ;;  %v7064_v6 = vadd.f32 %v16259_v49, %v6882_v25  ;;  %v6894_v49 = vadd.f32 %v12598_v42, %v16255_v31 }
 0x4b4   : >> { %v12627_v13 = vpop.f32.mrf.mxu1  ;;  %v16314_v35 = vpop.f32.mrf.mxu0 }
 0x4b5   : >> { %17125 = vst [vmem:[#allocation55_spill] sm:$0xff] %v16314_v35  ;;  %v6880_v35 = vadd.f32 %v6817_v23, %v16233_v53  ;;  %v6890_v53 = vadd.f32 %v12594_v17, %v16247_v10 }
 0x4b6   : >> { %v7288_v39 = vpop.f32.mrf.mxu1  ;;  %v16316_v16 = vpop.f32.mrf.mxu0 }
 0x4b7   : >> { %17126 = vst [vmem:[#allocation56_spill] sm:$0xff] %v16316_v16  ;;  %v6881_v16 = vadd.f32 %v6820_v26, %v16237_v52  ;;  %v6891_v52 = vadd.f32 %v12595_v33, %v16251_v27  ;;  %v7062_v41 = vadd.f32 %v16264_v63, %v6880_v35  ;;  %v7334_v26 = vadd.f32 %v12622_v45, %v7064_v6  ;;  %v17132_v33 = vld [vmem:[#allocation42_spill] sm:$0xff]  ;;  %v17135_v45 = vld [vmem:[#allocation49_spill] sm:$0xff] }
 0x4b8   : >> { %v12630_v40 = vpop.f32.mrf.mxu1  ;;  %v16318_v37 = vpop.f32.mrf.mxu0  ;;  %v6892_v63 = vadd.f32 %v6865_v29, %v16257_v62  ;;  %v7072_v34 = vadd.f32 %v16280_v4, %v6890_v53  ;;  %v7335_v62 = vadd.f32 %v12623_v20, %v7065_v44  ;;  %v7336_v29 = vadd.f32 %v7285_v19, %v7066_v7  ;;  %v17141_v44 = vld [vmem:[#allocation53_spill] sm:$0xff] }
 0x4b9   : >> { %17127 = vst [vmem:[#allocation57_spill] sm:$0xff] %v16318_v37  ;;  %v6886_v37 = vadd.f32 %v12590_v56, %v16239_v46  ;;  %v6889_v46 = vadd.f32 %v6852_v43, %v16253_v58  ;;  %v7069_v56 = vadd.f32 %v16276_v59, %v6887_v22  ;;  %v7332_v31 = vadd.f32 %v7269_v60, %v7062_v41  ;;  %v17130_v59 = vld [vmem:[#allocation45_spill] sm:$0xff]  ;;  %v17133_v43 = vld [vmem:[#allocation47_spill] sm:$0xff]  ;;  %v17136_v22 = vld [vmem:[#allocation44_spill] sm:$0xff] }
 0x4ba   : >> { %v7301_v24 = vpop.f32.mrf.mxu1  ;;  %v16320_v55 = vpop.f32.mrf.mxu0  ;;  %v7073_v9 = vadd.f32 %v16284_v14, %v6891_v52  ;;  %v6895_v17 = vadd.f32 %v17130_v59, %v16261_v3  ;;  %v6893_v4 = vadd.f32 %v17133_v43, %v17132_v33  ;;  %v7342_v25 = vadd.f32 %v12630_v40, %v7072_v34  ;;  %v17138_v52 = vld [vmem:[#allocation46_spill] sm:$0xff]  ;;  %v17139_v41 = vld [vmem:[#allocation51_spill] sm:$0xff] }
 0x4bb   : >> { %17128 = vst [vmem:[#allocation58_spill] sm:$0xff] %v16320_v55  ;;  %v7068_v10 = vadd.f32 %v16272_v28, %v6886_v37  ;;  %v7606_v60 = vadd.f32 %v17135_v45, %v7332_v31  ;;  %v7339_v37 = vadd.f32 %v12627_v13, %v7069_v56  ;;  %v8148_v33 = vld [vmem:[%s16386_s21 + $0x10] sm:$0xff] }
 0x4bc   : >> { %v12631_v12 = vpop.f32.mrf.mxu1  ;;  %v16322_v21 = vpop.f32.mrf.mxu0 }
 0x4bd   : >> { %v7338_v11 = vadd.f32 %v12626_v5, %v7068_v10  ;;  %v7343_v20 = vadd.f32 %v12631_v12, %v7073_v9  ;;  %v17137_v5 = vld [vmem:[#allocation50_spill] sm:$0xff]  ;;  %v17143_v10 = vld [vmem:[#allocation4_spill] sm:$0xff] }
 0x4be   : >> { %v16325_v51 = vpop.f32.mrf.mxu1  ;;  %v16327_v1 = vpop.f32.mrf.mxu0  ;;  %v7609_v19 = vadd.f32 %v17137_v5, %v7335_v62  ;;  %v17145_v34 = vld [vmem:[#allocation56_spill] sm:$0xff] }
 0x4bf   : >> { %17129 = vst [vmem:[#allocation59_spill] sm:$0xff] %v16327_v1  ;;  %v6885_v1 = vadd.f32 %v6836_v32, %v16245_v30  ;;  %v7063_v30 = vadd.f32 %v16270_v61, %v6881_v16  ;;  %v7071_v61 = vadd.f32 %v16286_v57, %v6889_v46  ;;  %v7076_v32 = vadd.f32 %v16288_v36, %v6894_v49  ;;  %v17134_v57 = vld [vmem:[#allocation43_spill] sm:$0xff]  ;;  %v17140_v49 = vld [vmem:[#allocation52_spill] sm:$0xff] }
 0x4c0   : >> { %v16334_v55 = vpop.f32.mrf.mxu1  ;;  %v16336_v15 = vpop.f32.mrf.mxu0  ;;  %v7074_v48 = vadd.f32 %v17134_v57, %v6892_v63  ;;  %v16379_v46 = vadd.f32 %v17138_v52, %v6893_v4  ;;  %v17144_v63 = vld [vmem:[#allocation55_spill] sm:$0xff]  ;;  %v17146_v9 = vld [vmem:[#allocation57_spill] sm:$0xff] }
 0x4c1   : >> { %v7067_v47 = vadd.f32 %v16278_v2, %v6885_v1  ;;  %v17131_v2 = vld [vmem:[#allocation48_spill] sm:$0xff]  ;;  %v7333_v42 = vadd.f32 %v7272_v50, %v7063_v30  ;;  %v7340_v1 = vadd.f32 %v7301_v24, %v7070_v54  ;;  %v7077_v50 = vadd.f32 %v17136_v22, %v6895_v17  ;;  %v17142_v24 = vld [vmem:[#allocation54_spill] sm:$0xff] }
 0x4c2   : >> { %v16345_v23 = vpop.f32.mrf.mxu1  ;;  %v16347_v18 = vpop.f32.mrf.mxu0  ;;  %v7608_v0 = vadd.f32 %v17131_v2, %v7334_v26  ;;  %v7612_v26 = vadd.f32 %v17140_v49, %v7338_v11  ;;  %v7613_v30 = vadd.f32 %v17142_v24, %v7339_v37  ;;  %v16392_v54 = vadd.f32 %v17145_v34, %v7342_v25  ;;  %v17147_v59 = vld [vmem:[#allocation58_spill] sm:$0xff]  ;;  %v8146_v37 = vld [vmem:[%s16386_s21] sm:$0xff] }
 0x4c3   : >> { %v7337_v3 = vadd.f32 %v7288_v39, %v7067_v47  ;;  %v7607_v13 = vadd.f32 %v17139_v41, %v7333_v42  ;;  %v7610_v39 = vadd.f32 %v17141_v44, %v7336_v29  ;;  %v16398_v17 = vadd.f32 %v17147_v59, %v7343_v20 }
 0x4c4   : >> { %v16355_v27 = vpop.f32.mrf.mxu1  ;;  %v16357_v58 = vpop.f32.mrf.mxu0  ;;  %v7341_v42 = vadd.f32 %v16325_v51, %v7071_v61  ;;  %v7346_v11 = vadd.f32 %v16334_v55, %v7076_v32  ;;  %v7344_v29 = vadd.f32 %v16345_v23, %v7074_v48  ;;  %v8149_v48 = vld [vmem:[%s16386_s21 + $0x18] sm:$0xff] }
 0x4c5   : >> { %v7611_v31 = vadd.f32 %v17144_v63, %v7337_v3 }
 0x4c6   : >> { %v16366_v28 = vpop.f32.mrf.mxu1  ;;  %v12676_v8 = vpop.f32.mrf.mxu0  ;;  %v16427_v63 = vadd.f32 %v16336_v15, %v7344_v29 }
 0x4c8   : >> { %v12658_v14 = vpop.f32.mrf.mxu1  ;;  %v7995_v16 = vpop.f32.mrf.mxu0 }
 0x4c9   : >> { %v7790_v36 = vadd.f32 %v12658_v14, %v7608_v0 }
 0x4ca   : >> { %v7725_v35 = vpop.f32.mrf.mxu1  ;;  %v12677_v6 = vpop.f32.mrf.mxu0 }
 0x4cb   : >> { %v8060_v53 = vadd.f32 %v12676_v8, %v7790_v36  ;;  %v7788_v38 = vadd.f32 %v7725_v35, %v7606_v60  ;;  %v16395_v8 = vadd.f32 %v17146_v9, %v7340_v1 }
 0x4cc   : >> { %v12659_v12 = vpop.f32.mrf.mxu1  ;;  %v7998_v40 = vpop.f32.mrf.mxu0 }
 0x4cd   : >> { %v8082_v7 = vadd.f32 %v17143_v10, %v8060_v53  ;;  %v8058_v56 = vadd.f32 %v7995_v16, %v7788_v38  ;;  %v7791_v47 = vadd.f32 %v12659_v12, %v7609_v19  ;;  %v7347_v38 = vadd.f32 %v16355_v27, %v7077_v50 }
 0x4ce   : >> { %v7728_v2 = vpop.f32.mrf.mxu1  ;;  %v12680_v0 = vpop.f32.mrf.mxu0 }
 0x4cf   : >> { %vm8098_vm10 = vcmp.ge.f32.partialorder %v8082_v7, 0.0  ;;  %v8114_v62 = vmul.f32 0.01, %v8082_v7  ;;  %v8080_v43 = vadd.f32 %v17143_v10, %v8058_v56  ;;  %v8061_v4 = vadd.f32 %v12677_v6, %v7791_v47  ;;  %v17148_v56 = vld [vmem:[#allocation59_spill] sm:$0xff] }
 0x4d0   : >> { %v7789_v14 = vadd.f32 %v7728_v2, %v7607_v13  ;;  %v12662_v16 = vpop.f32.mrf.mxu1  ;;  %v8011_v57 = vpop.f32.mrf.mxu0  ;;  %v7620_v47 = vadd.f32 %v17148_v56, %v7346_v11  ;;  %v16437_v11 = vadd.f32 %v16347_v18, %v7347_v38 }
 0x4d1   : >> { %v8130_v45 = vsel %vm8098_vm10, %v8082_v7, %v8114_v62  ;;  %vm8096_vm11 = vcmp.ge.f32.partialorder %v8080_v43, 0.0  ;;  %v8112_v60 = vmul.f32 0.01, %v8080_v43  ;;  %v8083_v36 = vadd.f32 %v17143_v10, %v8061_v4  ;;  %v8152_v62 = vld [vmem:[%s16386_s21 + $0x30] sm:$0xff] }
 0x4d2   : >> { %v8164_v3 = vadd.f32 %v8148_v33, %v8130_v45  ;;  %v11860_v25 = vpack.c.bf16 %v8130_v45, %v8130_v45  ;;  %v8059_v1 = vadd.f32 %v7998_v40, %v7789_v14  ;;  %v7794_v51 = vadd.f32 %v12662_v16, %v7612_v26  ;;  %v7741_v61 = vpop.f32.mrf.mxu1  ;;  %v12681_v55 = vpop.f32.mrf.mxu0  ;;  %v8150_v33 = vld [vmem:[%s16386_s21 + $0x20] sm:$0xff] }
 0x4d3   : >> { %v8128_v32 = vsel %vm8096_vm11, %v8080_v43, %v8112_v60  ;;  %vm8099_vm12 = vcmp.ge.f32.partialorder %v8083_v36, 0.0  ;;  %v8115_v23 = vmul.f32 0.01, %v8083_v36  ;;  %v7792_v20 = vadd.f32 %v7741_v61, %v7610_v39  ;;  %v8147_v39 = vld [vmem:[%s16386_s21 + $0x8] sm:$0xff] }
 0x4d4   : >> { %8180 = vst.msk [vmem:[%s16386_s21 + $0x10] sm:$0xff] %vm640_vm2, %v8164_v3  ;;  %v8162_v35 = vadd.f32 %v8146_v37, %v8128_v32  ;;  %v11858_v6 = vpack.c.bf16 %v8128_v32, %v8128_v32  ;;  %v8081_v22 = vadd.f32 %v17143_v10, %v8059_v1  ;;  %v8064_v5 = vadd.f32 %v12680_v0, %v7794_v51  ;;  %v12663_v19 = vpop.f32.mrf.mxu1  ;;  %v8014_v53 = vpop.f32.mrf.mxu0  ;;  %v8153_v1 = vld [vmem:[%s16386_s21 + $0x38] sm:$0xff] }
 0x4d5   : >> { %11503 = vst.msk [vmem:[%s16411_s22 + $0x94] sm:$0xf] %vm172_vm0, %v11860_v25  ;;  %v8131_v52 = vsel %vm8099_vm12, %v8083_v36, %v8115_v23  ;;  %v8062_v41 = vadd.f32 %v8011_v57, %v7792_v20  ;;  %v7795_v13 = vadd.f32 %v12663_v19, %v7613_v30  ;;  %v7615_v7 = vadd.f32 %v16322_v21, %v7341_v42 }
 0x4d6   : >> { %8178 = vst.msk [vmem:[%s16386_s21] sm:$0xff] %vm640_vm2, %v8162_v35  ;;  %v8165_v49 = vadd.f32 %v8149_v48, %v8131_v52  ;;  %v11861_v26 = vpack.c.bf16 %v8131_v52, %v8131_v52  ;;  %vm8097_vm13 = vcmp.ge.f32.partialorder %v8081_v22, 0.0  ;;  %v8113_v44 = vmul.f32 0.01, %v8081_v22  ;;  %v7744_v12 = vpop.f32.mrf.mxu1  ;;  %v12684_v40 = vpop.f32.mrf.mxu0 }
 0x4d7   : >> { %11501 = vst.msk [vmem:[%s16411_s22 + $0x84] sm:$0xf] %vm172_vm0, %v11858_v6  ;;  %v8086_v24 = vadd.f32 %v17143_v10, %v8064_v5  ;;  %v8084_v27 = vadd.f32 %v17143_v10, %v8062_v41  ;;  %v8065_v50 = vadd.f32 %v12681_v55, %v7795_v13  ;;  %v7793_v30 = vadd.f32 %v7744_v12, %v7611_v31 }
 0x4d8   : >> { %8181 = vst.msk [vmem:[%s16386_s21 + $0x18] sm:$0xff] %vm640_vm2, %v8165_v49  ;;  %v8129_v34 = vsel %vm8097_vm13, %v8081_v22, %v8113_v44  ;;  %v12666_v9 = vpop.f32.mrf.mxu1  ;;  %v8027_v59 = vpop.f32.mrf.mxu0 }
 0x4d9   : >> { %11504 = vst.msk [vmem:[%s16411_s22 + $0x98] sm:$0xf] %vm172_vm0, %v11861_v26  ;;  %v8163_v2 = vadd.f32 %v8147_v39, %v8129_v34  ;;  %v11859_v0 = vpack.c.bf16 %v8129_v34, %v8129_v34  ;;  %vm8102_vm14 = vcmp.ge.f32.partialorder %v8086_v24, 0.0  ;;  %v8118_v31 = vmul.f32 0.01, %v8086_v24  ;;  %v8156_v26 = vld [vmem:[%s16386_s21 + $0x50] sm:$0xff] }
 0x4da   : >> { %vm8100_vm15 = vcmp.ge.f32.partialorder %v8084_v27, 0.0  ;;  %v8116_v21 = vmul.f32 0.01, %v8084_v27  ;;  %v8087_v15 = vadd.f32 %v17143_v10, %v8065_v50  ;;  %v8063_v43 = vadd.f32 %v8014_v53, %v7793_v30  ;;  %v7757_v4 = vpop.f32.mrf.mxu1  ;;  %v12685_v42 = vpop.f32.mrf.mxu0 }
 0x4db   : >> { %8179 = vst.msk [vmem:[%s16386_s21 + $0x8] sm:$0xff] %vm640_vm2, %v8163_v2  ;;  %v8134_v29 = vsel %vm8102_vm14, %v8086_v24, %v8118_v31  ;;  %v7798_v14 = vadd.f32 %v12666_v9, %v16392_v54  ;;  %v7796_v16 = vadd.f32 %v7757_v4, %v16395_v8  ;;  %v7345_v54 = vadd.f32 %v16366_v28, %v16379_v46  ;;  %v8151_v46 = vld [vmem:[%s16386_s21 + $0x28] sm:$0xff]  ;;  %v8157_v31 = vld [vmem:[%s16386_s21 + $0x58] sm:$0xff] }
 0x4dc   : >> { %11502 = vst.msk [vmem:[%s16411_s22 + $0x88] sm:$0xf] %vm172_vm0, %v11859_v0  ;;  %v8168_v57 = vadd.f32 %v8152_v62, %v8134_v29  ;;  %v11864_v45 = vpack.c.bf16 %v8134_v29, %v8134_v29  ;;  %v8132_v60 = vsel %vm8100_vm15, %v8084_v27, %v8116_v21  ;;  %vm8103_vm3 = vcmp.ge.f32.partialorder %v8087_v15, 0.0  ;;  %v12667_v37 = vpop.f32.mrf.mxu1  ;;  %v8030_v18 = vpop.f32.mrf.mxu0 }
 0x4dd   : >> { %v8166_v36 = vadd.f32 %v8150_v33, %v8132_v60  ;;  %v11862_v3 = vpack.c.bf16 %v8132_v60, %v8132_v60  ;;  %v8119_v25 = vmul.f32 0.01, %v8087_v15  ;;  %v8085_v51 = vadd.f32 %v17143_v10, %v8063_v43  ;;  %v8155_v33 = vld [vmem:[%s16386_s21 + $0x48] sm:$0xff] }
 0x4de   : >> { %8184 = vst.msk [vmem:[%s16386_s21 + $0x30] sm:$0xff] %vm640_vm2, %v8168_v57  ;;  %v8068_v8 = vadd.f32 %v12684_v40, %v7798_v14  ;;  %v8066_v61 = vadd.f32 %v8027_v59, %v7796_v16  ;;  %v7799_v55 = vadd.f32 %v12667_v37, %v16398_v17  ;;  %v7760_v32 = vpop.f32.mrf.mxu1  ;;  %v12688_v23 = vpop.f32.mrf.mxu0  ;;  %v8154_v40 = vld [vmem:[%s16386_s21 + $0x40] sm:$0xff]  ;;  %v7619_v50 = vadd.f32 %v16357_v58, %v7345_v54 }
 0x4df   : >> { %11507 = vst.msk [vmem:[%s16411_s22 + $0xb4] sm:$0xf] %vm172_vm0, %v11864_v45  ;;  %11505 = vst.msk [vmem:[%s16411_s22 + $0xa4] sm:$0xf] %vm172_vm0, %v11862_v3  ;;  %v8135_v48 = vsel %vm8103_vm3, %v8087_v15, %v8119_v25  ;;  %vm8101_vm4 = vcmp.ge.f32.partialorder %v8085_v51, 0.0  ;;  %v7797_v20 = vadd.f32 %v7760_v32, %v7615_v7  ;;  %v8158_v54 = vld [vmem:[%s16386_s21 + $0x60] sm:$0xff] }
 0x4e0   : >> { %8182 = vst.msk [vmem:[%s16386_s21 + $0x20] sm:$0xff] %vm640_vm2, %v8166_v36  ;;  %v8117_v28 = vmul.f32 0.01, %v8085_v51  ;;  %v8169_v35 = vadd.f32 %v8153_v1, %v8135_v48  ;;  %v11865_v6 = vpack.c.bf16 %v8135_v48, %v8135_v48  ;;  %v8090_v22 = vadd.f32 %v17143_v10, %v8068_v8  ;;  %v12670_v5 = vpop.f32.mrf.mxu1  ;;  %v8043_v39 = vpop.f32.mrf.mxu0 }
 0x4e1   : >> { %v8088_v17 = vadd.f32 %v17143_v10, %v8066_v61  ;;  %v8069_v53 = vadd.f32 %v12685_v42, %v7799_v55  ;;  %v8067_v38 = vadd.f32 %v8030_v18, %v7797_v20  ;;  %v7802_v52 = vadd.f32 %v12670_v5, %v7620_v47  ;;  %v8161_v20 = vld [vmem:[%s16386_s21 + $0x78] sm:$0xff] }
 0x4e2   : >> { %v8133_v19 = vsel %vm8101_vm4, %v8085_v51, %v8117_v28  ;;  %8185 = vst.msk [vmem:[%s16386_s21 + $0x38] sm:$0xff] %vm640_vm2, %v8169_v35  ;;  %vm8106_vm5 = vcmp.ge.f32.partialorder %v8090_v22, 0.0  ;;  %v8122_v49 = vmul.f32 0.01, %v8090_v22  ;;  %v7773_v44 = vpop.f32.mrf.mxu1  ;;  %v12689_v62 = vpop.f32.mrf.mxu0 }
 0x4e3   : >> { %11508 = vst.msk [vmem:[%s16411_s22 + $0xb8] sm:$0xf] %vm172_vm0, %v11865_v6  ;;  %v8167_v41 = vadd.f32 %v8151_v46, %v8133_v19  ;;  %v11863_v13 = vpack.c.bf16 %v8133_v19, %v8133_v19  ;;  %vm8104_vm6 = vcmp.ge.f32.partialorder %v8088_v17, 0.0  ;;  %v8120_v12 = vmul.f32 0.01, %v8088_v17  ;;  %v8159_v6 = vld [vmem:[%s16386_s21 + $0x68] sm:$0xff] }
 0x4e4   : >> { %v8091_v24 = vadd.f32 %v17143_v10, %v8069_v53  ;;  %v8089_v27 = vadd.f32 %v17143_v10, %v8067_v38  ;;  %v8138_v30 = vsel %vm8106_vm5, %v8090_v22, %v8122_v49  ;;  %v8072_v7 = vadd.f32 %v12688_v23, %v7802_v52  ;;  %v12671_v47 = vpop.f32.mrf.mxu1  ;;  %v8046_v36 = vpop.f32.mrf.mxu0  ;;  %v16527_v52 = vld [vmem:[%s17015_s2 + $0x3] ss:$0 sm:$0xff] (%p5918_p6) }
 0x4e5   : >> { %8183 = vst.msk [vmem:[%s16386_s21 + $0x28] sm:$0xff] %vm640_vm2, %v8167_v41  ;;  %v7800_v56 = vadd.f32 %v7773_v44, %v16427_v63  ;;  %v8172_v34 = vadd.f32 %v8156_v26, %v8138_v30  ;;  %v11868_v9 = vpack.c.bf16 %v8138_v30, %v8138_v30  ;;  %v8136_v59 = vsel %vm8104_vm6, %v8088_v17, %v8120_v12 }
 0x4e6   : >> { %11506 = vst.msk [vmem:[%s16411_s22 + $0xa8] sm:$0xf] %vm172_vm0, %v11863_v13  ;;  %vm8107_vm7 = vcmp.ge.f32.partialorder %v8091_v24, 0.0  ;;  %v8170_v2 = vadd.f32 %v8154_v40, %v8136_v59  ;;  %v11866_v58 = vpack.c.bf16 %v8136_v59, %v8136_v59  ;;  %v8123_v0 = vmul.f32 0.01, %v8091_v24  ;;  %v7776_v21 = vpop.f32.mrf.mxu1  ;;  %17149 = vst [vmem:[#allocation60_spill] sm:$0xff] (%p5918_p6), %v16527_v52 }
 0x4e7   : >> { %vm8105_vm8 = vcmp.ge.f32.partialorder %v8089_v27, 0.0  ;;  %8188 = vst.msk [vmem:[%s16386_s21 + $0x50] sm:$0xff] %vm640_vm2, %v8172_v34  ;;  %v8121_v63 = vmul.f32 0.01, %v8089_v27  ;;  %v8094_v15 = vadd.f32 %v17143_v10, %v8072_v7  ;;  %v8070_v43 = vadd.f32 %v8043_v39, %v7800_v56 }
 0x4e8   : >> { %11511 = vst.msk [vmem:[%s16411_s22 + $0xd4] sm:$0xf] %vm172_vm0, %v11868_v9  ;;  %v7803_v4 = vadd.f32 %v12671_v47, %v16437_v11  ;;  %11509 = vst.msk [vmem:[%s16411_s22 + $0xc4] sm:$0xf] %vm172_vm0, %v11866_v58  ;;  %v8139_v42 = vsel %vm8107_vm7, %v8091_v24, %v8123_v0  ;;  %v7801_v29 = vadd.f32 %v7776_v21, %v7619_v50  ;;  %v8160_v11 = vld [vmem:[%s16386_s21 + $0x70] sm:$0xff] }
 0x4e9   : >> { %8186 = vst.msk [vmem:[%s16386_s21 + $0x40] sm:$0xff] %vm640_vm2, %v8170_v2  ;;  %v8173_v14 = vadd.f32 %v8157_v31, %v8139_v42  ;;  %v11869_v16 = vpack.c.bf16 %v8139_v42, %v8139_v42  ;;  %v8137_v57 = vsel %vm8105_vm8, %v8089_v27, %v8121_v63  ;;  %vm8110_vm9 = vcmp.ge.f32.partialorder %v8094_v15, 0.0 }
 0x4ea   : >> { %v8171_v45 = vadd.f32 %v8155_v33, %v8137_v57  ;;  %v11867_v60 = vpack.c.bf16 %v8137_v57, %v8137_v57  ;;  %v8126_v37 = vmul.f32 0.01, %v8094_v15  ;;  %v8092_v18 = vadd.f32 %v17143_v10, %v8070_v43 }
 0x4eb   : >> { %8189 = vst.msk [vmem:[%s16386_s21 + $0x58] sm:$0xff] %vm640_vm2, %v8173_v14  ;;  %v8073_v3 = vadd.f32 %v12689_v62, %v7803_v4  ;;  %v8071_v25 = vadd.f32 %v8046_v36, %v7801_v29 }
 0x4ec   : >> { %11512 = vst.msk [vmem:[%s16411_s22 + $0xd8] sm:$0xf] %vm172_vm0, %v11869_v16  ;;  %11510 = vst.msk [vmem:[%s16411_s22 + $0xc8] sm:$0xf] %vm172_vm0, %v11867_v60  ;;  %v8142_v1 = vsel %vm8110_vm9, %v8094_v15, %v8126_v37  ;;  %vm8108_vm10 = vcmp.ge.f32.partialorder %v8092_v18, 0.0 }
 0x4ed   : >> { %8187 = vst.msk [vmem:[%s16386_s21 + $0x48] sm:$0xff] %vm640_vm2, %v8171_v45  ;;  %v8124_v51 = vmul.f32 0.01, %v8092_v18  ;;  %v8176_v8 = vadd.f32 %v8160_v11, %v8142_v1  ;;  %v11872_v61 = vpack.c.bf16 %v8142_v1, %v8142_v1  ;;  %v8095_v55 = vadd.f32 %v17143_v10, %v8073_v3 }
 0x4ee   : >> { %v8093_v32 = vadd.f32 %v17143_v10, %v8071_v25 }
 0x4ef   : >> { %v8140_v23 = vsel %vm8108_vm10, %v8092_v18, %v8124_v51  ;;  %8192 = vst.msk [vmem:[%s16386_s21 + $0x70] sm:$0xff] %vm640_vm2, %v8176_v8  ;;  %vm8111_vm11 = vcmp.ge.f32.partialorder %v8095_v55, 0.0  ;;  %v8127_v46 = vmul.f32 0.01, %v8095_v55 }
 0x4f0   : >> { %11515 = vst.msk [vmem:[%s16411_s22 + $0xf4] sm:$0xf] %vm172_vm0, %v11872_v61  ;;  %v8174_v48 = vadd.f32 %v8158_v54, %v8140_v23  ;;  %v11870_v28 = vpack.c.bf16 %v8140_v23, %v8140_v23  ;;  %vm8109_vm12 = vcmp.ge.f32.partialorder %v8093_v32, 0.0  ;;  %v8125_v35 = vmul.f32 0.01, %v8093_v32 }
 0x4f1   : >> { %v8143_v22 = vsel %vm8111_vm11, %v8095_v55, %v8127_v46 }
 0x4f2   : >> { %8190 = vst.msk [vmem:[%s16386_s21 + $0x60] sm:$0xff] %vm640_vm2, %v8174_v48  ;;  %v8177_v17 = vadd.f32 %v8161_v20, %v8143_v22  ;;  %v11873_v5 = vpack.c.bf16 %v8143_v22, %v8143_v22  ;;  %v8141_v19 = vsel %vm8109_vm12, %v8093_v32, %v8125_v35  ;;  %5920 = sbr.rel (!%p5918_p6) target bundleno = 908 (0x38c), region = 174 }
 0x4f3   : >> { %11513 = vst.msk [vmem:[%s16411_s22 + $0xe4] sm:$0xf] %vm172_vm0, %v11870_v28  ;;  %v8175_v53 = vadd.f32 %v8159_v6, %v8141_v19  ;;  %v11871_v38 = vpack.c.bf16 %v8141_v19, %v8141_v19 }
 0x4f4   : >> { %8193 = vst.msk [vmem:[%s16386_s21 + $0x78] sm:$0xff] %vm640_vm2, %v8177_v17 }
 0x4f5   : >> { %11516 = vst.msk [vmem:[%s16411_s22 + $0xf8] sm:$0xf] %vm172_vm0, %v11873_v5  ;;  %11514 = vst.msk [vmem:[%s16411_s22 + $0xe8] sm:$0xf] %vm172_vm0, %v11871_v38 }
 0x4f6   : >> { %8191 = vst.msk [vmem:[%s16386_s21 + $0x68] sm:$0xff] %vm640_vm2, %v8175_v53 }
 0x4f7 LB: >> { %v11522_v41 = vld [vmem:[%s17014_s1 + $0x38] sm:$0x3]  ;;  %v11521_v10 = vld [vmem:[%s17014_s1 + $0x36] sm:$0x3]  ;;  %v11555_v13 = vld [vmem:[%s17014_s1 + $0x3a] sm:$0x3]  ;;  %s13123_s29 = sphi %s16529_s29, %s8283_s29  }
 0x4f8   : >> { %12891 = vmatprep.subr.msk.bf16.mxu1 %vm665_vm1, %v11522_v41  ;;  %12890 = vmatprep.subr.msk.bf16.mxu0 %vm665_vm1, %v11522_v41  ;;  %v8383_v49 = vsel %vm665_vm1, %v11522_v41, 0  ;;  %s11876_s5 = sshll.u32 %s13123_s29, 7  ;;  %v8531_v27 = vsel %vm665_vm1, %v11521_v10, 0  ;;  %v8713_v7 = vsel %vm665_vm1, %v11555_v13, 0  ;;  %v11590_v59 = vld [vmem:[%s17014_s1 + $0x3c] sm:$0x3] }
 0x4f9   : >> { %12859 = vmatpush3.bf16.msra.mxu1 %v8383_v49  ;;  %12691 = vmatpush3.bf16.msra.mxu0 %v8383_v49  ;;  %s16551_s6 = scalar_lea.vmem [#allocation3], %s11876_s5  ;;  %v11623_v15 = vld [vmem:[%s17014_s1 + $0x3e] sm:$0x3]  ;;  %v8915_v3 = vsel %vm665_vm1, %v11590_v59, 0  ;;  %v11656_v1 = vld [vmem:[%s17014_s1 + $0x40] sm:$0x3]  ;;  %s16914_s21 = scalar_lea.vmem %s13561_s23, %s11876_s5 }
 0x4fa   : >> { %12892 = vmatprep.subr.msk.bf16.mxu1 %vm665_vm1, %v11521_v10  ;;  %12893 = vmatprep.subr.msk.bf16.mxu0 %vm665_vm1, %v11555_v13  ;;  %v9113_v18 = vsel %vm665_vm1, %v11623_v15, 0  ;;  %v11691_v51 = vld [vmem:[%s17014_s1 + $0x42] sm:$0x3]  ;;  %v9311_v49 = vsel %vm665_vm1, %v11656_v1, 0  ;;  %s8283_s29 = sadd.s32 1, %s13123_s29  }
 0x4fb   : >> { %v9513_v10 = vsel %vm665_vm1, %v11691_v51, 0  ;;  %p8280_p7 = scmp.ge.s32.totalorder %s8283_s29, 2  }
 0x4fc   : >> { %v8289_v26 = vld [vmem:[%s16551_s6 + $0x4] sm:$0xf]  ;;  %v8306_v44 = vld [vmem:[%s16551_s6 + $0x8] sm:$0xf]  ;;  %v8291_v50 = vld [vmem:[%s16551_s6 + $0x14] sm:$0xf] }
 0x4fd   : >> { %v11523_v39 = vcombine.low %v8289_v26, %v8306_v44  ;;  %v16556_v12 = vld [vmem:[%s16551_s6 + $0x44] sm:$0xf]  ;;  %v8310_v40 = vld [vmem:[%s16551_s6 + $0x48] sm:$0xf]  ;;  %v8307_v30 = vld [vmem:[%s16551_s6 + $0x18] sm:$0xf] }
 0x4fe   : >> { %v11527_v24 = vcombine.low %v16556_v12, %v8310_v40  ;;  %v11524_v56 = vcombine.low %v8291_v50, %v8307_v30  ;;  %v16566_v47 = vld [vmem:[%s16551_s6 + $0x54] sm:$0xf]  ;;  %v8311_v34 = vld [vmem:[%s16551_s6 + $0x58] sm:$0xf]  ;;  %v8293_v9 = vld [vmem:[%s16551_s6 + $0x24] sm:$0xf] }
 0x4ff   : >> { %12692 = vmatprep.mubr.msk.bf16.mxu0 %vm640_vm2, %v11523_v39  ;;  %v11528_v2 = vcombine.low %v16566_v47, %v8311_v34  ;;  %v8308_v58 = vld [vmem:[%s16551_s6 + $0x28] sm:$0xf]  ;;  %v16577_v0 = vld [vmem:[%s16551_s6 + $0x64] sm:$0xf]  ;;  %v8295_v63 = vld [vmem:[%s16551_s6 + $0x34] sm:$0xf] }
 0x500   : >> { %12700 = vmatprep.mubr.msk.bf16.mxu1 %vm640_vm2, %v11527_v24  ;;  %v8312_v31 = vld [vmem:[%s16551_s6 + $0x68] sm:$0xf]  ;;  %12693 = vmatmul.mubr.msk.bf16.vlgmr.msra.gmra.mxu0 %vm640_vm2, %v11524_v56  ;;  %v11525_v62 = vcombine.low %v8293_v9, %v8308_v58  ;;  %v8309_v33 = vld [vmem:[%s16551_s6 + $0x38] sm:$0xf]  ;;  %v8303_v43 = vld [vmem:[%s16551_s6 + $0x74] sm:$0xf] }
 0x501   : >> { %v11529_v21 = vcombine.low %v16577_v0, %v8312_v31  ;;  %12701 = vmatmul.mubr.msk.bf16.vlgmr.msra.gmra.mxu1 %vm640_vm2, %v11528_v2  ;;  %12727 = vmatpush3.bf16.msra.mxu0 %v8713_v7  ;;  %v8313_v4 = vld [vmem:[%s16551_s6 + $0x78] sm:$0xf]  ;;  %v8288_v42 = vld [vmem:[%s16551_s6] sm:$0xf]  ;;  %v11526_v29 = vcombine.low %v8295_v63, %v8309_v33  ;;  %v13024_v16 = vld [vmem:[%s16551_s6 + $0x8] sm:$0xff]  }
 0x502   : >> { %12709 = vmatpush3.bf16.msra.mxu1 %v8531_v27  ;;  %12696 = vmatprep.mubr.msk.bf16.mxu0 %vm640_vm2, %v11525_v62  ;;  %v11530_v14 = vcombine.low %v8303_v43, %v8313_v4  ;;  %v11539_v57 = vcombine.low %v8288_v42, %v8289_v26  ;;  %v8290_v45 = vld [vmem:[%s16551_s6 + $0x10] sm:$0xf]  ;;  %v8292_v60 = vld [vmem:[%s16551_s6 + $0x20] sm:$0xf]  ;;  %v13025_v37 = vld [vmem:[%s16551_s6 + $0x18] sm:$0xff]  }
 0x503   : >> { %12704 = vmatprep.mubr.msk.bf16.mxu1 %vm640_vm2, %v11529_v21  ;;  %12894 = vmatprep.subr.msk.bf16.mxu1 %vm665_vm1, %v11590_v59  ;;  %v11540_v11 = vcombine.low %v8290_v45, %v8291_v50  ;;  %v11541_v36 = vcombine.low %v8292_v60, %v8293_v9  ;;  %v13027_v25 = vld [vmem:[%s16551_s6 + $0x28] sm:$0xff]   ;;  %v8294_v54 = vld [vmem:[%s16551_s6 + $0x30] sm:$0xf]  ;;  %v8296_v8 = vld [vmem:[%s16551_s6 + $0x40] sm:$0xf] }
 0x504   : >> { %12895 = vmatprep.subr.msk.bf16.mxu0 %vm665_vm1, %v11623_v15  ;;  %v13029_v61 = vld [vmem:[%s16551_s6 + $0x38] sm:$0xff]   ;;  %v11542_v55 = vcombine.low %v8294_v54, %v8295_v63  ;;  %v13030_v32 = vld [vmem:[%s16551_s6 + $0x48] sm:$0xff]   ;;  %v11543_v23 = vcombine.low %v8296_v8, %v16556_v12  ;;  %v8298_v48 = vld [vmem:[%s16551_s6 + $0x50] sm:$0xf] }
 0x505   : >> { %v8300_v28 = vld [vmem:[%s16551_s6 + $0x60] sm:$0xf]  ;;  %v13032_v46 = vld [vmem:[%s16551_s6 + $0x58] sm:$0xff]   ;;  %v11544_v20 = vcombine.low %v8298_v48, %v16566_v47  ;;  %v13034_v35 = vld [vmem:[%s16551_s6 + $0x68] sm:$0xff]  }
 0x506   : >> { %v11545_v6 = vcombine.low %v8300_v28, %v16577_v0  ;;  %v8302_v22 = vld [vmem:[%s16551_s6 + $0x70] sm:$0xf]  ;;  %v13036_v17 = vld [vmem:[%s16551_s6 + $0x78] sm:$0xff]   ;;  %v13038_v19 = vld [vmem:[%s16551_s6 + $0x84] sm:$0xff]  }
 0x507   : >> { %v11546_v5 = vcombine.low %v8302_v22, %v8303_v43  ;;  %v13037_v53 = vld [vmem:[%s16551_s6 + $0x80] sm:$0xff]   ;;  %v13040_v38 = vld [vmem:[%s16551_s6 + $0x94] sm:$0xff]   ;;  %v13053_v59 = vld [vmem:[%s16551_s6 + $0x88] sm:$0xff]  }
 0x508   : >> { %12697 = vmatmul.mubr.msk.bf16.gmra.mxu0 %vm640_vm2, %v11526_v29  ;;  %v13039_v41 = vld [vmem:[%s16551_s6 + $0x90] sm:$0xff]   ;;  %v13041_v13 = vld [vmem:[%s16551_s6 + $0xa0] sm:$0xff]   ;;  %v13055_v58 = vld [vmem:[%s16551_s6 + $0x98] sm:$0xff]  }
 0x509   : >> { %12705 = vmatmul.mubr.msk.bf16.gmra.mxu1 %vm640_vm2, %v11530_v14  ;;  %12728 = vmatprep.mubr.msk.bf16.mxu0 %vm640_vm2, %v13024_v16  ;;  %v13042_v26 = vld [vmem:[%s16551_s6 + $0xa4] sm:$0xff]   ;;  %v13043_v12 = vld [vmem:[%s16551_s6 + $0xb0] sm:$0xff]   ;;  %v13059_v33 = vld [vmem:[%s16551_s6 + $0xb8] sm:$0xff]  }
 0x50a   : >> { %12710 = vmatprep.mubr.msk.bf16.mxu1 %vm640_vm2, %v11539_v57  ;;  %v11724_v44 = vld [vmem:[%s17014_s1 + $0x44] sm:$0x3]  ;;  %v11757_v39 = vld [vmem:[%s17014_s1 + $0x46] sm:$0x3]  ;;  %v13044_v40 = vld [vmem:[%s16551_s6 + $0xb4] sm:$0xff]  }
 0x50b   : >> { %v13046_v24 = vld [vmem:[%s16551_s6 + $0xc4] sm:$0xff]   ;;  %v13048_v50 = vld [vmem:[%s16551_s6 + $0xd4] sm:$0xff]   ;;  %v9909_v0 = vsel %vm665_vm1, %v11757_v39, 0  ;;  %v9711_v62 = vsel %vm665_vm1, %v11724_v44, 0 }
 0x50c   : >> { %v13045_v27 = vld [vmem:[%s16551_s6 + $0xc0] sm:$0xff]   ;;  %v13047_v30 = vld [vmem:[%s16551_s6 + $0xd0] sm:$0xff]   ;;  %v13057_v31 = vld [vmem:[%s16551_s6 + $0xa8] sm:$0xff]  }
 0x50d   : >> { %v13050_v7 = vld [vmem:[%s16551_s6 + $0xe4] sm:$0xff]   ;;  %v13052_v47 = vld [vmem:[%s16551_s6 + $0xf4] sm:$0xff]  }
 0x50e   : >> { %v13049_v56 = vld [vmem:[%s16551_s6 + $0xe0] sm:$0xff]   ;;  %v13051_v34 = vld [vmem:[%s16551_s6 + $0xf0] sm:$0xff]   ;;  %v13061_v43 = vld [vmem:[%s16551_s6 + $0xc8] sm:$0xff]  }
 0x50f   : >> { %v13054_v9 = vld [vmem:[%s16551_s6 + $0x100] sm:$0xff]   ;;  %v13056_v2 = vld [vmem:[%s16551_s6 + $0x110] sm:$0xff]   ;;  %v13063_v42 = vld [vmem:[%s16551_s6 + $0xd8] sm:$0xff]  }
 0x510   : >> { %12729 = vmatmul.mubr.msk.bf16.vlgmr.msra.gmra.mxu0 %vm640_vm2, %v13025_v37  ;;  %v13058_v21 = vld [vmem:[%s16551_s6 + $0x120] sm:$0xff]   ;;  %v13060_v63 = vld [vmem:[%s16551_s6 + $0x130] sm:$0xff]   ;;  %v13065_v14 = vld [vmem:[%s16551_s6 + $0xe8] sm:$0xff]  }
 0x511   : >> { %12711 = vmatmul.mubr.msk.bf16.vlgmr.msra.gmra.mxu1 %vm640_vm2, %v11540_v11  ;;  %12763 = vmatpush3.bf16.msra.mxu0 %v9113_v18  ;;  %v13062_v15 = vld [vmem:[%s16551_s6 + $0x140] sm:$0xff]   ;;  %v13064_v4 = vld [vmem:[%s16551_s6 + $0x150] sm:$0xff]   ;;  %v13067_v57 = vld [vmem:[%s16551_s6 + $0xf8] sm:$0xff]  }
 0x512   : >> { %12745 = vmatpush3.bf16.msra.mxu1 %v8915_v3  ;;  %12714 = vmatprep.mubr.msk.bf16.mxu1 %vm640_vm2, %v11541_v36  ;;  %v13066_v29 = vld [vmem:[%s16551_s6 + $0x160] sm:$0xff]   ;;  %v13068_v16 = vld [vmem:[%s16551_s6 + $0x170] sm:$0xff]   ;;  %v13070_v45 = vld [vmem:[%s16551_s6 + $0x108] sm:$0xff]  }
 0x513   : >> { %12732 = vmatprep.mubr.msk.bf16.mxu0 %vm640_vm2, %v13027_v25  ;;  %12896 = vmatprep.subr.msk.bf16.mxu1 %vm665_vm1, %v11656_v1  ;;  %v13069_v60 = vld [vmem:[%s16551_s6 + $0x104] sm:$0xff]   ;;  %v13072_v37 = vld [vmem:[%s16551_s6 + $0x118] sm:$0xff]  }
 0x514   : >> { %12897 = vmatprep.subr.msk.bf16.mxu0 %vm665_vm1, %v11691_v51  ;;  %v13071_v11 = vld [vmem:[%s16551_s6 + $0x114] sm:$0xff]   ;;  %v13074_v18 = vld [vmem:[%s16551_s6 + $0x128] sm:$0xff]  }
 0x515   : >> { %v13073_v36 = vld [vmem:[%s16551_s6 + $0x124] sm:$0xff]   ;;  %v13076_v3 = vld [vmem:[%s16551_s6 + $0x138] sm:$0xff]  }
 0x516   : >> { %v13075_v25 = vld [vmem:[%s16551_s6 + $0x134] sm:$0xff]   ;;  %v13078_v1 = vld [vmem:[%s16551_s6 + $0x148] sm:$0xff]  }
 0x517   : >> { %v13077_v51 = vld [vmem:[%s16551_s6 + $0x144] sm:$0xff]   ;;  %v13080_v54 = vld [vmem:[%s16551_s6 + $0x158] sm:$0xff]  }
 0x518   : >> { %12733 = vmatmul.mubr.msk.bf16.gmra.mxu0 %vm640_vm2, %v13029_v61  ;;  %v13079_v8 = vld [vmem:[%s16551_s6 + $0x154] sm:$0xff]   ;;  %v13082_v61 = vld [vmem:[%s16551_s6 + $0x168] sm:$0xff]  }
 0x519   : >> { %12715 = vmatmul.mubr.msk.bf16.gmra.mxu1 %vm640_vm2, %v11542_v55  ;;  %12736 = vmatprep.mubr.msk.bf16.mxu0 %vm640_vm2, %v13030_v32  ;;  %v13081_v55 = vld [vmem:[%s16551_s6 + $0x164] sm:$0xff]   ;;  %v13084_v32 = vld [vmem:[%s16551_s6 + $0x178] sm:$0xff]  }
 0x51a   : >> { %12718 = vmatprep.mubr.msk.bf16.mxu1 %vm640_vm2, %v11543_v23  ;;  %v13083_v23 = vld [vmem:[%s16551_s6 + $0x174] sm:$0xff]  }
 0x520   : >> { %12737 = vmatmul.mubr.msk.bf16.gmra.mxu0 %vm640_vm2, %v13032_v46 }
 0x521   : >> { %12719 = vmatmul.mubr.msk.bf16.gmra.mxu1 %vm640_vm2, %v11544_v20  ;;  %12740 = vmatprep.mubr.msk.bf16.mxu0 %vm640_vm2, %v13034_v35 }
 0x522   : >> { %12722 = vmatprep.mubr.msk.bf16.mxu1 %vm640_vm2, %v11545_v6 }
 0x528   : >> { %12741 = vmatmul.mubr.msk.bf16.gmra.mxu0 %vm640_vm2, %v13036_v17 }
 0x529   : >> { %12723 = vmatmul.mubr.msk.bf16.gmra.mxu1 %vm640_vm2, %v11546_v5  ;;  %12764 = vmatprep.mubr.msk.bf16.mxu0 %vm640_vm2, %v13038_v19 }
 0x52a   : >> { %12746 = vmatprep.mubr.msk.bf16.mxu1 %vm640_vm2, %v13037_v53 }
 0x530   : >> { %12765 = vmatmul.mubr.msk.bf16.vlgmr.msra.gmra.mxu0 %vm640_vm2, %v13040_v38 }
 0x531   : >> { %12747 = vmatmul.mubr.msk.bf16.vlgmr.msra.gmra.mxu1 %vm640_vm2, %v13039_v41  ;;  %12799 = vmatpush3.bf16.msra.mxu0 %v9513_v10 }
 0x532   : >> { %12781 = vmatpush3.bf16.msra.mxu1 %v9311_v49  ;;  %12750 = vmatprep.mubr.msk.bf16.mxu1 %vm640_vm2, %v13041_v13 }
 0x533   : >> { %12768 = vmatprep.mubr.msk.bf16.mxu0 %vm640_vm2, %v13042_v26  ;;  %12898 = vmatprep.subr.msk.bf16.mxu1 %vm665_vm1, %v11724_v44 }
 0x534   : >> { %12899 = vmatprep.subr.msk.bf16.mxu0 %vm665_vm1, %v11757_v39 }
 0x538   : >> { %12769 = vmatmul.mubr.msk.bf16.gmra.mxu0 %vm640_vm2, %v13044_v40 }
 0x539   : >> { %12751 = vmatmul.mubr.msk.bf16.gmra.mxu1 %vm640_vm2, %v13043_v12  ;;  %12772 = vmatprep.mubr.msk.bf16.mxu0 %vm640_vm2, %v13046_v24 }
 0x53a   : >> { %12754 = vmatprep.mubr.msk.bf16.mxu1 %vm640_vm2, %v13045_v27 }
 0x540   : >> { %12773 = vmatmul.mubr.msk.bf16.gmra.mxu0 %vm640_vm2, %v13048_v50 }
 0x541   : >> { %12755 = vmatmul.mubr.msk.bf16.gmra.mxu1 %vm640_vm2, %v13047_v30  ;;  %12776 = vmatprep.mubr.msk.bf16.mxu0 %vm640_vm2, %v13050_v7 }
 0x542   : >> { %12758 = vmatprep.mubr.msk.bf16.mxu1 %vm640_vm2, %v13049_v56 }
 0x548   : >> { %12777 = vmatmul.mubr.msk.bf16.gmra.mxu0 %vm640_vm2, %v13052_v47 }
 0x549   : >> { %12759 = vmatmul.mubr.msk.bf16.gmra.mxu1 %vm640_vm2, %v13051_v34  ;;  %12800 = vmatprep.mubr.msk.bf16.mxu0 %vm640_vm2, %v13054_v9 }
 0x54a   : >> { %12782 = vmatprep.mubr.msk.bf16.mxu1 %vm640_vm2, %v13053_v59 }
 0x550   : >> { %12801 = vmatmul.mubr.msk.bf16.vlgmr.msra.gmra.mxu0 %vm640_vm2, %v13056_v2 }
 0x551   : >> { %12783 = vmatmul.mubr.msk.bf16.vlgmr.msra.gmra.mxu1 %vm640_vm2, %v13055_v58  ;;  %12835 = vmatpush3.bf16.msra.mxu0 %v9909_v0 }
 0x552   : >> { %12817 = vmatpush3.bf16.msra.mxu1 %v9711_v62  ;;  %12786 = vmatprep.mubr.msk.bf16.mxu1 %vm640_vm2, %v13057_v31 }
 0x553   : >> { %12804 = vmatprep.mubr.msk.bf16.mxu0 %vm640_vm2, %v13058_v21 }
 0x558   : >> { %12805 = vmatmul.mubr.msk.bf16.gmra.mxu0 %vm640_vm2, %v13060_v63 }
 0x559   : >> { %12787 = vmatmul.mubr.msk.bf16.gmra.mxu1 %vm640_vm2, %v13059_v33  ;;  %12808 = vmatprep.mubr.msk.bf16.mxu0 %vm640_vm2, %v13062_v15 }
 0x55a   : >> { %12790 = vmatprep.mubr.msk.bf16.mxu1 %vm640_vm2, %v13061_v43 }
 0x560   : >> { %12809 = vmatmul.mubr.msk.bf16.gmra.mxu0 %vm640_vm2, %v13064_v4 }
 0x561   : >> { %12791 = vmatmul.mubr.msk.bf16.gmra.mxu1 %vm640_vm2, %v13063_v42  ;;  %12812 = vmatprep.mubr.msk.bf16.mxu0 %vm640_vm2, %v13066_v29 }
 0x562   : >> { %12794 = vmatprep.mubr.msk.bf16.mxu1 %vm640_vm2, %v13065_v14 }
 0x568   : >> { %12813 = vmatmul.mubr.msk.bf16.gmra.mxu0 %vm640_vm2, %v13068_v16 }
 0x569   : >> { %12795 = vmatmul.mubr.msk.bf16.gmra.mxu1 %vm640_vm2, %v13067_v57  ;;  %12836 = vmatprep.mubr.msk.bf16.mxu0 %vm640_vm2, %v13070_v45 }
 0x56a   : >> { %12818 = vmatprep.mubr.msk.bf16.mxu1 %vm640_vm2, %v13069_v60 }
 0x570   : >> { %12837 = vmatmul.mubr.msk.bf16.vlgmr.msra.gmra.mxu0 %vm640_vm2, %v13072_v37 }
 0x571   : >> { %12819 = vmatmul.mubr.msk.bf16.vlgmr.msra.gmra.mxu1 %vm640_vm2, %v13071_v11  ;;  %12840 = vmatprep.mubr.msk.bf16.mxu0 %vm640_vm2, %v13074_v18 }
 0x572   : >> { %12822 = vmatprep.mubr.msk.bf16.mxu1 %vm640_vm2, %v13073_v36 }
 0x578   : >> { %12841 = vmatmul.mubr.msk.bf16.gmra.mxu0 %vm640_vm2, %v13076_v3 }
 0x579   : >> { %12823 = vmatmul.mubr.msk.bf16.gmra.mxu1 %vm640_vm2, %v13075_v25  ;;  %12844 = vmatprep.mubr.msk.bf16.mxu0 %vm640_vm2, %v13078_v1 }
 0x57a   : >> { %12826 = vmatprep.mubr.msk.bf16.mxu1 %vm640_vm2, %v13077_v51 }
 0x580   : >> { %12845 = vmatmul.mubr.msk.bf16.gmra.mxu0 %vm640_vm2, %v13080_v54 }
 0x581   : >> { %12827 = vmatmul.mubr.msk.bf16.gmra.mxu1 %vm640_vm2, %v13079_v8  ;;  %12848 = vmatprep.mubr.msk.bf16.mxu0 %vm640_vm2, %v13082_v61 }
 0x582   : >> { %12830 = vmatprep.mubr.msk.bf16.mxu1 %vm640_vm2, %v13081_v55 }
 0x588   : >> { %12849 = vmatmul.mubr.msk.bf16.gmra.mxu0 %vm640_vm2, %v13084_v32 }
 0x589   : >> { %12831 = vmatmul.mubr.msk.bf16.gmra.mxu1 %vm640_vm2, %v13083_v23 }
 0x5c0   : >> { %v12694_v48 = vpop.f32.mrf.mxu0 }
 0x5c1   : >> { %v12702_v28 = vpop.f32.mrf.mxu1 }
 0x5c2   : >> { %v8419_v46 = vpop.f32.mrf.mxu0 }
 0x5c3   : >> { %v8451_v20 = vpop.f32.mrf.mxu1 }
 0x5c4   : >> { %v12695_v35 = vpop.f32.mrf.mxu0 }
 0x5c5   : >> { %v12703_v6 = vpop.f32.mrf.mxu1 }
 0x5c6   : >> { %v8422_v22 = vpop.f32.mrf.mxu0 }
 0x5c7   : >> { %v8454_v17 = vpop.f32.mrf.mxu1 }
 0x5c8   : >> { %v12698_v5 = vpop.f32.mrf.mxu0 }
 0x5c9   : >> { %v12706_v19 = vpop.f32.mrf.mxu1 }
 0x5ca   : >> { %v8435_v53 = vpop.f32.mrf.mxu0 }
 0x5cb   : >> { %v8467_v38 = vpop.f32.mrf.mxu1 }
 0x5cc   : >> { %v12699_v41 = vpop.f32.mrf.mxu0 }
 0x5cd   : >> { %v12707_v10 = vpop.f32.mrf.mxu1 }
 0x5ce   : >> { %v8438_v13 = vpop.f32.mrf.mxu0 }
 0x5cf   : >> { %v16749_v49 = vpop.f32.mrf.mxu1 }
 0x5d0   : >> { %v12730_v26 = vpop.f32.mrf.mxu0 }
 0x5d1   : >> { %v12712_v44 = vpop.f32.mrf.mxu1 }
 0x5d2   : >> { %v8576_v39 = vadd.f32 %v12712_v44, %v12694_v48  ;;  %v8749_v12 = vpop.f32.mrf.mxu0 }
 0x5d3   : >> { %v8567_v40 = vpop.f32.mrf.mxu1 }
 0x5d4   : >> { %v16751_v24 = vadd.f32 %v12730_v26, %v8576_v39  ;;  %v8568_v27 = vadd.f32 %v8567_v40, %v8419_v46  ;;  %v12731_v50 = vpop.f32.mrf.mxu0 }
 0x5d5   : >> { %v12713_v30 = vpop.f32.mrf.mxu1 }
 0x5d6   : >> { %v16753_v7 = vadd.f32 %v8749_v12, %v8568_v27  ;;  %v8579_v56 = vadd.f32 %v12713_v30, %v12695_v35  ;;  %v8752_v47 = vpop.f32.mrf.mxu0 }
 0x5d7   : >> { %v8570_v34 = vpop.f32.mrf.mxu1 }
 0x5d8   : >> { %v16755_v9 = vadd.f32 %v12731_v50, %v8579_v56  ;;  %v8571_v59 = vadd.f32 %v8570_v34, %v8422_v22  ;;  %v12734_v2 = vpop.f32.mrf.mxu0 }
 0x5d9   : >> { %v12716_v58 = vpop.f32.mrf.mxu1 }
 0x5da   : >> { %v16757_v0 = vadd.f32 %v8752_v47, %v8571_v59  ;;  %v8592_v31 = vadd.f32 %v12716_v58, %v12698_v5  ;;  %v8765_v62 = vpop.f32.mrf.mxu0 }
 0x5db   : >> { %v8583_v21 = vpop.f32.mrf.mxu1 }
 0x5dc   : >> { %v16759_v63 = vadd.f32 %v12734_v2, %v8592_v31  ;;  %v8584_v33 = vadd.f32 %v8583_v21, %v8435_v53  ;;  %v12735_v15 = vpop.f32.mrf.mxu0 }
 0x5dd   : >> { %v12717_v43 = vpop.f32.mrf.mxu1 }
 0x5de   : >> { %v16761_v4 = vadd.f32 %v8765_v62, %v8584_v33  ;;  %v8595_v42 = vadd.f32 %v12717_v43, %v12699_v41  ;;  %v8768_v29 = vpop.f32.mrf.mxu0 }
 0x5df   : >> { %v8586_v14 = vpop.f32.mrf.mxu1 }
 0x5e0   : >> { %v16763_v16 = vadd.f32 %v12735_v15, %v8595_v42  ;;  %v8587_v57 = vadd.f32 %v8586_v14, %v8438_v13  ;;  %v12738_v45 = vpop.f32.mrf.mxu0 }
 0x5e1   : >> { %v12720_v60 = vpop.f32.mrf.mxu1 }
 0x5e2   : >> { %v16765_v37 = vadd.f32 %v8768_v29, %v8587_v57  ;;  %v8608_v11 = vadd.f32 %v12720_v60, %v12702_v28  ;;  %v8781_v18 = vpop.f32.mrf.mxu0 }
 0x5e3   : >> { %v8599_v36 = vpop.f32.mrf.mxu1 }
 0x5e4   : >> { %v16767_v3 = vadd.f32 %v12738_v45, %v8608_v11  ;;  %v8600_v25 = vadd.f32 %v8599_v36, %v8451_v20  ;;  %v12739_v1 = vpop.f32.mrf.mxu0 }
 0x5e5   : >> { %v12721_v51 = vpop.f32.mrf.mxu1 }
 0x5e6   : >> { %v16769_v54 = vadd.f32 %v8781_v18, %v8600_v25  ;;  %v8611_v8 = vadd.f32 %v12721_v51, %v12703_v6  ;;  %v8784_v61 = vpop.f32.mrf.mxu0 }
 0x5e7   : >> { %v8602_v55 = vpop.f32.mrf.mxu1 }
 0x5e8   : >> { %v16771_v32 = vadd.f32 %v12739_v1, %v8611_v8  ;;  %v8603_v23 = vadd.f32 %v8602_v55, %v8454_v17  ;;  %v12742_v48 = vpop.f32.mrf.mxu0 }
 0x5e9   : >> { %v12724_v46 = vpop.f32.mrf.mxu1 }
 0x5ea   : >> { %v16773_v35 = vadd.f32 %v8784_v61, %v8603_v23  ;;  %v8624_v28 = vadd.f32 %v12724_v46, %v12706_v19  ;;  %v8797_v22 = vpop.f32.mrf.mxu0 }
 0x5eb   : >> { %v8615_v5 = vpop.f32.mrf.mxu1 }
 0x5ec   : >> { %v16775_v53 = vadd.f32 %v12742_v48, %v8624_v28  ;;  %v8616_v20 = vadd.f32 %v8615_v5, %v8467_v38  ;;  %v12743_v41 = vpop.f32.mrf.mxu0 }
 0x5ed   : >> { %v12725_v13 = vpop.f32.mrf.mxu1 }
 0x5ee   : >> { %v16777_v26 = vadd.f32 %v8797_v22, %v8616_v20  ;;  %v8627_v6 = vadd.f32 %v12725_v13, %v12707_v10  ;;  %v8800_v44 = vpop.f32.mrf.mxu0 }
 0x5ef   : >> { %v8618_v39 = vpop.f32.mrf.mxu1 }
 0x5f0   : >> { %v16779_v12 = vadd.f32 %v12743_v41, %v8627_v6  ;;  %v8619_v17 = vadd.f32 %v8618_v39, %v16749_v49  ;;  %v12766_v40 = vpop.f32.mrf.mxu0 }
 0x5f1   : >> { %v12748_v27 = vpop.f32.mrf.mxu1 }
 0x5f2   : >> { %v16782_v50 = vadd.f32 %v8800_v44, %v8619_v17  ;;  %v16784_v19 = vpop.f32.mrf.mxu0 }
 0x5f3   : >> { %v8951_v30 = vpop.f32.mrf.mxu1 }
 0x5f4   : >> { %v16786_v56 = vpop.f32.mrf.mxu0 }
 0x5f5   : >> { %v12749_v38 = vpop.f32.mrf.mxu1 }
 0x5f6   : >> { %v16788_v47 = vpop.f32.mrf.mxu0 }
 0x5f7   : >> { %v8954_v34 = vpop.f32.mrf.mxu1 }
 0x5f8   : >> { %v16790_v10 = vpop.f32.mrf.mxu0 }
 0x5f9   : >> { %v12752_v59 = vpop.f32.mrf.mxu1 }
 0x5fa   : >> { %v16792_v2 = vpop.f32.mrf.mxu0 }
 0x5fb   : >> { %v8967_v58 = vpop.f32.mrf.mxu1 }
 0x5fc   : >> { %v16794_v49 = vpop.f32.mrf.mxu0 }
 0x5fd   : >> { %v12753_v31 = vpop.f32.mrf.mxu1 }
 0x5fe   : >> { %v16796_v62 = vpop.f32.mrf.mxu0 }
 0x5ff   : >> { %v8970_v21 = vpop.f32.mrf.mxu1 }
 0x600   : >> { %v16798_v33 = vpop.f32.mrf.mxu0 }
 0x601   : >> { %v12756_v15 = vpop.f32.mrf.mxu1 }
 0x602   : >> { %v16800_v43 = vpop.f32.mrf.mxu0 }
 0x603   : >> { %v8983_v42 = vpop.f32.mrf.mxu1 }
 0x604   : >> { %v16802_v29 = vpop.f32.mrf.mxu0 }
 0x605   : >> { %v12757_v14 = vpop.f32.mrf.mxu1 }
 0x606   : >> { %v16804_v57 = vpop.f32.mrf.mxu0 }
 0x607   : >> { %v8986_v45 = vpop.f32.mrf.mxu1 }
 0x608   : >> { %v16806_v60 = vpop.f32.mrf.mxu0 }
 0x609   : >> { %17150 = vst [vmem:[#allocation61_spill] sm:$0xff] %v16806_v60  ;;  %v12760_v11 = vpop.f32.mrf.mxu1 }
 0x60a   : >> { %v16808_v18 = vpop.f32.mrf.mxu0 }
 0x60b   : >> { %17151 = vst [vmem:[#allocation62_spill] sm:$0xff] %v16808_v18  ;;  %v16810_v36 = vpop.f32.mrf.mxu1 }
 0x60c   : >> { %v16812_v25 = vpop.f32.mrf.mxu0 }
 0x60d   : >> { %17152 = vst [vmem:[#allocation63_spill] sm:$0xff] %v16812_v25  ;;  %v16814_v1 = vpop.f32.mrf.mxu1 }
 0x60e   : >> { %v16816_v51 = vpop.f32.mrf.mxu0 }
 0x60f   : >> { %17153 = vst [vmem:[#allocation64_spill] sm:$0xff] %v16816_v51  ;;  %v16818_v8 = vpop.f32.mrf.mxu1 }
 0x610   : >> { %v12802_v61 = vpop.f32.mrf.mxu0 }
 0x611   : >> { %v12784_v55 = vpop.f32.mrf.mxu1 }
 0x612   : >> { %v16820_v23 = vpop.f32.mrf.mxu0 }
 0x613   : >> { %v9347_v48 = vpop.f32.mrf.mxu1 }
 0x614   : >> { %v16822_v46 = vpop.f32.mrf.mxu0 }
 0x615   : >> { %17154 = vst [vmem:[#allocation65_spill] sm:$0xff] %v16822_v46  ;;  %v12785_v28 = vpop.f32.mrf.mxu1 }
 0x616   : >> { %v16824_v22 = vpop.f32.mrf.mxu0 }
 0x617   : >> { %17155 = vst [vmem:[#allocation66_spill] sm:$0xff] %v16824_v22  ;;  %v9350_v5 = vpop.f32.mrf.mxu1 }
 0x618   : >> { %v16826_v20 = vpop.f32.mrf.mxu0 }
 0x619   : >> { %17156 = vst [vmem:[#allocation67_spill] sm:$0xff] %v16826_v20  ;;  %v12788_v41 = vpop.f32.mrf.mxu1 }
 0x61a   : >> { %v16828_v13 = vpop.f32.mrf.mxu0 }
 0x61b   : >> { %17157 = vst [vmem:[#allocation68_spill] sm:$0xff] %v16828_v13  ;;  %v9363_v6 = vpop.f32.mrf.mxu1  ;;  %v9016_v13 = vadd.f32 %v12748_v27, %v16751_v24  ;;  %v9018_v24 = vadd.f32 %v8967_v58, %v16761_v4  ;;  %v9021_v27 = vadd.f32 %v12753_v31, %v16763_v16 }
 0x61c   : >> { %v16830_v44 = vpop.f32.mrf.mxu0 }
 0x61d   : >> { %17158 = vst [vmem:[#allocation69_spill] sm:$0xff] %v16830_v44  ;;  %v12789_v39 = vpop.f32.mrf.mxu1  ;;  %v9219_v58 = vadd.f32 %v16794_v49, %v9021_v27 }
 0x61e   : >> { %v16832_v17 = vpop.f32.mrf.mxu0 }
 0x61f   : >> { %17159 = vst [vmem:[#allocation70_spill] sm:$0xff] %v16832_v17  ;;  %v16834_v52 = vpop.f32.mrf.mxu1  ;;  %v9014_v17 = vadd.f32 %v8951_v30, %v16753_v7 }
 0x620   : >> { %17160 = vst [vmem:[#allocation71_spill] sm:$0xff] %v16834_v52  ;;  %v16836_v51 = vpop.f32.mrf.mxu0 }
 0x621   : >> { %17161 = vst [vmem:[#allocation72_spill] sm:$0xff] %v16836_v51  ;;  %v16838_v25 = vpop.f32.mrf.mxu1  ;;  %v9212_v30 = vadd.f32 %v16784_v19, %v9014_v17  ;;  %v9216_v19 = vadd.f32 %v16792_v2, %v9018_v24  ;;  %v9029_v2 = vadd.f32 %v16814_v1, %v16779_v12  ;;  %v17169_v12 = vld [vmem:[#allocation65_spill] sm:$0xff] }
 0x622   : >> { %17162 = vst [vmem:[#allocation73_spill] sm:$0xff] %v16838_v25  ;;  %v16840_v18 = vpop.f32.mrf.mxu0  ;;  %v9214_v25 = vadd.f32 %v12766_v40, %v9016_v13  ;;  %v9024_v40 = vadd.f32 %v12756_v15, %v16767_v3 }
 0x623   : >> { %17163 = vst [vmem:[#allocation74_spill] sm:$0xff] %v16840_v18  ;;  %v16842_v22 = vpop.f32.mrf.mxu1  ;;  %v9017_v18 = vadd.f32 %v12749_v38, %v16755_v9  ;;  %v9025_v38 = vadd.f32 %v12757_v14, %v16771_v32 }
 0x624   : >> { %17164 = vst [vmem:[#allocation75_spill] sm:$0xff] %v16842_v22  ;;  %v16844_v20 = vpop.f32.mrf.mxu0  ;;  %v9015_v22 = vadd.f32 %v8954_v34, %v16757_v0  ;;  %v9412_v13 = vadd.f32 %v12784_v55, %v9214_v25  ;;  %v9022_v0 = vadd.f32 %v8983_v42, %v16769_v54  ;;  %v9410_v34 = vadd.f32 %v9347_v48, %v9212_v30 }
 0x625   : >> { %17165 = vst [vmem:[#allocation76_spill] sm:$0xff] %v16844_v20  ;;  %v16846_v46 = vpop.f32.mrf.mxu1  ;;  %v9215_v4 = vadd.f32 %v16786_v56, %v9017_v18  ;;  %v9222_v31 = vadd.f32 %v16798_v33, %v9024_v40  ;;  %v9028_v56 = vadd.f32 %v12760_v11, %v16775_v53  ;;  %v9223_v42 = vadd.f32 %v16802_v29, %v9025_v38  ;;  %v17176_v40 = vld [vmem:[#allocation66_spill] sm:$0xff] }
 0x626   : >> { %17166 = vst [vmem:[#allocation77_spill] sm:$0xff] %v16846_v46  ;;  %v16849_v44 = vpop.f32.mrf.mxu0  ;;  %v9020_v46 = vadd.f32 %v12752_v59, %v16759_v63  ;;  %v9213_v16 = vadd.f32 %v16788_v47, %v9015_v22  ;;  %v9614_v47 = vadd.f32 %v12802_v61, %v9412_v13  ;;  %v9220_v15 = vadd.f32 %v16800_v43, %v9022_v0  ;;  %v17177_v0 = vld [vmem:[#allocation67_spill] sm:$0xff] }
 0x627   : >> { %17167 = vst [vmem:[#allocation78_spill] sm:$0xff] %v16849_v44  ;;  %v16851_v60 = vpop.f32.mrf.mxu1  ;;  %v9019_v44 = vadd.f32 %v8970_v21, %v16765_v37  ;;  %v9023_v37 = vadd.f32 %v8986_v45, %v16773_v35  ;;  %v9413_v21 = vadd.f32 %v12785_v28, %v9215_v4  ;;  %v9027_v33 = vadd.f32 %v16818_v8, %v16782_v50  ;;  %v17170_v50 = vld [vmem:[#allocation62_spill] sm:$0xff]  ;;  %v17178_v4 = vld [vmem:[#allocation68_spill] sm:$0xff] }
 0x628   : >> { %v16854_v52 = vpop.f32.mrf.mxu0  ;;  %v9218_v3 = vadd.f32 %v16790_v10, %v9020_v46  ;;  %v9026_v10 = vadd.f32 %v16810_v36, %v16777_v26  ;;  %v9612_v53 = vadd.f32 %v16820_v23, %v9410_v34  ;;  %v9411_v45 = vadd.f32 %v9350_v5, %v9213_v16  ;;  %v17168_v36 = vld [vmem:[#allocation61_spill] sm:$0xff]  ;;  %v17171_v23 = vld [vmem:[#allocation63_spill] sm:$0xff] }
 0x629   : >> { %v16856_v51 = vpop.f32.mrf.mxu1  ;;  %v9217_v54 = vadd.f32 %v16796_v62, %v9019_v44  ;;  %v9221_v62 = vadd.f32 %v16804_v57, %v9023_v37  ;;  %v9414_v11 = vadd.f32 %v9363_v6, %v9216_v19  ;;  %v9417_v18 = vadd.f32 %v12789_v39, %v9219_v58  ;;  %v17172_v46 = vld [vmem:[#allocation71_spill] sm:$0xff]  ;;  %v17173_v22 = vld [vmem:[#allocation73_spill] sm:$0xff]  ;;  %v17174_v6 = vld [vmem:[#allocation64_spill] sm:$0xff] }
 0x62a   : >> { %v16860_v20 = vpop.f32.mrf.mxu0  ;;  %v9416_v29 = vadd.f32 %v12788_v41, %v9218_v3  ;;  %v16900_v25 = vadd.f32 %v17168_v36, %v9028_v56  ;;  %v9615_v1 = vadd.f32 %v17169_v12, %v9413_v21  ;;  %v16904_v8 = vadd.f32 %v17170_v50, %v9026_v10  ;;  %v17175_v39 = vld [vmem:[#allocation60_spill] sm:$0xff]  ;;  %v17179_v37 = vld [vmem:[#allocation69_spill] sm:$0xff] }
 0x62b   : >> { %v16866_v7 = vpop.f32.mrf.mxu1  ;;  %v16907_v48 = vadd.f32 %v17171_v23, %v9029_v2  ;;  %v9415_v28 = vadd.f32 %v17172_v46, %v9217_v54  ;;  %v9420_v5 = vadd.f32 %v17173_v22, %v9222_v31  ;;  %v16917_v44 = vadd.f32 %v17174_v6, %v9027_v33  ;;  %v10098_v58 = vld [vmem:[%s16914_s21 + $0x10] sm:$0xff]  ;;  %v17182_v2 = vld [vmem:[#allocation75_spill] sm:$0xff] }
 0x62c   : >> { %v16870_v9 = vpop.f32.mrf.mxu0  ;;  %v9613_v13 = vadd.f32 %v17176_v40, %v9411_v45  ;;  %v9618_v38 = vadd.f32 %v17177_v0, %v9416_v29  ;;  %v9616_v16 = vadd.f32 %v17178_v4, %v9414_v11  ;;  %v9619_v34 = vadd.f32 %v17179_v37, %v9417_v18  ;;  %v10096_v45 = vld [vmem:[%s16914_s21] sm:$0xff] }
 0x62d   : >> { %v16874_v63 = vpop.f32.mrf.mxu1  ;;  %v17183_v18 = vld [vmem:[#allocation77_spill] sm:$0xff]  ;;  %v9419_v46 = vadd.f32 %v16851_v60, %v9221_v62  ;;  %v10097_v62 = vld [vmem:[%s16914_s21 + $0x8] sm:$0xff] }
 0x62e   : >> { %v16879_v59 = vpop.f32.mrf.mxu0 }
 0x62f   : >> { %v16885_v32 = vpop.f32.mrf.mxu1 }
 0x630   : >> { %v12838_v35 = vpop.f32.mrf.mxu0 }
 0x631   : >> { %v12820_v49 = vpop.f32.mrf.mxu1 }
 0x632   : >> { %v9812_v14 = vadd.f32 %v12820_v49, %v9614_v47  ;;  %v9945_v43 = vpop.f32.mrf.mxu0  ;;  %v17180_v47 = vld [vmem:[#allocation70_spill] sm:$0xff]  ;;  %v9418_v49 = vadd.f32 %v17182_v2, %v9220_v15 }
 0x633   : >> { %v9747_v26 = vpop.f32.mrf.mxu1  ;;  %v9617_v21 = vadd.f32 %v17180_v47, %v9415_v28 }
 0x634   : >> { %v10010_v57 = vadd.f32 %v12838_v35, %v9812_v14  ;;  %v9810_v61 = vadd.f32 %v9747_v26, %v9612_v53  ;;  %v12839_v55 = vpop.f32.mrf.mxu0  ;;  %v17181_v35 = vld [vmem:[#allocation72_spill] sm:$0xff]  ;;  %v9421_v26 = vadd.f32 %v17183_v18, %v9223_v42 }
 0x635   : >> { %v12821_v41 = vpop.f32.mrf.mxu1  ;;  %v9622_v10 = vadd.f32 %v17181_v35, %v9420_v5 }
 0x636   : >> { %v10032_v17 = vadd.f32 %v17175_v39, %v10010_v57  ;;  %v10008_v24 = vadd.f32 %v9945_v43, %v9810_v61  ;;  %v9813_v27 = vadd.f32 %v12821_v41, %v9615_v1  ;;  %v9948_v30 = vpop.f32.mrf.mxu0  ;;  %v17184_v41 = vld [vmem:[#allocation74_spill] sm:$0xff] }
 0x637   : >> { %v9750_v3 = vpop.f32.mrf.mxu1  ;;  %v9620_v6 = vadd.f32 %v17184_v41, %v9418_v49  ;;  %v10100_v49 = vld [vmem:[%s16914_s21 + $0x20] sm:$0xff] }
 0x638   : >> { %vm10048_vm0 = vcmp.ge.f32.partialorder %v10032_v17, 0.0  ;;  %v10064_v19 = vmul.f32 0.01, %v10032_v17  ;;  %v10030_v54 = vadd.f32 %v17175_v39, %v10008_v24  ;;  %v10011_v31 = vadd.f32 %v12839_v55, %v9813_v27  ;;  %v12842_v56 = vpop.f32.mrf.mxu0  ;;  %v10099_v55 = vld [vmem:[%s16914_s21 + $0x18] sm:$0xff] }
 0x639   : >> { %v9811_v33 = vadd.f32 %v9750_v3, %v9613_v13  ;;  %v12824_v53 = vpop.f32.mrf.mxu1 }
 0x63a   : >> { %v10080_v14 = vsel %vm10048_vm0, %v10032_v17, %v10064_v19  ;;  %vm10046_vm13 = vcmp.ge.f32.partialorder %v10030_v54, 0.0  ;;  %v10062_v43 = vmul.f32 0.01, %v10030_v54  ;;  %v10033_v29 = vadd.f32 %v17175_v39, %v10011_v31  ;;  %v9961_v11 = vpop.f32.mrf.mxu0 }
 0x63b   : >> { %v10114_v36 = vadd.f32 %v10098_v58, %v10080_v14  ;;  %v10009_v12 = vadd.f32 %v9948_v30, %v9811_v33  ;;  %v9816_v1 = vadd.f32 %v12824_v53, %v9618_v38  ;;  %v9763_v57 = vpop.f32.mrf.mxu1  ;;  %v17185_v38 = vld [vmem:[#allocation76_spill] sm:$0xff] }
 0x63c   : >> { %v10078_v61 = vsel %vm10046_vm13, %v10030_v54, %v10062_v43  ;;  %vm10049_vm14 = vcmp.ge.f32.partialorder %v10033_v29, 0.0  ;;  %v10065_v15 = vmul.f32 0.01, %v10033_v29  ;;  %v9814_v50 = vadd.f32 %v9763_v57, %v9616_v16  ;;  %v12843_v23 = vpop.f32.mrf.mxu0 }
 0x63d   : >> { %10130 = vst.msk [vmem:[%s16914_s21 + $0x10] sm:$0xff] %vm640_vm2, %v10114_v36  ;;  %v10112_v28 = vadd.f32 %v10096_v45, %v10078_v61  ;;  %v10031_v22 = vadd.f32 %v17175_v39, %v10009_v12  ;;  %v10014_v42 = vadd.f32 %v12842_v56, %v9816_v1  ;;  %v12825_v5 = vpop.f32.mrf.mxu1  ;;  %v9623_v4 = vadd.f32 %v17185_v38, %v9421_v26  ;;  %v10102_v56 = vld [vmem:[%s16914_s21 + $0x30] sm:$0xff]  ;;  %v10103_v36 = vld [vmem:[%s16914_s21 + $0x38] sm:$0xff] }
 0x63e   : >> { %v10081_v17 = vsel %vm10049_vm14, %v10033_v29, %v10065_v15  ;;  %v10012_v24 = vadd.f32 %v9961_v11, %v9814_v50  ;;  %v9817_v27 = vadd.f32 %v12825_v5, %v9619_v34  ;;  %v9964_v30 = vpop.f32.mrf.mxu0  ;;  %v17186_v34 = vld [vmem:[#allocation78_spill] sm:$0xff]  ;;  %v9425_v15 = vadd.f32 %v16874_v63, %v16907_v48 }
 0x63f   : >> { %10128 = vst.msk [vmem:[%s16914_s21] sm:$0xff] %vm640_vm2, %v10112_v28  ;;  %v10115_v40 = vadd.f32 %v10099_v55, %v10081_v17  ;;  %vm10047_vm15 = vcmp.ge.f32.partialorder %v10031_v22, 0.0  ;;  %v10063_v60 = vmul.f32 0.01, %v10031_v22  ;;  %v10036_v13 = vadd.f32 %v17175_v39, %v10014_v42  ;;  %v9766_v0 = vpop.f32.mrf.mxu1 }
 0x640   : >> { %v10034_v16 = vadd.f32 %v17175_v39, %v10012_v24  ;;  %v10015_v37 = vadd.f32 %v12843_v23, %v9817_v27  ;;  %v9815_v3 = vadd.f32 %v9766_v0, %v9617_v21  ;;  %v12846_v19 = vpop.f32.mrf.mxu0  ;;  %v9621_v58 = vadd.f32 %v17186_v34, %v9419_v46  ;;  %v10106_v27 = vld [vmem:[%s16914_s21 + $0x50] sm:$0xff]  ;;  %v10107_v34 = vld [vmem:[%s16914_s21 + $0x58] sm:$0xff] }
 0x641   : >> { %10131 = vst.msk [vmem:[%s16914_s21 + $0x18] sm:$0xff] %vm640_vm2, %v10115_v40  ;;  %v10079_v54 = vsel %vm10047_vm15, %v10031_v22, %v10063_v60  ;;  %vm10052_vm3 = vcmp.ge.f32.partialorder %v10036_v13, 0.0  ;;  %v10068_v31 = vmul.f32 0.01, %v10036_v13  ;;  %v12828_v47 = vpop.f32.mrf.mxu1  ;;  %v9424_v21 = vadd.f32 %v16856_v51, %v16900_v25  ;;  %v10101_v22 = vld [vmem:[%s16914_s21 + $0x28] sm:$0xff] }
 0x642   : >> { %v10113_v35 = vadd.f32 %v10097_v62, %v10079_v54  ;;  %vm10050_vm4 = vcmp.ge.f32.partialorder %v10034_v16, 0.0  ;;  %v10066_v2 = vmul.f32 0.01, %v10034_v16  ;;  %v10037_v33 = vadd.f32 %v17175_v39, %v10015_v37  ;;  %v9977_v53 = vpop.f32.mrf.mxu0 }
 0x643   : >> { %v10084_v14 = vsel %vm10052_vm3, %v10036_v13, %v10068_v31  ;;  %v10013_v43 = vadd.f32 %v9964_v30, %v9815_v3  ;;  %v9820_v45 = vadd.f32 %v12828_v47, %v9622_v10  ;;  %v9779_v29 = vpop.f32.mrf.mxu1  ;;  %v9422_v10 = vadd.f32 %v16866_v7, %v16904_v8  ;;  %v10104_v3 = vld [vmem:[%s16914_s21 + $0x40] sm:$0xff] }
 0x644   : >> { %10129 = vst.msk [vmem:[%s16914_s21 + $0x8] sm:$0xff] %vm640_vm2, %v10113_v35  ;;  %v10118_v11 = vadd.f32 %v10102_v56, %v10084_v14  ;;  %v10082_v18 = vsel %vm10050_vm4, %v10034_v16, %v10066_v2  ;;  %vm10053_vm5 = vcmp.ge.f32.partialorder %v10037_v33, 0.0  ;;  %v10069_v26 = vmul.f32 0.01, %v10037_v33  ;;  %v12847_v12 = vpop.f32.mrf.mxu0 }
 0x645   : >> { %v10116_v1 = vadd.f32 %v10100_v49, %v10082_v18  ;;  %v10035_v57 = vadd.f32 %v17175_v39, %v10013_v43  ;;  %v10018_v61 = vadd.f32 %v12846_v19, %v9820_v45  ;;  %v9818_v51 = vadd.f32 %v9779_v29, %v9620_v6  ;;  %v12829_v25 = vpop.f32.mrf.mxu1 }
 0x646   : >> { %10134 = vst.msk [vmem:[%s16914_s21 + $0x30] sm:$0xff] %vm640_vm2, %v10118_v11  ;;  %v10085_v55 = vsel %vm10053_vm5, %v10037_v33, %v10069_v26  ;;  %v9821_v50 = vadd.f32 %v12829_v25, %v9623_v4  ;;  %v9980_v23 = vpop.f32.mrf.mxu0  ;;  %v9626_v7 = vadd.f32 %v16854_v52, %v9424_v21  ;;  %v9423_v6 = vadd.f32 %v16885_v32, %v16917_v44 }
 0x647   : >> { %10132 = vst.msk [vmem:[%s16914_s21 + $0x20] sm:$0xff] %vm640_vm2, %v10116_v1  ;;  %v10119_v46 = vadd.f32 %v10103_v36, %v10085_v55  ;;  %vm10051_vm6 = vcmp.ge.f32.partialorder %v10035_v57, 0.0  ;;  %v10067_v28 = vmul.f32 0.01, %v10035_v57  ;;  %v10040_v42 = vadd.f32 %v17175_v39, %v10018_v61  ;;  %v9782_v5 = vpop.f32.mrf.mxu1  ;;  %v10110_v36 = vld [vmem:[%s16914_s21 + $0x70] sm:$0xff] }
 0x648   : >> { %v10016_v8 = vadd.f32 %v9977_v53, %v9818_v51  ;;  %v10019_v63 = vadd.f32 %v12847_v12, %v9821_v50  ;;  %v9819_v48 = vadd.f32 %v9782_v5, %v9621_v58  ;;  %v12850_v41 = vpop.f32.mrf.mxu0  ;;  %v9624_v0 = vadd.f32 %v16860_v20, %v9422_v10  ;;  %v10105_v53 = vld [vmem:[%s16914_s21 + $0x48] sm:$0xff]  ;;  %v10108_v10 = vld [vmem:[%s16914_s21 + $0x60] sm:$0xff]  ;;  %v10111_v50 = vld [vmem:[%s16914_s21 + $0x78] sm:$0xff] }
 0x649   : >> { %10135 = vst.msk [vmem:[%s16914_s21 + $0x38] sm:$0xff] %vm640_vm2, %v10119_v46  ;;  %v10083_v17 = vsel %vm10051_vm6, %v10035_v57, %v10067_v28  ;;  %vm10056_vm7 = vcmp.ge.f32.partialorder %v10040_v42, 0.0  ;;  %v10072_v24 = vmul.f32 0.01, %v10040_v42  ;;  %v12832_v30 = vpop.f32.mrf.mxu1  ;;  %v9627_v32 = vadd.f32 %v16870_v9, %v9425_v15  ;;  %v10109_v5 = vld [vmem:[%s16914_s21 + $0x68] sm:$0xff] }
 0x64a   : >> { %v10117_v40 = vadd.f32 %v10101_v22, %v10083_v17  ;;  %v10038_v60 = vadd.f32 %v17175_v39, %v10016_v8  ;;  %v10041_v52 = vadd.f32 %v17175_v39, %v10019_v63  ;;  %v10017_v62 = vadd.f32 %v9980_v23, %v9819_v48  ;;  %v9993_v13 = vpop.f32.mrf.mxu0 }
 0x64b   : >> { %v10088_v44 = vsel %vm10056_vm7, %v10040_v42, %v10072_v24  ;;  %v9824_v38 = vadd.f32 %v12832_v30, %v9626_v7  ;;  %v9795_v4 = vpop.f32.mrf.mxu1  ;;  %v9625_v9 = vadd.f32 %v16879_v59, %v9423_v6 }
 0x64c   : >> { %10133 = vst.msk [vmem:[%s16914_s21 + $0x28] sm:$0xff] %vm640_vm2, %v10117_v40  ;;  %v10122_v16 = vadd.f32 %v10106_v27, %v10088_v44  ;;  %vm10054_vm8 = vcmp.ge.f32.partialorder %v10038_v60, 0.0  ;;  %v10070_v37 = vmul.f32 0.01, %v10038_v60  ;;  %vm10057_vm9 = vcmp.ge.f32.partialorder %v10041_v52, 0.0  ;;  %v12851_v35 = vpop.f32.mrf.mxu0 }
 0x64d   : >> { %v10073_v19 = vmul.f32 0.01, %v10041_v52  ;;  %v10039_v58 = vadd.f32 %v17175_v39, %v10017_v62  ;;  %v10022_v54 = vadd.f32 %v12850_v41, %v9824_v38  ;;  %v9822_v20 = vadd.f32 %v9795_v4, %v9624_v0  ;;  %v12833_v31 = vpop.f32.mrf.mxu1 }
 0x64e   : >> { %10138 = vst.msk [vmem:[%s16914_s21 + $0x50] sm:$0xff] %vm640_vm2, %v10122_v16  ;;  %v10086_v56 = vsel %vm10054_vm8, %v10038_v60, %v10070_v37  ;;  %v9825_v47 = vadd.f32 %v12833_v31, %v9627_v32  ;;  %v9996_v1 = vpop.f32.mrf.mxu0 }
 0x64f   : >> { %v10120_v2 = vadd.f32 %v10104_v3, %v10086_v56  ;;  %v10089_v49 = vsel %vm10057_vm9, %v10041_v52, %v10073_v19  ;;  %vm10055_vm10 = vcmp.ge.f32.partialorder %v10039_v58, 0.0  ;;  %v10071_v33 = vmul.f32 0.01, %v10039_v58  ;;  %v9798_v21 = vpop.f32.mrf.mxu1 }
 0x650   : >> { %v10123_v14 = vadd.f32 %v10107_v34, %v10089_v49  ;;  %v10044_v43 = vadd.f32 %v17175_v39, %v10022_v54  ;;  %v10020_v45 = vadd.f32 %v9993_v13, %v9822_v20  ;;  %v10023_v29 = vadd.f32 %v12851_v35, %v9825_v47 }
 0x651   : >> { %10136 = vst.msk [vmem:[%s16914_s21 + $0x40] sm:$0xff] %vm640_vm2, %v10120_v2  ;;  %v10087_v59 = vsel %vm10055_vm10, %v10039_v58, %v10071_v33  ;;  %v9823_v11 = vadd.f32 %v9798_v21, %v9625_v9 }
 0x652   : >> { %10139 = vst.msk [vmem:[%s16914_s21 + $0x58] sm:$0xff] %vm640_vm2, %v10123_v14  ;;  %v10121_v18 = vadd.f32 %v10105_v53, %v10087_v59  ;;  %vm10060_vm11 = vcmp.ge.f32.partialorder %v10044_v43, 0.0  ;;  %v10076_v26 = vmul.f32 0.01, %v10044_v43  ;;  %v10042_v12 = vadd.f32 %v17175_v39, %v10020_v45 }
 0x653   : >> { %v10045_v57 = vadd.f32 %v17175_v39, %v10023_v29  ;;  %v10021_v61 = vadd.f32 %v9996_v1, %v9823_v11 }
 0x654   : >> { %10137 = vst.msk [vmem:[%s16914_s21 + $0x48] sm:$0xff] %vm640_vm2, %v10121_v18  ;;  %v10092_v51 = vsel %vm10060_vm11, %v10044_v43, %v10076_v26  ;;  %vm10058_vm12 = vcmp.ge.f32.partialorder %v10042_v12, 0.0  ;;  %v10074_v25 = vmul.f32 0.01, %v10042_v12 }
 0x655   : >> { %v10126_v15 = vadd.f32 %v10110_v36, %v10092_v51  ;;  %vm10061_vm0 = vcmp.ge.f32.partialorder %v10045_v57, 0.0  ;;  %v10077_v55 = vmul.f32 0.01, %v10045_v57  ;;  %v10043_v23 = vadd.f32 %v17175_v39, %v10021_v61 }
 0x656   : >> { %v10090_v46 = vsel %vm10058_vm12, %v10042_v12, %v10074_v25 }
 0x657   : >> { %10142 = vst.msk [vmem:[%s16914_s21 + $0x70] sm:$0xff] %vm640_vm2, %v10126_v15  ;;  %v10124_v28 = vadd.f32 %v10108_v10, %v10090_v46  ;;  %v10093_v22 = vsel %vm10061_vm0, %v10045_v57, %v10077_v55  ;;  %vm10059_vm13 = vcmp.ge.f32.partialorder %v10043_v23, 0.0  ;;  %v10075_v42 = vmul.f32 0.01, %v10043_v23 }
 0x658   : >> { %v10127_v7 = vadd.f32 %v10111_v50, %v10093_v22  ;;  %8282 = sbr.rel (!%p8280_p7) target bundleno = 1271 (0x4f7), region = 185 }
 0x659   : >> { %10140 = vst.msk [vmem:[%s16914_s21 + $0x60] sm:$0xff] %vm640_vm2, %v10124_v28  ;;  %v10091_v8 = vsel %vm10059_vm13, %v10043_v23, %v10075_v42 }
 0x65a   : >> { %10143 = vst.msk [vmem:[%s16914_s21 + $0x78] sm:$0xff] %vm640_vm2, %v10127_v7  ;;  %v10125_v63 = vadd.f32 %v10109_v5, %v10091_v8 }
 0x65c   : >> { %10141 = vst.msk [vmem:[%s16914_s21 + $0x68] sm:$0xff] %vm640_vm2, %v10125_v63 }
 0x65d PF: > { %s13_s12 = sadd.s32 1, %s13107_s12  }
 0x65e   : > { %p10_p8 = scmp.ge.s32.totalorder %s13_s12, 4  }
 0x660   :  { %12 = sbr.rel (!%p10_p8) target bundleno = 1 (0x1), region = 196 }

</bundles_post_ra>
